<compile_context>
chip_gen: v7x
topology: tpu7x:2x2x1
jax: 0.10.0
libtpu: 0.0.40
codegen_flags: <defaults>
</compile_context>

<pallas_src>
import functools
import math

import jax
import jax.numpy as jnp
from jax.experimental import pallas as pl
from jax.experimental.pallas import tpu as pltpu

# ----------------------------------------------------------------------------------
# Scaled-down configuration (original cotr_args values shown in comments).
# ----------------------------------------------------------------------------------
HIDDEN = 32        # original: hidden_dim = 312
NHEADS = 8         # original: nheads = 8
FFN = 64           # original: dim_feedforward = 1024
ENC_LAYERS = 2     # original: enc_layers = 6
DEC_LAYERS = 2     # original: dec_layers = 6
BACKBONE_CH = 16   # stand-in for ResNet-50 layer3's 1024 channels
DOWNSAMPLE = 4     # stand-in for ResNet-50 layer3's stride-16 downsampling

assert FFN == 2 * HIDDEN, "packed slab layout assumes dim_feedforward == 2 * hidden"
assert HIDDEN % NHEADS == 0 and HIDDEN % 4 == 0


# ----------------------------------------------------------------------------------
# BlockSpec helpers
# ----------------------------------------------------------------------------------
def _batched_spec(shape):
    """Per-batch block: (B, ...) array -> block (1, ...) indexed by the grid axis."""
    rest = tuple(shape[1:])
    nd = len(rest)
    return pl.BlockSpec((1,) + rest, lambda b: (b,) + (0,) * nd)


def _shared_spec(shape):
    """Whole-array block broadcast across the batch grid (packed weights)."""
    shape = tuple(shape)
    nd = len(shape)
    return pl.BlockSpec(shape, lambda b: (0,) * nd)


# ----------------------------------------------------------------------------------
# In-kernel math helpers (operate on loaded fp32 arrays)
# ----------------------------------------------------------------------------------
def _layernorm(x, g, b, eps=1e-5):
    mu = jnp.mean(x, axis=-1, keepdims=True)
    xc = x - mu
    var = jnp.mean(xc * xc, axis=-1, keepdims=True)
    return xc * jax.lax.rsqrt(var + eps) * g + b


def _mha(q, k, v, wo, bo, nheads):
    """Multi-head softmax attention + output projection.

    q: (Lq, D) already scaled by 1/sqrt(head_dim) (baked into the weights at pack time),
    k/v: (Lk, D), wo: (D, D) un-reshaped concat-heads projection, bo: (1, D).
    Per-head scores use static lane slices; per-head PV results are lane-concatenated so
    the output projection is a single (Lq, D) @ (D, D) matmul.
    """
    D = q.shape[-1]
    hd = D // nheads
    outs = []
    for h in range(nheads):
        sl = slice(h * hd, (h + 1) * hd)
        s = jax.lax.dot_general(q[:, sl], k[:, sl], (((1,), (1,)), ((), ())),
                                preferred_element_type=jnp.float32)       # (Lq, Lk)
        s = s - jnp.max(s, axis=-1, keepdims=True)
        p = jnp.exp(s)
        p = p / jnp.sum(p, axis=-1, keepdims=True)
        outs.append(jnp.dot(p, v[:, sl], preferred_element_type=jnp.float32))   # (Lq, hd)
    o = jnp.concatenate(outs, axis=-1)                                           # (Lq, D)
    return jnp.dot(o, wo, preferred_element_type=jnp.float32) + bo


# ----------------------------------------------------------------------------------
# The single fused COTR-core kernel (stem -> encoder -> decoder -> head)
# ----------------------------------------------------------------------------------
def _cotr_core_kernel(feat_ref, qpos_ref, stem_ref,
                      enc96_ref, enc64_ref, enc32_ref,
                      dec96_ref, dec64_ref, dec32_ref,
                      head32_ref, head128_ref,
                      mem_ref, corr_ref,
                      *, nheads, enc_layers, dec_layers, d, ffn, seq_len):
    D, F, L = d, ffn, seq_len

    # ---- Stem: backbone-stand-in 1x1 conv (bias folded via ones column) + input_proj.
    sp = stem_ref[...]                                               # (4 + D + 1, D)
    x4 = feat_ref[0]                                                 # (L, 4)
    h = jnp.maximum(jnp.dot(x4, sp[0:4], preferred_element_type=jnp.float32), 0.0)
    x = jnp.dot(h, sp[4:4 + D], preferred_element_type=jnp.float32) + sp[4 + D:5 + D]

    # ---- Transformer encoder (weights stacked on a leading layer axis).
    # Layout per layer:
    #   p96 (D+L, 3D): rows [0:D]   = [s*Wq | Wk | Wv]
    #                  rows [D:D+L] = per-token bias [pos@sWq+sbq | pos@Wk+bk | bv]
    #   p64 (D+1, F):  rows [0:D] = W1,  row [D] = b1
    #   p32 (D+F+6,D): rows [0:D] = Wo, [D:D+F] = W2,
    #                  rows D+F.. = bo, ln1_g, ln1_b, b2, ln2_g, ln2_b
    for l in range(enc_layers):
        p96 = enc96_ref[l]
        p64 = enc64_ref[l]
        p32 = enc32_ref[l]
        V = D + F
        qkv = jnp.dot(x, p96[0:D], preferred_element_type=jnp.float32) + p96[D:D + L]
        attn = _mha(qkv[:, :D], qkv[:, D:2 * D], qkv[:, 2 * D:],
                    p32[0:D], p32[V:V + 1], nheads)
        x = _layernorm(x + attn, p32[V + 1:V + 2], p32[V + 2:V + 3])
        ff = jnp.maximum(jnp.dot(x, p64[0:D], preferred_element_type=jnp.float32)
                         + p64[D:D + 1], 0.0)
        ff = jnp.dot(ff, p32[D:D + F], preferred_element_type=jnp.float32) + p32[V + 3:V + 4]
        x = _layernorm(x + ff, p32[V + 4:V + 5], p32[V + 5:V + 6])

    mem_ref[0] = x                                                   # encoder memory out
    mem = x

    # ---- Transformer decoder.
    # Layout per layer:
    #   p96 (D+1, 3D):       rows [0:D] = [s*Wq | Wk | Wv] (self-attn), row [D] = biases
    #   p64 (2D+L+1, F):     [0:D] = [Wk|Wv] (cross), [D:D+L] = per-token [pos@Wk+bk | bv],
    #                        [D+L:2D+L] = W1, row [2D+L] = b1
    #   p32 (3D+F+10, D):    [0:D]=sa_Wo, [D:2D]=s*ca_Wq, [2D:3D]=ca_Wo, [3D:3D+F]=W2,
    #                        rows 3D+F.. = sa_bo, ln1_g, ln1_b, s*ca_bq, ca_bo,
    #                                      ln2_g, ln2_b, b2, ln3_g, ln3_b
    qpos = qpos_ref[0]                                               # (Q, D)
    tgt = jnp.zeros_like(qpos)
    V0 = 3 * D + F
    for l in range(dec_layers):
        p96 = dec96_ref[l]
        p64 = dec64_ref[l]
        p32 = dec32_ref[l]

        # Self-attention: q, k from (tgt + query_pos); v from tgt.
        saw = p96[0:D]
        sab = p96[D:D + 1]
        q_in = tgt + qpos
        qk = jnp.dot(q_in, saw[:, :2 * D], preferred_element_type=jnp.float32) + sab[:, :2 * D]
        v = jnp.dot(tgt, saw[:, 2 * D:], preferred_element_type=jnp.float32) + sab[:, 2 * D:]
        attn = _mha(qk[:, :D], qk[:, D:], v, p32[0:D], p32[V0:V0 + 1], nheads)
        y = _layernorm(tgt + attn, p32[V0 + 1:V0 + 2], p32[V0 + 2:V0 + 3])

        # Cross-attention: q from (y + query_pos); k, v from encoder memory (pos baked in).
        q = jnp.dot(y + qpos, p32[D:2 * D], preferred_element_type=jnp.float32) + p32[V0 + 3:V0 + 4]
        kv = jnp.dot(mem, p64[0:D], preferred_element_type=jnp.float32) + p64[D:D + L]
        attn = _mha(q, kv[:, :D], kv[:, D:], p32[2 * D:3 * D], p32[V0 + 4:V0 + 5], nheads)
        y = _layernorm(y + attn, p32[V0 + 5:V0 + 6], p32[V0 + 6:V0 + 7])

        # FFN.
        ff = jnp.maximum(jnp.dot(y, p64[D + L:2 * D + L], preferred_element_type=jnp.float32)
                         + p64[2 * D + L:2 * D + L + 1], 0.0)
        ff = jnp.dot(ff, p32[3 * D:3 * D + F], preferred_element_type=jnp.float32) + p32[V0 + 7:V0 + 8]
        tgt = _layernorm(y + ff, p32[V0 + 8:V0 + 9], p32[V0 + 9:V0 + 10])

    # ---- Head: decoder LayerNorm + corr MLP (D->D ReLU, D->D ReLU, D->2 zero-padded
    #      to 128 output lanes so the store is lane-dense; XLA slices [..., :2]).
    h32 = head32_ref[...]                                            # (2D+4, D)
    h128 = head128_ref[...]                                          # (D+1, 128)
    hh = _layernorm(tgt, h32[2 * D:2 * D + 1], h32[2 * D + 1:2 * D + 2])
    hh = jnp.maximum(jnp.dot(hh, h32[0:D], preferred_element_type=jnp.float32)
                     + h32[2 * D + 2:2 * D + 3], 0.0)
    hh = jnp.maximum(jnp.dot(hh, h32[D:2 * D], preferred_element_type=jnp.float32)
                     + h32[2 * D + 3:2 * D + 4], 0.0)
    corr_ref[0] = jnp.dot(hh, h128[0:D], preferred_element_type=jnp.float32) + h128[D:D + 1]


def run_cotr_core(pk, feat4, qpos):
    """One fused Pallas launch: (feat4, query_pos) -> (encoder memory, padded corrs)."""
    B, L, _ = feat4.shape
    Q = qpos.shape[1]
    kernel = functools.partial(_cotr_core_kernel, nheads=NHEADS,
                               enc_layers=ENC_LAYERS, dec_layers=DEC_LAYERS,
                               d=HIDDEN, ffn=FFN, seq_len=L)
    weights = [pk["stem"], pk["enc_p96"], pk["enc_p64"], pk["enc_p32"],
               pk["dec_p96"], pk["dec_p64"], pk["dec_p32"],
               pk["head32"], pk["head128"]]
    return pl.pallas_call(
        kernel,
        out_shape=(jax.ShapeDtypeStruct((B, L, HIDDEN), jnp.float32),
                   jax.ShapeDtypeStruct((B, Q, 128), jnp.float32)),
        grid=(B,),
        in_specs=[_batched_spec(feat4.shape), _batched_spec(qpos.shape)]
                 + [_shared_spec(w.shape) for w in weights],
        out_specs=(_batched_spec((B, L, HIDDEN)), _batched_spec((B, Q, 128))),
        compiler_params=pltpu.CompilerParams(dimension_semantics=("parallel",)),
    )(feat4, qpos, *weights)


# ----------------------------------------------------------------------------------
# Positional encodings (plain JAX; pos_embed_sine runs once at pack time)
# ----------------------------------------------------------------------------------
def nerf_pos_encoding(x, depth):
    """NerfPositionalEncoding, sine_type='lin_sine': (B, Q, 2) -> (B, Q, 4*depth)."""
    bases = jnp.arange(1, depth + 1, dtype=jnp.float32)
    v = x[..., None, :] * bases[:, None] * math.pi            # (B, Q, depth, 2)
    out = jnp.concatenate([jnp.sin(v), jnp.cos(v)], axis=-2)  # (B, Q, 2*depth, 2)
    return out.reshape(*x.shape[:-1], 4 * depth)


def pos_embed_sine(h, w, hidden):
    """PositionEmbeddingSine, sine_type='lin_sine', normalized; returns (h, w, hidden)."""
    npf = hidden // 2
    scale = 2.0 * math.pi
    eps = 1e-6
    y_embed = jnp.broadcast_to(jnp.arange(1, h + 1, dtype=jnp.float32)[:, None], (h, w))
    x_embed = jnp.broadcast_to(jnp.arange(1, w + 1, dtype=jnp.float32)[None, :], (h, w))
    y_embed = y_embed / (y_embed[-1:, :] + eps) * scale
    x_embed = x_embed / (x_embed[:, -1:] + eps) * scale
    dim_t = jnp.arange(1, npf + 1, dtype=jnp.float32)          # linear ("lin_sine") bases
    pos_x = x_embed[:, :, None] * dim_t
    pos_y = y_embed[:, :, None] * dim_t
    pos_x = jnp.stack([jnp.sin(pos_x[:, :, 0::2]), jnp.cos(pos_x[:, :, 1::2])], axis=3).reshape(h, w, npf)
    pos_y = jnp.stack([jnp.sin(pos_y[:, :, 0::2]), jnp.cos(pos_y[:, :, 1::2])], axis=3).reshape(h, w, npf)
    return jnp.concatenate([pos_y, pos_x], axis=-1)


# ----------------------------------------------------------------------------------
# COTR forward (XLA glue is only: avg-pool downsample, nerf query encoding, reshapes)
# ----------------------------------------------------------------------------------
def corr_forward(packed, sbs_img, queries):
    """COTR correspondence sub-model: (sbs_img, queries) -> (corrs_pred, enc_out)."""
    B, C, H, W = sbs_img.shape
    Hf, Wf = H // DOWNSAMPLE, W // DOWNSAMPLE
    L = Hf * Wf
    assert packed["enc_p96"].shape[1] == HIDDEN + L, "packed params built for another resolution"

    # Backbone stand-in: avg-pool downsample; the 1x1-conv + input_proj run in-kernel.
    x = sbs_img.reshape(B, C, Hf, DOWNSAMPLE, Wf, DOWNSAMPLE).mean(axis=(3, 5))
    feat = x.transpose(0, 2, 3, 1).reshape(B, L, C)
    feat4 = jnp.concatenate([feat, jnp.ones((B, L, 1), jnp.float32)], axis=-1)  # ones -> bias

    query_embed = nerf_pos_encoding(queries, HIDDEN // 4)                        # (B, Q, D)

    memory, corr_pad = run_cotr_core(packed, feat4, query_embed)
    corrs = corr_pad[..., :2]
    enc_out = memory.reshape(B, Hf, Wf, HIDDEN).transpose(0, 3, 1, 2)            # (B, D, Hf, Wf)
    return corrs, enc_out


def cotr_forward(packed, sbs_img, query_input):
    """Outer COTR.forward: cycle-consistency check across the side-by-side image."""
    corrs_pred, enc_out = corr_forward(packed, sbs_img, query_input)

    half = sbs_img.shape[-1] // 2  # original module hard-codes 640 (half of the sbs width)
    img_reverse_input = jnp.concatenate([sbs_img[..., half:], sbs_img[..., :half]], axis=-1)

    # PyTorch: query_reverse = corrs_pred; query_reverse[..., 0] -= 0.5  (in-place ALIAS:
    # the returned corrs_pred is also shifted). Reproduce that aliasing here.
    corrs_pred = corrs_pred.at[..., 0].add(-0.5)
    query_reverse = corrs_pred

    cycle, _ = corr_forward(packed, img_reverse_input, query_reverse)
    cycle = cycle.at[..., 0].add(-0.5)

    mask = jnp.sqrt(jnp.sum((cycle - query_input) ** 2, axis=-1)) < (10.0 / 640.0)
    return corrs_pred, cycle, mask, enc_out


# ----------------------------------------------------------------------------------
# Deterministic parameter initialization (raw, PyTorch-like layout)
# ----------------------------------------------------------------------------------
def _init_w(key, fan_in, fan_out):
    return jax.random.normal(key, (fan_in, fan_out), jnp.float32) * (1.0 / math.sqrt(fan_in))


def init_linear(key, fan_in, fan_out):
    return {"w": _init_w(key, fan_in, fan_out), "b": jnp.zeros((1, fan_out), jnp.float32)}


def _ln_params(d):
    return jnp.ones((1, d), jnp.float32), jnp.zeros((1, d), jnp.float32)


def init_attn(key, d):
    kq, kk, kv, ko = jax.random.split(key, 4)
    z = lambda: jnp.zeros((1, d), jnp.float32)
    return {"wq": _init_w(kq, d, d), "bq": z(),
            "wk": _init_w(kk, d, d), "bk": z(),
            "wv": _init_w(kv, d, d), "bv": z(),
            "wo": _init_w(ko, d, d), "bo": z()}


def init_enc_layer(key):
    ks = jax.random.split(key, 3)
    g1, b1 = _ln_params(HIDDEN)
    g2, b2 = _ln_params(HIDDEN)
    return {"sa": init_attn(ks[0], HIDDEN),
            "lin1": init_linear(ks[1], HIDDEN, FFN),
            "lin2": init_linear(ks[2], FFN, HIDDEN),
            "ln1_g": g1, "ln1_b": b1, "ln2_g": g2, "ln2_b": b2}


def init_dec_layer(key):
    ks = jax.random.split(key, 4)
    g1, b1 = _ln_params(HIDDEN)
    g2, b2 = _ln_params(HIDDEN)
    g3, b3 = _ln_params(HIDDEN)
    return {"sa": init_attn(ks[0], HIDDEN), "ca": init_attn(ks[1], HIDDEN),
            "lin1": init_linear(ks[2], HIDDEN, FFN),
            "lin2": init_linear(ks[3], FFN, HIDDEN),
            "ln1_g": g1, "ln1_b": b1, "ln2_g": g2, "ln2_b": b2, "ln3_g": g3, "ln3_b": b3}


def init_params(key):
    ks = jax.random.split(key, 5)
    enc_keys = jax.random.split(ks[0], ENC_LAYERS)
    dec_keys = jax.random.split(ks[1], DEC_LAYERS)
    mlp_keys = jax.random.split(ks[2], 3)
    dng, dnb = _ln_params(HIDDEN)
    return {"backbone": init_linear(ks[3], 3, BACKBONE_CH),
            "input_proj": init_linear(ks[4], BACKBONE_CH, HIDDEN),
            "enc_layers": [init_enc_layer(k) for k in enc_keys],
            "dec_layers": [init_dec_layer(k) for k in dec_keys],
            "dec_norm_g": dng, "dec_norm_b": dnb,
            "mlp0": init_linear(mlp_keys[0], HIDDEN, HIDDEN),
            "mlp1": init_linear(mlp_keys[1], HIDDEN, HIDDEN),
            "mlp2": init_linear(mlp_keys[2], HIDDEN, 2)}


# ----------------------------------------------------------------------------------
# Parameter packing: stack per-layer weights, bake pos embeddings and attention scale.
# ----------------------------------------------------------------------------------
def pack_params(raw, h_feat, w_feat):
    D, F = HIDDEN, FFN
    L = h_feat * w_feat
    scale = 1.0 / math.sqrt(D // NHEADS)
    pos = pos_embed_sine(h_feat, w_feat, D).reshape(L, D)        # constant for this res

    # Stem: backbone bias folded via the ones column appended to the features; the 16-ch
    # intermediate is lane-padded to D with zero weights (ReLU keeps the padding at 0).
    wb = jnp.concatenate([raw["backbone"]["w"], raw["backbone"]["b"]], axis=0)   # (4, 16)
    wb = jnp.pad(wb, ((0, 0), (0, D - BACKBONE_CH)))                             # (4, D)
    wp = jnp.pad(raw["input_proj"]["w"], ((0, D - BACKBONE_CH), (0, 0)))         # (D, D)
    stem = jnp.concatenate([wb, wp, raw["input_proj"]["b"]], axis=0)             # (4+D+1, D)

    def enc_pack(lp):
        sa = lp["sa"]
        wqkv = jnp.concatenate([sa["wq"] * scale, sa["wk"], sa["wv"]], axis=1)
        bqkv = jnp.concatenate([pos @ (sa["wq"] * scale) + sa["bq"] * scale,
                                pos @ sa["wk"] + sa["bk"],
                                jnp.broadcast_to(sa["bv"], (L, D))], axis=1)
        p96 = jnp.concatenate([wqkv, bqkv], axis=0)                              # (D+L, 3D)
        p64 = jnp.concatenate([lp["lin1"]["w"], lp["lin1"]["b"]], axis=0)        # (D+1, F)
        vec = jnp.concatenate([sa["bo"], lp["ln1_g"], lp["ln1_b"],
                               lp["lin2"]["b"], lp["ln2_g"], lp["ln2_b"]], axis=0)
        p32 = jnp.concatenate([sa["wo"], lp["lin2"]["w"], vec], axis=0)          # (D+F+6, D)
        return p96, p64, p32

    def dec_pack(lp):
        sa, ca = lp["sa"], lp["ca"]
        p96 = jnp.concatenate(
            [jnp.concatenate([sa["wq"] * scale, sa["wk"], sa["wv"]], axis=1),
             jnp.concatenate([sa["bq"] * scale, sa["bk"], sa["bv"]], axis=1)],
            axis=0)                                                              # (D+1, 3D)
        ca_bkv = jnp.concatenate([pos @ ca["wk"] + ca["bk"],
                                  jnp.broadcast_to(ca["bv"], (L, D))], axis=1)   # (L, 2D)
        p64 = jnp.concatenate([jnp.concatenate([ca["wk"], ca["wv"]], axis=1),
                               ca_bkv, lp["lin1"]["w"], lp["lin1"]["b"]],
                              axis=0)                                            # (2D+L+1, F)
        vec = jnp.concatenate([sa["bo"], lp["ln1_g"], lp["ln1_b"],
                               ca["bq"] * scale, ca["bo"], lp["ln2_g"], lp["ln2_b"],
                               lp["lin2"]["b"], lp["ln3_g"], lp["ln3_b"]], axis=0)
        p32 = jnp.concatenate([sa["wo"], ca["wq"] * scale, ca["wo"],
                               lp["lin2"]["w"], vec], axis=0)                    # (3D+F+10, D)
        return p96, p64, p32

    e96, e64, e32 = zip(*(enc_pack(lp) for lp in raw["enc_layers"]))
    d96, d64, d32 = zip(*(dec_pack(lp) for lp in raw["dec_layers"]))

    head32 = jnp.concatenate([raw["mlp0"]["w"], raw["mlp1"]["w"],
                              raw["dec_norm_g"], raw["dec_norm_b"],
                              raw["mlp0"]["b"], raw["mlp1"]["b"]], axis=0)       # (2D+4, D)
    pad2 = 128 - raw["mlp2"]["w"].shape[1]
    head128 = jnp.concatenate([jnp.pad(raw["mlp2"]["w"], ((0, 0), (0, pad2))),
                               jnp.pad(raw["mlp2"]["b"], ((0, 0), (0, pad2)))],
                              axis=0)                                            # (D+1, 128)

    return {"stem": stem,
            "enc_p96": jnp.stack(e96), "enc_p64": jnp.stack(e64), "enc_p32": jnp.stack(e32),
            "dec_p96": jnp.stack(d96), "dec_p64": jnp.stack(d64), "dec_p32": jnp.stack(d32),
            "head32": head32, "head128": head128}


# ----------------------------------------------------------------------------------
# Main
# ----------------------------------------------------------------------------------
if __name__ == "__main__":
    key = jax.random.PRNGKey(0)
    kp, kimg, kq = jax.random.split(key, 3)

    params = init_params(kp)

    B, H, HALF_W, Q = 2, 16, 16, 8
    W = 2 * HALF_W
    packed = pack_params(params, H // DOWNSAMPLE, W // DOWNSAMPLE)

    # Side-by-side image (two HALF_W-wide images concatenated along width), NCHW.
    sbs_img = jax.random.uniform(kimg, (B, 3, H, W), jnp.float32)
    # Normalized query coordinates on the left half: x in [0, 0.5], y in [0, 1].
    query_input = jax.random.uniform(kq, (B, Q, 2), jnp.float32) * jnp.array([0.5, 1.0], jnp.float32)

    fwd = jax.jit(cotr_forward)
    corrs_pred, cycle, mask, enc_out = fwd(packed, sbs_img, query_input)
    jax.block_until_ready((corrs_pred, cycle, mask, enc_out))

    assert corrs_pred.shape == (B, Q, 2)
    assert cycle.shape == (B, Q, 2)
    assert mask.shape == (B, Q) and mask.dtype == jnp.bool_
    assert enc_out.shape == (B, HIDDEN, H // DOWNSAMPLE, W // DOWNSAMPLE)
    assert bool(jnp.all(jnp.isfinite(corrs_pred)))
    assert bool(jnp.all(jnp.isfinite(cycle)))
    assert bool(jnp.all(jnp.isfinite(enc_out)))
    print("KERNEL_OK")
</pallas_src>

<mosaic_0001>
module attributes {stable_mosaic.version = 11 : i64} {
  func.func @_cotr_core_kernel(%arg0: i32, %arg1: memref<1x32x4xf32, #tpu.memory_space<vmem>>, %arg2: memref<1x8x32xf32, #tpu.memory_space<vmem>>, %arg3: memref<37x32xf32, #tpu.memory_space<vmem>>, %arg4: memref<2x64x96xf32, #tpu.memory_space<vmem>>, %arg5: memref<2x33x64xf32, #tpu.memory_space<vmem>>, %arg6: memref<2x102x32xf32, #tpu.memory_space<vmem>>, %arg7: memref<2x33x96xf32, #tpu.memory_space<vmem>>, %arg8: memref<2x97x64xf32, #tpu.memory_space<vmem>>, %arg9: memref<2x170x32xf32, #tpu.memory_space<vmem>>, %arg10: memref<68x32xf32, #tpu.memory_space<vmem>>, %arg11: memref<33x128xf32, #tpu.memory_space<vmem>>, %arg12: memref<1x32x32xf32, #tpu.memory_space<vmem>>, %arg13: memref<1x8x128xf32, #tpu.memory_space<vmem>>) attributes {dimension_semantics = [#tpu.dimension_semantics<parallel>], iteration_bounds = array<i64: 2>, scalar_prefetch = 0 : i64, scratch_operands = 0 : i64, tpu.core_type = #tpu.core_type<tc>, window_params = [{transform_indices = @transform_0, window_bounds = array<i64: 1, 32, 4>}, {transform_indices = @transform_1, window_bounds = array<i64: 1, 8, 32>}, {pipeline_mode = #tpu.pipeline_mode<synchronous>, transform_indices = @transform_2, window_bounds = array<i64: 37, 32>}, {pipeline_mode = #tpu.pipeline_mode<synchronous>, transform_indices = @transform_3, window_bounds = array<i64: 2, 64, 96>}, {pipeline_mode = #tpu.pipeline_mode<synchronous>, transform_indices = @transform_4, window_bounds = array<i64: 2, 33, 64>}, {pipeline_mode = #tpu.pipeline_mode<synchronous>, transform_indices = @transform_5, window_bounds = array<i64: 2, 102, 32>}, {pipeline_mode = #tpu.pipeline_mode<synchronous>, transform_indices = @transform_6, window_bounds = array<i64: 2, 33, 96>}, {pipeline_mode = #tpu.pipeline_mode<synchronous>, transform_indices = @transform_7, window_bounds = array<i64: 2, 97, 64>}, {pipeline_mode = #tpu.pipeline_mode<synchronous>, transform_indices = @transform_8, window_bounds = array<i64: 2, 170, 32>}, {pipeline_mode = #tpu.pipeline_mode<synchronous>, transform_indices = @transform_9, window_bounds = array<i64: 68, 32>}, {pipeline_mode = #tpu.pipeline_mode<synchronous>, transform_indices = @transform_10, window_bounds = array<i64: 33, 128>}, {transform_indices = @transform_11, window_bounds = array<i64: 1, 32, 32>}, {transform_indices = @transform_12, window_bounds = array<i64: 1, 8, 128>}]} {
    %c0 = arith.constant 0 : index
    %c0_0 = arith.constant 0 : index
    %0 = vector.load %arg3[%c0, %c0_0] : memref<37x32xf32, #tpu.memory_space<vmem>>, vector<37x32xf32>
    %c0_1 = arith.constant 0 : index
    %c0_2 = arith.constant 0 : index
    %c0_3 = arith.constant 0 : index
    %1 = vector.load %arg1[%c0_1, %c0_2, %c0_3] : memref<1x32x4xf32, #tpu.memory_space<vmem>>, vector<1x32x4xf32>
    %2 = vector.shape_cast %1 : vector<1x32x4xf32> to vector<32x4xf32>
    %3 = vector.extract_strided_slice %0 {offsets = [0, 0], sizes = [4, 32], strides = [1, 1]} : vector<37x32xf32> to vector<4x32xf32>
    %cst = arith.constant dense<0.000000e+00> : vector<32x32xf32>
    %4 = tpu.matmul %2, %3, %cst {dimension_numbers = #tpu.dot_dimension_numbers<[1], [0], [0], [1], [0, 0, 1, 1], [], []>} : vector<32x4xf32>, vector<4x32xf32>, vector<32x32xf32> -> vector<32x32xf32>
    %cst_4 = arith.constant 0.000000e+00 : f32
    %5 = vector.broadcast %cst_4 : f32 to vector<32x32xf32>
    %6 = arith.maximumf %4, %5 : vector<32x32xf32>
    %7 = vector.extract_strided_slice %0 {offsets = [4, 0], sizes = [32, 32], strides = [1, 1]} : vector<37x32xf32> to vector<32x32xf32>
    %cst_5 = arith.constant dense<0.000000e+00> : vector<32x32xf32>
    %8 = tpu.matmul %6, %7, %cst_5 {dimension_numbers = #tpu.dot_dimension_numbers<[1], [0], [0], [1], [0, 0, 1, 1], [], []>} : vector<32x32xf32>, vector<32x32xf32>, vector<32x32xf32> -> vector<32x32xf32>
    %9 = vector.extract_strided_slice %0 {offsets = [36, 0], sizes = [1, 32], strides = [1, 1]} : vector<37x32xf32> to vector<1x32xf32>
    %10 = vector.broadcast %9 : vector<1x32xf32> to vector<32x32xf32>
    %11 = arith.addf %8, %10 : vector<32x32xf32>
    %c0_6 = arith.constant 0 : index
    %c0_7 = arith.constant 0 : index
    %c0_8 = arith.constant 0 : index
    %12 = vector.load %arg4[%c0_6, %c0_7, %c0_8] : memref<2x64x96xf32, #tpu.memory_space<vmem>>, vector<1x64x96xf32>
    %13 = vector.shape_cast %12 : vector<1x64x96xf32> to vector<64x96xf32>
    %c0_9 = arith.constant 0 : index
    %c0_10 = arith.constant 0 : index
    %c0_11 = arith.constant 0 : index
    %14 = vector.load %arg5[%c0_9, %c0_10, %c0_11] : memref<2x33x64xf32, #tpu.memory_space<vmem>>, vector<1x33x64xf32>
    %15 = vector.shape_cast %14 : vector<1x33x64xf32> to vector<33x64xf32>
    %c0_12 = arith.constant 0 : index
    %c0_13 = arith.constant 0 : index
    %c0_14 = arith.constant 0 : index
    %16 = vector.load %arg6[%c0_12, %c0_13, %c0_14] : memref<2x102x32xf32, #tpu.memory_space<vmem>>, vector<1x102x32xf32>
    %17 = vector.shape_cast %16 : vector<1x102x32xf32> to vector<102x32xf32>
    %18 = vector.extract_strided_slice %13 {offsets = [0, 0], sizes = [32, 96], strides = [1, 1]} : vector<64x96xf32> to vector<32x96xf32>
    %cst_15 = arith.constant dense<0.000000e+00> : vector<32x96xf32>
    %19 = tpu.matmul %11, %18, %cst_15 {dimension_numbers = #tpu.dot_dimension_numbers<[1], [0], [0], [1], [0, 0, 1, 1], [], []>} : vector<32x32xf32>, vector<32x96xf32>, vector<32x96xf32> -> vector<32x96xf32>
    %20 = vector.extract_strided_slice %13 {offsets = [32, 0], sizes = [32, 96], strides = [1, 1]} : vector<64x96xf32> to vector<32x96xf32>
    %21 = arith.addf %19, %20 : vector<32x96xf32>
    %22 = vector.extract_strided_slice %21 {offsets = [0, 0], sizes = [32, 32], strides = [1, 1]} : vector<32x96xf32> to vector<32x32xf32>
    %23 = vector.extract_strided_slice %21 {offsets = [0, 32], sizes = [32, 32], strides = [1, 1]} : vector<32x96xf32> to vector<32x32xf32>
    %24 = vector.extract_strided_slice %21 {offsets = [0, 64], sizes = [32, 32], strides = [1, 1]} : vector<32x96xf32> to vector<32x32xf32>
    %25 = vector.extract_strided_slice %17 {offsets = [0, 0], sizes = [32, 32], strides = [1, 1]} : vector<102x32xf32> to vector<32x32xf32>
    %26 = vector.extract_strided_slice %17 {offsets = [96, 0], sizes = [1, 32], strides = [1, 1]} : vector<102x32xf32> to vector<1x32xf32>
    %27 = vector.extract_strided_slice %22 {offsets = [0, 0], sizes = [32, 4], strides = [1, 1]} : vector<32x32xf32> to vector<32x4xf32>
    %28 = vector.extract_strided_slice %23 {offsets = [0, 0], sizes = [32, 4], strides = [1, 1]} : vector<32x32xf32> to vector<32x4xf32>
    %cst_16 = arith.constant dense<0.000000e+00> : vector<32x32xf32>
    %29 = tpu.matmul %27, %28, %cst_16 {dimension_numbers = #tpu.dot_dimension_numbers<[1], [1], [0], [0], [0, 0, 1, 0], [], []>} : vector<32x4xf32>, vector<32x4xf32>, vector<32x32xf32> -> vector<32x32xf32>
    %cst_17 = arith.constant dense<0xFF800000> : vector<32xf32>
    %30 = vector.multi_reduction <maximumf>, %29, %cst_17 [1] : vector<32x32xf32> to vector<32xf32>
    %31 = vector.shape_cast %30 : vector<32xf32> to vector<32x1xf32>
    %32 = vector.broadcast %31 : vector<32x1xf32> to vector<32x32xf32>
    %33 = arith.subf %29, %32 : vector<32x32xf32>
    %34 = math.exp %33 : vector<32x32xf32>
    %cst_18 = arith.constant dense<0.000000e+00> : vector<32xf32>
    %35 = vector.multi_reduction <add>, %34, %cst_18 [1] : vector<32x32xf32> to vector<32xf32>
    %36 = vector.shape_cast %35 : vector<32xf32> to vector<32x1xf32>
    %37 = vector.broadcast %36 : vector<32x1xf32> to vector<32x32xf32>
    %38 = arith.divf %34, %37 : vector<32x32xf32>
    %39 = vector.extract_strided_slice %24 {offsets = [0, 0], sizes = [32, 4], strides = [1, 1]} : vector<32x32xf32> to vector<32x4xf32>
    %cst_19 = arith.constant dense<0.000000e+00> : vector<32x4xf32>
    %40 = tpu.matmul %38, %39, %cst_19 {dimension_numbers = #tpu.dot_dimension_numbers<[1], [0], [0], [1], [0, 0, 1, 1], [], []>} : vector<32x32xf32>, vector<32x4xf32>, vector<32x4xf32> -> vector<32x4xf32>
    %41 = vector.extract_strided_slice %22 {offsets = [0, 4], sizes = [32, 4], strides = [1, 1]} : vector<32x32xf32> to vector<32x4xf32>
    %42 = vector.extract_strided_slice %23 {offsets = [0, 4], sizes = [32, 4], strides = [1, 1]} : vector<32x32xf32> to vector<32x4xf32>
    %cst_20 = arith.constant dense<0.000000e+00> : vector<32x32xf32>
    %43 = tpu.matmul %41, %42, %cst_20 {dimension_numbers = #tpu.dot_dimension_numbers<[1], [1], [0], [0], [0, 0, 1, 0], [], []>} : vector<32x4xf32>, vector<32x4xf32>, vector<32x32xf32> -> vector<32x32xf32>
    %cst_21 = arith.constant dense<0xFF800000> : vector<32xf32>
    %44 = vector.multi_reduction <maximumf>, %43, %cst_21 [1] : vector<32x32xf32> to vector<32xf32>
    %45 = vector.shape_cast %44 : vector<32xf32> to vector<32x1xf32>
    %46 = vector.broadcast %45 : vector<32x1xf32> to vector<32x32xf32>
    %47 = arith.subf %43, %46 : vector<32x32xf32>
    %48 = math.exp %47 : vector<32x32xf32>
    %cst_22 = arith.constant dense<0.000000e+00> : vector<32xf32>
    %49 = vector.multi_reduction <add>, %48, %cst_22 [1] : vector<32x32xf32> to vector<32xf32>
    %50 = vector.shape_cast %49 : vector<32xf32> to vector<32x1xf32>
    %51 = vector.broadcast %50 : vector<32x1xf32> to vector<32x32xf32>
    %52 = arith.divf %48, %51 : vector<32x32xf32>
    %53 = vector.extract_strided_slice %24 {offsets = [0, 4], sizes = [32, 4], strides = [1, 1]} : vector<32x32xf32> to vector<32x4xf32>
    %cst_23 = arith.constant dense<0.000000e+00> : vector<32x4xf32>
    %54 = tpu.matmul %52, %53, %cst_23 {dimension_numbers = #tpu.dot_dimension_numbers<[1], [0], [0], [1], [0, 0, 1, 1], [], []>} : vector<32x32xf32>, vector<32x4xf32>, vector<32x4xf32> -> vector<32x4xf32>
    %55 = vector.extract_strided_slice %22 {offsets = [0, 8], sizes = [32, 4], strides = [1, 1]} : vector<32x32xf32> to vector<32x4xf32>
    %56 = vector.extract_strided_slice %23 {offsets = [0, 8], sizes = [32, 4], strides = [1, 1]} : vector<32x32xf32> to vector<32x4xf32>
    %cst_24 = arith.constant dense<0.000000e+00> : vector<32x32xf32>
    %57 = tpu.matmul %55, %56, %cst_24 {dimension_numbers = #tpu.dot_dimension_numbers<[1], [1], [0], [0], [0, 0, 1, 0], [], []>} : vector<32x4xf32>, vector<32x4xf32>, vector<32x32xf32> -> vector<32x32xf32>
    %cst_25 = arith.constant dense<0xFF800000> : vector<32xf32>
    %58 = vector.multi_reduction <maximumf>, %57, %cst_25 [1] : vector<32x32xf32> to vector<32xf32>
    %59 = vector.shape_cast %58 : vector<32xf32> to vector<32x1xf32>
    %60 = vector.broadcast %59 : vector<32x1xf32> to vector<32x32xf32>
    %61 = arith.subf %57, %60 : vector<32x32xf32>
    %62 = math.exp %61 : vector<32x32xf32>
    %cst_26 = arith.constant dense<0.000000e+00> : vector<32xf32>
    %63 = vector.multi_reduction <add>, %62, %cst_26 [1] : vector<32x32xf32> to vector<32xf32>
    %64 = vector.shape_cast %63 : vector<32xf32> to vector<32x1xf32>
    %65 = vector.broadcast %64 : vector<32x1xf32> to vector<32x32xf32>
    %66 = arith.divf %62, %65 : vector<32x32xf32>
    %67 = vector.extract_strided_slice %24 {offsets = [0, 8], sizes = [32, 4], strides = [1, 1]} : vector<32x32xf32> to vector<32x4xf32>
    %cst_27 = arith.constant dense<0.000000e+00> : vector<32x4xf32>
    %68 = tpu.matmul %66, %67, %cst_27 {dimension_numbers = #tpu.dot_dimension_numbers<[1], [0], [0], [1], [0, 0, 1, 1], [], []>} : vector<32x32xf32>, vector<32x4xf32>, vector<32x4xf32> -> vector<32x4xf32>
    %69 = vector.extract_strided_slice %22 {offsets = [0, 12], sizes = [32, 4], strides = [1, 1]} : vector<32x32xf32> to vector<32x4xf32>
    %70 = vector.extract_strided_slice %23 {offsets = [0, 12], sizes = [32, 4], strides = [1, 1]} : vector<32x32xf32> to vector<32x4xf32>
    %cst_28 = arith.constant dense<0.000000e+00> : vector<32x32xf32>
    %71 = tpu.matmul %69, %70, %cst_28 {dimension_numbers = #tpu.dot_dimension_numbers<[1], [1], [0], [0], [0, 0, 1, 0], [], []>} : vector<32x4xf32>, vector<32x4xf32>, vector<32x32xf32> -> vector<32x32xf32>
    %cst_29 = arith.constant dense<0xFF800000> : vector<32xf32>
    %72 = vector.multi_reduction <maximumf>, %71, %cst_29 [1] : vector<32x32xf32> to vector<32xf32>
    %73 = vector.shape_cast %72 : vector<32xf32> to vector<32x1xf32>
    %74 = vector.broadcast %73 : vector<32x1xf32> to vector<32x32xf32>
    %75 = arith.subf %71, %74 : vector<32x32xf32>
    %76 = math.exp %75 : vector<32x32xf32>
    %cst_30 = arith.constant dense<0.000000e+00> : vector<32xf32>
    %77 = vector.multi_reduction <add>, %76, %cst_30 [1] : vector<32x32xf32> to vector<32xf32>
    %78 = vector.shape_cast %77 : vector<32xf32> to vector<32x1xf32>
    %79 = vector.broadcast %78 : vector<32x1xf32> to vector<32x32xf32>
    %80 = arith.divf %76, %79 : vector<32x32xf32>
    %81 = vector.extract_strided_slice %24 {offsets = [0, 12], sizes = [32, 4], strides = [1, 1]} : vector<32x32xf32> to vector<32x4xf32>
    %cst_31 = arith.constant dense<0.000000e+00> : vector<32x4xf32>
    %82 = tpu.matmul %80, %81, %cst_31 {dimension_numbers = #tpu.dot_dimension_numbers<[1], [0], [0], [1], [0, 0, 1, 1], [], []>} : vector<32x32xf32>, vector<32x4xf32>, vector<32x4xf32> -> vector<32x4xf32>
    %83 = vector.extract_strided_slice %22 {offsets = [0, 16], sizes = [32, 4], strides = [1, 1]} : vector<32x32xf32> to vector<32x4xf32>
    %84 = vector.extract_strided_slice %23 {offsets = [0, 16], sizes = [32, 4], strides = [1, 1]} : vector<32x32xf32> to vector<32x4xf32>
    %cst_32 = arith.constant dense<0.000000e+00> : vector<32x32xf32>
    %85 = tpu.matmul %83, %84, %cst_32 {dimension_numbers = #tpu.dot_dimension_numbers<[1], [1], [0], [0], [0, 0, 1, 0], [], []>} : vector<32x4xf32>, vector<32x4xf32>, vector<32x32xf32> -> vector<32x32xf32>
    %cst_33 = arith.constant dense<0xFF800000> : vector<32xf32>
    %86 = vector.multi_reduction <maximumf>, %85, %cst_33 [1] : vector<32x32xf32> to vector<32xf32>
    %87 = vector.shape_cast %86 : vector<32xf32> to vector<32x1xf32>
    %88 = vector.broadcast %87 : vector<32x1xf32> to vector<32x32xf32>
    %89 = arith.subf %85, %88 : vector<32x32xf32>
    %90 = math.exp %89 : vector<32x32xf32>
    %cst_34 = arith.constant dense<0.000000e+00> : vector<32xf32>
    %91 = vector.multi_reduction <add>, %90, %cst_34 [1] : vector<32x32xf32> to vector<32xf32>
    %92 = vector.shape_cast %91 : vector<32xf32> to vector<32x1xf32>
    %93 = vector.broadcast %92 : vector<32x1xf32> to vector<32x32xf32>
    %94 = arith.divf %90, %93 : vector<32x32xf32>
    %95 = vector.extract_strided_slice %24 {offsets = [0, 16], sizes = [32, 4], strides = [1, 1]} : vector<32x32xf32> to vector<32x4xf32>
    %cst_35 = arith.constant dense<0.000000e+00> : vector<32x4xf32>
    %96 = tpu.matmul %94, %95, %cst_35 {dimension_numbers = #tpu.dot_dimension_numbers<[1], [0], [0], [1], [0, 0, 1, 1], [], []>} : vector<32x32xf32>, vector<32x4xf32>, vector<32x4xf32> -> vector<32x4xf32>
    %97 = vector.extract_strided_slice %22 {offsets = [0, 20], sizes = [32, 4], strides = [1, 1]} : vector<32x32xf32> to vector<32x4xf32>
    %98 = vector.extract_strided_slice %23 {offsets = [0, 20], sizes = [32, 4], strides = [1, 1]} : vector<32x32xf32> to vector<32x4xf32>
    %cst_36 = arith.constant dense<0.000000e+00> : vector<32x32xf32>
    %99 = tpu.matmul %97, %98, %cst_36 {dimension_numbers = #tpu.dot_dimension_numbers<[1], [1], [0], [0], [0, 0, 1, 0], [], []>} : vector<32x4xf32>, vector<32x4xf32>, vector<32x32xf32> -> vector<32x32xf32>
    %cst_37 = arith.constant dense<0xFF800000> : vector<32xf32>
    %100 = vector.multi_reduction <maximumf>, %99, %cst_37 [1] : vector<32x32xf32> to vector<32xf32>
    %101 = vector.shape_cast %100 : vector<32xf32> to vector<32x1xf32>
    %102 = vector.broadcast %101 : vector<32x1xf32> to vector<32x32xf32>
    %103 = arith.subf %99, %102 : vector<32x32xf32>
    %104 = math.exp %103 : vector<32x32xf32>
    %cst_38 = arith.constant dense<0.000000e+00> : vector<32xf32>
    %105 = vector.multi_reduction <add>, %104, %cst_38 [1] : vector<32x32xf32> to vector<32xf32>
    %106 = vector.shape_cast %105 : vector<32xf32> to vector<32x1xf32>
    %107 = vector.broadcast %106 : vector<32x1xf32> to vector<32x32xf32>
    %108 = arith.divf %104, %107 : vector<32x32xf32>
    %109 = vector.extract_strided_slice %24 {offsets = [0, 20], sizes = [32, 4], strides = [1, 1]} : vector<32x32xf32> to vector<32x4xf32>
    %cst_39 = arith.constant dense<0.000000e+00> : vector<32x4xf32>
    %110 = tpu.matmul %108, %109, %cst_39 {dimension_numbers = #tpu.dot_dimension_numbers<[1], [0], [0], [1], [0, 0, 1, 1], [], []>} : vector<32x32xf32>, vector<32x4xf32>, vector<32x4xf32> -> vector<32x4xf32>
    %111 = vector.extract_strided_slice %22 {offsets = [0, 24], sizes = [32, 4], strides = [1, 1]} : vector<32x32xf32> to vector<32x4xf32>
    %112 = vector.extract_strided_slice %23 {offsets = [0, 24], sizes = [32, 4], strides = [1, 1]} : vector<32x32xf32> to vector<32x4xf32>
    %cst_40 = arith.constant dense<0.000000e+00> : vector<32x32xf32>
    %113 = tpu.matmul %111, %112, %cst_40 {dimension_numbers = #tpu.dot_dimension_numbers<[1], [1], [0], [0], [0, 0, 1, 0], [], []>} : vector<32x4xf32>, vector<32x4xf32>, vector<32x32xf32> -> vector<32x32xf32>
    %cst_41 = arith.constant dense<0xFF800000> : vector<32xf32>
    %114 = vector.multi_reduction <maximumf>, %113, %cst_41 [1] : vector<32x32xf32> to vector<32xf32>
    %115 = vector.shape_cast %114 : vector<32xf32> to vector<32x1xf32>
    %116 = vector.broadcast %115 : vector<32x1xf32> to vector<32x32xf32>
    %117 = arith.subf %113, %116 : vector<32x32xf32>
    %118 = math.exp %117 : vector<32x32xf32>
    %cst_42 = arith.constant dense<0.000000e+00> : vector<32xf32>
    %119 = vector.multi_reduction <add>, %118, %cst_42 [1] : vector<32x32xf32> to vector<32xf32>
    %120 = vector.shape_cast %119 : vector<32xf32> to vector<32x1xf32>
    %121 = vector.broadcast %120 : vector<32x1xf32> to vector<32x32xf32>
    %122 = arith.divf %118, %121 : vector<32x32xf32>
    %123 = vector.extract_strided_slice %24 {offsets = [0, 24], sizes = [32, 4], strides = [1, 1]} : vector<32x32xf32> to vector<32x4xf32>
    %cst_43 = arith.constant dense<0.000000e+00> : vector<32x4xf32>
    %124 = tpu.matmul %122, %123, %cst_43 {dimension_numbers = #tpu.dot_dimension_numbers<[1], [0], [0], [1], [0, 0, 1, 1], [], []>} : vector<32x32xf32>, vector<32x4xf32>, vector<32x4xf32> -> vector<32x4xf32>
    %125 = vector.extract_strided_slice %22 {offsets = [0, 28], sizes = [32, 4], strides = [1, 1]} : vector<32x32xf32> to vector<32x4xf32>
    %126 = vector.extract_strided_slice %23 {offsets = [0, 28], sizes = [32, 4], strides = [1, 1]} : vector<32x32xf32> to vector<32x4xf32>
    %cst_44 = arith.constant dense<0.000000e+00> : vector<32x32xf32>
    %127 = tpu.matmul %125, %126, %cst_44 {dimension_numbers = #tpu.dot_dimension_numbers<[1], [1], [0], [0], [0, 0, 1, 0], [], []>} : vector<32x4xf32>, vector<32x4xf32>, vector<32x32xf32> -> vector<32x32xf32>
    %cst_45 = arith.constant dense<0xFF800000> : vector<32xf32>
    %128 = vector.multi_reduction <maximumf>, %127, %cst_45 [1] : vector<32x32xf32> to vector<32xf32>
    %129 = vector.shape_cast %128 : vector<32xf32> to vector<32x1xf32>
    %130 = vector.broadcast %129 : vector<32x1xf32> to vector<32x32xf32>
    %131 = arith.subf %127, %130 : vector<32x32xf32>
    %132 = math.exp %131 : vector<32x32xf32>
    %cst_46 = arith.constant dense<0.000000e+00> : vector<32xf32>
    %133 = vector.multi_reduction <add>, %132, %cst_46 [1] : vector<32x32xf32> to vector<32xf32>
    %134 = vector.shape_cast %133 : vector<32xf32> to vector<32x1xf32>
    %135 = vector.broadcast %134 : vector<32x1xf32> to vector<32x32xf32>
    %136 = arith.divf %132, %135 : vector<32x32xf32>
    %137 = vector.extract_strided_slice %24 {offsets = [0, 28], sizes = [32, 4], strides = [1, 1]} : vector<32x32xf32> to vector<32x4xf32>
    %cst_47 = arith.constant dense<0.000000e+00> : vector<32x4xf32>
    %138 = tpu.matmul %136, %137, %cst_47 {dimension_numbers = #tpu.dot_dimension_numbers<[1], [0], [0], [1], [0, 0, 1, 1], [], []>} : vector<32x32xf32>, vector<32x4xf32>, vector<32x4xf32> -> vector<32x4xf32>
    %139 = tpu.concatenate %40, %54, %68, %82, %96, %110, %124, %138 in 1 : vector<32x4xf32>, vector<32x4xf32>, vector<32x4xf32>, vector<32x4xf32>, vector<32x4xf32>, vector<32x4xf32>, vector<32x4xf32>, vector<32x4xf32> -> vector<32x32xf32>
    %cst_48 = arith.constant dense<0.000000e+00> : vector<32x32xf32>
    %140 = tpu.matmul %139, %25, %cst_48 {dimension_numbers = #tpu.dot_dimension_numbers<[1], [0], [0], [1], [0, 0, 1, 1], [], []>} : vector<32x32xf32>, vector<32x32xf32>, vector<32x32xf32> -> vector<32x32xf32>
    %141 = vector.broadcast %26 : vector<1x32xf32> to vector<32x32xf32>
    %142 = arith.addf %140, %141 : vector<32x32xf32>
    %143 = arith.addf %11, %142 : vector<32x32xf32>
    %144 = vector.extract_strided_slice %17 {offsets = [97, 0], sizes = [1, 32], strides = [1, 1]} : vector<102x32xf32> to vector<1x32xf32>
    %145 = vector.extract_strided_slice %17 {offsets = [98, 0], sizes = [1, 32], strides = [1, 1]} : vector<102x32xf32> to vector<1x32xf32>
    %cst_49 = arith.constant dense<0.000000e+00> : vector<32xf32>
    %146 = vector.multi_reduction <add>, %143, %cst_49 [1] : vector<32x32xf32> to vector<32xf32>
    %147 = vector.shape_cast %146 : vector<32xf32> to vector<32x1xf32>
    %cst_50 = arith.constant 3.200000e+01 : f32
    %148 = vector.broadcast %cst_50 : f32 to vector<32x1xf32>
    %149 = arith.divf %147, %148 : vector<32x1xf32>
    %150 = vector.broadcast %149 : vector<32x1xf32> to vector<32x32xf32>
    %151 = arith.subf %143, %150 : vector<32x32xf32>
    %152 = arith.mulf %151, %151 : vector<32x32xf32>
    %cst_51 = arith.constant dense<0.000000e+00> : vector<32xf32>
    %153 = vector.multi_reduction <add>, %152, %cst_51 [1] : vector<32x32xf32> to vector<32xf32>
    %154 = vector.shape_cast %153 : vector<32xf32> to vector<32x1xf32>
    %cst_52 = arith.constant 3.200000e+01 : f32
    %155 = vector.broadcast %cst_52 : f32 to vector<32x1xf32>
    %156 = arith.divf %154, %155 : vector<32x1xf32>
    %cst_53 = arith.constant 9.99999974E-6 : f32
    %157 = vector.broadcast %cst_53 : f32 to vector<32x1xf32>
    %158 = arith.addf %156, %157 : vector<32x1xf32>
    %159 = math.rsqrt %158 : vector<32x1xf32>
    %160 = vector.broadcast %159 : vector<32x1xf32> to vector<32x32xf32>
    %161 = arith.mulf %151, %160 : vector<32x32xf32>
    %162 = vector.broadcast %144 : vector<1x32xf32> to vector<32x32xf32>
    %163 = arith.mulf %161, %162 : vector<32x32xf32>
    %164 = vector.broadcast %145 : vector<1x32xf32> to vector<32x32xf32>
    %165 = arith.addf %163, %164 : vector<32x32xf32>
    %166 = vector.extract_strided_slice %15 {offsets = [0, 0], sizes = [32, 64], strides = [1, 1]} : vector<33x64xf32> to vector<32x64xf32>
    %cst_54 = arith.constant dense<0.000000e+00> : vector<32x64xf32>
    %167 = tpu.matmul %165, %166, %cst_54 {dimension_numbers = #tpu.dot_dimension_numbers<[1], [0], [0], [1], [0, 0, 1, 1], [], []>} : vector<32x32xf32>, vector<32x64xf32>, vector<32x64xf32> -> vector<32x64xf32>
    %168 = vector.extract_strided_slice %15 {offsets = [32, 0], sizes = [1, 64], strides = [1, 1]} : vector<33x64xf32> to vector<1x64xf32>
    %169 = vector.broadcast %168 : vector<1x64xf32> to vector<32x64xf32>
    %170 = arith.addf %167, %169 : vector<32x64xf32>
    %cst_55 = arith.constant 0.000000e+00 : f32
    %171 = vector.broadcast %cst_55 : f32 to vector<32x64xf32>
    %172 = arith.maximumf %170, %171 : vector<32x64xf32>
    %173 = vector.extract_strided_slice %17 {offsets = [32, 0], sizes = [64, 32], strides = [1, 1]} : vector<102x32xf32> to vector<64x32xf32>
    %cst_56 = arith.constant dense<0.000000e+00> : vector<32x32xf32>
    %174 = tpu.matmul %172, %173, %cst_56 {dimension_numbers = #tpu.dot_dimension_numbers<[1], [0], [0], [1], [0, 0, 1, 1], [], []>} : vector<32x64xf32>, vector<64x32xf32>, vector<32x32xf32> -> vector<32x32xf32>
    %175 = vector.extract_strided_slice %17 {offsets = [99, 0], sizes = [1, 32], strides = [1, 1]} : vector<102x32xf32> to vector<1x32xf32>
    %176 = vector.broadcast %175 : vector<1x32xf32> to vector<32x32xf32>
    %177 = arith.addf %174, %176 : vector<32x32xf32>
    %178 = arith.addf %165, %177 : vector<32x32xf32>
    %179 = vector.extract_strided_slice %17 {offsets = [100, 0], sizes = [1, 32], strides = [1, 1]} : vector<102x32xf32> to vector<1x32xf32>
    %180 = vector.extract_strided_slice %17 {offsets = [101, 0], sizes = [1, 32], strides = [1, 1]} : vector<102x32xf32> to vector<1x32xf32>
    %cst_57 = arith.constant dense<0.000000e+00> : vector<32xf32>
    %181 = vector.multi_reduction <add>, %178, %cst_57 [1] : vector<32x32xf32> to vector<32xf32>
    %182 = vector.shape_cast %181 : vector<32xf32> to vector<32x1xf32>
    %cst_58 = arith.constant 3.200000e+01 : f32
    %183 = vector.broadcast %cst_58 : f32 to vector<32x1xf32>
    %184 = arith.divf %182, %183 : vector<32x1xf32>
    %185 = vector.broadcast %184 : vector<32x1xf32> to vector<32x32xf32>
    %186 = arith.subf %178, %185 : vector<32x32xf32>
    %187 = arith.mulf %186, %186 : vector<32x32xf32>
    %cst_59 = arith.constant dense<0.000000e+00> : vector<32xf32>
    %188 = vector.multi_reduction <add>, %187, %cst_59 [1] : vector<32x32xf32> to vector<32xf32>
    %189 = vector.shape_cast %188 : vector<32xf32> to vector<32x1xf32>
    %cst_60 = arith.constant 3.200000e+01 : f32
    %190 = vector.broadcast %cst_60 : f32 to vector<32x1xf32>
    %191 = arith.divf %189, %190 : vector<32x1xf32>
    %cst_61 = arith.constant 9.99999974E-6 : f32
    %192 = vector.broadcast %cst_61 : f32 to vector<32x1xf32>
    %193 = arith.addf %191, %192 : vector<32x1xf32>
    %194 = math.rsqrt %193 : vector<32x1xf32>
    %195 = vector.broadcast %194 : vector<32x1xf32> to vector<32x32xf32>
    %196 = arith.mulf %186, %195 : vector<32x32xf32>
    %197 = vector.broadcast %179 : vector<1x32xf32> to vector<32x32xf32>
    %198 = arith.mulf %196, %197 : vector<32x32xf32>
    %199 = vector.broadcast %180 : vector<1x32xf32> to vector<32x32xf32>
    %200 = arith.addf %198, %199 : vector<32x32xf32>
    %c1 = arith.constant 1 : index
    %c0_62 = arith.constant 0 : index
    %c0_63 = arith.constant 0 : index
    %201 = vector.load %arg4[%c1, %c0_62, %c0_63] : memref<2x64x96xf32, #tpu.memory_space<vmem>>, vector<1x64x96xf32>
    %202 = vector.shape_cast %201 : vector<1x64x96xf32> to vector<64x96xf32>
    %c1_64 = arith.constant 1 : index
    %c0_65 = arith.constant 0 : index
    %c0_66 = arith.constant 0 : index
    %203 = vector.load %arg5[%c1_64, %c0_65, %c0_66] : memref<2x33x64xf32, #tpu.memory_space<vmem>>, vector<1x33x64xf32>
    %204 = vector.shape_cast %203 : vector<1x33x64xf32> to vector<33x64xf32>
    %c1_67 = arith.constant 1 : index
    %c0_68 = arith.constant 0 : index
    %c0_69 = arith.constant 0 : index
    %205 = vector.load %arg6[%c1_67, %c0_68, %c0_69] : memref<2x102x32xf32, #tpu.memory_space<vmem>>, vector<1x102x32xf32>
    %206 = vector.shape_cast %205 : vector<1x102x32xf32> to vector<102x32xf32>
    %207 = vector.extract_strided_slice %202 {offsets = [0, 0], sizes = [32, 96], strides = [1, 1]} : vector<64x96xf32> to vector<32x96xf32>
    %cst_70 = arith.constant dense<0.000000e+00> : vector<32x96xf32>
    %208 = tpu.matmul %200, %207, %cst_70 {dimension_numbers = #tpu.dot_dimension_numbers<[1], [0], [0], [1], [0, 0, 1, 1], [], []>} : vector<32x32xf32>, vector<32x96xf32>, vector<32x96xf32> -> vector<32x96xf32>
    %209 = vector.extract_strided_slice %202 {offsets = [32, 0], sizes = [32, 96], strides = [1, 1]} : vector<64x96xf32> to vector<32x96xf32>
    %210 = arith.addf %208, %209 : vector<32x96xf32>
    %211 = vector.extract_strided_slice %210 {offsets = [0, 0], sizes = [32, 32], strides = [1, 1]} : vector<32x96xf32> to vector<32x32xf32>
    %212 = vector.extract_strided_slice %210 {offsets = [0, 32], sizes = [32, 32], strides = [1, 1]} : vector<32x96xf32> to vector<32x32xf32>
    %213 = vector.extract_strided_slice %210 {offsets = [0, 64], sizes = [32, 32], strides = [1, 1]} : vector<32x96xf32> to vector<32x32xf32>
    %214 = vector.extract_strided_slice %206 {offsets = [0, 0], sizes = [32, 32], strides = [1, 1]} : vector<102x32xf32> to vector<32x32xf32>
    %215 = vector.extract_strided_slice %206 {offsets = [96, 0], sizes = [1, 32], strides = [1, 1]} : vector<102x32xf32> to vector<1x32xf32>
    %216 = vector.extract_strided_slice %211 {offsets = [0, 0], sizes = [32, 4], strides = [1, 1]} : vector<32x32xf32> to vector<32x4xf32>
    %217 = vector.extract_strided_slice %212 {offsets = [0, 0], sizes = [32, 4], strides = [1, 1]} : vector<32x32xf32> to vector<32x4xf32>
    %cst_71 = arith.constant dense<0.000000e+00> : vector<32x32xf32>
    %218 = tpu.matmul %216, %217, %cst_71 {dimension_numbers = #tpu.dot_dimension_numbers<[1], [1], [0], [0], [0, 0, 1, 0], [], []>} : vector<32x4xf32>, vector<32x4xf32>, vector<32x32xf32> -> vector<32x32xf32>
    %cst_72 = arith.constant dense<0xFF800000> : vector<32xf32>
    %219 = vector.multi_reduction <maximumf>, %218, %cst_72 [1] : vector<32x32xf32> to vector<32xf32>
    %220 = vector.shape_cast %219 : vector<32xf32> to vector<32x1xf32>
    %221 = vector.broadcast %220 : vector<32x1xf32> to vector<32x32xf32>
    %222 = arith.subf %218, %221 : vector<32x32xf32>
    %223 = math.exp %222 : vector<32x32xf32>
    %cst_73 = arith.constant dense<0.000000e+00> : vector<32xf32>
    %224 = vector.multi_reduction <add>, %223, %cst_73 [1] : vector<32x32xf32> to vector<32xf32>
    %225 = vector.shape_cast %224 : vector<32xf32> to vector<32x1xf32>
    %226 = vector.broadcast %225 : vector<32x1xf32> to vector<32x32xf32>
    %227 = arith.divf %223, %226 : vector<32x32xf32>
    %228 = vector.extract_strided_slice %213 {offsets = [0, 0], sizes = [32, 4], strides = [1, 1]} : vector<32x32xf32> to vector<32x4xf32>
    %cst_74 = arith.constant dense<0.000000e+00> : vector<32x4xf32>
    %229 = tpu.matmul %227, %228, %cst_74 {dimension_numbers = #tpu.dot_dimension_numbers<[1], [0], [0], [1], [0, 0, 1, 1], [], []>} : vector<32x32xf32>, vector<32x4xf32>, vector<32x4xf32> -> vector<32x4xf32>
    %230 = vector.extract_strided_slice %211 {offsets = [0, 4], sizes = [32, 4], strides = [1, 1]} : vector<32x32xf32> to vector<32x4xf32>
    %231 = vector.extract_strided_slice %212 {offsets = [0, 4], sizes = [32, 4], strides = [1, 1]} : vector<32x32xf32> to vector<32x4xf32>
    %cst_75 = arith.constant dense<0.000000e+00> : vector<32x32xf32>
    %232 = tpu.matmul %230, %231, %cst_75 {dimension_numbers = #tpu.dot_dimension_numbers<[1], [1], [0], [0], [0, 0, 1, 0], [], []>} : vector<32x4xf32>, vector<32x4xf32>, vector<32x32xf32> -> vector<32x32xf32>
    %cst_76 = arith.constant dense<0xFF800000> : vector<32xf32>
    %233 = vector.multi_reduction <maximumf>, %232, %cst_76 [1] : vector<32x32xf32> to vector<32xf32>
    %234 = vector.shape_cast %233 : vector<32xf32> to vector<32x1xf32>
    %235 = vector.broadcast %234 : vector<32x1xf32> to vector<32x32xf32>
    %236 = arith.subf %232, %235 : vector<32x32xf32>
    %237 = math.exp %236 : vector<32x32xf32>
    %cst_77 = arith.constant dense<0.000000e+00> : vector<32xf32>
    %238 = vector.multi_reduction <add>, %237, %cst_77 [1] : vector<32x32xf32> to vector<32xf32>
    %239 = vector.shape_cast %238 : vector<32xf32> to vector<32x1xf32>
    %240 = vector.broadcast %239 : vector<32x1xf32> to vector<32x32xf32>
    %241 = arith.divf %237, %240 : vector<32x32xf32>
    %242 = vector.extract_strided_slice %213 {offsets = [0, 4], sizes = [32, 4], strides = [1, 1]} : vector<32x32xf32> to vector<32x4xf32>
    %cst_78 = arith.constant dense<0.000000e+00> : vector<32x4xf32>
    %243 = tpu.matmul %241, %242, %cst_78 {dimension_numbers = #tpu.dot_dimension_numbers<[1], [0], [0], [1], [0, 0, 1, 1], [], []>} : vector<32x32xf32>, vector<32x4xf32>, vector<32x4xf32> -> vector<32x4xf32>
    %244 = vector.extract_strided_slice %211 {offsets = [0, 8], sizes = [32, 4], strides = [1, 1]} : vector<32x32xf32> to vector<32x4xf32>
    %245 = vector.extract_strided_slice %212 {offsets = [0, 8], sizes = [32, 4], strides = [1, 1]} : vector<32x32xf32> to vector<32x4xf32>
    %cst_79 = arith.constant dense<0.000000e+00> : vector<32x32xf32>
    %246 = tpu.matmul %244, %245, %cst_79 {dimension_numbers = #tpu.dot_dimension_numbers<[1], [1], [0], [0], [0, 0, 1, 0], [], []>} : vector<32x4xf32>, vector<32x4xf32>, vector<32x32xf32> -> vector<32x32xf32>
    %cst_80 = arith.constant dense<0xFF800000> : vector<32xf32>
    %247 = vector.multi_reduction <maximumf>, %246, %cst_80 [1] : vector<32x32xf32> to vector<32xf32>
    %248 = vector.shape_cast %247 : vector<32xf32> to vector<32x1xf32>
    %249 = vector.broadcast %248 : vector<32x1xf32> to vector<32x32xf32>
    %250 = arith.subf %246, %249 : vector<32x32xf32>
    %251 = math.exp %250 : vector<32x32xf32>
    %cst_81 = arith.constant dense<0.000000e+00> : vector<32xf32>
    %252 = vector.multi_reduction <add>, %251, %cst_81 [1] : vector<32x32xf32> to vector<32xf32>
    %253 = vector.shape_cast %252 : vector<32xf32> to vector<32x1xf32>
    %254 = vector.broadcast %253 : vector<32x1xf32> to vector<32x32xf32>
    %255 = arith.divf %251, %254 : vector<32x32xf32>
    %256 = vector.extract_strided_slice %213 {offsets = [0, 8], sizes = [32, 4], strides = [1, 1]} : vector<32x32xf32> to vector<32x4xf32>
    %cst_82 = arith.constant dense<0.000000e+00> : vector<32x4xf32>
    %257 = tpu.matmul %255, %256, %cst_82 {dimension_numbers = #tpu.dot_dimension_numbers<[1], [0], [0], [1], [0, 0, 1, 1], [], []>} : vector<32x32xf32>, vector<32x4xf32>, vector<32x4xf32> -> vector<32x4xf32>
    %258 = vector.extract_strided_slice %211 {offsets = [0, 12], sizes = [32, 4], strides = [1, 1]} : vector<32x32xf32> to vector<32x4xf32>
    %259 = vector.extract_strided_slice %212 {offsets = [0, 12], sizes = [32, 4], strides = [1, 1]} : vector<32x32xf32> to vector<32x4xf32>
    %cst_83 = arith.constant dense<0.000000e+00> : vector<32x32xf32>
    %260 = tpu.matmul %258, %259, %cst_83 {dimension_numbers = #tpu.dot_dimension_numbers<[1], [1], [0], [0], [0, 0, 1, 0], [], []>} : vector<32x4xf32>, vector<32x4xf32>, vector<32x32xf32> -> vector<32x32xf32>
    %cst_84 = arith.constant dense<0xFF800000> : vector<32xf32>
    %261 = vector.multi_reduction <maximumf>, %260, %cst_84 [1] : vector<32x32xf32> to vector<32xf32>
    %262 = vector.shape_cast %261 : vector<32xf32> to vector<32x1xf32>
    %263 = vector.broadcast %262 : vector<32x1xf32> to vector<32x32xf32>
    %264 = arith.subf %260, %263 : vector<32x32xf32>
    %265 = math.exp %264 : vector<32x32xf32>
    %cst_85 = arith.constant dense<0.000000e+00> : vector<32xf32>
    %266 = vector.multi_reduction <add>, %265, %cst_85 [1] : vector<32x32xf32> to vector<32xf32>
    %267 = vector.shape_cast %266 : vector<32xf32> to vector<32x1xf32>
    %268 = vector.broadcast %267 : vector<32x1xf32> to vector<32x32xf32>
    %269 = arith.divf %265, %268 : vector<32x32xf32>
    %270 = vector.extract_strided_slice %213 {offsets = [0, 12], sizes = [32, 4], strides = [1, 1]} : vector<32x32xf32> to vector<32x4xf32>
    %cst_86 = arith.constant dense<0.000000e+00> : vector<32x4xf32>
    %271 = tpu.matmul %269, %270, %cst_86 {dimension_numbers = #tpu.dot_dimension_numbers<[1], [0], [0], [1], [0, 0, 1, 1], [], []>} : vector<32x32xf32>, vector<32x4xf32>, vector<32x4xf32> -> vector<32x4xf32>
    %272 = vector.extract_strided_slice %211 {offsets = [0, 16], sizes = [32, 4], strides = [1, 1]} : vector<32x32xf32> to vector<32x4xf32>
    %273 = vector.extract_strided_slice %212 {offsets = [0, 16], sizes = [32, 4], strides = [1, 1]} : vector<32x32xf32> to vector<32x4xf32>
    %cst_87 = arith.constant dense<0.000000e+00> : vector<32x32xf32>
    %274 = tpu.matmul %272, %273, %cst_87 {dimension_numbers = #tpu.dot_dimension_numbers<[1], [1], [0], [0], [0, 0, 1, 0], [], []>} : vector<32x4xf32>, vector<32x4xf32>, vector<32x32xf32> -> vector<32x32xf32>
    %cst_88 = arith.constant dense<0xFF800000> : vector<32xf32>
    %275 = vector.multi_reduction <maximumf>, %274, %cst_88 [1] : vector<32x32xf32> to vector<32xf32>
    %276 = vector.shape_cast %275 : vector<32xf32> to vector<32x1xf32>
    %277 = vector.broadcast %276 : vector<32x1xf32> to vector<32x32xf32>
    %278 = arith.subf %274, %277 : vector<32x32xf32>
    %279 = math.exp %278 : vector<32x32xf32>
    %cst_89 = arith.constant dense<0.000000e+00> : vector<32xf32>
    %280 = vector.multi_reduction <add>, %279, %cst_89 [1] : vector<32x32xf32> to vector<32xf32>
    %281 = vector.shape_cast %280 : vector<32xf32> to vector<32x1xf32>
    %282 = vector.broadcast %281 : vector<32x1xf32> to vector<32x32xf32>
    %283 = arith.divf %279, %282 : vector<32x32xf32>
    %284 = vector.extract_strided_slice %213 {offsets = [0, 16], sizes = [32, 4], strides = [1, 1]} : vector<32x32xf32> to vector<32x4xf32>
    %cst_90 = arith.constant dense<0.000000e+00> : vector<32x4xf32>
    %285 = tpu.matmul %283, %284, %cst_90 {dimension_numbers = #tpu.dot_dimension_numbers<[1], [0], [0], [1], [0, 0, 1, 1], [], []>} : vector<32x32xf32>, vector<32x4xf32>, vector<32x4xf32> -> vector<32x4xf32>
    %286 = vector.extract_strided_slice %211 {offsets = [0, 20], sizes = [32, 4], strides = [1, 1]} : vector<32x32xf32> to vector<32x4xf32>
    %287 = vector.extract_strided_slice %212 {offsets = [0, 20], sizes = [32, 4], strides = [1, 1]} : vector<32x32xf32> to vector<32x4xf32>
    %cst_91 = arith.constant dense<0.000000e+00> : vector<32x32xf32>
    %288 = tpu.matmul %286, %287, %cst_91 {dimension_numbers = #tpu.dot_dimension_numbers<[1], [1], [0], [0], [0, 0, 1, 0], [], []>} : vector<32x4xf32>, vector<32x4xf32>, vector<32x32xf32> -> vector<32x32xf32>
    %cst_92 = arith.constant dense<0xFF800000> : vector<32xf32>
    %289 = vector.multi_reduction <maximumf>, %288, %cst_92 [1] : vector<32x32xf32> to vector<32xf32>
    %290 = vector.shape_cast %289 : vector<32xf32> to vector<32x1xf32>
    %291 = vector.broadcast %290 : vector<32x1xf32> to vector<32x32xf32>
    %292 = arith.subf %288, %291 : vector<32x32xf32>
    %293 = math.exp %292 : vector<32x32xf32>
    %cst_93 = arith.constant dense<0.000000e+00> : vector<32xf32>
    %294 = vector.multi_reduction <add>, %293, %cst_93 [1] : vector<32x32xf32> to vector<32xf32>
    %295 = vector.shape_cast %294 : vector<32xf32> to vector<32x1xf32>
    %296 = vector.broadcast %295 : vector<32x1xf32> to vector<32x32xf32>
    %297 = arith.divf %293, %296 : vector<32x32xf32>
    %298 = vector.extract_strided_slice %213 {offsets = [0, 20], sizes = [32, 4], strides = [1, 1]} : vector<32x32xf32> to vector<32x4xf32>
    %cst_94 = arith.constant dense<0.000000e+00> : vector<32x4xf32>
    %299 = tpu.matmul %297, %298, %cst_94 {dimension_numbers = #tpu.dot_dimension_numbers<[1], [0], [0], [1], [0, 0, 1, 1], [], []>} : vector<32x32xf32>, vector<32x4xf32>, vector<32x4xf32> -> vector<32x4xf32>
    %300 = vector.extract_strided_slice %211 {offsets = [0, 24], sizes = [32, 4], strides = [1, 1]} : vector<32x32xf32> to vector<32x4xf32>
    %301 = vector.extract_strided_slice %212 {offsets = [0, 24], sizes = [32, 4], strides = [1, 1]} : vector<32x32xf32> to vector<32x4xf32>
    %cst_95 = arith.constant dense<0.000000e+00> : vector<32x32xf32>
    %302 = tpu.matmul %300, %301, %cst_95 {dimension_numbers = #tpu.dot_dimension_numbers<[1], [1], [0], [0], [0, 0, 1, 0], [], []>} : vector<32x4xf32>, vector<32x4xf32>, vector<32x32xf32> -> vector<32x32xf32>
    %cst_96 = arith.constant dense<0xFF800000> : vector<32xf32>
    %303 = vector.multi_reduction <maximumf>, %302, %cst_96 [1] : vector<32x32xf32> to vector<32xf32>
    %304 = vector.shape_cast %303 : vector<32xf32> to vector<32x1xf32>
    %305 = vector.broadcast %304 : vector<32x1xf32> to vector<32x32xf32>
    %306 = arith.subf %302, %305 : vector<32x32xf32>
    %307 = math.exp %306 : vector<32x32xf32>
    %cst_97 = arith.constant dense<0.000000e+00> : vector<32xf32>
    %308 = vector.multi_reduction <add>, %307, %cst_97 [1] : vector<32x32xf32> to vector<32xf32>
    %309 = vector.shape_cast %308 : vector<32xf32> to vector<32x1xf32>
    %310 = vector.broadcast %309 : vector<32x1xf32> to vector<32x32xf32>
    %311 = arith.divf %307, %310 : vector<32x32xf32>
    %312 = vector.extract_strided_slice %213 {offsets = [0, 24], sizes = [32, 4], strides = [1, 1]} : vector<32x32xf32> to vector<32x4xf32>
    %cst_98 = arith.constant dense<0.000000e+00> : vector<32x4xf32>
    %313 = tpu.matmul %311, %312, %cst_98 {dimension_numbers = #tpu.dot_dimension_numbers<[1], [0], [0], [1], [0, 0, 1, 1], [], []>} : vector<32x32xf32>, vector<32x4xf32>, vector<32x4xf32> -> vector<32x4xf32>
    %314 = vector.extract_strided_slice %211 {offsets = [0, 28], sizes = [32, 4], strides = [1, 1]} : vector<32x32xf32> to vector<32x4xf32>
    %315 = vector.extract_strided_slice %212 {offsets = [0, 28], sizes = [32, 4], strides = [1, 1]} : vector<32x32xf32> to vector<32x4xf32>
    %cst_99 = arith.constant dense<0.000000e+00> : vector<32x32xf32>
    %316 = tpu.matmul %314, %315, %cst_99 {dimension_numbers = #tpu.dot_dimension_numbers<[1], [1], [0], [0], [0, 0, 1, 0], [], []>} : vector<32x4xf32>, vector<32x4xf32>, vector<32x32xf32> -> vector<32x32xf32>
    %cst_100 = arith.constant dense<0xFF800000> : vector<32xf32>
    %317 = vector.multi_reduction <maximumf>, %316, %cst_100 [1] : vector<32x32xf32> to vector<32xf32>
    %318 = vector.shape_cast %317 : vector<32xf32> to vector<32x1xf32>
    %319 = vector.broadcast %318 : vector<32x1xf32> to vector<32x32xf32>
    %320 = arith.subf %316, %319 : vector<32x32xf32>
    %321 = math.exp %320 : vector<32x32xf32>
    %cst_101 = arith.constant dense<0.000000e+00> : vector<32xf32>
    %322 = vector.multi_reduction <add>, %321, %cst_101 [1] : vector<32x32xf32> to vector<32xf32>
    %323 = vector.shape_cast %322 : vector<32xf32> to vector<32x1xf32>
    %324 = vector.broadcast %323 : vector<32x1xf32> to vector<32x32xf32>
    %325 = arith.divf %321, %324 : vector<32x32xf32>
    %326 = vector.extract_strided_slice %213 {offsets = [0, 28], sizes = [32, 4], strides = [1, 1]} : vector<32x32xf32> to vector<32x4xf32>
    %cst_102 = arith.constant dense<0.000000e+00> : vector<32x4xf32>
    %327 = tpu.matmul %325, %326, %cst_102 {dimension_numbers = #tpu.dot_dimension_numbers<[1], [0], [0], [1], [0, 0, 1, 1], [], []>} : vector<32x32xf32>, vector<32x4xf32>, vector<32x4xf32> -> vector<32x4xf32>
    %328 = tpu.concatenate %229, %243, %257, %271, %285, %299, %313, %327 in 1 : vector<32x4xf32>, vector<32x4xf32>, vector<32x4xf32>, vector<32x4xf32>, vector<32x4xf32>, vector<32x4xf32>, vector<32x4xf32>, vector<32x4xf32> -> vector<32x32xf32>
    %cst_103 = arith.constant dense<0.000000e+00> : vector<32x32xf32>
    %329 = tpu.matmul %328, %214, %cst_103 {dimension_numbers = #tpu.dot_dimension_numbers<[1], [0], [0], [1], [0, 0, 1, 1], [], []>} : vector<32x32xf32>, vector<32x32xf32>, vector<32x32xf32> -> vector<32x32xf32>
    %330 = vector.broadcast %215 : vector<1x32xf32> to vector<32x32xf32>
    %331 = arith.addf %329, %330 : vector<32x32xf32>
    %332 = arith.addf %200, %331 : vector<32x32xf32>
    %333 = vector.extract_strided_slice %206 {offsets = [97, 0], sizes = [1, 32], strides = [1, 1]} : vector<102x32xf32> to vector<1x32xf32>
    %334 = vector.extract_strided_slice %206 {offsets = [98, 0], sizes = [1, 32], strides = [1, 1]} : vector<102x32xf32> to vector<1x32xf32>
    %cst_104 = arith.constant dense<0.000000e+00> : vector<32xf32>
    %335 = vector.multi_reduction <add>, %332, %cst_104 [1] : vector<32x32xf32> to vector<32xf32>
    %336 = vector.shape_cast %335 : vector<32xf32> to vector<32x1xf32>
    %cst_105 = arith.constant 3.200000e+01 : f32
    %337 = vector.broadcast %cst_105 : f32 to vector<32x1xf32>
    %338 = arith.divf %336, %337 : vector<32x1xf32>
    %339 = vector.broadcast %338 : vector<32x1xf32> to vector<32x32xf32>
    %340 = arith.subf %332, %339 : vector<32x32xf32>
    %341 = arith.mulf %340, %340 : vector<32x32xf32>
    %cst_106 = arith.constant dense<0.000000e+00> : vector<32xf32>
    %342 = vector.multi_reduction <add>, %341, %cst_106 [1] : vector<32x32xf32> to vector<32xf32>
    %343 = vector.shape_cast %342 : vector<32xf32> to vector<32x1xf32>
    %cst_107 = arith.constant 3.200000e+01 : f32
    %344 = vector.broadcast %cst_107 : f32 to vector<32x1xf32>
    %345 = arith.divf %343, %344 : vector<32x1xf32>
    %cst_108 = arith.constant 9.99999974E-6 : f32
    %346 = vector.broadcast %cst_108 : f32 to vector<32x1xf32>
    %347 = arith.addf %345, %346 : vector<32x1xf32>
    %348 = math.rsqrt %347 : vector<32x1xf32>
    %349 = vector.broadcast %348 : vector<32x1xf32> to vector<32x32xf32>
    %350 = arith.mulf %340, %349 : vector<32x32xf32>
    %351 = vector.broadcast %333 : vector<1x32xf32> to vector<32x32xf32>
    %352 = arith.mulf %350, %351 : vector<32x32xf32>
    %353 = vector.broadcast %334 : vector<1x32xf32> to vector<32x32xf32>
    %354 = arith.addf %352, %353 : vector<32x32xf32>
    %355 = vector.extract_strided_slice %204 {offsets = [0, 0], sizes = [32, 64], strides = [1, 1]} : vector<33x64xf32> to vector<32x64xf32>
    %cst_109 = arith.constant dense<0.000000e+00> : vector<32x64xf32>
    %356 = tpu.matmul %354, %355, %cst_109 {dimension_numbers = #tpu.dot_dimension_numbers<[1], [0], [0], [1], [0, 0, 1, 1], [], []>} : vector<32x32xf32>, vector<32x64xf32>, vector<32x64xf32> -> vector<32x64xf32>
    %357 = vector.extract_strided_slice %204 {offsets = [32, 0], sizes = [1, 64], strides = [1, 1]} : vector<33x64xf32> to vector<1x64xf32>
    %358 = vector.broadcast %357 : vector<1x64xf32> to vector<32x64xf32>
    %359 = arith.addf %356, %358 : vector<32x64xf32>
    %cst_110 = arith.constant 0.000000e+00 : f32
    %360 = vector.broadcast %cst_110 : f32 to vector<32x64xf32>
    %361 = arith.maximumf %359, %360 : vector<32x64xf32>
    %362 = vector.extract_strided_slice %206 {offsets = [32, 0], sizes = [64, 32], strides = [1, 1]} : vector<102x32xf32> to vector<64x32xf32>
    %cst_111 = arith.constant dense<0.000000e+00> : vector<32x32xf32>
    %363 = tpu.matmul %361, %362, %cst_111 {dimension_numbers = #tpu.dot_dimension_numbers<[1], [0], [0], [1], [0, 0, 1, 1], [], []>} : vector<32x64xf32>, vector<64x32xf32>, vector<32x32xf32> -> vector<32x32xf32>
    %364 = vector.extract_strided_slice %206 {offsets = [99, 0], sizes = [1, 32], strides = [1, 1]} : vector<102x32xf32> to vector<1x32xf32>
    %365 = vector.broadcast %364 : vector<1x32xf32> to vector<32x32xf32>
    %366 = arith.addf %363, %365 : vector<32x32xf32>
    %367 = arith.addf %354, %366 : vector<32x32xf32>
    %368 = vector.extract_strided_slice %206 {offsets = [100, 0], sizes = [1, 32], strides = [1, 1]} : vector<102x32xf32> to vector<1x32xf32>
    %369 = vector.extract_strided_slice %206 {offsets = [101, 0], sizes = [1, 32], strides = [1, 1]} : vector<102x32xf32> to vector<1x32xf32>
    %cst_112 = arith.constant dense<0.000000e+00> : vector<32xf32>
    %370 = vector.multi_reduction <add>, %367, %cst_112 [1] : vector<32x32xf32> to vector<32xf32>
    %371 = vector.shape_cast %370 : vector<32xf32> to vector<32x1xf32>
    %cst_113 = arith.constant 3.200000e+01 : f32
    %372 = vector.broadcast %cst_113 : f32 to vector<32x1xf32>
    %373 = arith.divf %371, %372 : vector<32x1xf32>
    %374 = vector.broadcast %373 : vector<32x1xf32> to vector<32x32xf32>
    %375 = arith.subf %367, %374 : vector<32x32xf32>
    %376 = arith.mulf %375, %375 : vector<32x32xf32>
    %cst_114 = arith.constant dense<0.000000e+00> : vector<32xf32>
    %377 = vector.multi_reduction <add>, %376, %cst_114 [1] : vector<32x32xf32> to vector<32xf32>
    %378 = vector.shape_cast %377 : vector<32xf32> to vector<32x1xf32>
    %cst_115 = arith.constant 3.200000e+01 : f32
    %379 = vector.broadcast %cst_115 : f32 to vector<32x1xf32>
    %380 = arith.divf %378, %379 : vector<32x1xf32>
    %cst_116 = arith.constant 9.99999974E-6 : f32
    %381 = vector.broadcast %cst_116 : f32 to vector<32x1xf32>
    %382 = arith.addf %380, %381 : vector<32x1xf32>
    %383 = math.rsqrt %382 : vector<32x1xf32>
    %384 = vector.broadcast %383 : vector<32x1xf32> to vector<32x32xf32>
    %385 = arith.mulf %375, %384 : vector<32x32xf32>
    %386 = vector.broadcast %368 : vector<1x32xf32> to vector<32x32xf32>
    %387 = arith.mulf %385, %386 : vector<32x32xf32>
    %388 = vector.broadcast %369 : vector<1x32xf32> to vector<32x32xf32>
    %389 = arith.addf %387, %388 : vector<32x32xf32>
    %c0_117 = arith.constant 0 : index
    %c0_118 = arith.constant 0 : index
    %c0_119 = arith.constant 0 : index
    %390 = vector.load %arg12[%c0_117, %c0_118, %c0_119] : memref<1x32x32xf32, #tpu.memory_space<vmem>>, vector<1x32x32xf32>
    %391 = vector.shape_cast %390 : vector<1x32x32xf32> to vector<32x32xf32>
    %392 = vector.shape_cast %389 : vector<32x32xf32> to vector<1x32x32xf32>
    tpu.vector_store %arg12[%c0_117, %c0_118, %c0_119], %392 {strides = array<i32>} : memref<1x32x32xf32, #tpu.memory_space<vmem>>, vector<1x32x32xf32>,
    %c0_120 = arith.constant 0 : index
    %c0_121 = arith.constant 0 : index
    %c0_122 = arith.constant 0 : index
    %393 = vector.load %arg2[%c0_120, %c0_121, %c0_122] : memref<1x8x32xf32, #tpu.memory_space<vmem>>, vector<1x8x32xf32>
    %394 = vector.shape_cast %393 : vector<1x8x32xf32> to vector<8x32xf32>
    %cst_123 = arith.constant 0.000000e+00 : f32
    %395 = vector.broadcast %cst_123 : f32 to vector<8x32xf32>
    %c0_124 = arith.constant 0 : index
    %c0_125 = arith.constant 0 : index
    %c0_126 = arith.constant 0 : index
    %396 = vector.load %arg7[%c0_124, %c0_125, %c0_126] : memref<2x33x96xf32, #tpu.memory_space<vmem>>, vector<1x33x96xf32>
    %397 = vector.shape_cast %396 : vector<1x33x96xf32> to vector<33x96xf32>
    %c0_127 = arith.constant 0 : index
    %c0_128 = arith.constant 0 : index
    %c0_129 = arith.constant 0 : index
    %398 = vector.load %arg8[%c0_127, %c0_128, %c0_129] : memref<2x97x64xf32, #tpu.memory_space<vmem>>, vector<1x97x64xf32>
    %399 = vector.shape_cast %398 : vector<1x97x64xf32> to vector<97x64xf32>
    %c0_130 = arith.constant 0 : index
    %c0_131 = arith.constant 0 : index
    %c0_132 = arith.constant 0 : index
    %400 = vector.load %arg9[%c0_130, %c0_131, %c0_132] : memref<2x170x32xf32, #tpu.memory_space<vmem>>, vector<1x170x32xf32>
    %401 = vector.shape_cast %400 : vector<1x170x32xf32> to vector<170x32xf32>
    %402 = vector.extract_strided_slice %397 {offsets = [0, 0], sizes = [32, 96], strides = [1, 1]} : vector<33x96xf32> to vector<32x96xf32>
    %403 = vector.extract_strided_slice %397 {offsets = [32, 0], sizes = [1, 96], strides = [1, 1]} : vector<33x96xf32> to vector<1x96xf32>
    %404 = arith.addf %395, %394 : vector<8x32xf32>
    %405 = vector.extract_strided_slice %402 {offsets = [0, 0], sizes = [32, 64], strides = [1, 1]} : vector<32x96xf32> to vector<32x64xf32>
    %cst_133 = arith.constant dense<0.000000e+00> : vector<8x64xf32>
    %406 = tpu.matmul %404, %405, %cst_133 {dimension_numbers = #tpu.dot_dimension_numbers<[1], [0], [0], [1], [0, 0, 1, 1], [], []>} : vector<8x32xf32>, vector<32x64xf32>, vector<8x64xf32> -> vector<8x64xf32>
    %407 = vector.extract_strided_slice %403 {offsets = [0, 0], sizes = [1, 64], strides = [1, 1]} : vector<1x96xf32> to vector<1x64xf32>
    %408 = vector.broadcast %407 : vector<1x64xf32> to vector<8x64xf32>
    %409 = arith.addf %406, %408 : vector<8x64xf32>
    %410 = vector.extract_strided_slice %402 {offsets = [0, 64], sizes = [32, 32], strides = [1, 1]} : vector<32x96xf32> to vector<32x32xf32>
    %cst_134 = arith.constant dense<0.000000e+00> : vector<8x32xf32>
    %411 = tpu.matmul %395, %410, %cst_134 {dimension_numbers = #tpu.dot_dimension_numbers<[1], [0], [0], [1], [0, 0, 1, 1], [], []>} : vector<8x32xf32>, vector<32x32xf32>, vector<8x32xf32> -> vector<8x32xf32>
    %412 = vector.extract_strided_slice %403 {offsets = [0, 64], sizes = [1, 32], strides = [1, 1]} : vector<1x96xf32> to vector<1x32xf32>
    %413 = vector.broadcast %412 : vector<1x32xf32> to vector<8x32xf32>
    %414 = arith.addf %411, %413 : vector<8x32xf32>
    %415 = vector.extract_strided_slice %409 {offsets = [0, 0], sizes = [8, 32], strides = [1, 1]} : vector<8x64xf32> to vector<8x32xf32>
    %416 = vector.extract_strided_slice %409 {offsets = [0, 32], sizes = [8, 32], strides = [1, 1]} : vector<8x64xf32> to vector<8x32xf32>
    %417 = vector.extract_strided_slice %401 {offsets = [0, 0], sizes = [32, 32], strides = [1, 1]} : vector<170x32xf32> to vector<32x32xf32>
    %418 = vector.extract_strided_slice %401 {offsets = [160, 0], sizes = [1, 32], strides = [1, 1]} : vector<170x32xf32> to vector<1x32xf32>
    %419 = vector.extract_strided_slice %415 {offsets = [0, 0], sizes = [8, 4], strides = [1, 1]} : vector<8x32xf32> to vector<8x4xf32>
    %420 = vector.extract_strided_slice %416 {offsets = [0, 0], sizes = [8, 4], strides = [1, 1]} : vector<8x32xf32> to vector<8x4xf32>
    %cst_135 = arith.constant dense<0.000000e+00> : vector<8x8xf32>
    %421 = tpu.matmul %419, %420, %cst_135 {dimension_numbers = #tpu.dot_dimension_numbers<[1], [1], [0], [0], [0, 0, 1, 0], [], []>} : vector<8x4xf32>, vector<8x4xf32>, vector<8x8xf32> -> vector<8x8xf32>
    %cst_136 = arith.constant dense<0xFF800000> : vector<8xf32>
    %422 = vector.multi_reduction <maximumf>, %421, %cst_136 [1] : vector<8x8xf32> to vector<8xf32>
    %423 = vector.shape_cast %422 : vector<8xf32> to vector<8x1xf32>
    %424 = vector.broadcast %423 : vector<8x1xf32> to vector<8x8xf32>
    %425 = arith.subf %421, %424 : vector<8x8xf32>
    %426 = math.exp %425 : vector<8x8xf32>
    %cst_137 = arith.constant dense<0.000000e+00> : vector<8xf32>
    %427 = vector.multi_reduction <add>, %426, %cst_137 [1] : vector<8x8xf32> to vector<8xf32>
    %428 = vector.shape_cast %427 : vector<8xf32> to vector<8x1xf32>
    %429 = vector.broadcast %428 : vector<8x1xf32> to vector<8x8xf32>
    %430 = arith.divf %426, %429 : vector<8x8xf32>
    %431 = vector.extract_strided_slice %414 {offsets = [0, 0], sizes = [8, 4], strides = [1, 1]} : vector<8x32xf32> to vector<8x4xf32>
    %cst_138 = arith.constant dense<0.000000e+00> : vector<8x4xf32>
    %432 = tpu.matmul %430, %431, %cst_138 {dimension_numbers = #tpu.dot_dimension_numbers<[1], [0], [0], [1], [0, 0, 1, 1], [], []>} : vector<8x8xf32>, vector<8x4xf32>, vector<8x4xf32> -> vector<8x4xf32>
    %433 = vector.extract_strided_slice %415 {offsets = [0, 4], sizes = [8, 4], strides = [1, 1]} : vector<8x32xf32> to vector<8x4xf32>
    %434 = vector.extract_strided_slice %416 {offsets = [0, 4], sizes = [8, 4], strides = [1, 1]} : vector<8x32xf32> to vector<8x4xf32>
    %cst_139 = arith.constant dense<0.000000e+00> : vector<8x8xf32>
    %435 = tpu.matmul %433, %434, %cst_139 {dimension_numbers = #tpu.dot_dimension_numbers<[1], [1], [0], [0], [0, 0, 1, 0], [], []>} : vector<8x4xf32>, vector<8x4xf32>, vector<8x8xf32> -> vector<8x8xf32>
    %cst_140 = arith.constant dense<0xFF800000> : vector<8xf32>
    %436 = vector.multi_reduction <maximumf>, %435, %cst_140 [1] : vector<8x8xf32> to vector<8xf32>
    %437 = vector.shape_cast %436 : vector<8xf32> to vector<8x1xf32>
    %438 = vector.broadcast %437 : vector<8x1xf32> to vector<8x8xf32>
    %439 = arith.subf %435, %438 : vector<8x8xf32>
    %440 = math.exp %439 : vector<8x8xf32>
    %cst_141 = arith.constant dense<0.000000e+00> : vector<8xf32>
    %441 = vector.multi_reduction <add>, %440, %cst_141 [1] : vector<8x8xf32> to vector<8xf32>
    %442 = vector.shape_cast %441 : vector<8xf32> to vector<8x1xf32>
    %443 = vector.broadcast %442 : vector<8x1xf32> to vector<8x8xf32>
    %444 = arith.divf %440, %443 : vector<8x8xf32>
    %445 = vector.extract_strided_slice %414 {offsets = [0, 4], sizes = [8, 4], strides = [1, 1]} : vector<8x32xf32> to vector<8x4xf32>
    %cst_142 = arith.constant dense<0.000000e+00> : vector<8x4xf32>
    %446 = tpu.matmul %444, %445, %cst_142 {dimension_numbers = #tpu.dot_dimension_numbers<[1], [0], [0], [1], [0, 0, 1, 1], [], []>} : vector<8x8xf32>, vector<8x4xf32>, vector<8x4xf32> -> vector<8x4xf32>
    %447 = vector.extract_strided_slice %415 {offsets = [0, 8], sizes = [8, 4], strides = [1, 1]} : vector<8x32xf32> to vector<8x4xf32>
    %448 = vector.extract_strided_slice %416 {offsets = [0, 8], sizes = [8, 4], strides = [1, 1]} : vector<8x32xf32> to vector<8x4xf32>
    %cst_143 = arith.constant dense<0.000000e+00> : vector<8x8xf32>
    %449 = tpu.matmul %447, %448, %cst_143 {dimension_numbers = #tpu.dot_dimension_numbers<[1], [1], [0], [0], [0, 0, 1, 0], [], []>} : vector<8x4xf32>, vector<8x4xf32>, vector<8x8xf32> -> vector<8x8xf32>
    %cst_144 = arith.constant dense<0xFF800000> : vector<8xf32>
    %450 = vector.multi_reduction <maximumf>, %449, %cst_144 [1] : vector<8x8xf32> to vector<8xf32>
    %451 = vector.shape_cast %450 : vector<8xf32> to vector<8x1xf32>
    %452 = vector.broadcast %451 : vector<8x1xf32> to vector<8x8xf32>
    %453 = arith.subf %449, %452 : vector<8x8xf32>
    %454 = math.exp %453 : vector<8x8xf32>
    %cst_145 = arith.constant dense<0.000000e+00> : vector<8xf32>
    %455 = vector.multi_reduction <add>, %454, %cst_145 [1] : vector<8x8xf32> to vector<8xf32>
    %456 = vector.shape_cast %455 : vector<8xf32> to vector<8x1xf32>
    %457 = vector.broadcast %456 : vector<8x1xf32> to vector<8x8xf32>
    %458 = arith.divf %454, %457 : vector<8x8xf32>
    %459 = vector.extract_strided_slice %414 {offsets = [0, 8], sizes = [8, 4], strides = [1, 1]} : vector<8x32xf32> to vector<8x4xf32>
    %cst_146 = arith.constant dense<0.000000e+00> : vector<8x4xf32>
    %460 = tpu.matmul %458, %459, %cst_146 {dimension_numbers = #tpu.dot_dimension_numbers<[1], [0], [0], [1], [0, 0, 1, 1], [], []>} : vector<8x8xf32>, vector<8x4xf32>, vector<8x4xf32> -> vector<8x4xf32>
    %461 = vector.extract_strided_slice %415 {offsets = [0, 12], sizes = [8, 4], strides = [1, 1]} : vector<8x32xf32> to vector<8x4xf32>
    %462 = vector.extract_strided_slice %416 {offsets = [0, 12], sizes = [8, 4], strides = [1, 1]} : vector<8x32xf32> to vector<8x4xf32>
    %cst_147 = arith.constant dense<0.000000e+00> : vector<8x8xf32>
    %463 = tpu.matmul %461, %462, %cst_147 {dimension_numbers = #tpu.dot_dimension_numbers<[1], [1], [0], [0], [0, 0, 1, 0], [], []>} : vector<8x4xf32>, vector<8x4xf32>, vector<8x8xf32> -> vector<8x8xf32>
    %cst_148 = arith.constant dense<0xFF800000> : vector<8xf32>
    %464 = vector.multi_reduction <maximumf>, %463, %cst_148 [1] : vector<8x8xf32> to vector<8xf32>
    %465 = vector.shape_cast %464 : vector<8xf32> to vector<8x1xf32>
    %466 = vector.broadcast %465 : vector<8x1xf32> to vector<8x8xf32>
    %467 = arith.subf %463, %466 : vector<8x8xf32>
    %468 = math.exp %467 : vector<8x8xf32>
    %cst_149 = arith.constant dense<0.000000e+00> : vector<8xf32>
    %469 = vector.multi_reduction <add>, %468, %cst_149 [1] : vector<8x8xf32> to vector<8xf32>
    %470 = vector.shape_cast %469 : vector<8xf32> to vector<8x1xf32>
    %471 = vector.broadcast %470 : vector<8x1xf32> to vector<8x8xf32>
    %472 = arith.divf %468, %471 : vector<8x8xf32>
    %473 = vector.extract_strided_slice %414 {offsets = [0, 12], sizes = [8, 4], strides = [1, 1]} : vector<8x32xf32> to vector<8x4xf32>
    %cst_150 = arith.constant dense<0.000000e+00> : vector<8x4xf32>
    %474 = tpu.matmul %472, %473, %cst_150 {dimension_numbers = #tpu.dot_dimension_numbers<[1], [0], [0], [1], [0, 0, 1, 1], [], []>} : vector<8x8xf32>, vector<8x4xf32>, vector<8x4xf32> -> vector<8x4xf32>
    %475 = vector.extract_strided_slice %415 {offsets = [0, 16], sizes = [8, 4], strides = [1, 1]} : vector<8x32xf32> to vector<8x4xf32>
    %476 = vector.extract_strided_slice %416 {offsets = [0, 16], sizes = [8, 4], strides = [1, 1]} : vector<8x32xf32> to vector<8x4xf32>
    %cst_151 = arith.constant dense<0.000000e+00> : vector<8x8xf32>
    %477 = tpu.matmul %475, %476, %cst_151 {dimension_numbers = #tpu.dot_dimension_numbers<[1], [1], [0], [0], [0, 0, 1, 0], [], []>} : vector<8x4xf32>, vector<8x4xf32>, vector<8x8xf32> -> vector<8x8xf32>
    %cst_152 = arith.constant dense<0xFF800000> : vector<8xf32>
    %478 = vector.multi_reduction <maximumf>, %477, %cst_152 [1] : vector<8x8xf32> to vector<8xf32>
    %479 = vector.shape_cast %478 : vector<8xf32> to vector<8x1xf32>
    %480 = vector.broadcast %479 : vector<8x1xf32> to vector<8x8xf32>
    %481 = arith.subf %477, %480 : vector<8x8xf32>
    %482 = math.exp %481 : vector<8x8xf32>
    %cst_153 = arith.constant dense<0.000000e+00> : vector<8xf32>
    %483 = vector.multi_reduction <add>, %482, %cst_153 [1] : vector<8x8xf32> to vector<8xf32>
    %484 = vector.shape_cast %483 : vector<8xf32> to vector<8x1xf32>
    %485 = vector.broadcast %484 : vector<8x1xf32> to vector<8x8xf32>
    %486 = arith.divf %482, %485 : vector<8x8xf32>
    %487 = vector.extract_strided_slice %414 {offsets = [0, 16], sizes = [8, 4], strides = [1, 1]} : vector<8x32xf32> to vector<8x4xf32>
    %cst_154 = arith.constant dense<0.000000e+00> : vector<8x4xf32>
    %488 = tpu.matmul %486, %487, %cst_154 {dimension_numbers = #tpu.dot_dimension_numbers<[1], [0], [0], [1], [0, 0, 1, 1], [], []>} : vector<8x8xf32>, vector<8x4xf32>, vector<8x4xf32> -> vector<8x4xf32>
    %489 = vector.extract_strided_slice %415 {offsets = [0, 20], sizes = [8, 4], strides = [1, 1]} : vector<8x32xf32> to vector<8x4xf32>
    %490 = vector.extract_strided_slice %416 {offsets = [0, 20], sizes = [8, 4], strides = [1, 1]} : vector<8x32xf32> to vector<8x4xf32>
    %cst_155 = arith.constant dense<0.000000e+00> : vector<8x8xf32>
    %491 = tpu.matmul %489, %490, %cst_155 {dimension_numbers = #tpu.dot_dimension_numbers<[1], [1], [0], [0], [0, 0, 1, 0], [], []>} : vector<8x4xf32>, vector<8x4xf32>, vector<8x8xf32> -> vector<8x8xf32>
    %cst_156 = arith.constant dense<0xFF800000> : vector<8xf32>
    %492 = vector.multi_reduction <maximumf>, %491, %cst_156 [1] : vector<8x8xf32> to vector<8xf32>
    %493 = vector.shape_cast %492 : vector<8xf32> to vector<8x1xf32>
    %494 = vector.broadcast %493 : vector<8x1xf32> to vector<8x8xf32>
    %495 = arith.subf %491, %494 : vector<8x8xf32>
    %496 = math.exp %495 : vector<8x8xf32>
    %cst_157 = arith.constant dense<0.000000e+00> : vector<8xf32>
    %497 = vector.multi_reduction <add>, %496, %cst_157 [1] : vector<8x8xf32> to vector<8xf32>
    %498 = vector.shape_cast %497 : vector<8xf32> to vector<8x1xf32>
    %499 = vector.broadcast %498 : vector<8x1xf32> to vector<8x8xf32>
    %500 = arith.divf %496, %499 : vector<8x8xf32>
    %501 = vector.extract_strided_slice %414 {offsets = [0, 20], sizes = [8, 4], strides = [1, 1]} : vector<8x32xf32> to vector<8x4xf32>
    %cst_158 = arith.constant dense<0.000000e+00> : vector<8x4xf32>
    %502 = tpu.matmul %500, %501, %cst_158 {dimension_numbers = #tpu.dot_dimension_numbers<[1], [0], [0], [1], [0, 0, 1, 1], [], []>} : vector<8x8xf32>, vector<8x4xf32>, vector<8x4xf32> -> vector<8x4xf32>
    %503 = vector.extract_strided_slice %415 {offsets = [0, 24], sizes = [8, 4], strides = [1, 1]} : vector<8x32xf32> to vector<8x4xf32>
    %504 = vector.extract_strided_slice %416 {offsets = [0, 24], sizes = [8, 4], strides = [1, 1]} : vector<8x32xf32> to vector<8x4xf32>
    %cst_159 = arith.constant dense<0.000000e+00> : vector<8x8xf32>
    %505 = tpu.matmul %503, %504, %cst_159 {dimension_numbers = #tpu.dot_dimension_numbers<[1], [1], [0], [0], [0, 0, 1, 0], [], []>} : vector<8x4xf32>, vector<8x4xf32>, vector<8x8xf32> -> vector<8x8xf32>
    %cst_160 = arith.constant dense<0xFF800000> : vector<8xf32>
    %506 = vector.multi_reduction <maximumf>, %505, %cst_160 [1] : vector<8x8xf32> to vector<8xf32>
    %507 = vector.shape_cast %506 : vector<8xf32> to vector<8x1xf32>
    %508 = vector.broadcast %507 : vector<8x1xf32> to vector<8x8xf32>
    %509 = arith.subf %505, %508 : vector<8x8xf32>
    %510 = math.exp %509 : vector<8x8xf32>
    %cst_161 = arith.constant dense<0.000000e+00> : vector<8xf32>
    %511 = vector.multi_reduction <add>, %510, %cst_161 [1] : vector<8x8xf32> to vector<8xf32>
    %512 = vector.shape_cast %511 : vector<8xf32> to vector<8x1xf32>
    %513 = vector.broadcast %512 : vector<8x1xf32> to vector<8x8xf32>
    %514 = arith.divf %510, %513 : vector<8x8xf32>
    %515 = vector.extract_strided_slice %414 {offsets = [0, 24], sizes = [8, 4], strides = [1, 1]} : vector<8x32xf32> to vector<8x4xf32>
    %cst_162 = arith.constant dense<0.000000e+00> : vector<8x4xf32>
    %516 = tpu.matmul %514, %515, %cst_162 {dimension_numbers = #tpu.dot_dimension_numbers<[1], [0], [0], [1], [0, 0, 1, 1], [], []>} : vector<8x8xf32>, vector<8x4xf32>, vector<8x4xf32> -> vector<8x4xf32>
    %517 = vector.extract_strided_slice %415 {offsets = [0, 28], sizes = [8, 4], strides = [1, 1]} : vector<8x32xf32> to vector<8x4xf32>
    %518 = vector.extract_strided_slice %416 {offsets = [0, 28], sizes = [8, 4], strides = [1, 1]} : vector<8x32xf32> to vector<8x4xf32>
    %cst_163 = arith.constant dense<0.000000e+00> : vector<8x8xf32>
    %519 = tpu.matmul %517, %518, %cst_163 {dimension_numbers = #tpu.dot_dimension_numbers<[1], [1], [0], [0], [0, 0, 1, 0], [], []>} : vector<8x4xf32>, vector<8x4xf32>, vector<8x8xf32> -> vector<8x8xf32>
    %cst_164 = arith.constant dense<0xFF800000> : vector<8xf32>
    %520 = vector.multi_reduction <maximumf>, %519, %cst_164 [1] : vector<8x8xf32> to vector<8xf32>
    %521 = vector.shape_cast %520 : vector<8xf32> to vector<8x1xf32>
    %522 = vector.broadcast %521 : vector<8x1xf32> to vector<8x8xf32>
    %523 = arith.subf %519, %522 : vector<8x8xf32>
    %524 = math.exp %523 : vector<8x8xf32>
    %cst_165 = arith.constant dense<0.000000e+00> : vector<8xf32>
    %525 = vector.multi_reduction <add>, %524, %cst_165 [1] : vector<8x8xf32> to vector<8xf32>
    %526 = vector.shape_cast %525 : vector<8xf32> to vector<8x1xf32>
    %527 = vector.broadcast %526 : vector<8x1xf32> to vector<8x8xf32>
    %528 = arith.divf %524, %527 : vector<8x8xf32>
    %529 = vector.extract_strided_slice %414 {offsets = [0, 28], sizes = [8, 4], strides = [1, 1]} : vector<8x32xf32> to vector<8x4xf32>
    %cst_166 = arith.constant dense<0.000000e+00> : vector<8x4xf32>
    %530 = tpu.matmul %528, %529, %cst_166 {dimension_numbers = #tpu.dot_dimension_numbers<[1], [0], [0], [1], [0, 0, 1, 1], [], []>} : vector<8x8xf32>, vector<8x4xf32>, vector<8x4xf32> -> vector<8x4xf32>
    %531 = tpu.concatenate %432, %446, %460, %474, %488, %502, %516, %530 in 1 : vector<8x4xf32>, vector<8x4xf32>, vector<8x4xf32>, vector<8x4xf32>, vector<8x4xf32>, vector<8x4xf32>, vector<8x4xf32>, vector<8x4xf32> -> vector<8x32xf32>
    %cst_167 = arith.constant dense<0.000000e+00> : vector<8x32xf32>
    %532 = tpu.matmul %531, %417, %cst_167 {dimension_numbers = #tpu.dot_dimension_numbers<[1], [0], [0], [1], [0, 0, 1, 1], [], []>} : vector<8x32xf32>, vector<32x32xf32>, vector<8x32xf32> -> vector<8x32xf32>
    %533 = vector.broadcast %418 : vector<1x32xf32> to vector<8x32xf32>
    %534 = arith.addf %532, %533 : vector<8x32xf32>
    %535 = arith.addf %395, %534 : vector<8x32xf32>
    %536 = vector.extract_strided_slice %401 {offsets = [161, 0], sizes = [1, 32], strides = [1, 1]} : vector<170x32xf32> to vector<1x32xf32>
    %537 = vector.extract_strided_slice %401 {offsets = [162, 0], sizes = [1, 32], strides = [1, 1]} : vector<170x32xf32> to vector<1x32xf32>
    %cst_168 = arith.constant dense<0.000000e+00> : vector<8xf32>
    %538 = vector.multi_reduction <add>, %535, %cst_168 [1] : vector<8x32xf32> to vector<8xf32>
    %539 = vector.shape_cast %538 : vector<8xf32> to vector<8x1xf32>
    %cst_169 = arith.constant 3.200000e+01 : f32
    %540 = vector.broadcast %cst_169 : f32 to vector<8x1xf32>
    %541 = arith.divf %539, %540 : vector<8x1xf32>
    %542 = vector.broadcast %541 : vector<8x1xf32> to vector<8x32xf32>
    %543 = arith.subf %535, %542 : vector<8x32xf32>
    %544 = arith.mulf %543, %543 : vector<8x32xf32>
    %cst_170 = arith.constant dense<0.000000e+00> : vector<8xf32>
    %545 = vector.multi_reduction <add>, %544, %cst_170 [1] : vector<8x32xf32> to vector<8xf32>
    %546 = vector.shape_cast %545 : vector<8xf32> to vector<8x1xf32>
    %cst_171 = arith.constant 3.200000e+01 : f32
    %547 = vector.broadcast %cst_171 : f32 to vector<8x1xf32>
    %548 = arith.divf %546, %547 : vector<8x1xf32>
    %cst_172 = arith.constant 9.99999974E-6 : f32
    %549 = vector.broadcast %cst_172 : f32 to vector<8x1xf32>
    %550 = arith.addf %548, %549 : vector<8x1xf32>
    %551 = math.rsqrt %550 : vector<8x1xf32>
    %552 = vector.broadcast %551 : vector<8x1xf32> to vector<8x32xf32>
    %553 = arith.mulf %543, %552 : vector<8x32xf32>
    %554 = vector.broadcast %536 : vector<1x32xf32> to vector<8x32xf32>
    %555 = arith.mulf %553, %554 : vector<8x32xf32>
    %556 = vector.broadcast %537 : vector<1x32xf32> to vector<8x32xf32>
    %557 = arith.addf %555, %556 : vector<8x32xf32>
    %558 = arith.addf %557, %394 : vector<8x32xf32>
    %559 = vector.extract_strided_slice %401 {offsets = [32, 0], sizes = [32, 32], strides = [1, 1]} : vector<170x32xf32> to vector<32x32xf32>
    %cst_173 = arith.constant dense<0.000000e+00> : vector<8x32xf32>
    %560 = tpu.matmul %558, %559, %cst_173 {dimension_numbers = #tpu.dot_dimension_numbers<[1], [0], [0], [1], [0, 0, 1, 1], [], []>} : vector<8x32xf32>, vector<32x32xf32>, vector<8x32xf32> -> vector<8x32xf32>
    %561 = vector.extract_strided_slice %401 {offsets = [163, 0], sizes = [1, 32], strides = [1, 1]} : vector<170x32xf32> to vector<1x32xf32>
    %562 = vector.broadcast %561 : vector<1x32xf32> to vector<8x32xf32>
    %563 = arith.addf %560, %562 : vector<8x32xf32>
    %564 = vector.extract_strided_slice %399 {offsets = [0, 0], sizes = [32, 64], strides = [1, 1]} : vector<97x64xf32> to vector<32x64xf32>
    %cst_174 = arith.constant dense<0.000000e+00> : vector<32x64xf32>
    %565 = tpu.matmul %389, %564, %cst_174 {dimension_numbers = #tpu.dot_dimension_numbers<[1], [0], [0], [1], [0, 0, 1, 1], [], []>} : vector<32x32xf32>, vector<32x64xf32>, vector<32x64xf32> -> vector<32x64xf32>
    %566 = vector.extract_strided_slice %399 {offsets = [32, 0], sizes = [32, 64], strides = [1, 1]} : vector<97x64xf32> to vector<32x64xf32>
    %567 = arith.addf %565, %566 : vector<32x64xf32>
    %568 = vector.extract_strided_slice %567 {offsets = [0, 0], sizes = [32, 32], strides = [1, 1]} : vector<32x64xf32> to vector<32x32xf32>
    %569 = vector.extract_strided_slice %567 {offsets = [0, 32], sizes = [32, 32], strides = [1, 1]} : vector<32x64xf32> to vector<32x32xf32>
    %570 = vector.extract_strided_slice %401 {offsets = [64, 0], sizes = [32, 32], strides = [1, 1]} : vector<170x32xf32> to vector<32x32xf32>
    %571 = vector.extract_strided_slice %401 {offsets = [164, 0], sizes = [1, 32], strides = [1, 1]} : vector<170x32xf32> to vector<1x32xf32>
    %572 = vector.extract_strided_slice %563 {offsets = [0, 0], sizes = [8, 4], strides = [1, 1]} : vector<8x32xf32> to vector<8x4xf32>
    %573 = vector.extract_strided_slice %568 {offsets = [0, 0], sizes = [32, 4], strides = [1, 1]} : vector<32x32xf32> to vector<32x4xf32>
    %cst_175 = arith.constant dense<0.000000e+00> : vector<8x32xf32>
    %574 = tpu.matmul %572, %573, %cst_175 {dimension_numbers = #tpu.dot_dimension_numbers<[1], [1], [0], [0], [0, 0, 1, 0], [], []>} : vector<8x4xf32>, vector<32x4xf32>, vector<8x32xf32> -> vector<8x32xf32>
    %cst_176 = arith.constant dense<0xFF800000> : vector<8xf32>
    %575 = vector.multi_reduction <maximumf>, %574, %cst_176 [1] : vector<8x32xf32> to vector<8xf32>
    %576 = vector.shape_cast %575 : vector<8xf32> to vector<8x1xf32>
    %577 = vector.broadcast %576 : vector<8x1xf32> to vector<8x32xf32>
    %578 = arith.subf %574, %577 : vector<8x32xf32>
    %579 = math.exp %578 : vector<8x32xf32>
    %cst_177 = arith.constant dense<0.000000e+00> : vector<8xf32>
    %580 = vector.multi_reduction <add>, %579, %cst_177 [1] : vector<8x32xf32> to vector<8xf32>
    %581 = vector.shape_cast %580 : vector<8xf32> to vector<8x1xf32>
    %582 = vector.broadcast %581 : vector<8x1xf32> to vector<8x32xf32>
    %583 = arith.divf %579, %582 : vector<8x32xf32>
    %584 = vector.extract_strided_slice %569 {offsets = [0, 0], sizes = [32, 4], strides = [1, 1]} : vector<32x32xf32> to vector<32x4xf32>
    %cst_178 = arith.constant dense<0.000000e+00> : vector<8x4xf32>
    %585 = tpu.matmul %583, %584, %cst_178 {dimension_numbers = #tpu.dot_dimension_numbers<[1], [0], [0], [1], [0, 0, 1, 1], [], []>} : vector<8x32xf32>, vector<32x4xf32>, vector<8x4xf32> -> vector<8x4xf32>
    %586 = vector.extract_strided_slice %563 {offsets = [0, 4], sizes = [8, 4], strides = [1, 1]} : vector<8x32xf32> to vector<8x4xf32>
    %587 = vector.extract_strided_slice %568 {offsets = [0, 4], sizes = [32, 4], strides = [1, 1]} : vector<32x32xf32> to vector<32x4xf32>
    %cst_179 = arith.constant dense<0.000000e+00> : vector<8x32xf32>
    %588 = tpu.matmul %586, %587, %cst_179 {dimension_numbers = #tpu.dot_dimension_numbers<[1], [1], [0], [0], [0, 0, 1, 0], [], []>} : vector<8x4xf32>, vector<32x4xf32>, vector<8x32xf32> -> vector<8x32xf32>
    %cst_180 = arith.constant dense<0xFF800000> : vector<8xf32>
    %589 = vector.multi_reduction <maximumf>, %588, %cst_180 [1] : vector<8x32xf32> to vector<8xf32>
    %590 = vector.shape_cast %589 : vector<8xf32> to vector<8x1xf32>
    %591 = vector.broadcast %590 : vector<8x1xf32> to vector<8x32xf32>
    %592 = arith.subf %588, %591 : vector<8x32xf32>
    %593 = math.exp %592 : vector<8x32xf32>
    %cst_181 = arith.constant dense<0.000000e+00> : vector<8xf32>
    %594 = vector.multi_reduction <add>, %593, %cst_181 [1] : vector<8x32xf32> to vector<8xf32>
    %595 = vector.shape_cast %594 : vector<8xf32> to vector<8x1xf32>
    %596 = vector.broadcast %595 : vector<8x1xf32> to vector<8x32xf32>
    %597 = arith.divf %593, %596 : vector<8x32xf32>
    %598 = vector.extract_strided_slice %569 {offsets = [0, 4], sizes = [32, 4], strides = [1, 1]} : vector<32x32xf32> to vector<32x4xf32>
    %cst_182 = arith.constant dense<0.000000e+00> : vector<8x4xf32>
    %599 = tpu.matmul %597, %598, %cst_182 {dimension_numbers = #tpu.dot_dimension_numbers<[1], [0], [0], [1], [0, 0, 1, 1], [], []>} : vector<8x32xf32>, vector<32x4xf32>, vector<8x4xf32> -> vector<8x4xf32>
    %600 = vector.extract_strided_slice %563 {offsets = [0, 8], sizes = [8, 4], strides = [1, 1]} : vector<8x32xf32> to vector<8x4xf32>
    %601 = vector.extract_strided_slice %568 {offsets = [0, 8], sizes = [32, 4], strides = [1, 1]} : vector<32x32xf32> to vector<32x4xf32>
    %cst_183 = arith.constant dense<0.000000e+00> : vector<8x32xf32>
    %602 = tpu.matmul %600, %601, %cst_183 {dimension_numbers = #tpu.dot_dimension_numbers<[1], [1], [0], [0], [0, 0, 1, 0], [], []>} : vector<8x4xf32>, vector<32x4xf32>, vector<8x32xf32> -> vector<8x32xf32>
    %cst_184 = arith.constant dense<0xFF800000> : vector<8xf32>
    %603 = vector.multi_reduction <maximumf>, %602, %cst_184 [1] : vector<8x32xf32> to vector<8xf32>
    %604 = vector.shape_cast %603 : vector<8xf32> to vector<8x1xf32>
    %605 = vector.broadcast %604 : vector<8x1xf32> to vector<8x32xf32>
    %606 = arith.subf %602, %605 : vector<8x32xf32>
    %607 = math.exp %606 : vector<8x32xf32>
    %cst_185 = arith.constant dense<0.000000e+00> : vector<8xf32>
    %608 = vector.multi_reduction <add>, %607, %cst_185 [1] : vector<8x32xf32> to vector<8xf32>
    %609 = vector.shape_cast %608 : vector<8xf32> to vector<8x1xf32>
    %610 = vector.broadcast %609 : vector<8x1xf32> to vector<8x32xf32>
    %611 = arith.divf %607, %610 : vector<8x32xf32>
    %612 = vector.extract_strided_slice %569 {offsets = [0, 8], sizes = [32, 4], strides = [1, 1]} : vector<32x32xf32> to vector<32x4xf32>
    %cst_186 = arith.constant dense<0.000000e+00> : vector<8x4xf32>
    %613 = tpu.matmul %611, %612, %cst_186 {dimension_numbers = #tpu.dot_dimension_numbers<[1], [0], [0], [1], [0, 0, 1, 1], [], []>} : vector<8x32xf32>, vector<32x4xf32>, vector<8x4xf32> -> vector<8x4xf32>
    %614 = vector.extract_strided_slice %563 {offsets = [0, 12], sizes = [8, 4], strides = [1, 1]} : vector<8x32xf32> to vector<8x4xf32>
    %615 = vector.extract_strided_slice %568 {offsets = [0, 12], sizes = [32, 4], strides = [1, 1]} : vector<32x32xf32> to vector<32x4xf32>
    %cst_187 = arith.constant dense<0.000000e+00> : vector<8x32xf32>
    %616 = tpu.matmul %614, %615, %cst_187 {dimension_numbers = #tpu.dot_dimension_numbers<[1], [1], [0], [0], [0, 0, 1, 0], [], []>} : vector<8x4xf32>, vector<32x4xf32>, vector<8x32xf32> -> vector<8x32xf32>
    %cst_188 = arith.constant dense<0xFF800000> : vector<8xf32>
    %617 = vector.multi_reduction <maximumf>, %616, %cst_188 [1] : vector<8x32xf32> to vector<8xf32>
    %618 = vector.shape_cast %617 : vector<8xf32> to vector<8x1xf32>
    %619 = vector.broadcast %618 : vector<8x1xf32> to vector<8x32xf32>
    %620 = arith.subf %616, %619 : vector<8x32xf32>
    %621 = math.exp %620 : vector<8x32xf32>
    %cst_189 = arith.constant dense<0.000000e+00> : vector<8xf32>
    %622 = vector.multi_reduction <add>, %621, %cst_189 [1] : vector<8x32xf32> to vector<8xf32>
    %623 = vector.shape_cast %622 : vector<8xf32> to vector<8x1xf32>
    %624 = vector.broadcast %623 : vector<8x1xf32> to vector<8x32xf32>
    %625 = arith.divf %621, %624 : vector<8x32xf32>
    %626 = vector.extract_strided_slice %569 {offsets = [0, 12], sizes = [32, 4], strides = [1, 1]} : vector<32x32xf32> to vector<32x4xf32>
    %cst_190 = arith.constant dense<0.000000e+00> : vector<8x4xf32>
    %627 = tpu.matmul %625, %626, %cst_190 {dimension_numbers = #tpu.dot_dimension_numbers<[1], [0], [0], [1], [0, 0, 1, 1], [], []>} : vector<8x32xf32>, vector<32x4xf32>, vector<8x4xf32> -> vector<8x4xf32>
    %628 = vector.extract_strided_slice %563 {offsets = [0, 16], sizes = [8, 4], strides = [1, 1]} : vector<8x32xf32> to vector<8x4xf32>
    %629 = vector.extract_strided_slice %568 {offsets = [0, 16], sizes = [32, 4], strides = [1, 1]} : vector<32x32xf32> to vector<32x4xf32>
    %cst_191 = arith.constant dense<0.000000e+00> : vector<8x32xf32>
    %630 = tpu.matmul %628, %629, %cst_191 {dimension_numbers = #tpu.dot_dimension_numbers<[1], [1], [0], [0], [0, 0, 1, 0], [], []>} : vector<8x4xf32>, vector<32x4xf32>, vector<8x32xf32> -> vector<8x32xf32>
    %cst_192 = arith.constant dense<0xFF800000> : vector<8xf32>
    %631 = vector.multi_reduction <maximumf>, %630, %cst_192 [1] : vector<8x32xf32> to vector<8xf32>
    %632 = vector.shape_cast %631 : vector<8xf32> to vector<8x1xf32>
    %633 = vector.broadcast %632 : vector<8x1xf32> to vector<8x32xf32>
    %634 = arith.subf %630, %633 : vector<8x32xf32>
    %635 = math.exp %634 : vector<8x32xf32>
    %cst_193 = arith.constant dense<0.000000e+00> : vector<8xf32>
    %636 = vector.multi_reduction <add>, %635, %cst_193 [1] : vector<8x32xf32> to vector<8xf32>
    %637 = vector.shape_cast %636 : vector<8xf32> to vector<8x1xf32>
    %638 = vector.broadcast %637 : vector<8x1xf32> to vector<8x32xf32>
    %639 = arith.divf %635, %638 : vector<8x32xf32>
    %640 = vector.extract_strided_slice %569 {offsets = [0, 16], sizes = [32, 4], strides = [1, 1]} : vector<32x32xf32> to vector<32x4xf32>
    %cst_194 = arith.constant dense<0.000000e+00> : vector<8x4xf32>
    %641 = tpu.matmul %639, %640, %cst_194 {dimension_numbers = #tpu.dot_dimension_numbers<[1], [0], [0], [1], [0, 0, 1, 1], [], []>} : vector<8x32xf32>, vector<32x4xf32>, vector<8x4xf32> -> vector<8x4xf32>
    %642 = vector.extract_strided_slice %563 {offsets = [0, 20], sizes = [8, 4], strides = [1, 1]} : vector<8x32xf32> to vector<8x4xf32>
    %643 = vector.extract_strided_slice %568 {offsets = [0, 20], sizes = [32, 4], strides = [1, 1]} : vector<32x32xf32> to vector<32x4xf32>
    %cst_195 = arith.constant dense<0.000000e+00> : vector<8x32xf32>
    %644 = tpu.matmul %642, %643, %cst_195 {dimension_numbers = #tpu.dot_dimension_numbers<[1], [1], [0], [0], [0, 0, 1, 0], [], []>} : vector<8x4xf32>, vector<32x4xf32>, vector<8x32xf32> -> vector<8x32xf32>
    %cst_196 = arith.constant dense<0xFF800000> : vector<8xf32>
    %645 = vector.multi_reduction <maximumf>, %644, %cst_196 [1] : vector<8x32xf32> to vector<8xf32>
    %646 = vector.shape_cast %645 : vector<8xf32> to vector<8x1xf32>
    %647 = vector.broadcast %646 : vector<8x1xf32> to vector<8x32xf32>
    %648 = arith.subf %644, %647 : vector<8x32xf32>
    %649 = math.exp %648 : vector<8x32xf32>
    %cst_197 = arith.constant dense<0.000000e+00> : vector<8xf32>
    %650 = vector.multi_reduction <add>, %649, %cst_197 [1] : vector<8x32xf32> to vector<8xf32>
    %651 = vector.shape_cast %650 : vector<8xf32> to vector<8x1xf32>
    %652 = vector.broadcast %651 : vector<8x1xf32> to vector<8x32xf32>
    %653 = arith.divf %649, %652 : vector<8x32xf32>
    %654 = vector.extract_strided_slice %569 {offsets = [0, 20], sizes = [32, 4], strides = [1, 1]} : vector<32x32xf32> to vector<32x4xf32>
    %cst_198 = arith.constant dense<0.000000e+00> : vector<8x4xf32>
    %655 = tpu.matmul %653, %654, %cst_198 {dimension_numbers = #tpu.dot_dimension_numbers<[1], [0], [0], [1], [0, 0, 1, 1], [], []>} : vector<8x32xf32>, vector<32x4xf32>, vector<8x4xf32> -> vector<8x4xf32>
    %656 = vector.extract_strided_slice %563 {offsets = [0, 24], sizes = [8, 4], strides = [1, 1]} : vector<8x32xf32> to vector<8x4xf32>
    %657 = vector.extract_strided_slice %568 {offsets = [0, 24], sizes = [32, 4], strides = [1, 1]} : vector<32x32xf32> to vector<32x4xf32>
    %cst_199 = arith.constant dense<0.000000e+00> : vector<8x32xf32>
    %658 = tpu.matmul %656, %657, %cst_199 {dimension_numbers = #tpu.dot_dimension_numbers<[1], [1], [0], [0], [0, 0, 1, 0], [], []>} : vector<8x4xf32>, vector<32x4xf32>, vector<8x32xf32> -> vector<8x32xf32>
    %cst_200 = arith.constant dense<0xFF800000> : vector<8xf32>
    %659 = vector.multi_reduction <maximumf>, %658, %cst_200 [1] : vector<8x32xf32> to vector<8xf32>
    %660 = vector.shape_cast %659 : vector<8xf32> to vector<8x1xf32>
    %661 = vector.broadcast %660 : vector<8x1xf32> to vector<8x32xf32>
    %662 = arith.subf %658, %661 : vector<8x32xf32>
    %663 = math.exp %662 : vector<8x32xf32>
    %cst_201 = arith.constant dense<0.000000e+00> : vector<8xf32>
    %664 = vector.multi_reduction <add>, %663, %cst_201 [1] : vector<8x32xf32> to vector<8xf32>
    %665 = vector.shape_cast %664 : vector<8xf32> to vector<8x1xf32>
    %666 = vector.broadcast %665 : vector<8x1xf32> to vector<8x32xf32>
    %667 = arith.divf %663, %666 : vector<8x32xf32>
    %668 = vector.extract_strided_slice %569 {offsets = [0, 24], sizes = [32, 4], strides = [1, 1]} : vector<32x32xf32> to vector<32x4xf32>
    %cst_202 = arith.constant dense<0.000000e+00> : vector<8x4xf32>
    %669 = tpu.matmul %667, %668, %cst_202 {dimension_numbers = #tpu.dot_dimension_numbers<[1], [0], [0], [1], [0, 0, 1, 1], [], []>} : vector<8x32xf32>, vector<32x4xf32>, vector<8x4xf32> -> vector<8x4xf32>
    %670 = vector.extract_strided_slice %563 {offsets = [0, 28], sizes = [8, 4], strides = [1, 1]} : vector<8x32xf32> to vector<8x4xf32>
    %671 = vector.extract_strided_slice %568 {offsets = [0, 28], sizes = [32, 4], strides = [1, 1]} : vector<32x32xf32> to vector<32x4xf32>
    %cst_203 = arith.constant dense<0.000000e+00> : vector<8x32xf32>
    %672 = tpu.matmul %670, %671, %cst_203 {dimension_numbers = #tpu.dot_dimension_numbers<[1], [1], [0], [0], [0, 0, 1, 0], [], []>} : vector<8x4xf32>, vector<32x4xf32>, vector<8x32xf32> -> vector<8x32xf32>
    %cst_204 = arith.constant dense<0xFF800000> : vector<8xf32>
    %673 = vector.multi_reduction <maximumf>, %672, %cst_204 [1] : vector<8x32xf32> to vector<8xf32>
    %674 = vector.shape_cast %673 : vector<8xf32> to vector<8x1xf32>
    %675 = vector.broadcast %674 : vector<8x1xf32> to vector<8x32xf32>
    %676 = arith.subf %672, %675 : vector<8x32xf32>
    %677 = math.exp %676 : vector<8x32xf32>
    %cst_205 = arith.constant dense<0.000000e+00> : vector<8xf32>
    %678 = vector.multi_reduction <add>, %677, %cst_205 [1] : vector<8x32xf32> to vector<8xf32>
    %679 = vector.shape_cast %678 : vector<8xf32> to vector<8x1xf32>
    %680 = vector.broadcast %679 : vector<8x1xf32> to vector<8x32xf32>
    %681 = arith.divf %677, %680 : vector<8x32xf32>
    %682 = vector.extract_strided_slice %569 {offsets = [0, 28], sizes = [32, 4], strides = [1, 1]} : vector<32x32xf32> to vector<32x4xf32>
    %cst_206 = arith.constant dense<0.000000e+00> : vector<8x4xf32>
    %683 = tpu.matmul %681, %682, %cst_206 {dimension_numbers = #tpu.dot_dimension_numbers<[1], [0], [0], [1], [0, 0, 1, 1], [], []>} : vector<8x32xf32>, vector<32x4xf32>, vector<8x4xf32> -> vector<8x4xf32>
    %684 = tpu.concatenate %585, %599, %613, %627, %641, %655, %669, %683 in 1 : vector<8x4xf32>, vector<8x4xf32>, vector<8x4xf32>, vector<8x4xf32>, vector<8x4xf32>, vector<8x4xf32>, vector<8x4xf32>, vector<8x4xf32> -> vector<8x32xf32>
    %cst_207 = arith.constant dense<0.000000e+00> : vector<8x32xf32>
    %685 = tpu.matmul %684, %570, %cst_207 {dimension_numbers = #tpu.dot_dimension_numbers<[1], [0], [0], [1], [0, 0, 1, 1], [], []>} : vector<8x32xf32>, vector<32x32xf32>, vector<8x32xf32> -> vector<8x32xf32>
    %686 = vector.broadcast %571 : vector<1x32xf32> to vector<8x32xf32>
    %687 = arith.addf %685, %686 : vector<8x32xf32>
    %688 = arith.addf %557, %687 : vector<8x32xf32>
    %689 = vector.extract_strided_slice %401 {offsets = [165, 0], sizes = [1, 32], strides = [1, 1]} : vector<170x32xf32> to vector<1x32xf32>
    %690 = vector.extract_strided_slice %401 {offsets = [166, 0], sizes = [1, 32], strides = [1, 1]} : vector<170x32xf32> to vector<1x32xf32>
    %cst_208 = arith.constant dense<0.000000e+00> : vector<8xf32>
    %691 = vector.multi_reduction <add>, %688, %cst_208 [1] : vector<8x32xf32> to vector<8xf32>
    %692 = vector.shape_cast %691 : vector<8xf32> to vector<8x1xf32>
    %cst_209 = arith.constant 3.200000e+01 : f32
    %693 = vector.broadcast %cst_209 : f32 to vector<8x1xf32>
    %694 = arith.divf %692, %693 : vector<8x1xf32>
    %695 = vector.broadcast %694 : vector<8x1xf32> to vector<8x32xf32>
    %696 = arith.subf %688, %695 : vector<8x32xf32>
    %697 = arith.mulf %696, %696 : vector<8x32xf32>
    %cst_210 = arith.constant dense<0.000000e+00> : vector<8xf32>
    %698 = vector.multi_reduction <add>, %697, %cst_210 [1] : vector<8x32xf32> to vector<8xf32>
    %699 = vector.shape_cast %698 : vector<8xf32> to vector<8x1xf32>
    %cst_211 = arith.constant 3.200000e+01 : f32
    %700 = vector.broadcast %cst_211 : f32 to vector<8x1xf32>
    %701 = arith.divf %699, %700 : vector<8x1xf32>
    %cst_212 = arith.constant 9.99999974E-6 : f32
    %702 = vector.broadcast %cst_212 : f32 to vector<8x1xf32>
    %703 = arith.addf %701, %702 : vector<8x1xf32>
    %704 = math.rsqrt %703 : vector<8x1xf32>
    %705 = vector.broadcast %704 : vector<8x1xf32> to vector<8x32xf32>
    %706 = arith.mulf %696, %705 : vector<8x32xf32>
    %707 = vector.broadcast %689 : vector<1x32xf32> to vector<8x32xf32>
    %708 = arith.mulf %706, %707 : vector<8x32xf32>
    %709 = vector.broadcast %690 : vector<1x32xf32> to vector<8x32xf32>
    %710 = arith.addf %708, %709 : vector<8x32xf32>
    %711 = vector.extract_strided_slice %399 {offsets = [64, 0], sizes = [32, 64], strides = [1, 1]} : vector<97x64xf32> to vector<32x64xf32>
    %cst_213 = arith.constant dense<0.000000e+00> : vector<8x64xf32>
    %712 = tpu.matmul %710, %711, %cst_213 {dimension_numbers = #tpu.dot_dimension_numbers<[1], [0], [0], [1], [0, 0, 1, 1], [], []>} : vector<8x32xf32>, vector<32x64xf32>, vector<8x64xf32> -> vector<8x64xf32>
    %713 = vector.extract_strided_slice %399 {offsets = [96, 0], sizes = [1, 64], strides = [1, 1]} : vector<97x64xf32> to vector<1x64xf32>
    %714 = vector.broadcast %713 : vector<1x64xf32> to vector<8x64xf32>
    %715 = arith.addf %712, %714 : vector<8x64xf32>
    %cst_214 = arith.constant 0.000000e+00 : f32
    %716 = vector.broadcast %cst_214 : f32 to vector<8x64xf32>
    %717 = arith.maximumf %715, %716 : vector<8x64xf32>
    %718 = vector.extract_strided_slice %401 {offsets = [96, 0], sizes = [64, 32], strides = [1, 1]} : vector<170x32xf32> to vector<64x32xf32>
    %cst_215 = arith.constant dense<0.000000e+00> : vector<8x32xf32>
    %719 = tpu.matmul %717, %718, %cst_215 {dimension_numbers = #tpu.dot_dimension_numbers<[1], [0], [0], [1], [0, 0, 1, 1], [], []>} : vector<8x64xf32>, vector<64x32xf32>, vector<8x32xf32> -> vector<8x32xf32>
    %720 = vector.extract_strided_slice %401 {offsets = [167, 0], sizes = [1, 32], strides = [1, 1]} : vector<170x32xf32> to vector<1x32xf32>
    %721 = vector.broadcast %720 : vector<1x32xf32> to vector<8x32xf32>
    %722 = arith.addf %719, %721 : vector<8x32xf32>
    %723 = arith.addf %710, %722 : vector<8x32xf32>
    %724 = vector.extract_strided_slice %401 {offsets = [168, 0], sizes = [1, 32], strides = [1, 1]} : vector<170x32xf32> to vector<1x32xf32>
    %725 = vector.extract_strided_slice %401 {offsets = [169, 0], sizes = [1, 32], strides = [1, 1]} : vector<170x32xf32> to vector<1x32xf32>
    %cst_216 = arith.constant dense<0.000000e+00> : vector<8xf32>
    %726 = vector.multi_reduction <add>, %723, %cst_216 [1] : vector<8x32xf32> to vector<8xf32>
    %727 = vector.shape_cast %726 : vector<8xf32> to vector<8x1xf32>
    %cst_217 = arith.constant 3.200000e+01 : f32
    %728 = vector.broadcast %cst_217 : f32 to vector<8x1xf32>
    %729 = arith.divf %727, %728 : vector<8x1xf32>
    %730 = vector.broadcast %729 : vector<8x1xf32> to vector<8x32xf32>
    %731 = arith.subf %723, %730 : vector<8x32xf32>
    %732 = arith.mulf %731, %731 : vector<8x32xf32>
    %cst_218 = arith.constant dense<0.000000e+00> : vector<8xf32>
    %733 = vector.multi_reduction <add>, %732, %cst_218 [1] : vector<8x32xf32> to vector<8xf32>
    %734 = vector.shape_cast %733 : vector<8xf32> to vector<8x1xf32>
    %cst_219 = arith.constant 3.200000e+01 : f32
    %735 = vector.broadcast %cst_219 : f32 to vector<8x1xf32>
    %736 = arith.divf %734, %735 : vector<8x1xf32>
    %cst_220 = arith.constant 9.99999974E-6 : f32
    %737 = vector.broadcast %cst_220 : f32 to vector<8x1xf32>
    %738 = arith.addf %736, %737 : vector<8x1xf32>
    %739 = math.rsqrt %738 : vector<8x1xf32>
    %740 = vector.broadcast %739 : vector<8x1xf32> to vector<8x32xf32>
    %741 = arith.mulf %731, %740 : vector<8x32xf32>
    %742 = vector.broadcast %724 : vector<1x32xf32> to vector<8x32xf32>
    %743 = arith.mulf %741, %742 : vector<8x32xf32>
    %744 = vector.broadcast %725 : vector<1x32xf32> to vector<8x32xf32>
    %745 = arith.addf %743, %744 : vector<8x32xf32>
    %c1_221 = arith.constant 1 : index
    %c0_222 = arith.constant 0 : index
    %c0_223 = arith.constant 0 : index
    %746 = vector.load %arg7[%c1_221, %c0_222, %c0_223] : memref<2x33x96xf32, #tpu.memory_space<vmem>>, vector<1x33x96xf32>
    %747 = vector.shape_cast %746 : vector<1x33x96xf32> to vector<33x96xf32>
    %c1_224 = arith.constant 1 : index
    %c0_225 = arith.constant 0 : index
    %c0_226 = arith.constant 0 : index
    %748 = vector.load %arg8[%c1_224, %c0_225, %c0_226] : memref<2x97x64xf32, #tpu.memory_space<vmem>>, vector<1x97x64xf32>
    %749 = vector.shape_cast %748 : vector<1x97x64xf32> to vector<97x64xf32>
    %c1_227 = arith.constant 1 : index
    %c0_228 = arith.constant 0 : index
    %c0_229 = arith.constant 0 : index
    %750 = vector.load %arg9[%c1_227, %c0_228, %c0_229] : memref<2x170x32xf32, #tpu.memory_space<vmem>>, vector<1x170x32xf32>
    %751 = vector.shape_cast %750 : vector<1x170x32xf32> to vector<170x32xf32>
    %752 = vector.extract_strided_slice %747 {offsets = [0, 0], sizes = [32, 96], strides = [1, 1]} : vector<33x96xf32> to vector<32x96xf32>
    %753 = vector.extract_strided_slice %747 {offsets = [32, 0], sizes = [1, 96], strides = [1, 1]} : vector<33x96xf32> to vector<1x96xf32>
    %754 = arith.addf %745, %394 : vector<8x32xf32>
    %755 = vector.extract_strided_slice %752 {offsets = [0, 0], sizes = [32, 64], strides = [1, 1]} : vector<32x96xf32> to vector<32x64xf32>
    %cst_230 = arith.constant dense<0.000000e+00> : vector<8x64xf32>
    %756 = tpu.matmul %754, %755, %cst_230 {dimension_numbers = #tpu.dot_dimension_numbers<[1], [0], [0], [1], [0, 0, 1, 1], [], []>} : vector<8x32xf32>, vector<32x64xf32>, vector<8x64xf32> -> vector<8x64xf32>
    %757 = vector.extract_strided_slice %753 {offsets = [0, 0], sizes = [1, 64], strides = [1, 1]} : vector<1x96xf32> to vector<1x64xf32>
    %758 = vector.broadcast %757 : vector<1x64xf32> to vector<8x64xf32>
    %759 = arith.addf %756, %758 : vector<8x64xf32>
    %760 = vector.extract_strided_slice %752 {offsets = [0, 64], sizes = [32, 32], strides = [1, 1]} : vector<32x96xf32> to vector<32x32xf32>
    %cst_231 = arith.constant dense<0.000000e+00> : vector<8x32xf32>
    %761 = tpu.matmul %745, %760, %cst_231 {dimension_numbers = #tpu.dot_dimension_numbers<[1], [0], [0], [1], [0, 0, 1, 1], [], []>} : vector<8x32xf32>, vector<32x32xf32>, vector<8x32xf32> -> vector<8x32xf32>
    %762 = vector.extract_strided_slice %753 {offsets = [0, 64], sizes = [1, 32], strides = [1, 1]} : vector<1x96xf32> to vector<1x32xf32>
    %763 = vector.broadcast %762 : vector<1x32xf32> to vector<8x32xf32>
    %764 = arith.addf %761, %763 : vector<8x32xf32>
    %765 = vector.extract_strided_slice %759 {offsets = [0, 0], sizes = [8, 32], strides = [1, 1]} : vector<8x64xf32> to vector<8x32xf32>
    %766 = vector.extract_strided_slice %759 {offsets = [0, 32], sizes = [8, 32], strides = [1, 1]} : vector<8x64xf32> to vector<8x32xf32>
    %767 = vector.extract_strided_slice %751 {offsets = [0, 0], sizes = [32, 32], strides = [1, 1]} : vector<170x32xf32> to vector<32x32xf32>
    %768 = vector.extract_strided_slice %751 {offsets = [160, 0], sizes = [1, 32], strides = [1, 1]} : vector<170x32xf32> to vector<1x32xf32>
    %769 = vector.extract_strided_slice %765 {offsets = [0, 0], sizes = [8, 4], strides = [1, 1]} : vector<8x32xf32> to vector<8x4xf32>
    %770 = vector.extract_strided_slice %766 {offsets = [0, 0], sizes = [8, 4], strides = [1, 1]} : vector<8x32xf32> to vector<8x4xf32>
    %cst_232 = arith.constant dense<0.000000e+00> : vector<8x8xf32>
    %771 = tpu.matmul %769, %770, %cst_232 {dimension_numbers = #tpu.dot_dimension_numbers<[1], [1], [0], [0], [0, 0, 1, 0], [], []>} : vector<8x4xf32>, vector<8x4xf32>, vector<8x8xf32> -> vector<8x8xf32>
    %cst_233 = arith.constant dense<0xFF800000> : vector<8xf32>
    %772 = vector.multi_reduction <maximumf>, %771, %cst_233 [1] : vector<8x8xf32> to vector<8xf32>
    %773 = vector.shape_cast %772 : vector<8xf32> to vector<8x1xf32>
    %774 = vector.broadcast %773 : vector<8x1xf32> to vector<8x8xf32>
    %775 = arith.subf %771, %774 : vector<8x8xf32>
    %776 = math.exp %775 : vector<8x8xf32>
    %cst_234 = arith.constant dense<0.000000e+00> : vector<8xf32>
    %777 = vector.multi_reduction <add>, %776, %cst_234 [1] : vector<8x8xf32> to vector<8xf32>
    %778 = vector.shape_cast %777 : vector<8xf32> to vector<8x1xf32>
    %779 = vector.broadcast %778 : vector<8x1xf32> to vector<8x8xf32>
    %780 = arith.divf %776, %779 : vector<8x8xf32>
    %781 = vector.extract_strided_slice %764 {offsets = [0, 0], sizes = [8, 4], strides = [1, 1]} : vector<8x32xf32> to vector<8x4xf32>
    %cst_235 = arith.constant dense<0.000000e+00> : vector<8x4xf32>
    %782 = tpu.matmul %780, %781, %cst_235 {dimension_numbers = #tpu.dot_dimension_numbers<[1], [0], [0], [1], [0, 0, 1, 1], [], []>} : vector<8x8xf32>, vector<8x4xf32>, vector<8x4xf32> -> vector<8x4xf32>
    %783 = vector.extract_strided_slice %765 {offsets = [0, 4], sizes = [8, 4], strides = [1, 1]} : vector<8x32xf32> to vector<8x4xf32>
    %784 = vector.extract_strided_slice %766 {offsets = [0, 4], sizes = [8, 4], strides = [1, 1]} : vector<8x32xf32> to vector<8x4xf32>
    %cst_236 = arith.constant dense<0.000000e+00> : vector<8x8xf32>
    %785 = tpu.matmul %783, %784, %cst_236 {dimension_numbers = #tpu.dot_dimension_numbers<[1], [1], [0], [0], [0, 0, 1, 0], [], []>} : vector<8x4xf32>, vector<8x4xf32>, vector<8x8xf32> -> vector<8x8xf32>
    %cst_237 = arith.constant dense<0xFF800000> : vector<8xf32>
    %786 = vector.multi_reduction <maximumf>, %785, %cst_237 [1] : vector<8x8xf32> to vector<8xf32>
    %787 = vector.shape_cast %786 : vector<8xf32> to vector<8x1xf32>
    %788 = vector.broadcast %787 : vector<8x1xf32> to vector<8x8xf32>
    %789 = arith.subf %785, %788 : vector<8x8xf32>
    %790 = math.exp %789 : vector<8x8xf32>
    %cst_238 = arith.constant dense<0.000000e+00> : vector<8xf32>
    %791 = vector.multi_reduction <add>, %790, %cst_238 [1] : vector<8x8xf32> to vector<8xf32>
    %792 = vector.shape_cast %791 : vector<8xf32> to vector<8x1xf32>
    %793 = vector.broadcast %792 : vector<8x1xf32> to vector<8x8xf32>
    %794 = arith.divf %790, %793 : vector<8x8xf32>
    %795 = vector.extract_strided_slice %764 {offsets = [0, 4], sizes = [8, 4], strides = [1, 1]} : vector<8x32xf32> to vector<8x4xf32>
    %cst_239 = arith.constant dense<0.000000e+00> : vector<8x4xf32>
    %796 = tpu.matmul %794, %795, %cst_239 {dimension_numbers = #tpu.dot_dimension_numbers<[1], [0], [0], [1], [0, 0, 1, 1], [], []>} : vector<8x8xf32>, vector<8x4xf32>, vector<8x4xf32> -> vector<8x4xf32>
    %797 = vector.extract_strided_slice %765 {offsets = [0, 8], sizes = [8, 4], strides = [1, 1]} : vector<8x32xf32> to vector<8x4xf32>
    %798 = vector.extract_strided_slice %766 {offsets = [0, 8], sizes = [8, 4], strides = [1, 1]} : vector<8x32xf32> to vector<8x4xf32>
    %cst_240 = arith.constant dense<0.000000e+00> : vector<8x8xf32>
    %799 = tpu.matmul %797, %798, %cst_240 {dimension_numbers = #tpu.dot_dimension_numbers<[1], [1], [0], [0], [0, 0, 1, 0], [], []>} : vector<8x4xf32>, vector<8x4xf32>, vector<8x8xf32> -> vector<8x8xf32>
    %cst_241 = arith.constant dense<0xFF800000> : vector<8xf32>
    %800 = vector.multi_reduction <maximumf>, %799, %cst_241 [1] : vector<8x8xf32> to vector<8xf32>
    %801 = vector.shape_cast %800 : vector<8xf32> to vector<8x1xf32>
    %802 = vector.broadcast %801 : vector<8x1xf32> to vector<8x8xf32>
    %803 = arith.subf %799, %802 : vector<8x8xf32>
    %804 = math.exp %803 : vector<8x8xf32>
    %cst_242 = arith.constant dense<0.000000e+00> : vector<8xf32>
    %805 = vector.multi_reduction <add>, %804, %cst_242 [1] : vector<8x8xf32> to vector<8xf32>
    %806 = vector.shape_cast %805 : vector<8xf32> to vector<8x1xf32>
    %807 = vector.broadcast %806 : vector<8x1xf32> to vector<8x8xf32>
    %808 = arith.divf %804, %807 : vector<8x8xf32>
    %809 = vector.extract_strided_slice %764 {offsets = [0, 8], sizes = [8, 4], strides = [1, 1]} : vector<8x32xf32> to vector<8x4xf32>
    %cst_243 = arith.constant dense<0.000000e+00> : vector<8x4xf32>
    %810 = tpu.matmul %808, %809, %cst_243 {dimension_numbers = #tpu.dot_dimension_numbers<[1], [0], [0], [1], [0, 0, 1, 1], [], []>} : vector<8x8xf32>, vector<8x4xf32>, vector<8x4xf32> -> vector<8x4xf32>
    %811 = vector.extract_strided_slice %765 {offsets = [0, 12], sizes = [8, 4], strides = [1, 1]} : vector<8x32xf32> to vector<8x4xf32>
    %812 = vector.extract_strided_slice %766 {offsets = [0, 12], sizes = [8, 4], strides = [1, 1]} : vector<8x32xf32> to vector<8x4xf32>
    %cst_244 = arith.constant dense<0.000000e+00> : vector<8x8xf32>
    %813 = tpu.matmul %811, %812, %cst_244 {dimension_numbers = #tpu.dot_dimension_numbers<[1], [1], [0], [0], [0, 0, 1, 0], [], []>} : vector<8x4xf32>, vector<8x4xf32>, vector<8x8xf32> -> vector<8x8xf32>
    %cst_245 = arith.constant dense<0xFF800000> : vector<8xf32>
    %814 = vector.multi_reduction <maximumf>, %813, %cst_245 [1] : vector<8x8xf32> to vector<8xf32>
    %815 = vector.shape_cast %814 : vector<8xf32> to vector<8x1xf32>
    %816 = vector.broadcast %815 : vector<8x1xf32> to vector<8x8xf32>
    %817 = arith.subf %813, %816 : vector<8x8xf32>
    %818 = math.exp %817 : vector<8x8xf32>
    %cst_246 = arith.constant dense<0.000000e+00> : vector<8xf32>
    %819 = vector.multi_reduction <add>, %818, %cst_246 [1] : vector<8x8xf32> to vector<8xf32>
    %820 = vector.shape_cast %819 : vector<8xf32> to vector<8x1xf32>
    %821 = vector.broadcast %820 : vector<8x1xf32> to vector<8x8xf32>
    %822 = arith.divf %818, %821 : vector<8x8xf32>
    %823 = vector.extract_strided_slice %764 {offsets = [0, 12], sizes = [8, 4], strides = [1, 1]} : vector<8x32xf32> to vector<8x4xf32>
    %cst_247 = arith.constant dense<0.000000e+00> : vector<8x4xf32>
    %824 = tpu.matmul %822, %823, %cst_247 {dimension_numbers = #tpu.dot_dimension_numbers<[1], [0], [0], [1], [0, 0, 1, 1], [], []>} : vector<8x8xf32>, vector<8x4xf32>, vector<8x4xf32> -> vector<8x4xf32>
    %825 = vector.extract_strided_slice %765 {offsets = [0, 16], sizes = [8, 4], strides = [1, 1]} : vector<8x32xf32> to vector<8x4xf32>
    %826 = vector.extract_strided_slice %766 {offsets = [0, 16], sizes = [8, 4], strides = [1, 1]} : vector<8x32xf32> to vector<8x4xf32>
    %cst_248 = arith.constant dense<0.000000e+00> : vector<8x8xf32>
    %827 = tpu.matmul %825, %826, %cst_248 {dimension_numbers = #tpu.dot_dimension_numbers<[1], [1], [0], [0], [0, 0, 1, 0], [], []>} : vector<8x4xf32>, vector<8x4xf32>, vector<8x8xf32> -> vector<8x8xf32>
    %cst_249 = arith.constant dense<0xFF800000> : vector<8xf32>
    %828 = vector.multi_reduction <maximumf>, %827, %cst_249 [1] : vector<8x8xf32> to vector<8xf32>
    %829 = vector.shape_cast %828 : vector<8xf32> to vector<8x1xf32>
    %830 = vector.broadcast %829 : vector<8x1xf32> to vector<8x8xf32>
    %831 = arith.subf %827, %830 : vector<8x8xf32>
    %832 = math.exp %831 : vector<8x8xf32>
    %cst_250 = arith.constant dense<0.000000e+00> : vector<8xf32>
    %833 = vector.multi_reduction <add>, %832, %cst_250 [1] : vector<8x8xf32> to vector<8xf32>
    %834 = vector.shape_cast %833 : vector<8xf32> to vector<8x1xf32>
    %835 = vector.broadcast %834 : vector<8x1xf32> to vector<8x8xf32>
    %836 = arith.divf %832, %835 : vector<8x8xf32>
    %837 = vector.extract_strided_slice %764 {offsets = [0, 16], sizes = [8, 4], strides = [1, 1]} : vector<8x32xf32> to vector<8x4xf32>
    %cst_251 = arith.constant dense<0.000000e+00> : vector<8x4xf32>
    %838 = tpu.matmul %836, %837, %cst_251 {dimension_numbers = #tpu.dot_dimension_numbers<[1], [0], [0], [1], [0, 0, 1, 1], [], []>} : vector<8x8xf32>, vector<8x4xf32>, vector<8x4xf32> -> vector<8x4xf32>
    %839 = vector.extract_strided_slice %765 {offsets = [0, 20], sizes = [8, 4], strides = [1, 1]} : vector<8x32xf32> to vector<8x4xf32>
    %840 = vector.extract_strided_slice %766 {offsets = [0, 20], sizes = [8, 4], strides = [1, 1]} : vector<8x32xf32> to vector<8x4xf32>
    %cst_252 = arith.constant dense<0.000000e+00> : vector<8x8xf32>
    %841 = tpu.matmul %839, %840, %cst_252 {dimension_numbers = #tpu.dot_dimension_numbers<[1], [1], [0], [0], [0, 0, 1, 0], [], []>} : vector<8x4xf32>, vector<8x4xf32>, vector<8x8xf32> -> vector<8x8xf32>
    %cst_253 = arith.constant dense<0xFF800000> : vector<8xf32>
    %842 = vector.multi_reduction <maximumf>, %841, %cst_253 [1] : vector<8x8xf32> to vector<8xf32>
    %843 = vector.shape_cast %842 : vector<8xf32> to vector<8x1xf32>
    %844 = vector.broadcast %843 : vector<8x1xf32> to vector<8x8xf32>
    %845 = arith.subf %841, %844 : vector<8x8xf32>
    %846 = math.exp %845 : vector<8x8xf32>
    %cst_254 = arith.constant dense<0.000000e+00> : vector<8xf32>
    %847 = vector.multi_reduction <add>, %846, %cst_254 [1] : vector<8x8xf32> to vector<8xf32>
    %848 = vector.shape_cast %847 : vector<8xf32> to vector<8x1xf32>
    %849 = vector.broadcast %848 : vector<8x1xf32> to vector<8x8xf32>
    %850 = arith.divf %846, %849 : vector<8x8xf32>
    %851 = vector.extract_strided_slice %764 {offsets = [0, 20], sizes = [8, 4], strides = [1, 1]} : vector<8x32xf32> to vector<8x4xf32>
    %cst_255 = arith.constant dense<0.000000e+00> : vector<8x4xf32>
    %852 = tpu.matmul %850, %851, %cst_255 {dimension_numbers = #tpu.dot_dimension_numbers<[1], [0], [0], [1], [0, 0, 1, 1], [], []>} : vector<8x8xf32>, vector<8x4xf32>, vector<8x4xf32> -> vector<8x4xf32>
    %853 = vector.extract_strided_slice %765 {offsets = [0, 24], sizes = [8, 4], strides = [1, 1]} : vector<8x32xf32> to vector<8x4xf32>
    %854 = vector.extract_strided_slice %766 {offsets = [0, 24], sizes = [8, 4], strides = [1, 1]} : vector<8x32xf32> to vector<8x4xf32>
    %cst_256 = arith.constant dense<0.000000e+00> : vector<8x8xf32>
    %855 = tpu.matmul %853, %854, %cst_256 {dimension_numbers = #tpu.dot_dimension_numbers<[1], [1], [0], [0], [0, 0, 1, 0], [], []>} : vector<8x4xf32>, vector<8x4xf32>, vector<8x8xf32> -> vector<8x8xf32>
    %cst_257 = arith.constant dense<0xFF800000> : vector<8xf32>
    %856 = vector.multi_reduction <maximumf>, %855, %cst_257 [1] : vector<8x8xf32> to vector<8xf32>
    %857 = vector.shape_cast %856 : vector<8xf32> to vector<8x1xf32>
    %858 = vector.broadcast %857 : vector<8x1xf32> to vector<8x8xf32>
    %859 = arith.subf %855, %858 : vector<8x8xf32>
    %860 = math.exp %859 : vector<8x8xf32>
    %cst_258 = arith.constant dense<0.000000e+00> : vector<8xf32>
    %861 = vector.multi_reduction <add>, %860, %cst_258 [1] : vector<8x8xf32> to vector<8xf32>
    %862 = vector.shape_cast %861 : vector<8xf32> to vector<8x1xf32>
    %863 = vector.broadcast %862 : vector<8x1xf32> to vector<8x8xf32>
    %864 = arith.divf %860, %863 : vector<8x8xf32>
    %865 = vector.extract_strided_slice %764 {offsets = [0, 24], sizes = [8, 4], strides = [1, 1]} : vector<8x32xf32> to vector<8x4xf32>
    %cst_259 = arith.constant dense<0.000000e+00> : vector<8x4xf32>
    %866 = tpu.matmul %864, %865, %cst_259 {dimension_numbers = #tpu.dot_dimension_numbers<[1], [0], [0], [1], [0, 0, 1, 1], [], []>} : vector<8x8xf32>, vector<8x4xf32>, vector<8x4xf32> -> vector<8x4xf32>
    %867 = vector.extract_strided_slice %765 {offsets = [0, 28], sizes = [8, 4], strides = [1, 1]} : vector<8x32xf32> to vector<8x4xf32>
    %868 = vector.extract_strided_slice %766 {offsets = [0, 28], sizes = [8, 4], strides = [1, 1]} : vector<8x32xf32> to vector<8x4xf32>
    %cst_260 = arith.constant dense<0.000000e+00> : vector<8x8xf32>
    %869 = tpu.matmul %867, %868, %cst_260 {dimension_numbers = #tpu.dot_dimension_numbers<[1], [1], [0], [0], [0, 0, 1, 0], [], []>} : vector<8x4xf32>, vector<8x4xf32>, vector<8x8xf32> -> vector<8x8xf32>
    %cst_261 = arith.constant dense<0xFF800000> : vector<8xf32>
    %870 = vector.multi_reduction <maximumf>, %869, %cst_261 [1] : vector<8x8xf32> to vector<8xf32>
    %871 = vector.shape_cast %870 : vector<8xf32> to vector<8x1xf32>
    %872 = vector.broadcast %871 : vector<8x1xf32> to vector<8x8xf32>
    %873 = arith.subf %869, %872 : vector<8x8xf32>
    %874 = math.exp %873 : vector<8x8xf32>
    %cst_262 = arith.constant dense<0.000000e+00> : vector<8xf32>
    %875 = vector.multi_reduction <add>, %874, %cst_262 [1] : vector<8x8xf32> to vector<8xf32>
    %876 = vector.shape_cast %875 : vector<8xf32> to vector<8x1xf32>
    %877 = vector.broadcast %876 : vector<8x1xf32> to vector<8x8xf32>
    %878 = arith.divf %874, %877 : vector<8x8xf32>
    %879 = vector.extract_strided_slice %764 {offsets = [0, 28], sizes = [8, 4], strides = [1, 1]} : vector<8x32xf32> to vector<8x4xf32>
    %cst_263 = arith.constant dense<0.000000e+00> : vector<8x4xf32>
    %880 = tpu.matmul %878, %879, %cst_263 {dimension_numbers = #tpu.dot_dimension_numbers<[1], [0], [0], [1], [0, 0, 1, 1], [], []>} : vector<8x8xf32>, vector<8x4xf32>, vector<8x4xf32> -> vector<8x4xf32>
    %881 = tpu.concatenate %782, %796, %810, %824, %838, %852, %866, %880 in 1 : vector<8x4xf32>, vector<8x4xf32>, vector<8x4xf32>, vector<8x4xf32>, vector<8x4xf32>, vector<8x4xf32>, vector<8x4xf32>, vector<8x4xf32> -> vector<8x32xf32>
    %cst_264 = arith.constant dense<0.000000e+00> : vector<8x32xf32>
    %882 = tpu.matmul %881, %767, %cst_264 {dimension_numbers = #tpu.dot_dimension_numbers<[1], [0], [0], [1], [0, 0, 1, 1], [], []>} : vector<8x32xf32>, vector<32x32xf32>, vector<8x32xf32> -> vector<8x32xf32>
    %883 = vector.broadcast %768 : vector<1x32xf32> to vector<8x32xf32>
    %884 = arith.addf %882, %883 : vector<8x32xf32>
    %885 = arith.addf %745, %884 : vector<8x32xf32>
    %886 = vector.extract_strided_slice %751 {offsets = [161, 0], sizes = [1, 32], strides = [1, 1]} : vector<170x32xf32> to vector<1x32xf32>
    %887 = vector.extract_strided_slice %751 {offsets = [162, 0], sizes = [1, 32], strides = [1, 1]} : vector<170x32xf32> to vector<1x32xf32>
    %cst_265 = arith.constant dense<0.000000e+00> : vector<8xf32>
    %888 = vector.multi_reduction <add>, %885, %cst_265 [1] : vector<8x32xf32> to vector<8xf32>
    %889 = vector.shape_cast %888 : vector<8xf32> to vector<8x1xf32>
    %cst_266 = arith.constant 3.200000e+01 : f32
    %890 = vector.broadcast %cst_266 : f32 to vector<8x1xf32>
    %891 = arith.divf %889, %890 : vector<8x1xf32>
    %892 = vector.broadcast %891 : vector<8x1xf32> to vector<8x32xf32>
    %893 = arith.subf %885, %892 : vector<8x32xf32>
    %894 = arith.mulf %893, %893 : vector<8x32xf32>
    %cst_267 = arith.constant dense<0.000000e+00> : vector<8xf32>
    %895 = vector.multi_reduction <add>, %894, %cst_267 [1] : vector<8x32xf32> to vector<8xf32>
    %896 = vector.shape_cast %895 : vector<8xf32> to vector<8x1xf32>
    %cst_268 = arith.constant 3.200000e+01 : f32
    %897 = vector.broadcast %cst_268 : f32 to vector<8x1xf32>
    %898 = arith.divf %896, %897 : vector<8x1xf32>
    %cst_269 = arith.constant 9.99999974E-6 : f32
    %899 = vector.broadcast %cst_269 : f32 to vector<8x1xf32>
    %900 = arith.addf %898, %899 : vector<8x1xf32>
    %901 = math.rsqrt %900 : vector<8x1xf32>
    %902 = vector.broadcast %901 : vector<8x1xf32> to vector<8x32xf32>
    %903 = arith.mulf %893, %902 : vector<8x32xf32>
    %904 = vector.broadcast %886 : vector<1x32xf32> to vector<8x32xf32>
    %905 = arith.mulf %903, %904 : vector<8x32xf32>
    %906 = vector.broadcast %887 : vector<1x32xf32> to vector<8x32xf32>
    %907 = arith.addf %905, %906 : vector<8x32xf32>
    %908 = arith.addf %907, %394 : vector<8x32xf32>
    %909 = vector.extract_strided_slice %751 {offsets = [32, 0], sizes = [32, 32], strides = [1, 1]} : vector<170x32xf32> to vector<32x32xf32>
    %cst_270 = arith.constant dense<0.000000e+00> : vector<8x32xf32>
    %910 = tpu.matmul %908, %909, %cst_270 {dimension_numbers = #tpu.dot_dimension_numbers<[1], [0], [0], [1], [0, 0, 1, 1], [], []>} : vector<8x32xf32>, vector<32x32xf32>, vector<8x32xf32> -> vector<8x32xf32>
    %911 = vector.extract_strided_slice %751 {offsets = [163, 0], sizes = [1, 32], strides = [1, 1]} : vector<170x32xf32> to vector<1x32xf32>
    %912 = vector.broadcast %911 : vector<1x32xf32> to vector<8x32xf32>
    %913 = arith.addf %910, %912 : vector<8x32xf32>
    %914 = vector.extract_strided_slice %749 {offsets = [0, 0], sizes = [32, 64], strides = [1, 1]} : vector<97x64xf32> to vector<32x64xf32>
    %cst_271 = arith.constant dense<0.000000e+00> : vector<32x64xf32>
    %915 = tpu.matmul %389, %914, %cst_271 {dimension_numbers = #tpu.dot_dimension_numbers<[1], [0], [0], [1], [0, 0, 1, 1], [], []>} : vector<32x32xf32>, vector<32x64xf32>, vector<32x64xf32> -> vector<32x64xf32>
    %916 = vector.extract_strided_slice %749 {offsets = [32, 0], sizes = [32, 64], strides = [1, 1]} : vector<97x64xf32> to vector<32x64xf32>
    %917 = arith.addf %915, %916 : vector<32x64xf32>
    %918 = vector.extract_strided_slice %917 {offsets = [0, 0], sizes = [32, 32], strides = [1, 1]} : vector<32x64xf32> to vector<32x32xf32>
    %919 = vector.extract_strided_slice %917 {offsets = [0, 32], sizes = [32, 32], strides = [1, 1]} : vector<32x64xf32> to vector<32x32xf32>
    %920 = vector.extract_strided_slice %751 {offsets = [64, 0], sizes = [32, 32], strides = [1, 1]} : vector<170x32xf32> to vector<32x32xf32>
    %921 = vector.extract_strided_slice %751 {offsets = [164, 0], sizes = [1, 32], strides = [1, 1]} : vector<170x32xf32> to vector<1x32xf32>
    %922 = vector.extract_strided_slice %913 {offsets = [0, 0], sizes = [8, 4], strides = [1, 1]} : vector<8x32xf32> to vector<8x4xf32>
    %923 = vector.extract_strided_slice %918 {offsets = [0, 0], sizes = [32, 4], strides = [1, 1]} : vector<32x32xf32> to vector<32x4xf32>
    %cst_272 = arith.constant dense<0.000000e+00> : vector<8x32xf32>
    %924 = tpu.matmul %922, %923, %cst_272 {dimension_numbers = #tpu.dot_dimension_numbers<[1], [1], [0], [0], [0, 0, 1, 0], [], []>} : vector<8x4xf32>, vector<32x4xf32>, vector<8x32xf32> -> vector<8x32xf32>
    %cst_273 = arith.constant dense<0xFF800000> : vector<8xf32>
    %925 = vector.multi_reduction <maximumf>, %924, %cst_273 [1] : vector<8x32xf32> to vector<8xf32>
    %926 = vector.shape_cast %925 : vector<8xf32> to vector<8x1xf32>
    %927 = vector.broadcast %926 : vector<8x1xf32> to vector<8x32xf32>
    %928 = arith.subf %924, %927 : vector<8x32xf32>
    %929 = math.exp %928 : vector<8x32xf32>
    %cst_274 = arith.constant dense<0.000000e+00> : vector<8xf32>
    %930 = vector.multi_reduction <add>, %929, %cst_274 [1] : vector<8x32xf32> to vector<8xf32>
    %931 = vector.shape_cast %930 : vector<8xf32> to vector<8x1xf32>
    %932 = vector.broadcast %931 : vector<8x1xf32> to vector<8x32xf32>
    %933 = arith.divf %929, %932 : vector<8x32xf32>
    %934 = vector.extract_strided_slice %919 {offsets = [0, 0], sizes = [32, 4], strides = [1, 1]} : vector<32x32xf32> to vector<32x4xf32>
    %cst_275 = arith.constant dense<0.000000e+00> : vector<8x4xf32>
    %935 = tpu.matmul %933, %934, %cst_275 {dimension_numbers = #tpu.dot_dimension_numbers<[1], [0], [0], [1], [0, 0, 1, 1], [], []>} : vector<8x32xf32>, vector<32x4xf32>, vector<8x4xf32> -> vector<8x4xf32>
    %936 = vector.extract_strided_slice %913 {offsets = [0, 4], sizes = [8, 4], strides = [1, 1]} : vector<8x32xf32> to vector<8x4xf32>
    %937 = vector.extract_strided_slice %918 {offsets = [0, 4], sizes = [32, 4], strides = [1, 1]} : vector<32x32xf32> to vector<32x4xf32>
    %cst_276 = arith.constant dense<0.000000e+00> : vector<8x32xf32>
    %938 = tpu.matmul %936, %937, %cst_276 {dimension_numbers = #tpu.dot_dimension_numbers<[1], [1], [0], [0], [0, 0, 1, 0], [], []>} : vector<8x4xf32>, vector<32x4xf32>, vector<8x32xf32> -> vector<8x32xf32>
    %cst_277 = arith.constant dense<0xFF800000> : vector<8xf32>
    %939 = vector.multi_reduction <maximumf>, %938, %cst_277 [1] : vector<8x32xf32> to vector<8xf32>
    %940 = vector.shape_cast %939 : vector<8xf32> to vector<8x1xf32>
    %941 = vector.broadcast %940 : vector<8x1xf32> to vector<8x32xf32>
    %942 = arith.subf %938, %941 : vector<8x32xf32>
    %943 = math.exp %942 : vector<8x32xf32>
    %cst_278 = arith.constant dense<0.000000e+00> : vector<8xf32>
    %944 = vector.multi_reduction <add>, %943, %cst_278 [1] : vector<8x32xf32> to vector<8xf32>
    %945 = vector.shape_cast %944 : vector<8xf32> to vector<8x1xf32>
    %946 = vector.broadcast %945 : vector<8x1xf32> to vector<8x32xf32>
    %947 = arith.divf %943, %946 : vector<8x32xf32>
    %948 = vector.extract_strided_slice %919 {offsets = [0, 4], sizes = [32, 4], strides = [1, 1]} : vector<32x32xf32> to vector<32x4xf32>
    %cst_279 = arith.constant dense<0.000000e+00> : vector<8x4xf32>
    %949 = tpu.matmul %947, %948, %cst_279 {dimension_numbers = #tpu.dot_dimension_numbers<[1], [0], [0], [1], [0, 0, 1, 1], [], []>} : vector<8x32xf32>, vector<32x4xf32>, vector<8x4xf32> -> vector<8x4xf32>
    %950 = vector.extract_strided_slice %913 {offsets = [0, 8], sizes = [8, 4], strides = [1, 1]} : vector<8x32xf32> to vector<8x4xf32>
    %951 = vector.extract_strided_slice %918 {offsets = [0, 8], sizes = [32, 4], strides = [1, 1]} : vector<32x32xf32> to vector<32x4xf32>
    %cst_280 = arith.constant dense<0.000000e+00> : vector<8x32xf32>
    %952 = tpu.matmul %950, %951, %cst_280 {dimension_numbers = #tpu.dot_dimension_numbers<[1], [1], [0], [0], [0, 0, 1, 0], [], []>} : vector<8x4xf32>, vector<32x4xf32>, vector<8x32xf32> -> vector<8x32xf32>
    %cst_281 = arith.constant dense<0xFF800000> : vector<8xf32>
    %953 = vector.multi_reduction <maximumf>, %952, %cst_281 [1] : vector<8x32xf32> to vector<8xf32>
    %954 = vector.shape_cast %953 : vector<8xf32> to vector<8x1xf32>
    %955 = vector.broadcast %954 : vector<8x1xf32> to vector<8x32xf32>
    %956 = arith.subf %952, %955 : vector<8x32xf32>
    %957 = math.exp %956 : vector<8x32xf32>
    %cst_282 = arith.constant dense<0.000000e+00> : vector<8xf32>
    %958 = vector.multi_reduction <add>, %957, %cst_282 [1] : vector<8x32xf32> to vector<8xf32>
    %959 = vector.shape_cast %958 : vector<8xf32> to vector<8x1xf32>
    %960 = vector.broadcast %959 : vector<8x1xf32> to vector<8x32xf32>
    %961 = arith.divf %957, %960 : vector<8x32xf32>
    %962 = vector.extract_strided_slice %919 {offsets = [0, 8], sizes = [32, 4], strides = [1, 1]} : vector<32x32xf32> to vector<32x4xf32>
    %cst_283 = arith.constant dense<0.000000e+00> : vector<8x4xf32>
    %963 = tpu.matmul %961, %962, %cst_283 {dimension_numbers = #tpu.dot_dimension_numbers<[1], [0], [0], [1], [0, 0, 1, 1], [], []>} : vector<8x32xf32>, vector<32x4xf32>, vector<8x4xf32> -> vector<8x4xf32>
    %964 = vector.extract_strided_slice %913 {offsets = [0, 12], sizes = [8, 4], strides = [1, 1]} : vector<8x32xf32> to vector<8x4xf32>
    %965 = vector.extract_strided_slice %918 {offsets = [0, 12], sizes = [32, 4], strides = [1, 1]} : vector<32x32xf32> to vector<32x4xf32>
    %cst_284 = arith.constant dense<0.000000e+00> : vector<8x32xf32>
    %966 = tpu.matmul %964, %965, %cst_284 {dimension_numbers = #tpu.dot_dimension_numbers<[1], [1], [0], [0], [0, 0, 1, 0], [], []>} : vector<8x4xf32>, vector<32x4xf32>, vector<8x32xf32> -> vector<8x32xf32>
    %cst_285 = arith.constant dense<0xFF800000> : vector<8xf32>
    %967 = vector.multi_reduction <maximumf>, %966, %cst_285 [1] : vector<8x32xf32> to vector<8xf32>
    %968 = vector.shape_cast %967 : vector<8xf32> to vector<8x1xf32>
    %969 = vector.broadcast %968 : vector<8x1xf32> to vector<8x32xf32>
    %970 = arith.subf %966, %969 : vector<8x32xf32>
    %971 = math.exp %970 : vector<8x32xf32>
    %cst_286 = arith.constant dense<0.000000e+00> : vector<8xf32>
    %972 = vector.multi_reduction <add>, %971, %cst_286 [1] : vector<8x32xf32> to vector<8xf32>
    %973 = vector.shape_cast %972 : vector<8xf32> to vector<8x1xf32>
    %974 = vector.broadcast %973 : vector<8x1xf32> to vector<8x32xf32>
    %975 = arith.divf %971, %974 : vector<8x32xf32>
    %976 = vector.extract_strided_slice %919 {offsets = [0, 12], sizes = [32, 4], strides = [1, 1]} : vector<32x32xf32> to vector<32x4xf32>
    %cst_287 = arith.constant dense<0.000000e+00> : vector<8x4xf32>
    %977 = tpu.matmul %975, %976, %cst_287 {dimension_numbers = #tpu.dot_dimension_numbers<[1], [0], [0], [1], [0, 0, 1, 1], [], []>} : vector<8x32xf32>, vector<32x4xf32>, vector<8x4xf32> -> vector<8x4xf32>
    %978 = vector.extract_strided_slice %913 {offsets = [0, 16], sizes = [8, 4], strides = [1, 1]} : vector<8x32xf32> to vector<8x4xf32>
    %979 = vector.extract_strided_slice %918 {offsets = [0, 16], sizes = [32, 4], strides = [1, 1]} : vector<32x32xf32> to vector<32x4xf32>
    %cst_288 = arith.constant dense<0.000000e+00> : vector<8x32xf32>
    %980 = tpu.matmul %978, %979, %cst_288 {dimension_numbers = #tpu.dot_dimension_numbers<[1], [1], [0], [0], [0, 0, 1, 0], [], []>} : vector<8x4xf32>, vector<32x4xf32>, vector<8x32xf32> -> vector<8x32xf32>
    %cst_289 = arith.constant dense<0xFF800000> : vector<8xf32>
    %981 = vector.multi_reduction <maximumf>, %980, %cst_289 [1] : vector<8x32xf32> to vector<8xf32>
    %982 = vector.shape_cast %981 : vector<8xf32> to vector<8x1xf32>
    %983 = vector.broadcast %982 : vector<8x1xf32> to vector<8x32xf32>
    %984 = arith.subf %980, %983 : vector<8x32xf32>
    %985 = math.exp %984 : vector<8x32xf32>
    %cst_290 = arith.constant dense<0.000000e+00> : vector<8xf32>
    %986 = vector.multi_reduction <add>, %985, %cst_290 [1] : vector<8x32xf32> to vector<8xf32>
    %987 = vector.shape_cast %986 : vector<8xf32> to vector<8x1xf32>
    %988 = vector.broadcast %987 : vector<8x1xf32> to vector<8x32xf32>
    %989 = arith.divf %985, %988 : vector<8x32xf32>
    %990 = vector.extract_strided_slice %919 {offsets = [0, 16], sizes = [32, 4], strides = [1, 1]} : vector<32x32xf32> to vector<32x4xf32>
    %cst_291 = arith.constant dense<0.000000e+00> : vector<8x4xf32>
    %991 = tpu.matmul %989, %990, %cst_291 {dimension_numbers = #tpu.dot_dimension_numbers<[1], [0], [0], [1], [0, 0, 1, 1], [], []>} : vector<8x32xf32>, vector<32x4xf32>, vector<8x4xf32> -> vector<8x4xf32>
    %992 = vector.extract_strided_slice %913 {offsets = [0, 20], sizes = [8, 4], strides = [1, 1]} : vector<8x32xf32> to vector<8x4xf32>
    %993 = vector.extract_strided_slice %918 {offsets = [0, 20], sizes = [32, 4], strides = [1, 1]} : vector<32x32xf32> to vector<32x4xf32>
    %cst_292 = arith.constant dense<0.000000e+00> : vector<8x32xf32>
    %994 = tpu.matmul %992, %993, %cst_292 {dimension_numbers = #tpu.dot_dimension_numbers<[1], [1], [0], [0], [0, 0, 1, 0], [], []>} : vector<8x4xf32>, vector<32x4xf32>, vector<8x32xf32> -> vector<8x32xf32>
    %cst_293 = arith.constant dense<0xFF800000> : vector<8xf32>
    %995 = vector.multi_reduction <maximumf>, %994, %cst_293 [1] : vector<8x32xf32> to vector<8xf32>
    %996 = vector.shape_cast %995 : vector<8xf32> to vector<8x1xf32>
    %997 = vector.broadcast %996 : vector<8x1xf32> to vector<8x32xf32>
    %998 = arith.subf %994, %997 : vector<8x32xf32>
    %999 = math.exp %998 : vector<8x32xf32>
    %cst_294 = arith.constant dense<0.000000e+00> : vector<8xf32>
    %1000 = vector.multi_reduction <add>, %999, %cst_294 [1] : vector<8x32xf32> to vector<8xf32>
    %1001 = vector.shape_cast %1000 : vector<8xf32> to vector<8x1xf32>
    %1002 = vector.broadcast %1001 : vector<8x1xf32> to vector<8x32xf32>
    %1003 = arith.divf %999, %1002 : vector<8x32xf32>
    %1004 = vector.extract_strided_slice %919 {offsets = [0, 20], sizes = [32, 4], strides = [1, 1]} : vector<32x32xf32> to vector<32x4xf32>
    %cst_295 = arith.constant dense<0.000000e+00> : vector<8x4xf32>
    %1005 = tpu.matmul %1003, %1004, %cst_295 {dimension_numbers = #tpu.dot_dimension_numbers<[1], [0], [0], [1], [0, 0, 1, 1], [], []>} : vector<8x32xf32>, vector<32x4xf32>, vector<8x4xf32> -> vector<8x4xf32>
    %1006 = vector.extract_strided_slice %913 {offsets = [0, 24], sizes = [8, 4], strides = [1, 1]} : vector<8x32xf32> to vector<8x4xf32>
    %1007 = vector.extract_strided_slice %918 {offsets = [0, 24], sizes = [32, 4], strides = [1, 1]} : vector<32x32xf32> to vector<32x4xf32>
    %cst_296 = arith.constant dense<0.000000e+00> : vector<8x32xf32>
    %1008 = tpu.matmul %1006, %1007, %cst_296 {dimension_numbers = #tpu.dot_dimension_numbers<[1], [1], [0], [0], [0, 0, 1, 0], [], []>} : vector<8x4xf32>, vector<32x4xf32>, vector<8x32xf32> -> vector<8x32xf32>
    %cst_297 = arith.constant dense<0xFF800000> : vector<8xf32>
    %1009 = vector.multi_reduction <maximumf>, %1008, %cst_297 [1] : vector<8x32xf32> to vector<8xf32>
    %1010 = vector.shape_cast %1009 : vector<8xf32> to vector<8x1xf32>
    %1011 = vector.broadcast %1010 : vector<8x1xf32> to vector<8x32xf32>
    %1012 = arith.subf %1008, %1011 : vector<8x32xf32>
    %1013 = math.exp %1012 : vector<8x32xf32>
    %cst_298 = arith.constant dense<0.000000e+00> : vector<8xf32>
    %1014 = vector.multi_reduction <add>, %1013, %cst_298 [1] : vector<8x32xf32> to vector<8xf32>
    %1015 = vector.shape_cast %1014 : vector<8xf32> to vector<8x1xf32>
    %1016 = vector.broadcast %1015 : vector<8x1xf32> to vector<8x32xf32>
    %1017 = arith.divf %1013, %1016 : vector<8x32xf32>
    %1018 = vector.extract_strided_slice %919 {offsets = [0, 24], sizes = [32, 4], strides = [1, 1]} : vector<32x32xf32> to vector<32x4xf32>
    %cst_299 = arith.constant dense<0.000000e+00> : vector<8x4xf32>
    %1019 = tpu.matmul %1017, %1018, %cst_299 {dimension_numbers = #tpu.dot_dimension_numbers<[1], [0], [0], [1], [0, 0, 1, 1], [], []>} : vector<8x32xf32>, vector<32x4xf32>, vector<8x4xf32> -> vector<8x4xf32>
    %1020 = vector.extract_strided_slice %913 {offsets = [0, 28], sizes = [8, 4], strides = [1, 1]} : vector<8x32xf32> to vector<8x4xf32>
    %1021 = vector.extract_strided_slice %918 {offsets = [0, 28], sizes = [32, 4], strides = [1, 1]} : vector<32x32xf32> to vector<32x4xf32>
    %cst_300 = arith.constant dense<0.000000e+00> : vector<8x32xf32>
    %1022 = tpu.matmul %1020, %1021, %cst_300 {dimension_numbers = #tpu.dot_dimension_numbers<[1], [1], [0], [0], [0, 0, 1, 0], [], []>} : vector<8x4xf32>, vector<32x4xf32>, vector<8x32xf32> -> vector<8x32xf32>
    %cst_301 = arith.constant dense<0xFF800000> : vector<8xf32>
    %1023 = vector.multi_reduction <maximumf>, %1022, %cst_301 [1] : vector<8x32xf32> to vector<8xf32>
    %1024 = vector.shape_cast %1023 : vector<8xf32> to vector<8x1xf32>
    %1025 = vector.broadcast %1024 : vector<8x1xf32> to vector<8x32xf32>
    %1026 = arith.subf %1022, %1025 : vector<8x32xf32>
    %1027 = math.exp %1026 : vector<8x32xf32>
    %cst_302 = arith.constant dense<0.000000e+00> : vector<8xf32>
    %1028 = vector.multi_reduction <add>, %1027, %cst_302 [1] : vector<8x32xf32> to vector<8xf32>
    %1029 = vector.shape_cast %1028 : vector<8xf32> to vector<8x1xf32>
    %1030 = vector.broadcast %1029 : vector<8x1xf32> to vector<8x32xf32>
    %1031 = arith.divf %1027, %1030 : vector<8x32xf32>
    %1032 = vector.extract_strided_slice %919 {offsets = [0, 28], sizes = [32, 4], strides = [1, 1]} : vector<32x32xf32> to vector<32x4xf32>
    %cst_303 = arith.constant dense<0.000000e+00> : vector<8x4xf32>
    %1033 = tpu.matmul %1031, %1032, %cst_303 {dimension_numbers = #tpu.dot_dimension_numbers<[1], [0], [0], [1], [0, 0, 1, 1], [], []>} : vector<8x32xf32>, vector<32x4xf32>, vector<8x4xf32> -> vector<8x4xf32>
    %1034 = tpu.concatenate %935, %949, %963, %977, %991, %1005, %1019, %1033 in 1 : vector<8x4xf32>, vector<8x4xf32>, vector<8x4xf32>, vector<8x4xf32>, vector<8x4xf32>, vector<8x4xf32>, vector<8x4xf32>, vector<8x4xf32> -> vector<8x32xf32>
    %cst_304 = arith.constant dense<0.000000e+00> : vector<8x32xf32>
    %1035 = tpu.matmul %1034, %920, %cst_304 {dimension_numbers = #tpu.dot_dimension_numbers<[1], [0], [0], [1], [0, 0, 1, 1], [], []>} : vector<8x32xf32>, vector<32x32xf32>, vector<8x32xf32> -> vector<8x32xf32>
    %1036 = vector.broadcast %921 : vector<1x32xf32> to vector<8x32xf32>
    %1037 = arith.addf %1035, %1036 : vector<8x32xf32>
    %1038 = arith.addf %907, %1037 : vector<8x32xf32>
    %1039 = vector.extract_strided_slice %751 {offsets = [165, 0], sizes = [1, 32], strides = [1, 1]} : vector<170x32xf32> to vector<1x32xf32>
    %1040 = vector.extract_strided_slice %751 {offsets = [166, 0], sizes = [1, 32], strides = [1, 1]} : vector<170x32xf32> to vector<1x32xf32>
    %cst_305 = arith.constant dense<0.000000e+00> : vector<8xf32>
    %1041 = vector.multi_reduction <add>, %1038, %cst_305 [1] : vector<8x32xf32> to vector<8xf32>
    %1042 = vector.shape_cast %1041 : vector<8xf32> to vector<8x1xf32>
    %cst_306 = arith.constant 3.200000e+01 : f32
    %1043 = vector.broadcast %cst_306 : f32 to vector<8x1xf32>
    %1044 = arith.divf %1042, %1043 : vector<8x1xf32>
    %1045 = vector.broadcast %1044 : vector<8x1xf32> to vector<8x32xf32>
    %1046 = arith.subf %1038, %1045 : vector<8x32xf32>
    %1047 = arith.mulf %1046, %1046 : vector<8x32xf32>
    %cst_307 = arith.constant dense<0.000000e+00> : vector<8xf32>
    %1048 = vector.multi_reduction <add>, %1047, %cst_307 [1] : vector<8x32xf32> to vector<8xf32>
    %1049 = vector.shape_cast %1048 : vector<8xf32> to vector<8x1xf32>
    %cst_308 = arith.constant 3.200000e+01 : f32
    %1050 = vector.broadcast %cst_308 : f32 to vector<8x1xf32>
    %1051 = arith.divf %1049, %1050 : vector<8x1xf32>
    %cst_309 = arith.constant 9.99999974E-6 : f32
    %1052 = vector.broadcast %cst_309 : f32 to vector<8x1xf32>
    %1053 = arith.addf %1051, %1052 : vector<8x1xf32>
    %1054 = math.rsqrt %1053 : vector<8x1xf32>
    %1055 = vector.broadcast %1054 : vector<8x1xf32> to vector<8x32xf32>
    %1056 = arith.mulf %1046, %1055 : vector<8x32xf32>
    %1057 = vector.broadcast %1039 : vector<1x32xf32> to vector<8x32xf32>
    %1058 = arith.mulf %1056, %1057 : vector<8x32xf32>
    %1059 = vector.broadcast %1040 : vector<1x32xf32> to vector<8x32xf32>
    %1060 = arith.addf %1058, %1059 : vector<8x32xf32>
    %1061 = vector.extract_strided_slice %749 {offsets = [64, 0], sizes = [32, 64], strides = [1, 1]} : vector<97x64xf32> to vector<32x64xf32>
    %cst_310 = arith.constant dense<0.000000e+00> : vector<8x64xf32>
    %1062 = tpu.matmul %1060, %1061, %cst_310 {dimension_numbers = #tpu.dot_dimension_numbers<[1], [0], [0], [1], [0, 0, 1, 1], [], []>} : vector<8x32xf32>, vector<32x64xf32>, vector<8x64xf32> -> vector<8x64xf32>
    %1063 = vector.extract_strided_slice %749 {offsets = [96, 0], sizes = [1, 64], strides = [1, 1]} : vector<97x64xf32> to vector<1x64xf32>
    %1064 = vector.broadcast %1063 : vector<1x64xf32> to vector<8x64xf32>
    %1065 = arith.addf %1062, %1064 : vector<8x64xf32>
    %cst_311 = arith.constant 0.000000e+00 : f32
    %1066 = vector.broadcast %cst_311 : f32 to vector<8x64xf32>
    %1067 = arith.maximumf %1065, %1066 : vector<8x64xf32>
    %1068 = vector.extract_strided_slice %751 {offsets = [96, 0], sizes = [64, 32], strides = [1, 1]} : vector<170x32xf32> to vector<64x32xf32>
    %cst_312 = arith.constant dense<0.000000e+00> : vector<8x32xf32>
    %1069 = tpu.matmul %1067, %1068, %cst_312 {dimension_numbers = #tpu.dot_dimension_numbers<[1], [0], [0], [1], [0, 0, 1, 1], [], []>} : vector<8x64xf32>, vector<64x32xf32>, vector<8x32xf32> -> vector<8x32xf32>
    %1070 = vector.extract_strided_slice %751 {offsets = [167, 0], sizes = [1, 32], strides = [1, 1]} : vector<170x32xf32> to vector<1x32xf32>
    %1071 = vector.broadcast %1070 : vector<1x32xf32> to vector<8x32xf32>
    %1072 = arith.addf %1069, %1071 : vector<8x32xf32>
    %1073 = arith.addf %1060, %1072 : vector<8x32xf32>
    %1074 = vector.extract_strided_slice %751 {offsets = [168, 0], sizes = [1, 32], strides = [1, 1]} : vector<170x32xf32> to vector<1x32xf32>
    %1075 = vector.extract_strided_slice %751 {offsets = [169, 0], sizes = [1, 32], strides = [1, 1]} : vector<170x32xf32> to vector<1x32xf32>
    %cst_313 = arith.constant dense<0.000000e+00> : vector<8xf32>
    %1076 = vector.multi_reduction <add>, %1073, %cst_313 [1] : vector<8x32xf32> to vector<8xf32>
    %1077 = vector.shape_cast %1076 : vector<8xf32> to vector<8x1xf32>
    %cst_314 = arith.constant 3.200000e+01 : f32
    %1078 = vector.broadcast %cst_314 : f32 to vector<8x1xf32>
    %1079 = arith.divf %1077, %1078 : vector<8x1xf32>
    %1080 = vector.broadcast %1079 : vector<8x1xf32> to vector<8x32xf32>
    %1081 = arith.subf %1073, %1080 : vector<8x32xf32>
    %1082 = arith.mulf %1081, %1081 : vector<8x32xf32>
    %cst_315 = arith.constant dense<0.000000e+00> : vector<8xf32>
    %1083 = vector.multi_reduction <add>, %1082, %cst_315 [1] : vector<8x32xf32> to vector<8xf32>
    %1084 = vector.shape_cast %1083 : vector<8xf32> to vector<8x1xf32>
    %cst_316 = arith.constant 3.200000e+01 : f32
    %1085 = vector.broadcast %cst_316 : f32 to vector<8x1xf32>
    %1086 = arith.divf %1084, %1085 : vector<8x1xf32>
    %cst_317 = arith.constant 9.99999974E-6 : f32
    %1087 = vector.broadcast %cst_317 : f32 to vector<8x1xf32>
    %1088 = arith.addf %1086, %1087 : vector<8x1xf32>
    %1089 = math.rsqrt %1088 : vector<8x1xf32>
    %1090 = vector.broadcast %1089 : vector<8x1xf32> to vector<8x32xf32>
    %1091 = arith.mulf %1081, %1090 : vector<8x32xf32>
    %1092 = vector.broadcast %1074 : vector<1x32xf32> to vector<8x32xf32>
    %1093 = arith.mulf %1091, %1092 : vector<8x32xf32>
    %1094 = vector.broadcast %1075 : vector<1x32xf32> to vector<8x32xf32>
    %1095 = arith.addf %1093, %1094 : vector<8x32xf32>
    %c0_318 = arith.constant 0 : index
    %c0_319 = arith.constant 0 : index
    %1096 = vector.load %arg10[%c0_318, %c0_319] : memref<68x32xf32, #tpu.memory_space<vmem>>, vector<68x32xf32>
    %c0_320 = arith.constant 0 : index
    %c0_321 = arith.constant 0 : index
    %1097 = vector.load %arg11[%c0_320, %c0_321] : memref<33x128xf32, #tpu.memory_space<vmem>>, vector<33x128xf32>
    %1098 = vector.extract_strided_slice %1096 {offsets = [64, 0], sizes = [1, 32], strides = [1, 1]} : vector<68x32xf32> to vector<1x32xf32>
    %1099 = vector.extract_strided_slice %1096 {offsets = [65, 0], sizes = [1, 32], strides = [1, 1]} : vector<68x32xf32> to vector<1x32xf32>
    %cst_322 = arith.constant dense<0.000000e+00> : vector<8xf32>
    %1100 = vector.multi_reduction <add>, %1095, %cst_322 [1] : vector<8x32xf32> to vector<8xf32>
    %1101 = vector.shape_cast %1100 : vector<8xf32> to vector<8x1xf32>
    %cst_323 = arith.constant 3.200000e+01 : f32
    %1102 = vector.broadcast %cst_323 : f32 to vector<8x1xf32>
    %1103 = arith.divf %1101, %1102 : vector<8x1xf32>
    %1104 = vector.broadcast %1103 : vector<8x1xf32> to vector<8x32xf32>
    %1105 = arith.subf %1095, %1104 : vector<8x32xf32>
    %1106 = arith.mulf %1105, %1105 : vector<8x32xf32>
    %cst_324 = arith.constant dense<0.000000e+00> : vector<8xf32>
    %1107 = vector.multi_reduction <add>, %1106, %cst_324 [1] : vector<8x32xf32> to vector<8xf32>
    %1108 = vector.shape_cast %1107 : vector<8xf32> to vector<8x1xf32>
    %cst_325 = arith.constant 3.200000e+01 : f32
    %1109 = vector.broadcast %cst_325 : f32 to vector<8x1xf32>
    %1110 = arith.divf %1108, %1109 : vector<8x1xf32>
    %cst_326 = arith.constant 9.99999974E-6 : f32
    %1111 = vector.broadcast %cst_326 : f32 to vector<8x1xf32>
    %1112 = arith.addf %1110, %1111 : vector<8x1xf32>
    %1113 = math.rsqrt %1112 : vector<8x1xf32>
    %1114 = vector.broadcast %1113 : vector<8x1xf32> to vector<8x32xf32>
    %1115 = arith.mulf %1105, %1114 : vector<8x32xf32>
    %1116 = vector.broadcast %1098 : vector<1x32xf32> to vector<8x32xf32>
    %1117 = arith.mulf %1115, %1116 : vector<8x32xf32>
    %1118 = vector.broadcast %1099 : vector<1x32xf32> to vector<8x32xf32>
    %1119 = arith.addf %1117, %1118 : vector<8x32xf32>
    %1120 = vector.extract_strided_slice %1096 {offsets = [0, 0], sizes = [32, 32], strides = [1, 1]} : vector<68x32xf32> to vector<32x32xf32>
    %cst_327 = arith.constant dense<0.000000e+00> : vector<8x32xf32>
    %1121 = tpu.matmul %1119, %1120, %cst_327 {dimension_numbers = #tpu.dot_dimension_numbers<[1], [0], [0], [1], [0, 0, 1, 1], [], []>} : vector<8x32xf32>, vector<32x32xf32>, vector<8x32xf32> -> vector<8x32xf32>
    %1122 = vector.extract_strided_slice %1096 {offsets = [66, 0], sizes = [1, 32], strides = [1, 1]} : vector<68x32xf32> to vector<1x32xf32>
    %1123 = vector.broadcast %1122 : vector<1x32xf32> to vector<8x32xf32>
    %1124 = arith.addf %1121, %1123 : vector<8x32xf32>
    %cst_328 = arith.constant 0.000000e+00 : f32
    %1125 = vector.broadcast %cst_328 : f32 to vector<8x32xf32>
    %1126 = arith.maximumf %1124, %1125 : vector<8x32xf32>
    %1127 = vector.extract_strided_slice %1096 {offsets = [32, 0], sizes = [32, 32], strides = [1, 1]} : vector<68x32xf32> to vector<32x32xf32>
    %cst_329 = arith.constant dense<0.000000e+00> : vector<8x32xf32>
    %1128 = tpu.matmul %1126, %1127, %cst_329 {dimension_numbers = #tpu.dot_dimension_numbers<[1], [0], [0], [1], [0, 0, 1, 1], [], []>} : vector<8x32xf32>, vector<32x32xf32>, vector<8x32xf32> -> vector<8x32xf32>
    %1129 = vector.extract_strided_slice %1096 {offsets = [67, 0], sizes = [1, 32], strides = [1, 1]} : vector<68x32xf32> to vector<1x32xf32>
    %1130 = vector.broadcast %1129 : vector<1x32xf32> to vector<8x32xf32>
    %1131 = arith.addf %1128, %1130 : vector<8x32xf32>
    %cst_330 = arith.constant 0.000000e+00 : f32
    %1132 = vector.broadcast %cst_330 : f32 to vector<8x32xf32>
    %1133 = arith.maximumf %1131, %1132 : vector<8x32xf32>
    %1134 = vector.extract_strided_slice %1097 {offsets = [0, 0], sizes = [32, 128], strides = [1, 1]} : vector<33x128xf32> to vector<32x128xf32>
    %cst_331 = arith.constant dense<0.000000e+00> : vector<8x128xf32>
    %1135 = tpu.matmul %1133, %1134, %cst_331 {dimension_numbers = #tpu.dot_dimension_numbers<[1], [0], [0], [1], [0, 0, 1, 1], [], []>} : vector<8x32xf32>, vector<32x128xf32>, vector<8x128xf32> -> vector<8x128xf32>
    %1136 = vector.extract_strided_slice %1097 {offsets = [32, 0], sizes = [1, 128], strides = [1, 1]} : vector<33x128xf32> to vector<1x128xf32>
    %1137 = vector.broadcast %1136 : vector<1x128xf32> to vector<8x128xf32>
    %1138 = arith.addf %1135, %1137 : vector<8x128xf32>
    %c0_332 = arith.constant 0 : index
    %c0_333 = arith.constant 0 : index
    %c0_334 = arith.constant 0 : index
    %1139 = vector.load %arg13[%c0_332, %c0_333, %c0_334] : memref<1x8x128xf32, #tpu.memory_space<vmem>>, vector<1x8x128xf32>
    %1140 = vector.shape_cast %1139 : vector<1x8x128xf32> to vector<8x128xf32>
    %1141 = vector.shape_cast %1138 : vector<8x128xf32> to vector<1x8x128xf32>
    tpu.vector_store %arg13[%c0_332, %c0_333, %c0_334], %1141 {strides = array<i32>} : memref<1x8x128xf32, #tpu.memory_space<vmem>>, vector<1x8x128xf32>,
    return
  }
  func.func @transform_0(%arg0: i32) -> (i32, i32, i32) {
    %c0_i32 = arith.constant 0 : i32
    %c0_i32_0 = arith.constant 0 : i32
    %c0_i32_1 = arith.constant 0 : i32
    return %arg0, %c0_i32, %c0_i32_0 : i32, i32, i32
  }
  func.func @transform_1(%arg0: i32) -> (i32, i32, i32) {
    %c0_i32 = arith.constant 0 : i32
    %c0_i32_0 = arith.constant 0 : i32
    %c0_i32_1 = arith.constant 0 : i32
    return %arg0, %c0_i32, %c0_i32_0 : i32, i32, i32
  }
  func.func @transform_2(%arg0: i32) -> (i32, i32) {
    %c0_i32 = arith.constant 0 : i32
    %c0_i32_0 = arith.constant 0 : i32
    %c0_i32_1 = arith.constant 0 : i32
    return %c0_i32, %c0_i32_0 : i32, i32
  }
  func.func @transform_3(%arg0: i32) -> (i32, i32, i32) {
    %c0_i32 = arith.constant 0 : i32
    %c0_i32_0 = arith.constant 0 : i32
    %c0_i32_1 = arith.constant 0 : i32
    %c0_i32_2 = arith.constant 0 : i32
    return %c0_i32, %c0_i32_0, %c0_i32_1 : i32, i32, i32
  }
  func.func @transform_4(%arg0: i32) -> (i32, i32, i32) {
    %c0_i32 = arith.constant 0 : i32
    %c0_i32_0 = arith.constant 0 : i32
    %c0_i32_1 = arith.constant 0 : i32
    %c0_i32_2 = arith.constant 0 : i32
    return %c0_i32, %c0_i32_0, %c0_i32_1 : i32, i32, i32
  }
  func.func @transform_5(%arg0: i32) -> (i32, i32, i32) {
    %c0_i32 = arith.constant 0 : i32
    %c0_i32_0 = arith.constant 0 : i32
    %c0_i32_1 = arith.constant 0 : i32
    %c0_i32_2 = arith.constant 0 : i32
    return %c0_i32, %c0_i32_0, %c0_i32_1 : i32, i32, i32
  }
  func.func @transform_6(%arg0: i32) -> (i32, i32, i32) {
    %c0_i32 = arith.constant 0 : i32
    %c0_i32_0 = arith.constant 0 : i32
    %c0_i32_1 = arith.constant 0 : i32
    %c0_i32_2 = arith.constant 0 : i32
    return %c0_i32, %c0_i32_0, %c0_i32_1 : i32, i32, i32
  }
  func.func @transform_7(%arg0: i32) -> (i32, i32, i32) {
    %c0_i32 = arith.constant 0 : i32
    %c0_i32_0 = arith.constant 0 : i32
    %c0_i32_1 = arith.constant 0 : i32
    %c0_i32_2 = arith.constant 0 : i32
    return %c0_i32, %c0_i32_0, %c0_i32_1 : i32, i32, i32
  }
  func.func @transform_8(%arg0: i32) -> (i32, i32, i32) {
    %c0_i32 = arith.constant 0 : i32
    %c0_i32_0 = arith.constant 0 : i32
    %c0_i32_1 = arith.constant 0 : i32
    %c0_i32_2 = arith.constant 0 : i32
    return %c0_i32, %c0_i32_0, %c0_i32_1 : i32, i32, i32
  }
  func.func @transform_9(%arg0: i32) -> (i32, i32) {
    %c0_i32 = arith.constant 0 : i32
    %c0_i32_0 = arith.constant 0 : i32
    %c0_i32_1 = arith.constant 0 : i32
    return %c0_i32, %c0_i32_0 : i32, i32
  }
  func.func @transform_10(%arg0: i32) -> (i32, i32) {
    %c0_i32 = arith.constant 0 : i32
    %c0_i32_0 = arith.constant 0 : i32
    %c0_i32_1 = arith.constant 0 : i32
    return %c0_i32, %c0_i32_0 : i32, i32
  }
  func.func @transform_11(%arg0: i32) -> (i32, i32, i32) {
    %c0_i32 = arith.constant 0 : i32
    %c0_i32_0 = arith.constant 0 : i32
    %c0_i32_1 = arith.constant 0 : i32
    return %arg0, %c0_i32, %c0_i32_0 : i32, i32, i32
  }
  func.func @transform_12(%arg0: i32) -> (i32, i32, i32) {
    %c0_i32 = arith.constant 0 : i32
    %c0_i32_0 = arith.constant 0 : i32
    %c0_i32_1 = arith.constant 0 : i32
    return %arg0, %c0_i32, %c0_i32_0 : i32, i32, i32
  }
}

</mosaic_0001>

<bundles_post_ra>
// kernel: cotr_forward.2
= control target key start
LH: loop header
LB: loop body
LE: loop exit
PB: predicated region body
PF: predicated region fallthrough
CT: control target
= control target key end

     0   :  { %s21475_s0 = inlined_call_operand.vmem [shape: f32[2,32,4], index: 0, kind: input, shape index: {}]   ;;  %s21476_s1 = inlined_call_operand.vmem [shape: f32[2,8,32], index: 1, kind: input, shape index: {}]   ;;  %s21477_s2 = inlined_call_operand.vmem [shape: f32[37,32], index: 2, kind: input, shape index: {}]   ;;  %s21478_s3 = inlined_call_operand.vmem [shape: f32[2,64,96], index: 3, kind: input, shape index: {}]   ;;  %s21479_s4 = inlined_call_operand.vmem [shape: f32[2,33,64], index: 4, kind: input, shape index: {}]   ;;  %s21480_s5 = inlined_call_operand.vmem [shape: f32[2,102,32], index: 5, kind: input, shape index: {}]   ;;  %s21481_s6 = inlined_call_operand.vmem [shape: f32[2,33,96], index: 6, kind: input, shape index: {}]   ;;  %s21482_s7 = inlined_call_operand.vmem [shape: f32[2,97,64], index: 7, kind: input, shape index: {}]   ;;  %s21483_s8 = inlined_call_operand.vmem [shape: f32[2,170,32], index: 8, kind: input, shape index: {}]   ;;  %s21484_s9 = inlined_call_operand.vmem [shape: f32[68,32], index: 9, kind: input, shape index: {}]   ;;  %s21485_s10 = inlined_call_operand.vmem [shape: f32[33,128], index: 10, kind: input, shape index: {}]   ;;  %s21486_s11 = inlined_call_operand.hbm [shape: f32[2,32,32], index: 11, kind: output, shape index: {0}]   ;;  %s21487_s12 = inlined_call_operand.vmem [shape: f32[2,8,128], index: 12, kind: output, shape index: {1}]  }
   0x1   :  { %21579 = sst [smem:[#allocation17_spill]] %s21475_s0 }
   0x2   :  { %21580 = sst [smem:[#allocation18_spill]] %s21476_s1 }
   0x3   :  { %21581 = sst [smem:[#allocation19_spill]] %s21477_s2 }
   0x4   :  { %21582 = sst [smem:[#allocation20_spill]] %s21478_s3 }
   0x5   :  { %21583 = sst [smem:[#allocation21_spill]] %s21479_s4 }
   0x6   :  { %21584 = sst [smem:[#allocation22_spill]] %s21480_s5 }
   0x7   :  { %21585 = sst [smem:[#allocation23_spill]] %s21481_s6 }
   0x8   :  { %21586 = sst [smem:[#allocation24_spill]] %s21482_s7 }
   0x9   :  { %21587 = sst [smem:[#allocation25_spill]] %s21483_s8 }
   0xa   :  { %21588 = sst [smem:[#allocation26_spill]] %s21484_s9 }
   0xb   :  { %21589 = sst [smem:[#allocation27_spill]] %s21485_s10 }
   0xc   :  { %21590 = sst [smem:[#allocation28_spill]] %s21486_s11 }
   0xd   :  { %21591 = sst [smem:[#allocation29_spill]] %s21487_s12 }
   0xe   :  { %18 = vsyncpa [#allocation3], 0 }
   0xf   :  { %20 = vsyncpa [#allocation3 + $0x1], 0  ;;  %s18662_s21 = smov 0   ;;  %s18664_s22 = smov 0  }
  0x10   :  { %s18666_s23 = smov 0   ;;  %s18668_s24 = smov 0  }
  0x11 LB: > { %21592 = sst [smem:[#allocation5_spill]] %s18548_s21  ;;  %s18683_s25 = sadd.s32 4294967295, %s18560_s24   ;;  %s18560_s24 = sphi %s18668_s24, %s21678_s24   ;;  %s18556_s23 = sphi %s18666_s23, %s21681_s23   ;;  %s18552_s22 = sphi %s18664_s22, %s21680_s22   ;;  %s18548_s21 = sphi %s18662_s21, %s21679_s21  }
  0x12   : > { %21593 = sst [smem:[#allocation6_spill]] %s18552_s22  ;;  %s14085_s26 = sadd.s32 4294967294, %s18560_s24  }
  0x13   : > { %21594 = sst [smem:[#allocation7_spill]] %s18556_s23  ;;  %s18687_s27 = sadd.s32 1, %s18560_s24  }
  0x14   : > { %21595 = sst [smem:[#allocation8_spill]] %s18560_s24  ;;  %s274_s28 = sadd.s32 1, %s18556_s23 }
  0x15   : > { %21596 = sst [smem:[#allocation9_spill]] %s18683_s25  ;;  %s271_s29 = ssub.s32 %s18560_s24, %s18687_s27 }
  0x16   : > { %21597 = sst [smem:[#allocation10_spill]] %s18687_s27  ;;  %p284_p0 = scmp.ne.s32.totalorder %s18556_s23, %s18552_s22 }
  0x17   : > { %p272_p1 = scmp.eq.s32.totalorder %s271_s29, 0  ;;  %p285_p2 = scmp.eq.s32.totalorder %s18683_s25, 1 }
  0x18   : > { %p290_p3 = scmp.ne.s32.totalorder %s18552_s22, %s18548_s21  ;;  %p291_p4 = scmp.eq.s32.totalorder %s14085_s26, 1 }
  0x19   : > { %s18698_s30 = scalar_select %p272_p1, %s18556_s23, %s274_s28  }
  0x1a   : > { %p18700_p5 = por %p285_p2, %p284_p0  ;;  %p18704_p6 = por %p291_p4, %p290_p3 }
  0x1b   : > { %21598 = sst [smem:[#allocation11_spill]] %s18698_s30  ;;  %p14088_p7 = scmp.ge.s32.totalorder %s18560_s24, 1 }
  0x1c   : > { %s21599_s13 = scalar_select %p18700_p5, 1, 0 }
  0x1d   : > { %s21601_s14 = scalar_select %p18704_p6, 1, 0 }
  0x1e   : > { %21600 = sst [smem:[#allocation12_spill]] %s21599_s13  ;;  %p377_p8 = scmp.lt.s32.totalorder %s18560_s24, 3 }
  0x1f   : > { %21602 = sst [smem:[#allocation13_spill]] %s21601_s14 }
  0x20   : > { %p378_p9 = pnand %p14088_p7, %p377_p8 }
  0x22   : > { %381 = sbr.rel (%p378_p9) target bundleno = 30034 (0x7552), region = 64 }
  0x29   : > { %s21603_s2 = sld [smem:[#allocation19_spill]]  ;;  %vm462_vm0 = vcmask 1043456   ;;  %p427_p10 = scmp.lt.s32.totalorder %s18683_s25, 1  ;;  %vm449_vm1 = vcmask 31744   ;;  %vm576_vm2 = vcmask 261120   ;;  %v555_v34 = vlaneseq }
  0x2a   : > { %s21605_s0 = sld [smem:[#allocation17_spill]]  ;;  %s21606_s3 = sld [smem:[#allocation20_spill]]  ;;  %vm18817_vm3 = vmpackc.low %vm449_vm1, %vm449_vm1  ;;  %vm3069_vm4 = vcmask 64512   ;;  %vm3074_vm5 = vcmask 97280   ;;  %vm3079_vm6 = vcmask 130048   ;;  %vm3084_vm7 = vcmask 162816  }
  0x2b   : > { %s18723_s26 = scalar_select %p427_p10, %s18683_s25, 1  ;;  %v18759_v35 = vshrl.u32 %v555_v34, 7  ;;  %vm3089_vm8 = vcmask 195584   ;;  %vm3094_vm9 = vcmask 228352   ;;  %vm3382_vm10 = vcmask 523264  }
  0x2c   : > { %s21540_s29 = smov 64   ;;  %s21528_s15 = smov 92   ;;  %vm18593_vm11 = vmmov 0  }
  0x2d   : > { %21604 = sst [smem:[#allocation14_spill]] %s18723_s26  ;;  %s14573_s28 = sshll.u32 %s18723_s26, 5  ;;  %v18762_v36 = vsub.s32 4, %v18759_v35 }
  0x2e   : > { %s21522_s17 = smov 60   ;;  %s21520_s18 = smov 88  }
  0x2f   : > { %v440_v0 = vld [vmem:[%s21603_s2] sm:$0xff]  ;;  %v441_v1 = vld [vmem:[%s21603_s2 + $0x8] sm:$0xff]  ;;  %v442_v2 = vld [vmem:[%s21603_s2 + $0x10] sm:$0xff]  ;;  %s21488_s19 = smov 120   ;;  %s21494_s20 = smov 56  }
  0x30   : > { %15249 = vmatprep.subr.msk.mxu0 %vm462_vm0, %v440_v0  ;;  %v563_v3 = vrot.slane %v440_v0, 4  ;;  %v564_v4 = vrot.slane %v441_v1, 4  ;;  %v566_v5 = vrot.slane %v442_v2, 4  ;;  %s431_s16 = scalar_lea.vmem %s21605_s0, %s14573_s28  ;;  %v443_v13 = vld [vmem:[%s21603_s2 + $0x18] sm:$0xff]  ;;  %v444_v14 = vld [vmem:[%s21603_s2 + $0x20] sm:$0x1f] }
  0x31   : > { %15250 = vmatpush3.msk.msra.mxu0 %vm462_vm0, %v440_v0  ;;  %v445_v9 = vld [vmem:[%s431_s16] sm:$0xff]  ;;  %v446_v10 = vld [vmem:[%s431_s16 + $0x8] sm:$0xff]  ;;  %v447_v11 = vld [vmem:[%s431_s16 + $0x10] sm:$0xff]  ;;  %v568_v15 = vrot.slane %v443_v13, 4  ;;  %v570_v16 = vrot.slane %v444_v14, 4  ;;  %v558_v37 = vrot.slane %v444_v14, %v18762_v36  ;;  %s21542_s28 = smov 96  }
  0x32   : > { %v565_v6 = vsel %vm462_vm0, %v563_v3, %v564_v4  ;;  %v567_v7 = vsel %vm462_vm0, %v564_v4, %v566_v5  ;;  %15251 = vmatprep.mubr.msk.f32.mxu0 %vm449_vm1, %v445_v9  ;;  %v448_v12 = vld [vmem:[%s431_s16 + $0x18] sm:$0xff]  ;;  %v674_v20 = vld [vmem:[%s21606_s3] sm:$0xff]  ;;  %v675_v21 = vld [vmem:[%s21606_s3 + $0x8] sm:$0xff]  ;;  %s21524_s16 = smov 124   ;;  %s21609_s5 = sld [smem:[#allocation22_spill]] }
  0x33   : > { %v16590_v8 = vpack.c.bf16 %v567_v7, %v565_v6  ;;  %15252 = vmatmul.mubr.msk.f32.vlgmr.msra.gmra.mrb[0].mxu0 %vm449_vm1, %v446_v10  ;;  %v569_v17 = vsel %vm462_vm0, %v566_v5, %v568_v15  ;;  %v571_v18 = vsel %vm462_vm0, %v568_v15, %v570_v16  ;;  %v16598_v22 = vpack.c.bf16 %v675_v21, %v674_v20  ;;  %v676_v31 = vld [vmem:[%s21606_s3 + $0x10] sm:$0xff]  ;;  %v677_v32 = vld [vmem:[%s21606_s3 + $0x18] sm:$0xff]  ;;  %v679_v46 = vld [vmem:[%s21606_s3 + $0x28] sm:$0xff]  ;;  %s21611_s4 = sld [smem:[#allocation21_spill]]  ;;  %s21616_s0 = smov 60  }
  0x34   : > { %15254 = vmatprep.mubr.msk.f32.mxu0 %vm449_vm1, %v447_v11  ;;  %v16594_v19 = vpack.c.bf16 %v571_v18, %v569_v17  ;;  %v16602_v33 = vpack.c.bf16 %v677_v32, %v676_v31  ;;  %v678_v47 = vld [vmem:[%s21606_s3 + $0x20] sm:$0xff]  ;;  %v681_v52 = vld [vmem:[%s21606_s3 + $0x38] sm:$0xff]  ;;  %v680_v53 = vld [vmem:[%s21606_s3 + $0x30] sm:$0xff]  ;;  %s21619_s2 = smov 56   ;;  %s21620_s30 = smov 84  }
  0x35   : > { %16591 = vmatprep.subr.bf16.mxu1 %v16590_v8  ;;  %16599 = vmatprep.subr.bf16.mxu0 %v16598_v22  ;;  %s21626_s23 = smov 76   ;;  %s21627_s27 = smov 108  }
  0x36   : > { %16593 = vmatpush3.bf16.msra.mxu1 %v16590_v8  ;;  %16601 = vmatpush3.bf16.msra.mxu0 %v16598_v22  ;;  %s21629_s14 = smov 72   ;;  %s21630_s21 = smov 104  }
  0x37   : > { %15255 = vmatmul.mubr.msk.f32.gmra.mrb[2].mxu0 %vm449_vm1, %v448_v12  ;;  %16595 = vmatprep.subr.bf16.mxu1 %v16594_v19  ;;  %s21632_s24 = smov 68   ;;  %s21633_s12 = smov 100  }
  0x38   : > { %16603 = vmatprep.subr.bf16.mxu0 %v16602_v33  ;;  %s21635_s11 = smov 4   ;;  %s21636_s13 = smov 8  }
  0x39   : > { %s21637_s25 = smov 12   ;;  %s21638_s10 = smov 16  }
  0x3a   : > { %16597 = vmatpush3.bf16.msra.mxu1 %v16594_v19  ;;  %16605 = vmatpush3.bf16.msra.mxu0 %v16602_v33  ;;  %s21639_s9 = smov 20   ;;  %s21640_s7 = smov 28  }
  0x3b   : > { %s21641_s6 = sld [smem:[#allocation23_spill]]  ;;  %s21642_s1 = sld [smem:[#allocation18_spill]] }
  0x3c   : > { %s21647_s8 = smov 16   ;;  %s21651_s22 = smov 28  }
 0x106   : > { %v15253_v23 = vpop.f32.mrb[0].mxu0 }
 0x107   : > { %v532_v24 = vpop.f32.mrb[1].mxu0  ;;  %v552_v26 = vmax.f32 %v15253_v23, 0.0 }
 0x108   : > { %v551_v25 = vmax.f32 %v532_v24, 0.0 }
 0x10a   : > { %v15256_v27 = vpop.f32.mrb[2].mxu0  ;;  %15265 = vmatprep.mubr.msk.f32.mxu1 %vm576_vm2, %v551_v25 }
 0x10b   : > { %v554_v28 = vmax.f32 %v15256_v27, 0.0  ;;  %v542_v29 = vpop.f32.mrb[3].mxu0  ;;  %15266 = vmatmul.mubr.msk.f32.vlgmr.msra.gmra.mrb[0].mxu1 %vm576_vm2, %v552_v26 }
 0x10c   : > { %v553_v30 = vmax.f32 %v542_v29, 0.0 }
 0x10e   : > { %15268 = vmatprep.mubr.msk.f32.mxu1 %vm576_vm2, %v553_v30 }
 0x10f   : > { %15269 = vmatmul.mubr.msk.f32.gmra.mrb[2].mxu1 %vm576_vm2, %v554_v28 }
 0x1de   : > { %v15267_v38 = vpop.f32.mrb[0].mxu1 }
 0x1df   : > { %v18765_v39 = vadd.f32 %v15267_v38, %v558_v37  ;;  %v655_v40 = vpop.f32.mrb[1].mxu1 }
 0x1e0   : > { %v18767_v41 = vadd.f32 %v655_v40, %v558_v37 }
 0x1e2   : > { %v15270_v42 = vpop.f32.mrb[2].mxu1  ;;  %15279 = vmatprep.mubr.msk.f32.mxu0 %vm576_vm2, %v18767_v41 }
 0x1e3   : > { %v18771_v43 = vadd.f32 %v15270_v42, %v558_v37  ;;  %v665_v44 = vpop.f32.mrb[3].mxu1  ;;  %15280 = vmatmul.mubr.msk.f32.vlgmr.msra.gmra.mrb[4].mxu0 %vm576_vm2, %v18765_v39 }
 0x1e4   : > { %v18775_v45 = vadd.f32 %v665_v44, %v558_v37 }
 0x1e6   : > { %15282 = vmatprep.mubr.msk.f32.mxu0 %vm576_vm2, %v18775_v45 }
 0x1e7   : > { %15283 = vmatmul.mubr.msk.f32.gmra.mrb[6].mxu0 %vm576_vm2, %v18771_v43 }
 0x2b6   : > { %v15281_v48 = vpop.f32.mrb[4].mxu0 }
 0x2b7   : > { %v18787_v49 = vadd.f32 %v15281_v48, %v679_v46  ;;  %v778_v50 = vpop.f32.mrb[5].mxu0 }
 0x2b8   : > { %v18789_v51 = vadd.f32 %v778_v50, %v678_v47 }
 0x2ba   : > { %v15284_v54 = vpop.f32.mrb[6].mxu0  ;;  %15293 = vmatprep.mubr.msk.f32.mxu1 %vm449_vm1, %v18789_v51  ;;  %v18801_v55 = vpack.i.bf16 %v18787_v49, %v18789_v51 }
 0x2bb   : > { %v18803_v56 = vadd.f32 %v15284_v54, %v681_v52  ;;  %v788_v57 = vpop.f32.mrb[7].mxu0 }
 0x2bc   : > { %v18805_v58 = vadd.f32 %v788_v57, %v680_v53  ;;  %17426 = vrot.lane.b32.xlu0 %v18801_v55, %s21542_s28 }
 0x2be   : > { %v18811_v59 = vpack.i.bf16 %v18803_v56, %v18805_v58 }
 0x2c0   : > { %17431 = vrot.lane.b32.xlu0 %v18811_v59, %s21542_s28  ;;  %s21614_s28 = smov 92  }
 0x32e   : > { %v17427_v60 = vpop.permute.xlu0 %17426 }
 0x32f   : > { %v17429_v61 = vunpack.i.h.bf16 %v17427_v60  ;;  %v17428_v62 = vunpack.i.l.bf16 %v17427_v60 }
 0x331   : > { %v16606_v0 = vpack.c.bf16 %v17429_v61, %v17428_v62 }
 0x332   : > { %v17432_v1 = vpop.permute.xlu0 %17431 }
 0x333   : > { %v17434_v2 = vunpack.i.h.bf16 %v17432_v1  ;;  %v17433_v3 = vunpack.i.l.bf16 %v17432_v1  ;;  %16608 = vmatprep.subr.msk.bf16.mxu1 %vm18817_vm3, %v16606_v0 }
 0x334   : > { %16611 = vmatpush3.bf16.xpose.msk.msra.mxu1 %vm18817_vm3, %v16606_v0 }
 0x335   : > { %v16612_v4 = vpack.c.bf16 %v17434_v2, %v17433_v3 }
 0x337   : > { %16614 = vmatprep.subr.msk.bf16.mxu1 %vm18817_vm3, %v16612_v4 }
 0x33c   : > { %16617 = vmatpush3.bf16.xpose.msk.msra.mxu1 %vm18817_vm3, %v16612_v4 }
 0x343   : > { %15294 = vmatmul.mubr.msk.f32.vlgmr.msra.gmra.mrb[4].mxu1 %vm449_vm1, %v18787_v49 }
 0x344   : > { %15296 = vmatprep.mubr.msk.f32.mxu1 %vm449_vm1, %v18805_v58 }
 0x347   : > { %15297 = vmatmul.mubr.msk.f32.gmra.mrb[6].mxu1 %vm449_vm1, %v18803_v56 }
 0x416   : > { %v15295_v5 = vpop.f32.mrb[4].mxu1 }
 0x417   : > { %v891_v6 = vpop.f32.mrb[5].mxu1  ;;  %v913_v10 = vsel %vm576_vm2, %v15295_v5, -inf }
 0x418   : > { %v910_v7 = vsel %vm576_vm2, %v891_v6, -inf }
 0x419   : > { %911 = vmax.xlane.f32.xlu1 %v910_v7 }
 0x41a   : > { %v15298_v8 = vpop.f32.mrb[6].mxu1 }
 0x41b   : > { %v901_v9 = vpop.f32.mrb[7].mxu1  ;;  %v919_v12 = vsel %vm576_vm2, %v15298_v8, -inf }
 0x41c   : > { %v916_v11 = vsel %vm576_vm2, %v901_v9, -inf }
 0x41d   : > { %914 = vmax.xlane.f32.xlu1 %v913_v10  ;;  %917 = vmax.xlane.f32.xlu0 %v916_v11 }
 0x421   : > { %920 = vmax.xlane.f32.xlu1 %v919_v12 }
 0x432   : > { %17436 = vrot.lane.b32.xlu1 %v18801_v55, %s21540_s29 }
 0x433   : > { %17441 = vrot.lane.b32.xlu0 %v18811_v59, %s21540_s29  ;;  %s21610_s29 = smov 24  }
 0x436   : > { %17446 = vrot.lane.b32.xlu1 %v18801_v55, %s21528_s15 }
 0x437   : > { %1067 = vrot.lane.b32.xlu0 %v18805_v58, %s21524_s16 }
 0x43a   : > { %17451 = vrot.lane.b32.xlu1 %v18811_v59, %s21528_s15  ;;  %s21544_s15 = smov 24  }
 0x43e   : > { %1063 = vrot.lane.b32.xlu1 %v18789_v51, %s21524_s16 }
 0x4a6   : > { %v912_v13 = vpop.xlane.xlu1 %911 }
 0x4a7   : > { %v922_v14 = vsub.f32 %v891_v6, %v912_v13 }
 0x4a9   : > { %v926_v18 = vmul.f32 1.442695, %v922_v14 }
 0x4aa   : > { %v915_v15 = vpop.xlane.xlu1 %914  ;;  %v918_v16 = vpop.xlane.xlu0 %917 }
 0x4ab   : > { %v923_v17 = vsub.f32 %v15295_v5, %v915_v15  ;;  %v924_v23 = vsub.f32 %v901_v9, %v918_v16 }
 0x4ad   : > { %v928_v19 = vmul.f32 1.442695, %v923_v17  ;;  %v930_v30 = vmul.f32 1.442695, %v924_v23 }
 0x4ae   : > { %v921_v20 = vpop.xlane.xlu1 %920  ;;  %v17442_v22 = vpop.permute.xlu0 %17441 }
 0x4af   : > { %18065 = vpow2.f32 %v928_v19  ;;  %v925_v21 = vsub.f32 %v15298_v8, %v921_v20  ;;  %v17444_v26 = vunpack.i.h.bf16 %v17442_v22  ;;  %v17443_v27 = vunpack.i.l.bf16 %v17442_v22 }
 0x4b0   : > { %18067 = vpow2.f32 %v926_v18 }
 0x4b1   : > { %v932_v24 = vmul.f32 1.442695, %v925_v21  ;;  %v16622_v37 = vpack.c.bf16 %v17444_v26, %v17443_v27 }
 0x4b2   : > { %v17437_v25 = vpop.permute.xlu1 %17436  ;;  %v1068_v12 = vpop.permute.xlu0 %1067 }
 0x4b3   : > { %v17439_v28 = vunpack.i.h.bf16 %v17437_v25  ;;  %v17438_v29 = vunpack.i.l.bf16 %v17437_v25  ;;  %18069 = vpow2.f32 %v932_v24 }
 0x4b4   : > { %18071 = vpow2.f32 %v930_v30 }
 0x4b5   : > { %v16618_v31 = vpack.c.bf16 %v17439_v28, %v17438_v29 }
 0x4b6   : > { %v17447_v32 = vpop.permute.xlu1 %17446 }
 0x4b7   : > { %v17449_v33 = vunpack.i.h.bf16 %v17447_v32  ;;  %v17448_v34 = vunpack.i.l.bf16 %v17447_v32  ;;  %16619 = vmatprep.subr.bf16.mxu0 %v16618_v31 }
 0x4b8   : > { %16621 = vmatpush3.bf16.msra.mxu0 %v16618_v31 }
 0x4b9   : > { %v18066_v38 = vpop.eup %18065  ;;  %16623 = vmatprep.subr.bf16.mxu0 %v16622_v37  ;;  %v16626_v44 = vpack.c.bf16 %v17449_v33, %v17448_v34 }
 0x4ba   : > { %v937_v40 = vsel %vm576_vm2, %v18066_v38, 0.0  ;;  %v18068_v42 = vpop.eup %18067  ;;  %v17452_v53 = vpop.permute.xlu1 %17451 }
 0x4bb   : > { %938 = vadd.xlane.f32.xlu1 %v937_v40  ;;  %v934_v46 = vsel %vm576_vm2, %v18068_v42, 0.0  ;;  %v17454_v2 = vunpack.i.h.bf16 %v17452_v53  ;;  %v17453_v3 = vunpack.i.l.bf16 %v17452_v53 }
 0x4bc   : > { %16625 = vmatpush3.bf16.msra.mxu0 %v16622_v37 }
 0x4bd   : > { %16628 = vmatprep.subr.msk.bf16.mxu0 %vm18817_vm3, %v16626_v44  ;;  %v18070_v47 = vpop.eup %18069  ;;  %v16632_v6 = vpack.c.bf16 %v17454_v2, %v17453_v3 }
 0x4be   : > { %v943_v48 = vsel %vm576_vm2, %v18070_v47, 0.0  ;;  %v18072_v50 = vpop.eup %18071  ;;  %v1064_v54 = vpop.permute.xlu1 %1063 }
 0x4bf   : > { %935 = vadd.xlane.f32.xlu1 %v934_v46  ;;  %v940_v52 = vsel %vm576_vm2, %v18072_v50, 0.0 }
 0x4c3   : > { %944 = vadd.xlane.f32.xlu1 %v943_v48 }
 0x4c7   : > { %941 = vadd.xlane.f32.xlu1 %v940_v52 }
 0x4d8   : > { %1065 = vrot.lane.b32.xlu1 %v18787_v49, %s21524_s16 }
 0x4dc   : > { %1069 = vrot.lane.b32.xlu1 %v18803_v56, %s21524_s16  ;;  %s21532_s16 = smov 16  }
 0x548   : > { %v939_v57 = vpop.xlane.xlu1 %938 }
 0x549   : > { %18073 = vrcp.f32 %v939_v57 }
 0x54c   : > { %v936_v60 = vpop.xlane.xlu1 %935 }
 0x54d   : > { %18075 = vrcp.f32 %v936_v60 }
 0x550   : > { %v945_v61 = vpop.xlane.xlu1 %944 }
 0x551   : > { %18077 = vrcp.f32 %v945_v61 }
 0x553   : > { %v18074_v0 = vpop.eup %18073 }
 0x554   : > { %v942_v62 = vpop.xlane.xlu1 %941  ;;  %v949_v5 = vmul.f32 %v18074_v0, %v18066_v38 }
 0x555   : > { %18079 = vrcp.f32 %v942_v62 }
 0x557   : > { %v18076_v1 = vpop.eup %18075 }
 0x558   : > { %v947_v4 = vmul.f32 %v18076_v1, %v18068_v42  ;;  %v1066_v11 = vpop.permute.xlu1 %1065 }
 0x55a   : > { %15307 = vmatprep.mubr.msk.f32.mxu0 %vm576_vm2, %v947_v4 }
 0x55b   : > { %15308 = vmatmul.mubr.msk.f32.vlgmr.msra.gmra.mrb[8].mxu0 %vm576_vm2, %v949_v5  ;;  %v18078_v7 = vpop.eup %18077 }
 0x55c   : > { %16631 = vmatpush3.bf16.xpose.msk.msra.mxu0 %vm18817_vm3, %v16626_v44  ;;  %v953_v10 = vmul.f32 %v18078_v7, %v18070_v47  ;;  %v1070_v13 = vpop.permute.xlu1 %1069 }
 0x55d   : > { %16634 = vmatprep.subr.msk.bf16.mxu0 %vm18817_vm3, %v16632_v6 }
 0x55f   : > { %v18080_v8 = vpop.eup %18079 }
 0x560   : > { %v951_v9 = vmul.f32 %v18080_v8, %v18072_v50 }
 0x562   : > { %15310 = vmatprep.mubr.msk.f32.mxu0 %vm576_vm2, %v951_v9 }
 0x563   : > { %15311 = vmatmul.mubr.msk.f32.gmra.mrb[10].mxu0 %vm576_vm2, %v953_v10 }
 0x564   : > { %16637 = vmatpush3.bf16.xpose.msk.msra.mxu0 %vm18817_vm3, %v16632_v6  ;;  %15321 = vmatprep.mubr.msk.f32.mxu0 %vm449_vm1, %v1064_v54 }
 0x56b   : > { %15322 = vmatmul.mubr.msk.f32.vlgmr.msra.gmra.mrb[12].mxu0 %vm449_vm1, %v1066_v11 }
 0x56c   : > { %15324 = vmatprep.mubr.msk.f32.mxu0 %vm449_vm1, %v1068_v12 }
 0x56f   : > { %15325 = vmatmul.mubr.msk.f32.gmra.mrb[14].mxu0 %vm449_vm1, %v1070_v13 }
 0x62e   : > { %v18875_v14 = vpop.f32.mrb[8].mxu0 }
 0x62f   : > { %v18877_v15 = vpop.f32.mrb[9].mxu0 }
 0x636   : > { %v18879_v16 = vpop.f32.mrb[10].mxu0 }
 0x637   : > { %v18881_v17 = vpop.f32.mrb[11].mxu0 }
 0x63e   : > { %v15323_v18 = vpop.f32.mrb[12].mxu0 }
 0x63f   : > { %v1161_v19 = vpop.f32.mrb[13].mxu0  ;;  %v1183_v20 = vsel %vm576_vm2, %v15323_v18, -inf }
 0x640   : > { %1184 = vmax.xlane.f32.xlu1 %v1183_v20  ;;  %v1180_v21 = vsel %vm576_vm2, %v1161_v19, -inf }
 0x641   : > { %1181 = vmax.xlane.f32.xlu0 %v1180_v21 }
 0x642   : > { %v15326_v22 = vpop.f32.mrb[14].mxu0 }
 0x643   : > { %v1171_v23 = vpop.f32.mrb[15].mxu0  ;;  %v1189_v25 = vsel %vm576_vm2, %v15326_v22, -inf }
 0x644   : > { %v1186_v24 = vsel %vm576_vm2, %v1171_v23, -inf }
 0x645   : > { %1187 = vmax.xlane.f32.xlu0 %v1186_v24 }
 0x649   : > { %1190 = vmax.xlane.f32.xlu0 %v1189_v25 }
 0x651   : > { %17456 = vrot.lane.b32.xlu1 %v18801_v55, %s21522_s17 }
 0x655   : > { %17466 = vrot.lane.b32.xlu1 %v18801_v55, %s21520_s18 }
 0x6cd   : > { %v1185_v26 = vpop.xlane.xlu1 %1184 }
 0x6ce   : > { %v1193_v27 = vsub.f32 %v15323_v18, %v1185_v26  ;;  %v1182_v28 = vpop.xlane.xlu0 %1181 }
 0x6cf   : > { %v1192_v29 = vsub.f32 %v1161_v19, %v1182_v28 }
 0x6d0   : > { %v1198_v30 = vmul.f32 1.442695, %v1193_v27 }
 0x6d1   : > { %v1196_v31 = vmul.f32 1.442695, %v1192_v29  ;;  %v17457_v32 = vpop.permute.xlu1 %17456 }
 0x6d2   : > { %18081 = vpow2.f32 %v1198_v30  ;;  %v17459_v33 = vunpack.i.h.bf16 %v17457_v32  ;;  %v17458_v34 = vunpack.i.l.bf16 %v17457_v32  ;;  %v1188_v46 = vpop.xlane.xlu0 %1187 }
 0x6d3   : > { %18083 = vpow2.f32 %v1196_v31  ;;  %v1194_v50 = vsub.f32 %v1171_v23, %v1188_v46 }
 0x6d4   : > { %v16638_v37 = vpack.c.bf16 %v17459_v33, %v17458_v34 }
 0x6d5   : > { %v1200_v53 = vmul.f32 1.442695, %v1194_v50  ;;  %v17467_v62 = vpop.permute.xlu1 %17466 }
 0x6d6   : > { %16639 = vmatprep.subr.bf16.mxu1 %v16638_v37  ;;  %v1191_v47 = vpop.xlane.xlu0 %1190  ;;  %v17469_v3 = vunpack.i.h.bf16 %v17467_v62  ;;  %v17468_v4 = vunpack.i.l.bf16 %v17467_v62 }
 0x6d7   : > { %16641 = vmatpush3.bf16.msra.mxu1 %v16638_v37  ;;  %v1195_v48 = vsub.f32 %v15326_v22, %v1191_v47 }
 0x6d8   : > { %v16646_v8 = vpack.c.bf16 %v17469_v3, %v17468_v4 }
 0x6d9   : > { %v1202_v52 = vmul.f32 1.442695, %v1195_v48 }
 0x6db   : > { %18085 = vpow2.f32 %v1202_v52 }
 0x6dc   : > { %v18082_v38 = vpop.eup %18081  ;;  %18087 = vpow2.f32 %v1200_v53 }
 0x6dd   : > { %v18084_v40 = vpop.eup %18083  ;;  %v1207_v42 = vsel %vm576_vm2, %v18082_v38, 0.0 }
 0x6de   : > { %1208 = vadd.xlane.f32.xlu0 %v1207_v42  ;;  %v1204_v44 = vsel %vm576_vm2, %v18084_v40, 0.0 }
 0x6df   : > { %1205 = vadd.xlane.f32.xlu1 %v1204_v44 }
 0x6e5   : > { %v18086_v54 = vpop.eup %18085 }
 0x6e6   : > { %v18088_v57 = vpop.eup %18087  ;;  %v1213_v60 = vsel %vm576_vm2, %v18086_v54, 0.0 }
 0x6e7   : > { %v1210_v61 = vsel %vm576_vm2, %v18088_v57, 0.0 }
 0x6f0   : > { %17471 = vrot.lane.b32.xlu1 %v18811_v59, %s21520_s18  ;;  %s21536_s18 = smov 8  }
 0x6f4   : > { %17461 = vrot.lane.b32.xlu0 %v18811_v59, %s21522_s17  ;;  %s21534_s17 = smov 12  }
 0x713   : > { %1214 = vadd.xlane.f32.xlu0 %v1213_v60 }
 0x714   : > { %1211 = vadd.xlane.f32.xlu1 %v1210_v61 }
 0x725   : > { %1335 = vrot.lane.b32.xlu1 %v18787_v49, %s21488_s19 }
 0x729   : > { %1339 = vrot.lane.b32.xlu1 %v18803_v56, %s21488_s19  ;;  %1333 = vrot.lane.b32.xlu0 %v18789_v51, %s21488_s19 }
 0x72d   : > { %1337 = vrot.lane.b32.xlu0 %v18805_v58, %s21488_s19  ;;  %s21490_s19 = smov 84  }
 0x76b   : > { %v1209_v0 = vpop.xlane.xlu0 %1208 }
 0x76c   : > { %18089 = vrcp.f32 %v1209_v0  ;;  %v1206_v1 = vpop.xlane.xlu1 %1205 }
 0x76d   : > { %18091 = vrcp.f32 %v1206_v1 }
 0x76f   : > { %v17462_v2 = vpop.permute.xlu0 %17461 }
 0x770   : > { %v17464_v5 = vunpack.i.h.bf16 %v17462_v2  ;;  %v17463_v6 = vunpack.i.l.bf16 %v17462_v2  ;;  %v17472_v10 = vpop.permute.xlu1 %17471 }
 0x771   : > { %v17474_v18 = vunpack.i.h.bf16 %v17472_v10  ;;  %v17473_v19 = vunpack.i.l.bf16 %v17472_v10 }
 0x772   : > { %v16642_v7 = vpack.c.bf16 %v17464_v5, %v17463_v6 }
 0x773   : > { %v16652_v20 = vpack.c.bf16 %v17474_v18, %v17473_v19 }
 0x774   : > { %16643 = vmatprep.subr.bf16.mxu1 %v16642_v7 }
 0x775   : > { %16645 = vmatpush3.bf16.msra.mxu1 %v16642_v7 }
 0x776   : > { %v18090_v9 = vpop.eup %18089  ;;  %16648 = vmatprep.subr.msk.bf16.mxu1 %vm18817_vm3, %v16646_v8 }
 0x777   : > { %v18092_v11 = vpop.eup %18091  ;;  %v1219_v13 = vmul.f32 %v18090_v9, %v18082_v38 }
 0x778   : > { %v1217_v12 = vmul.f32 %v18092_v11, %v18084_v40 }
 0x77a   : > { %15335 = vmatprep.mubr.msk.f32.mxu1 %vm576_vm2, %v1217_v12 }
 0x77b   : > { %15336 = vmatmul.mubr.msk.f32.vlgmr.msra.gmra.mrb[8].mxu1 %vm576_vm2, %v1219_v13 }
 0x77e   : > { %16651 = vmatpush3.bf16.xpose.msk.msra.mxu1 %vm18817_vm3, %v16646_v8 }
 0x77f   : > { %16654 = vmatprep.subr.msk.bf16.mxu1 %vm18817_vm3, %v16652_v20 }
 0x786   : > { %16657 = vmatpush3.bf16.xpose.msk.msra.mxu1 %vm18817_vm3, %v16652_v20 }
 0x7a0   : > { %v1215_v21 = vpop.xlane.xlu0 %1214 }
 0x7a1   : > { %18093 = vrcp.f32 %v1215_v21  ;;  %v1212_v22 = vpop.xlane.xlu1 %1211 }
 0x7a2   : > { %18095 = vrcp.f32 %v1212_v22 }
 0x7a4   : > { %v1334_v26 = vpop.permute.xlu0 %1333 }
 0x7a5   : > { %v1336_v28 = vpop.permute.xlu1 %1335 }
 0x7a8   : > { %v1338_v29 = vpop.permute.xlu0 %1337 }
 0x7a9   : > { %v1340_v30 = vpop.permute.xlu1 %1339 }
 0x7ab   : > { %v18094_v23 = vpop.eup %18093 }
 0x7ac   : > { %v18096_v24 = vpop.eup %18095  ;;  %v1223_v27 = vmul.f32 %v18094_v23, %v18086_v54 }
 0x7ad   : > { %v1221_v25 = vmul.f32 %v18096_v24, %v18088_v57 }
 0x7af   : > { %15338 = vmatprep.mubr.msk.f32.mxu1 %vm576_vm2, %v1221_v25 }
 0x7b0   : > { %15339 = vmatmul.mubr.msk.f32.gmra.mrb[10].mxu1 %vm576_vm2, %v1223_v27 }
 0x7b1   : > { %15349 = vmatprep.mubr.msk.f32.mxu1 %vm449_vm1, %v1334_v26 }
 0x7b4   : > { %15350 = vmatmul.mubr.msk.f32.vlgmr.msra.gmra.mrb[12].mxu1 %vm449_vm1, %v1336_v28 }
 0x7b5   : > { %15352 = vmatprep.mubr.msk.f32.mxu1 %vm449_vm1, %v1338_v29 }
 0x7b8   : > { %15353 = vmatmul.mubr.msk.f32.gmra.mrb[14].mxu1 %vm449_vm1, %v1340_v30 }
 0x84e   : > { %v18923_v31 = vpop.f32.mrb[8].mxu1 }
 0x84f   : > { %v18925_v32 = vpop.f32.mrb[9].mxu1 }
 0x883   : > { %v18927_v33 = vpop.f32.mrb[10].mxu1 }
 0x884   : > { %v18929_v34 = vpop.f32.mrb[11].mxu1 }
 0x887   : > { %v15351_v37 = vpop.f32.mrb[12].mxu1 }
 0x888   : > { %v1431_v38 = vpop.f32.mrb[13].mxu1  ;;  %v1453_v40 = vsel %vm576_vm2, %v15351_v37, -inf }
 0x889   : > { %1454 = vmax.xlane.f32.xlu1 %v1453_v40  ;;  %v1450_v42 = vsel %vm576_vm2, %v1431_v38, -inf }
 0x88a   : > { %1451 = vmax.xlane.f32.xlu0 %v1450_v42 }
 0x88b   : > { %v15354_v44 = vpop.f32.mrb[14].mxu1 }
 0x88c   : > { %v1441_v46 = vpop.f32.mrb[15].mxu1  ;;  %v1459_v48 = vsel %vm576_vm2, %v15354_v44, -inf }
 0x88d   : > { %v1456_v47 = vsel %vm576_vm2, %v1441_v46, -inf }
 0x88e   : > { %1457 = vmax.xlane.f32.xlu0 %v1456_v47 }
 0x892   : > { %1460 = vmax.xlane.f32.xlu0 %v1459_v48 }
 0x89a   : > { %17476 = vrot.lane.b32.xlu1 %v18801_v55, %s21494_s20 }
 0x89e   : > { %17486 = vrot.lane.b32.xlu1 %v18801_v55, %s21490_s19 }
 0x916   : > { %v1455_v50 = vpop.xlane.xlu1 %1454 }
 0x917   : > { %v1463_v52 = vsub.f32 %v15351_v37, %v1455_v50  ;;  %v1452_v53 = vpop.xlane.xlu0 %1451 }
 0x918   : > { %v1462_v54 = vsub.f32 %v1431_v38, %v1452_v53 }
 0x919   : > { %v1468_v57 = vmul.f32 1.442695, %v1463_v52 }
 0x91a   : > { %v1466_v60 = vmul.f32 1.442695, %v1462_v54  ;;  %v17477_v61 = vpop.permute.xlu1 %17476 }
 0x91b   : > { %18097 = vpow2.f32 %v1468_v57  ;;  %v17479_v62 = vunpack.i.h.bf16 %v17477_v61  ;;  %v17478_v0 = vunpack.i.l.bf16 %v17477_v61  ;;  %v1458_v6 = vpop.xlane.xlu0 %1457 }
 0x91c   : > { %18099 = vpow2.f32 %v1466_v60  ;;  %v1464_v9 = vsub.f32 %v1441_v46, %v1458_v6 }
 0x91d   : > { %v16658_v1 = vpack.c.bf16 %v17479_v62, %v17478_v0 }
 0x91e   : > { %v1470_v11 = vmul.f32 1.442695, %v1464_v9  ;;  %v17487_v20 = vpop.permute.xlu1 %17486 }
 0x91f   : > { %16659 = vmatprep.subr.bf16.mxu0 %v16658_v1  ;;  %v1461_v7 = vpop.xlane.xlu0 %1460  ;;  %v17489_v24 = vunpack.i.h.bf16 %v17487_v20  ;;  %v17488_v25 = vunpack.i.l.bf16 %v17487_v20 }
 0x920   : > { %16661 = vmatpush3.bf16.msra.mxu0 %v16658_v1  ;;  %v1465_v8 = vsub.f32 %v15354_v44, %v1461_v7 }
 0x921   : > { %v16666_v29 = vpack.c.bf16 %v17489_v24, %v17488_v25 }
 0x922   : > { %v1472_v10 = vmul.f32 1.442695, %v1465_v8 }
 0x924   : > { %18101 = vpow2.f32 %v1472_v10 }
 0x925   : > { %v18098_v2 = vpop.eup %18097  ;;  %18103 = vpow2.f32 %v1470_v11 }
 0x926   : > { %v18100_v3 = vpop.eup %18099  ;;  %v1477_v4 = vsel %vm576_vm2, %v18098_v2, 0.0 }
 0x927   : > { %1478 = vadd.xlane.f32.xlu0 %v1477_v4  ;;  %v1474_v5 = vsel %vm576_vm2, %v18100_v3, 0.0 }
 0x928   : > { %1475 = vadd.xlane.f32.xlu1 %v1474_v5 }
 0x92e   : > { %v18102_v12 = vpop.eup %18101 }
 0x92f   : > { %v18104_v13 = vpop.eup %18103  ;;  %v1483_v18 = vsel %vm576_vm2, %v18102_v12, 0.0 }
 0x930   : > { %v1480_v19 = vsel %vm576_vm2, %v18104_v13, 0.0 }
 0x939   : > { %17491 = vrot.lane.b32.xlu1 %v18811_v59, %s21490_s19  ;;  %s21492_s19 = smov 116  }
 0x93d   : > { %17481 = vrot.lane.b32.xlu0 %v18811_v59, %s21494_s20  ;;  %s21496_s20 = smov 80  }
 0x95c   : > { %1484 = vadd.xlane.f32.xlu0 %v1483_v18 }
 0x95d   : > { %1481 = vadd.xlane.f32.xlu1 %v1480_v19 }
 0x96e   : > { %1605 = vrot.lane.b32.xlu1 %v18787_v49, %s21492_s19 }
 0x972   : > { %1609 = vrot.lane.b32.xlu1 %v18803_v56, %s21492_s19  ;;  %1603 = vrot.lane.b32.xlu0 %v18789_v51, %s21492_s19 }
 0x976   : > { %1607 = vrot.lane.b32.xlu0 %v18805_v58, %s21492_s19  ;;  %s21500_s19 = smov 52  }
 0x9b4   : > { %v1479_v21 = vpop.xlane.xlu0 %1478 }
 0x9b5   : > { %18105 = vrcp.f32 %v1479_v21  ;;  %v1476_v22 = vpop.xlane.xlu1 %1475 }
 0x9b6   : > { %18107 = vrcp.f32 %v1476_v22 }
 0x9b8   : > { %v17482_v23 = vpop.permute.xlu0 %17481 }
 0x9b9   : > { %v17484_v26 = vunpack.i.h.bf16 %v17482_v23  ;;  %v17483_v27 = vunpack.i.l.bf16 %v17482_v23  ;;  %v17492_v37 = vpop.permute.xlu1 %17491 }
 0x9ba   : > { %v17494_v44 = vunpack.i.h.bf16 %v17492_v37  ;;  %v17493_v46 = vunpack.i.l.bf16 %v17492_v37 }
 0x9bb   : > { %v16662_v28 = vpack.c.bf16 %v17484_v26, %v17483_v27 }
 0x9bc   : > { %v16672_v47 = vpack.c.bf16 %v17494_v44, %v17493_v46 }
 0x9bd   : > { %16663 = vmatprep.subr.bf16.mxu0 %v16662_v28 }
 0x9be   : > { %16665 = vmatpush3.bf16.msra.mxu0 %v16662_v28 }
 0x9bf   : > { %v18106_v30 = vpop.eup %18105  ;;  %16668 = vmatprep.subr.msk.bf16.mxu0 %vm18817_vm3, %v16666_v29 }
 0x9c0   : > { %v18108_v38 = vpop.eup %18107  ;;  %v1489_v42 = vmul.f32 %v18106_v30, %v18098_v2 }
 0x9c1   : > { %v1487_v40 = vmul.f32 %v18108_v38, %v18100_v3 }
 0x9c3   : > { %15363 = vmatprep.mubr.msk.f32.mxu0 %vm576_vm2, %v1487_v40 }
 0x9c4   : > { %15364 = vmatmul.mubr.msk.f32.vlgmr.msra.gmra.mrb[16].mxu0 %vm576_vm2, %v1489_v42 }
 0x9c7   : > { %16671 = vmatpush3.bf16.xpose.msk.msra.mxu0 %vm18817_vm3, %v16666_v29 }
 0x9c8   : > { %16674 = vmatprep.subr.msk.bf16.mxu0 %vm18817_vm3, %v16672_v47 }
 0x9cf   : > { %16677 = vmatpush3.bf16.xpose.msk.msra.mxu0 %vm18817_vm3, %v16672_v47 }
 0x9e9   : > { %v1485_v48 = vpop.xlane.xlu0 %1484 }
 0x9ea   : > { %18109 = vrcp.f32 %v1485_v48  ;;  %v1482_v50 = vpop.xlane.xlu1 %1481 }
 0x9eb   : > { %18111 = vrcp.f32 %v1482_v50 }
 0x9ed   : > { %v1604_v57 = vpop.permute.xlu0 %1603 }
 0x9ee   : > { %v1606_v61 = vpop.permute.xlu1 %1605 }
 0x9f1   : > { %v1608_v62 = vpop.permute.xlu0 %1607 }
 0x9f2   : > { %v1610_v0 = vpop.permute.xlu1 %1609 }
 0x9f4   : > { %v18110_v52 = vpop.eup %18109 }
 0x9f5   : > { %v18112_v53 = vpop.eup %18111  ;;  %v1493_v60 = vmul.f32 %v18110_v52, %v18102_v12 }
 0x9f6   : > { %v1491_v54 = vmul.f32 %v18112_v53, %v18104_v13 }
 0x9f8   : > { %15366 = vmatprep.mubr.msk.f32.mxu0 %vm576_vm2, %v1491_v54 }
 0x9f9   : > { %15367 = vmatmul.mubr.msk.f32.gmra.mrb[18].mxu0 %vm576_vm2, %v1493_v60 }
 0x9fa   : > { %15377 = vmatprep.mubr.msk.f32.mxu0 %vm449_vm1, %v1604_v57 }
 0x9fd   : > { %15378 = vmatmul.mubr.msk.f32.vlgmr.msra.gmra.mrb[20].mxu0 %vm449_vm1, %v1606_v61 }
 0x9fe   : > { %15380 = vmatprep.mubr.msk.f32.mxu0 %vm449_vm1, %v1608_v62 }
 0xa01   : > { %15381 = vmatmul.mubr.msk.f32.gmra.mrb[22].mxu0 %vm449_vm1, %v1610_v0 }
 0xa97   : > { %v18971_v1 = vpop.f32.mrb[16].mxu0 }
 0xa98   : > { %v18973_v2 = vpop.f32.mrb[17].mxu0 }
 0xacc   : > { %v18975_v3 = vpop.f32.mrb[18].mxu0 }
 0xacd   : > { %v18977_v4 = vpop.f32.mrb[19].mxu0 }
 0xad0   : > { %v15379_v5 = vpop.f32.mrb[20].mxu0 }
 0xad1   : > { %v1701_v6 = vpop.f32.mrb[21].mxu0  ;;  %v1723_v7 = vsel %vm576_vm2, %v15379_v5, -inf }
 0xad2   : > { %1724 = vmax.xlane.f32.xlu1 %v1723_v7  ;;  %v1720_v8 = vsel %vm576_vm2, %v1701_v6, -inf }
 0xad3   : > { %1721 = vmax.xlane.f32.xlu0 %v1720_v8 }
 0xad4   : > { %v15382_v9 = vpop.f32.mrb[22].mxu0 }
 0xad5   : > { %v1711_v10 = vpop.f32.mrb[23].mxu0  ;;  %v1729_v12 = vsel %vm576_vm2, %v15382_v9, -inf }
 0xad6   : > { %v1726_v11 = vsel %vm576_vm2, %v1711_v10, -inf }
 0xad7   : > { %1727 = vmax.xlane.f32.xlu0 %v1726_v11 }
 0xadb   : > { %1730 = vmax.xlane.f32.xlu0 %v1729_v12 }
 0xae3   : > { %17496 = vrot.lane.b32.xlu1 %v18801_v55, %s21500_s19 }
 0xae7   : > { %17506 = vrot.lane.b32.xlu1 %v18801_v55, %s21496_s20 }
 0xb5f   : > { %v1725_v13 = vpop.xlane.xlu1 %1724 }
 0xb60   : > { %v1733_v18 = vsub.f32 %v15379_v5, %v1725_v13  ;;  %v1722_v19 = vpop.xlane.xlu0 %1721 }
 0xb61   : > { %v1732_v20 = vsub.f32 %v1701_v6, %v1722_v19 }
 0xb62   : > { %v1738_v21 = vmul.f32 1.442695, %v1733_v18 }
 0xb63   : > { %v1736_v22 = vmul.f32 1.442695, %v1732_v20  ;;  %v17497_v23 = vpop.permute.xlu1 %17496 }
 0xb64   : > { %18113 = vpow2.f32 %v1738_v21  ;;  %v17499_v24 = vunpack.i.h.bf16 %v17497_v23  ;;  %v17498_v25 = vunpack.i.l.bf16 %v17497_v23  ;;  %v1728_v37 = vpop.xlane.xlu0 %1727 }
 0xb65   : > { %18115 = vpow2.f32 %v1736_v22  ;;  %v1734_v42 = vsub.f32 %v1711_v10, %v1728_v37 }
 0xb66   : > { %v16678_v26 = vpack.c.bf16 %v17499_v24, %v17498_v25 }
 0xb67   : > { %v1740_v46 = vmul.f32 1.442695, %v1734_v42  ;;  %v17507_v53 = vpop.permute.xlu1 %17506 }
 0xb68   : > { %16679 = vmatprep.subr.bf16.mxu1 %v16678_v26  ;;  %v1731_v38 = vpop.xlane.xlu0 %1730  ;;  %v17509_v61 = vunpack.i.h.bf16 %v17507_v53  ;;  %v17508_v62 = vunpack.i.l.bf16 %v17507_v53 }
 0xb69   : > { %16681 = vmatpush3.bf16.msra.mxu1 %v16678_v26  ;;  %v1735_v40 = vsub.f32 %v15382_v9, %v1731_v38 }
 0xb6a   : > { %v16686_v7 = vpack.c.bf16 %v17509_v61, %v17508_v62 }
 0xb6b   : > { %v1742_v44 = vmul.f32 1.442695, %v1735_v40 }
 0xb6d   : > { %18117 = vpow2.f32 %v1742_v44 }
 0xb6e   : > { %v18114_v27 = vpop.eup %18113  ;;  %18119 = vpow2.f32 %v1740_v46 }
 0xb6f   : > { %v18116_v28 = vpop.eup %18115  ;;  %v1747_v29 = vsel %vm576_vm2, %v18114_v27, 0.0 }
 0xb70   : > { %1748 = vadd.xlane.f32.xlu0 %v1747_v29  ;;  %v1744_v30 = vsel %vm576_vm2, %v18116_v28, 0.0 }
 0xb71   : > { %1745 = vadd.xlane.f32.xlu1 %v1744_v30 }
 0xb77   : > { %v18118_v47 = vpop.eup %18117 }
 0xb78   : > { %v18120_v48 = vpop.eup %18119  ;;  %v1753_v50 = vsel %vm576_vm2, %v18118_v47, 0.0 }
 0xb79   : > { %v1750_v52 = vsel %vm576_vm2, %v18120_v48, 0.0 }
 0xb82   : > { %17511 = vrot.lane.b32.xlu1 %v18811_v59, %s21496_s20  ;;  %s21498_s20 = smov 112  }
 0xb86   : > { %17501 = vrot.lane.b32.xlu0 %v18811_v59, %s21500_s19  ;;  %s21502_s19 = smov 76  }
 0xba5   : > { %1754 = vadd.xlane.f32.xlu0 %v1753_v50 }
 0xba6   : > { %1751 = vadd.xlane.f32.xlu1 %v1750_v52 }
 0xbb7   : > { %1875 = vrot.lane.b32.xlu1 %v18787_v49, %s21498_s20 }
 0xbbb   : > { %1879 = vrot.lane.b32.xlu1 %v18803_v56, %s21498_s20  ;;  %1873 = vrot.lane.b32.xlu0 %v18789_v51, %s21498_s20 }
 0xbbf   : > { %1877 = vrot.lane.b32.xlu0 %v18805_v58, %s21498_s20  ;;  %s21506_s20 = smov 48  }
 0xbfd   : > { %v1749_v54 = vpop.xlane.xlu0 %1748 }
 0xbfe   : > { %18121 = vrcp.f32 %v1749_v54  ;;  %v1746_v57 = vpop.xlane.xlu1 %1745 }
 0xbff   : > { %18123 = vrcp.f32 %v1746_v57 }
 0xc01   : > { %v17502_v60 = vpop.permute.xlu0 %17501 }
 0xc02   : > { %v17504_v0 = vunpack.i.h.bf16 %v17502_v60  ;;  %v17503_v5 = vunpack.i.l.bf16 %v17502_v60  ;;  %v17512_v9 = vpop.permute.xlu1 %17511 }
 0xc03   : > { %v17514_v13 = vunpack.i.h.bf16 %v17512_v9  ;;  %v17513_v18 = vunpack.i.l.bf16 %v17512_v9 }
 0xc04   : > { %v16682_v6 = vpack.c.bf16 %v17504_v0, %v17503_v5 }
 0xc05   : > { %v16692_v19 = vpack.c.bf16 %v17514_v13, %v17513_v18 }
 0xc06   : > { %16683 = vmatprep.subr.bf16.mxu1 %v16682_v6 }
 0xc07   : > { %16685 = vmatpush3.bf16.msra.mxu1 %v16682_v6 }
 0xc08   : > { %v18122_v8 = vpop.eup %18121  ;;  %16688 = vmatprep.subr.msk.bf16.mxu1 %vm18817_vm3, %v16686_v7 }
 0xc09   : > { %v18124_v10 = vpop.eup %18123  ;;  %v1759_v12 = vmul.f32 %v18122_v8, %v18114_v27 }
 0xc0a   : > { %v1757_v11 = vmul.f32 %v18124_v10, %v18116_v28 }
 0xc0c   : > { %15391 = vmatprep.mubr.msk.f32.mxu1 %vm576_vm2, %v1757_v11 }
 0xc0d   : > { %15392 = vmatmul.mubr.msk.f32.vlgmr.msra.gmra.mrb[16].mxu1 %vm576_vm2, %v1759_v12 }
 0xc10   : > { %16691 = vmatpush3.bf16.xpose.msk.msra.mxu1 %vm18817_vm3, %v16686_v7 }
 0xc11   : > { %16694 = vmatprep.subr.msk.bf16.mxu1 %vm18817_vm3, %v16692_v19 }
 0xc18   : > { %16697 = vmatpush3.bf16.xpose.msk.msra.mxu1 %vm18817_vm3, %v16692_v19 }
 0xc32   : > { %v1755_v20 = vpop.xlane.xlu0 %1754 }
 0xc33   : > { %18125 = vrcp.f32 %v1755_v20  ;;  %v1752_v21 = vpop.xlane.xlu1 %1751 }
 0xc34   : > { %18127 = vrcp.f32 %v1752_v21 }
 0xc36   : > { %v1874_v25 = vpop.permute.xlu0 %1873 }
 0xc37   : > { %v1876_v27 = vpop.permute.xlu1 %1875 }
 0xc3a   : > { %v1878_v28 = vpop.permute.xlu0 %1877 }
 0xc3b   : > { %v1880_v29 = vpop.permute.xlu1 %1879 }
 0xc3d   : > { %v18126_v22 = vpop.eup %18125 }
 0xc3e   : > { %v18128_v23 = vpop.eup %18127  ;;  %v1763_v26 = vmul.f32 %v18126_v22, %v18118_v47 }
 0xc3f   : > { %v1761_v24 = vmul.f32 %v18128_v23, %v18120_v48 }
 0xc41   : > { %15394 = vmatprep.mubr.msk.f32.mxu1 %vm576_vm2, %v1761_v24 }
 0xc42   : > { %15395 = vmatmul.mubr.msk.f32.gmra.mrb[18].mxu1 %vm576_vm2, %v1763_v26 }
 0xc43   : > { %15405 = vmatprep.mubr.msk.f32.mxu1 %vm449_vm1, %v1874_v25 }
 0xc46   : > { %15406 = vmatmul.mubr.msk.f32.vlgmr.msra.gmra.mrb[20].mxu1 %vm449_vm1, %v1876_v27 }
 0xc47   : > { %15408 = vmatprep.mubr.msk.f32.mxu1 %vm449_vm1, %v1878_v28 }
 0xc4a   : > { %15409 = vmatmul.mubr.msk.f32.gmra.mrb[22].mxu1 %vm449_vm1, %v1880_v29 }
 0xce0   : > { %v19019_v30 = vpop.f32.mrb[16].mxu1 }
 0xce1   : > { %v19021_v37 = vpop.f32.mrb[17].mxu1 }
 0xd15   : > { %v19023_v38 = vpop.f32.mrb[18].mxu1 }
 0xd16   : > { %v19025_v40 = vpop.f32.mrb[19].mxu1 }
 0xd19   : > { %v15407_v42 = vpop.f32.mrb[20].mxu1 }
 0xd1a   : > { %v1971_v44 = vpop.f32.mrb[21].mxu1  ;;  %v1993_v46 = vsel %vm576_vm2, %v15407_v42, -inf }
 0xd1b   : > { %1994 = vmax.xlane.f32.xlu1 %v1993_v46  ;;  %v1990_v47 = vsel %vm576_vm2, %v1971_v44, -inf }
 0xd1c   : > { %1991 = vmax.xlane.f32.xlu0 %v1990_v47 }
 0xd1d   : > { %v15410_v48 = vpop.f32.mrb[22].mxu1 }
 0xd1e   : > { %v1981_v50 = vpop.f32.mrb[23].mxu1  ;;  %v1999_v53 = vsel %vm576_vm2, %v15410_v48, -inf }
 0xd1f   : > { %v1996_v52 = vsel %vm576_vm2, %v1981_v50, -inf }
 0xd20   : > { %1997 = vmax.xlane.f32.xlu0 %v1996_v52 }
 0xd24   : > { %2000 = vmax.xlane.f32.xlu0 %v1999_v53 }
 0xd2c   : > { %17516 = vrot.lane.b32.xlu1 %v18801_v55, %s21506_s20 }
 0xd30   : > { %17526 = vrot.lane.b32.xlu1 %v18801_v55, %s21502_s19 }
 0xda8   : > { %v1995_v54 = vpop.xlane.xlu1 %1994 }
 0xda9   : > { %v2003_v57 = vsub.f32 %v15407_v42, %v1995_v54  ;;  %v1992_v60 = vpop.xlane.xlu0 %1991 }
 0xdaa   : > { %v2002_v61 = vsub.f32 %v1971_v44, %v1992_v60 }
 0xdab   : > { %v2008_v62 = vmul.f32 1.442695, %v2003_v57 }
 0xdac   : > { %v2006_v0 = vmul.f32 1.442695, %v2002_v61  ;;  %v17517_v5 = vpop.permute.xlu1 %17516 }
 0xdad   : > { %18129 = vpow2.f32 %v2008_v62  ;;  %v17519_v6 = vunpack.i.h.bf16 %v17517_v5  ;;  %v17518_v7 = vunpack.i.l.bf16 %v17517_v5  ;;  %v1998_v13 = vpop.xlane.xlu0 %1997 }
 0xdae   : > { %18131 = vpow2.f32 %v2006_v0  ;;  %v2004_v20 = vsub.f32 %v1981_v50, %v1998_v13 }
 0xdaf   : > { %v16698_v8 = vpack.c.bf16 %v17519_v6, %v17518_v7 }
 0xdb0   : > { %v2010_v22 = vmul.f32 1.442695, %v2004_v20  ;;  %v17527_v27 = vpop.permute.xlu1 %17526 }
 0xdb1   : > { %16699 = vmatprep.subr.bf16.mxu0 %v16698_v8  ;;  %v2001_v18 = vpop.xlane.xlu0 %2000  ;;  %v17529_v44 = vunpack.i.h.bf16 %v17527_v27  ;;  %v17528_v46 = vunpack.i.l.bf16 %v17527_v27 }
 0xdb2   : > { %16701 = vmatpush3.bf16.msra.mxu0 %v16698_v8  ;;  %v2005_v19 = vsub.f32 %v15410_v48, %v2001_v18 }
 0xdb3   : > { %v16706_v52 = vpack.c.bf16 %v17529_v44, %v17528_v46 }
 0xdb4   : > { %v2012_v21 = vmul.f32 1.442695, %v2005_v19 }
 0xdb6   : > { %18133 = vpow2.f32 %v2012_v21 }
 0xdb7   : > { %v18130_v9 = vpop.eup %18129  ;;  %18135 = vpow2.f32 %v2010_v22 }
 0xdb8   : > { %v18132_v10 = vpop.eup %18131  ;;  %v2017_v11 = vsel %vm576_vm2, %v18130_v9, 0.0 }
 0xdb9   : > { %2018 = vadd.xlane.f32.xlu0 %v2017_v11  ;;  %v2014_v12 = vsel %vm576_vm2, %v18132_v10, 0.0 }
 0xdba   : > { %2015 = vadd.xlane.f32.xlu1 %v2014_v12 }
 0xdc0   : > { %v18134_v23 = vpop.eup %18133 }
 0xdc1   : > { %v18136_v24 = vpop.eup %18135  ;;  %v2023_v25 = vsel %vm576_vm2, %v18134_v23, 0.0 }
 0xdc2   : > { %v2020_v26 = vsel %vm576_vm2, %v18136_v24, 0.0 }
 0xdcb   : > { %17531 = vrot.lane.b32.xlu1 %v18811_v59, %s21502_s19  ;;  %s21504_s19 = smov 108  }
 0xdcf   : > { %17521 = vrot.lane.b32.xlu0 %v18811_v59, %s21506_s20  ;;  %s21508_s20 = smov 72  }
 0xdee   : > { %2024 = vadd.xlane.f32.xlu0 %v2023_v25 }
 0xdef   : > { %2021 = vadd.xlane.f32.xlu1 %v2020_v26 }
 0xe00   : > { %2145 = vrot.lane.b32.xlu1 %v18787_v49, %s21504_s19 }
 0xe04   : > { %2149 = vrot.lane.b32.xlu1 %v18803_v56, %s21504_s19  ;;  %2143 = vrot.lane.b32.xlu0 %v18789_v51, %s21504_s19 }
 0xe08   : > { %2147 = vrot.lane.b32.xlu0 %v18805_v58, %s21504_s19  ;;  %s21512_s19 = smov 44  }
 0xe46   : > { %v2019_v28 = vpop.xlane.xlu0 %2018 }
 0xe47   : > { %18137 = vrcp.f32 %v2019_v28  ;;  %v2016_v29 = vpop.xlane.xlu1 %2015 }
 0xe48   : > { %18139 = vrcp.f32 %v2016_v29 }
 0xe4a   : > { %v17522_v42 = vpop.permute.xlu0 %17521 }
 0xe4b   : > { %v17524_v47 = vunpack.i.h.bf16 %v17522_v42  ;;  %v17523_v48 = vunpack.i.l.bf16 %v17522_v42  ;;  %v17532_v54 = vpop.permute.xlu1 %17531 }
 0xe4c   : > { %v17534_v62 = vunpack.i.h.bf16 %v17532_v54  ;;  %v17533_v0 = vunpack.i.l.bf16 %v17532_v54 }
 0xe4d   : > { %v16702_v50 = vpack.c.bf16 %v17524_v47, %v17523_v48 }
 0xe4e   : > { %v16712_v5 = vpack.c.bf16 %v17534_v62, %v17533_v0 }
 0xe4f   : > { %16703 = vmatprep.subr.bf16.mxu0 %v16702_v50 }
 0xe50   : > { %16705 = vmatpush3.bf16.msra.mxu0 %v16702_v50 }
 0xe51   : > { %v18138_v53 = vpop.eup %18137  ;;  %16708 = vmatprep.subr.msk.bf16.mxu0 %vm18817_vm3, %v16706_v52 }
 0xe52   : > { %v18140_v57 = vpop.eup %18139  ;;  %v2029_v61 = vmul.f32 %v18138_v53, %v18130_v9 }
 0xe53   : > { %v2027_v60 = vmul.f32 %v18140_v57, %v18132_v10 }
 0xe55   : > { %15419 = vmatprep.mubr.msk.f32.mxu0 %vm576_vm2, %v2027_v60 }
 0xe56   : > { %15420 = vmatmul.mubr.msk.f32.vlgmr.msra.gmra.mrb[24].mxu0 %vm576_vm2, %v2029_v61 }
 0xe59   : > { %16711 = vmatpush3.bf16.xpose.msk.msra.mxu0 %vm18817_vm3, %v16706_v52 }
 0xe5a   : > { %16714 = vmatprep.subr.msk.bf16.mxu0 %vm18817_vm3, %v16712_v5 }
 0xe61   : > { %16717 = vmatpush3.bf16.xpose.msk.msra.mxu0 %vm18817_vm3, %v16712_v5 }
 0xe7b   : > { %v2025_v6 = vpop.xlane.xlu0 %2024 }
 0xe7c   : > { %18141 = vrcp.f32 %v2025_v6  ;;  %v2022_v7 = vpop.xlane.xlu1 %2021 }
 0xe7d   : > { %18143 = vrcp.f32 %v2022_v7 }
 0xe7f   : > { %v2144_v11 = vpop.permute.xlu0 %2143 }
 0xe80   : > { %v2146_v13 = vpop.permute.xlu1 %2145 }
 0xe83   : > { %v2148_v18 = vpop.permute.xlu0 %2147 }
 0xe84   : > { %v2150_v19 = vpop.permute.xlu1 %2149 }
 0xe86   : > { %v18142_v8 = vpop.eup %18141 }
 0xe87   : > { %v18144_v9 = vpop.eup %18143  ;;  %v2033_v12 = vmul.f32 %v18142_v8, %v18134_v23 }
 0xe88   : > { %v2031_v10 = vmul.f32 %v18144_v9, %v18136_v24 }
 0xe8a   : > { %15422 = vmatprep.mubr.msk.f32.mxu0 %vm576_vm2, %v2031_v10 }
 0xe8b   : > { %15423 = vmatmul.mubr.msk.f32.gmra.mrb[26].mxu0 %vm576_vm2, %v2033_v12 }
 0xe8c   : > { %15433 = vmatprep.mubr.msk.f32.mxu0 %vm449_vm1, %v2144_v11 }
 0xe8f   : > { %15434 = vmatmul.mubr.msk.f32.vlgmr.msra.gmra.mrb[28].mxu0 %vm449_vm1, %v2146_v13 }
 0xe90   : > { %15436 = vmatprep.mubr.msk.f32.mxu0 %vm449_vm1, %v2148_v18 }
 0xe93   : > { %15437 = vmatmul.mubr.msk.f32.gmra.mrb[30].mxu0 %vm449_vm1, %v2150_v19 }
 0xf29   : > { %v19067_v20 = vpop.f32.mrb[24].mxu0 }
 0xf2a   : > { %v19069_v21 = vpop.f32.mrb[25].mxu0 }
 0xf5e   : > { %v19071_v22 = vpop.f32.mrb[26].mxu0 }
 0xf5f   : > { %v19073_v23 = vpop.f32.mrb[27].mxu0 }
 0xf62   : > { %v15435_v24 = vpop.f32.mrb[28].mxu0 }
 0xf63   : > { %v2241_v25 = vpop.f32.mrb[29].mxu0  ;;  %v2263_v26 = vsel %vm576_vm2, %v15435_v24, -inf }
 0xf64   : > { %2264 = vmax.xlane.f32.xlu1 %v2263_v26  ;;  %v2260_v27 = vsel %vm576_vm2, %v2241_v25, -inf }
 0xf65   : > { %2261 = vmax.xlane.f32.xlu0 %v2260_v27 }
 0xf66   : > { %v15438_v28 = vpop.f32.mrb[30].mxu0 }
 0xf67   : > { %v2251_v29 = vpop.f32.mrb[31].mxu0  ;;  %v2269_v44 = vsel %vm576_vm2, %v15438_v28, -inf }
 0xf68   : > { %v2266_v42 = vsel %vm576_vm2, %v2251_v29, -inf }
 0xf69   : > { %2267 = vmax.xlane.f32.xlu0 %v2266_v42 }
 0xf6d   : > { %2270 = vmax.xlane.f32.xlu0 %v2269_v44 }
 0xf75   : > { %17536 = vrot.lane.b32.xlu1 %v18801_v55, %s21512_s19 }
 0xf79   : > { %17546 = vrot.lane.b32.xlu1 %v18801_v55, %s21508_s20 }
 0xff1   : > { %v2265_v46 = vpop.xlane.xlu1 %2264 }
 0xff2   : > { %v2273_v47 = vsub.f32 %v15435_v24, %v2265_v46  ;;  %v2262_v48 = vpop.xlane.xlu0 %2261 }
 0xff3   : > { %v2272_v50 = vsub.f32 %v2241_v25, %v2262_v48 }
 0xff4   : > { %v2278_v52 = vmul.f32 1.442695, %v2273_v47 }
 0xff5   : > { %v2276_v53 = vmul.f32 1.442695, %v2272_v50  ;;  %v17537_v54 = vpop.permute.xlu1 %17536 }
 0xff6   : > { %18145 = vpow2.f32 %v2278_v52  ;;  %v17539_v57 = vunpack.i.h.bf16 %v17537_v54  ;;  %v17538_v60 = vunpack.i.l.bf16 %v17537_v54  ;;  %v2268_v7 = vpop.xlane.xlu0 %2267 }
 0xff7   : > { %18147 = vpow2.f32 %v2276_v53  ;;  %v2274_v10 = vsub.f32 %v2251_v29, %v2268_v7 }
 0xff8   : > { %v16718_v61 = vpack.c.bf16 %v17539_v57, %v17538_v60 }
 0xff9   : > { %v2280_v12 = vmul.f32 1.442695, %v2274_v10  ;;  %v17547_v25 = vpop.permute.xlu1 %17546 }
 0xffa   : > { %16719 = vmatprep.subr.bf16.mxu1 %v16718_v61  ;;  %v2271_v8 = vpop.xlane.xlu0 %2270  ;;  %v17549_v29 = vunpack.i.h.bf16 %v17547_v25  ;;  %v17548_v42 = vunpack.i.l.bf16 %v17547_v25 }
 0xffb   : > { %16721 = vmatpush3.bf16.msra.mxu1 %v16718_v61  ;;  %v2275_v9 = vsub.f32 %v15438_v28, %v2271_v8 }
 0xffc   : > { %v16726_v48 = vpack.c.bf16 %v17549_v29, %v17548_v42 }
 0xffd   : > { %v2282_v11 = vmul.f32 1.442695, %v2275_v9 }
 0xfff   : > { %18149 = vpow2.f32 %v2282_v11 }
0x1000   : > { %v18146_v62 = vpop.eup %18145  ;;  %18151 = vpow2.f32 %v2280_v12 }
0x1001   : > { %v18148_v0 = vpop.eup %18147  ;;  %v2287_v5 = vsel %vm576_vm2, %v18146_v62, 0.0 }
0x1002   : > { %2288 = vadd.xlane.f32.xlu0 %v2287_v5  ;;  %v2284_v6 = vsel %vm576_vm2, %v18148_v0, 0.0 }
0x1003   : > { %2285 = vadd.xlane.f32.xlu1 %v2284_v6 }
0x1009   : > { %v18150_v13 = vpop.eup %18149 }
0x100a   : > { %v18152_v18 = vpop.eup %18151  ;;  %v2293_v19 = vsel %vm576_vm2, %v18150_v13, 0.0 }
0x100b   : > { %v2290_v24 = vsel %vm576_vm2, %v18152_v18, 0.0 }
0x1014   : > { %17551 = vrot.lane.b32.xlu1 %v18811_v59, %s21508_s20  ;;  %s21510_s20 = smov 104  }
0x1018   : > { %17541 = vrot.lane.b32.xlu0 %v18811_v59, %s21512_s19  ;;  %s21514_s19 = smov 68  }
0x1037   : > { %2294 = vadd.xlane.f32.xlu0 %v2293_v19 }
0x1038   : > { %2291 = vadd.xlane.f32.xlu1 %v2290_v24 }
0x1049   : > { %2415 = vrot.lane.b32.xlu1 %v18787_v49, %s21510_s20 }
0x104d   : > { %2419 = vrot.lane.b32.xlu1 %v18803_v56, %s21510_s20  ;;  %2413 = vrot.lane.b32.xlu0 %v18789_v51, %s21510_s20 }
0x1051   : > { %2417 = vrot.lane.b32.xlu0 %v18805_v58, %s21510_s20  ;;  %s21518_s20 = smov 40  }
0x108f   : > { %v2289_v26 = vpop.xlane.xlu0 %2288 }
0x1090   : > { %18153 = vrcp.f32 %v2289_v26  ;;  %v2286_v27 = vpop.xlane.xlu1 %2285 }
0x1091   : > { %18155 = vrcp.f32 %v2286_v27 }
0x1093   : > { %v17542_v28 = vpop.permute.xlu0 %17541 }
0x1094   : > { %v17544_v44 = vunpack.i.h.bf16 %v17542_v28  ;;  %v17543_v46 = vunpack.i.l.bf16 %v17542_v28  ;;  %v17552_v52 = vpop.permute.xlu1 %17551 }
0x1095   : > { %v17554_v60 = vunpack.i.h.bf16 %v17552_v52  ;;  %v17553_v61 = vunpack.i.l.bf16 %v17552_v52 }
0x1096   : > { %v16722_v47 = vpack.c.bf16 %v17544_v44, %v17543_v46 }
0x1097   : > { %v16732_v5 = vpack.c.bf16 %v17554_v60, %v17553_v61 }
0x1098   : > { %16723 = vmatprep.subr.bf16.mxu1 %v16722_v47 }
0x1099   : > { %16725 = vmatpush3.bf16.msra.mxu1 %v16722_v47 }
0x109a   : > { %v18154_v50 = vpop.eup %18153  ;;  %16728 = vmatprep.subr.msk.bf16.mxu1 %vm18817_vm3, %v16726_v48 }
0x109b   : > { %v18156_v53 = vpop.eup %18155  ;;  %v2299_v57 = vmul.f32 %v18154_v50, %v18146_v62 }
0x109c   : > { %v2297_v54 = vmul.f32 %v18156_v53, %v18148_v0 }
0x109e   : > { %15447 = vmatprep.mubr.msk.f32.mxu1 %vm576_vm2, %v2297_v54 }
0x109f   : > { %15448 = vmatmul.mubr.msk.f32.vlgmr.msra.gmra.mrb[24].mxu1 %vm576_vm2, %v2299_v57 }
0x10a2   : > { %16731 = vmatpush3.bf16.xpose.msk.msra.mxu1 %vm18817_vm3, %v16726_v48 }
0x10a3   : > { %16734 = vmatprep.subr.msk.bf16.mxu1 %vm18817_vm3, %v16732_v5 }
0x10aa   : > { %16737 = vmatpush3.bf16.xpose.msk.msra.mxu1 %vm18817_vm3, %v16732_v5 }
0x10c4   : > { %v2295_v6 = vpop.xlane.xlu0 %2294 }
0x10c5   : > { %18157 = vrcp.f32 %v2295_v6  ;;  %v2292_v0 = vpop.xlane.xlu1 %2291 }
0x10c6   : > { %18159 = vrcp.f32 %v2292_v0 }
0x10c8   : > { %v2414_v9 = vpop.permute.xlu0 %2413 }
0x10c9   : > { %v2416_v11 = vpop.permute.xlu1 %2415 }
0x10cc   : > { %v2418_v12 = vpop.permute.xlu0 %2417 }
0x10cd   : > { %v2420_v19 = vpop.permute.xlu1 %2419 }
0x10cf   : > { %v18158_v62 = vpop.eup %18157 }
0x10d0   : > { %v18160_v7 = vpop.eup %18159  ;;  %v2303_v10 = vmul.f32 %v18158_v62, %v18150_v13 }
0x10d1   : > { %v2301_v8 = vmul.f32 %v18160_v7, %v18152_v18 }
0x10d3   : > { %15450 = vmatprep.mubr.msk.f32.mxu1 %vm576_vm2, %v2301_v8 }
0x10d4   : > { %15451 = vmatmul.mubr.msk.f32.gmra.mrb[26].mxu1 %vm576_vm2, %v2303_v10 }
0x10d5   : > { %15461 = vmatprep.mubr.msk.f32.mxu1 %vm449_vm1, %v2414_v9 }
0x10d8   : > { %15462 = vmatmul.mubr.msk.f32.vlgmr.msra.gmra.mrb[28].mxu1 %vm449_vm1, %v2416_v11 }
0x10d9   : > { %15464 = vmatprep.mubr.msk.f32.mxu1 %vm449_vm1, %v2418_v12 }
0x10dc   : > { %15465 = vmatmul.mubr.msk.f32.gmra.mrb[30].mxu1 %vm449_vm1, %v2420_v19 }
0x1172   : > { %v19115_v24 = vpop.f32.mrb[24].mxu1 }
0x1173   : > { %v19117_v18 = vpop.f32.mrb[25].mxu1 }
0x11a7   : > { %v19119_v13 = vpop.f32.mrb[26].mxu1 }
0x11a8   : > { %v19121_v25 = vpop.f32.mrb[27].mxu1 }
0x11ab   : > { %v15463_v26 = vpop.f32.mrb[28].mxu1 }
0x11ac   : > { %v2511_v27 = vpop.f32.mrb[29].mxu1  ;;  %v2533_v28 = vsel %vm576_vm2, %v15463_v26, -inf }
0x11ad   : > { %2534 = vmax.xlane.f32.xlu1 %v2533_v28  ;;  %v2530_v29 = vsel %vm576_vm2, %v2511_v27, -inf }
0x11ae   : > { %2531 = vmax.xlane.f32.xlu0 %v2530_v29 }
0x11af   : > { %v15466_v42 = vpop.f32.mrb[30].mxu1 }
0x11b0   : > { %v2521_v44 = vpop.f32.mrb[31].mxu1  ;;  %v2539_v47 = vsel %vm576_vm2, %v15466_v42, -inf }
0x11b1   : > { %v2536_v46 = vsel %vm576_vm2, %v2521_v44, -inf }
0x11b2   : > { %2537 = vmax.xlane.f32.xlu0 %v2536_v46 }
0x11b6   : > { %2540 = vmax.xlane.f32.xlu0 %v2539_v47 }
0x11be   : > { %17556 = vrot.lane.b32.xlu1 %v18801_v55, %s21518_s20 }
0x11c2   : > { %17566 = vrot.lane.b32.xlu1 %v18801_v55, %s21514_s19 }
0x123a   : > { %v2535_v48 = vpop.xlane.xlu1 %2534 }
0x123b   : > { %v2543_v50 = vsub.f32 %v15463_v26, %v2535_v48  ;;  %v2532_v52 = vpop.xlane.xlu0 %2531 }
0x123c   : > { %v2542_v53 = vsub.f32 %v2511_v27, %v2532_v52 }
0x123d   : > { %v2548_v54 = vmul.f32 1.442695, %v2543_v50 }
0x123e   : > { %v2546_v57 = vmul.f32 1.442695, %v2542_v53  ;;  %v17557_v60 = vpop.permute.xlu1 %17556 }
0x123f   : > { %18161 = vpow2.f32 %v2548_v54  ;;  %v17559_v61 = vunpack.i.h.bf16 %v17557_v60  ;;  %v17558_v5 = vunpack.i.l.bf16 %v17557_v60  ;;  %v2538_v9 = vpop.xlane.xlu0 %2537 }
0x1240   : > { %18163 = vpow2.f32 %v2546_v57  ;;  %v2544_v12 = vsub.f32 %v2521_v44, %v2538_v9 }
0x1241   : > { %v16738_v6 = vpack.c.bf16 %v17559_v61, %v17558_v5 }
0x1242   : > { %v2550_v26 = vmul.f32 1.442695, %v2544_v12 }
0x1243   : > { %16739 = vmatprep.subr.bf16.mxu0 %v16738_v6  ;;  %v2541_v10 = vpop.xlane.xlu0 %2540 }
0x1244   : > { %16741 = vmatpush3.bf16.msra.mxu0 %v16738_v6  ;;  %v2545_v11 = vsub.f32 %v15466_v42, %v2541_v10  ;;  %v17567_v42 = vpop.permute.xlu1 %17566 }
0x1245   : > { %v17569_v50 = vunpack.i.h.bf16 %v17567_v42  ;;  %v17568_v52 = vunpack.i.l.bf16 %v17567_v42 }
0x1246   : > { %v2552_v19 = vmul.f32 1.442695, %v2545_v11 }
0x1247   : > { %v16746_v57 = vpack.c.bf16 %v17569_v50, %v17568_v52 }
0x1248   : > { %18165 = vpow2.f32 %v2552_v19 }
0x1249   : > { %v18162_v0 = vpop.eup %18161  ;;  %18167 = vpow2.f32 %v2550_v26 }
0x124a   : > { %v18164_v62 = vpop.eup %18163  ;;  %v2557_v7 = vsel %vm576_vm2, %v18162_v0, 0.0 }
0x124b   : > { %2558 = vadd.xlane.f32.xlu0 %v2557_v7  ;;  %v2554_v8 = vsel %vm576_vm2, %v18164_v62, 0.0 }
0x124c   : > { %2555 = vadd.xlane.f32.xlu1 %v2554_v8 }
0x1252   : > { %v18166_v27 = vpop.eup %18165 }
0x1253   : > { %v18168_v28 = vpop.eup %18167  ;;  %v2563_v29 = vsel %vm576_vm2, %v18166_v27, 0.0 }
0x1254   : > { %v2560_v46 = vsel %vm576_vm2, %v18168_v28, 0.0 }
0x125d   : > { %17571 = vrot.lane.b32.xlu1 %v18811_v59, %s21514_s19  ;;  %s21516_s19 = smov 100  }
0x1261   : > { %17561 = vrot.lane.b32.xlu0 %v18811_v59, %s21518_s20  ;;  %s21538_s20 = smov 4  }
0x1280   : > { %2564 = vadd.xlane.f32.xlu0 %v2563_v29 }
0x1281   : > { %2561 = vadd.xlane.f32.xlu1 %v2560_v46 }
0x1292   : > { %2685 = vrot.lane.b32.xlu1 %v18787_v49, %s21516_s19 }
0x1296   : > { %2689 = vrot.lane.b32.xlu1 %v18803_v56, %s21516_s19  ;;  %2683 = vrot.lane.b32.xlu0 %v18789_v51, %s21516_s19 }
0x129a   : > { %2687 = vrot.lane.b32.xlu0 %v18805_v58, %s21516_s19  ;;  %s21526_s19 = smov 36  }
0x12d8   : > { %v2559_v44 = vpop.xlane.xlu0 %2558 }
0x12d9   : > { %18169 = vrcp.f32 %v2559_v44  ;;  %v2556_v47 = vpop.xlane.xlu1 %2555 }
0x12da   : > { %18171 = vrcp.f32 %v2556_v47 }
0x12dc   : > { %v17562_v48 = vpop.permute.xlu0 %17561 }
0x12dd   : > { %v17564_v53 = vunpack.i.h.bf16 %v17562_v48  ;;  %v17563_v54 = vunpack.i.l.bf16 %v17562_v48  ;;  %v17572_v60 = vpop.permute.xlu1 %17571 }
0x12de   : > { %v17574_v5 = vunpack.i.h.bf16 %v17572_v60  ;;  %v17573_v6 = vunpack.i.l.bf16 %v17572_v60 }
0x12df   : > { %v16742_v49 = vpack.c.bf16 %v17564_v53, %v17563_v54 }
0x12e0   : > { %v16752_v7 = vpack.c.bf16 %v17574_v5, %v17573_v6 }
0x12e1   : > { %16743 = vmatprep.subr.bf16.mxu0 %v16742_v49 }
0x12e2   : > { %16745 = vmatpush3.bf16.msra.mxu0 %v16742_v49 }
0x12e3   : > { %v18170_v56 = vpop.eup %18169  ;;  %16748 = vmatprep.subr.msk.bf16.mxu0 %vm18817_vm3, %v16746_v57 }
0x12e4   : > { %v18172_v51 = vpop.eup %18171  ;;  %v2569_v61 = vmul.f32 %v18170_v56, %v18162_v0 }
0x12e5   : > { %v2567_v58 = vmul.f32 %v18172_v51, %v18164_v62 }
0x12e7   : > { %15475 = vmatprep.mubr.msk.f32.mxu0 %vm576_vm2, %v2567_v58 }
0x12e8   : > { %15476 = vmatmul.mubr.msk.f32.vlgmr.msra.gmra.mrb[32].mxu0 %vm576_vm2, %v2569_v61 }
0x12eb   : > { %16751 = vmatpush3.bf16.xpose.msk.msra.mxu0 %vm18817_vm3, %v16746_v57 }
0x12ec   : > { %16754 = vmatprep.subr.msk.bf16.mxu0 %vm18817_vm3, %v16752_v7 }
0x12f3   : > { %16757 = vmatpush3.bf16.xpose.msk.msra.mxu0 %vm18817_vm3, %v16752_v7 }
0x130d   : > { %v2565_v8 = vpop.xlane.xlu0 %2564 }
0x130e   : > { %18173 = vrcp.f32 %v2565_v8  ;;  %v2562_v62 = vpop.xlane.xlu1 %2561 }
0x130f   : > { %18175 = vrcp.f32 %v2562_v62 }
0x1311   : > { %v2684_v11 = vpop.permute.xlu0 %2683 }
0x1312   : > { %v2686_v19 = vpop.permute.xlu1 %2685 }
0x1315   : > { %v2688_v26 = vpop.permute.xlu0 %2687 }
0x1316   : > { %v2690_v29 = vpop.permute.xlu1 %2689 }
0x1318   : > { %v18174_v0 = vpop.eup %18173 }
0x1319   : > { %v18176_v9 = vpop.eup %18175  ;;  %v2573_v12 = vmul.f32 %v18174_v0, %v18166_v27 }
0x131a   : > { %v2571_v10 = vmul.f32 %v18176_v9, %v18168_v28 }
0x131c   : > { %15478 = vmatprep.mubr.msk.f32.mxu0 %vm576_vm2, %v2571_v10 }
0x131d   : > { %15479 = vmatmul.mubr.msk.f32.gmra.mrb[34].mxu0 %vm576_vm2, %v2573_v12 }
0x131e   : > { %15489 = vmatprep.mubr.msk.f32.mxu0 %vm449_vm1, %v2684_v11 }
0x1321   : > { %15490 = vmatmul.mubr.msk.f32.vlgmr.msra.gmra.mrb[36].mxu0 %vm449_vm1, %v2686_v19 }
0x1322   : > { %15492 = vmatprep.mubr.msk.f32.mxu0 %vm449_vm1, %v2688_v26 }
0x1325   : > { %15493 = vmatmul.mubr.msk.f32.gmra.mrb[38].mxu0 %vm449_vm1, %v2690_v29 }
0x13bb   : > { %v15477_v46 = vpop.f32.mrb[32].mxu0 }
0x13bc   : > { %v2664_v42 = vpop.f32.mrb[33].mxu0 }
0x13f0   : > { %v19163_v28 = vpop.f32.mrb[34].mxu0 }
0x13f1   : > { %v19165_v27 = vpop.f32.mrb[35].mxu0 }
0x13f4   : > { %v15491_v44 = vpop.f32.mrb[36].mxu0 }
0x13f5   : > { %v2781_v47 = vpop.f32.mrb[37].mxu0  ;;  %v2803_v48 = vsel %vm576_vm2, %v15491_v44, -inf }
0x13f6   : > { %2804 = vmax.xlane.f32.xlu1 %v2803_v48  ;;  %v2800_v50 = vsel %vm576_vm2, %v2781_v47, -inf }
0x13f7   : > { %2801 = vmax.xlane.f32.xlu0 %v2800_v50 }
0x13f8   : > { %v15494_v52 = vpop.f32.mrb[38].mxu0 }
0x13f9   : > { %v2791_v53 = vpop.f32.mrb[39].mxu0  ;;  %v2809_v49 = vsel %vm576_vm2, %v15494_v52, -inf }
0x13fa   : > { %v2806_v54 = vsel %vm576_vm2, %v2791_v53, -inf }
0x13fb   : > { %2807 = vmax.xlane.f32.xlu0 %v2806_v54 }
0x13ff   : > { %2810 = vmax.xlane.f32.xlu0 %v2809_v49 }
0x1483   : > { %v2805_v57 = vpop.xlane.xlu1 %2804 }
0x1484   : > { %v2813_v56 = vsub.f32 %v15491_v44, %v2805_v57  ;;  %v2802_v60 = vpop.xlane.xlu0 %2801 }
0x1485   : > { %v2812_v51 = vsub.f32 %v2781_v47, %v2802_v60  ;;  %v690_v47 = vld [vmem:[%s21609_s5 + $0x18] sm:$0xff] }
0x1486   : > { %v2818_v58 = vmul.f32 1.442695, %v2813_v56 }
0x1487   : > { %v2816_v61 = vmul.f32 1.442695, %v2812_v51 }
0x1488   : > { %18177 = vpow2.f32 %v2818_v58  ;;  %v2808_v5 = vpop.xlane.xlu0 %2807 }
0x1489   : > { %18179 = vpow2.f32 %v2816_v61  ;;  %v2814_v6 = vsub.f32 %v2791_v53, %v2808_v5 }
0x148b   : > { %v2820_v7 = vmul.f32 1.442695, %v2814_v6 }
0x148c   : > { %v2811_v8 = vpop.xlane.xlu0 %2810 }
0x148d   : > { %18181 = vpow2.f32 %v2820_v7  ;;  %v2815_v62 = vsub.f32 %v15494_v52, %v2811_v8 }
0x148f   : > { %v2822_v0 = vmul.f32 1.442695, %v2815_v62 }
0x1491   : > { %18183 = vpow2.f32 %v2822_v0 }
0x1492   : > { %v19171_v9 = vpop.eup %18177 }
0x1493   : > { %v18180_v10 = vpop.eup %18179  ;;  %v2827_v11 = vsel %vm576_vm2, %v19171_v9, 0.0 }
0x1494   : > { %2828 = vadd.xlane.f32.xlu0 %v2827_v11  ;;  %v2824_v12 = vsel %vm576_vm2, %v18180_v10, 0.0 }
0x1495   : > { %2825 = vadd.xlane.f32.xlu1 %v2824_v12 }
0x1497   : > { %v19176_v19 = vpop.eup %18181 }
0x1498   : > { %v2830_v26 = vsel %vm576_vm2, %v19176_v19, 0.0 }
0x1499   : > { %2831 = vadd.xlane.f32.xlu1 %v2830_v26 }
0x149b   : > { %v19180_v29 = vpop.eup %18183 }
0x149c   : > { %v2833_v44 = vsel %vm576_vm2, %v19180_v29, 0.0 }
0x149d   : > { %2834 = vadd.xlane.f32.xlu0 %v2833_v44 }
0x14aa   : > { %17576 = vrot.lane.b32.xlu1 %v18801_v55, %s21526_s19 }
0x14ae   : > { %2957 = vrot.lane.b32.xlu1 %v18925_v32, %s21538_s20 }
0x14b2   : > { %2959 = vrot.lane.b32.xlu1 %v18923_v31, %s21538_s20 }
0x14b3   : > { %17581 = vrot.lane.b32.xlu0 %v18811_v59, %s21526_s19  ;;  %s21530_s19 = smov 20  }
0x14b6   : > { %2975 = vrot.lane.b32.xlu1 %v18971_v1, %s21536_s18 }
0x14b7   : > { %2973 = vrot.lane.b32.xlu0 %v18973_v2, %s21536_s18 }
0x14ba   : > { %2991 = vrot.lane.b32.xlu1 %v19019_v30, %s21534_s17 }
0x14bb   : > { %2989 = vrot.lane.b32.xlu0 %v19021_v37, %s21534_s17 }
0x14be   : > { %3007 = vrot.lane.b32.xlu1 %v19067_v20, %s21532_s16 }
0x14bf   : > { %3005 = vrot.lane.b32.xlu0 %v19069_v21, %s21532_s16 }
0x14c2   : > { %3023 = vrot.lane.b32.xlu1 %v19115_v24, %s21530_s19 }
0x14c3   : > { %3021 = vrot.lane.b32.xlu0 %v19117_v18, %s21530_s19 }
0x14c6   : > { %3039 = vrot.lane.b32.xlu1 %v15477_v46, %s21544_s15  ;;  %v689_v46 = vld [vmem:[%s21609_s5 + $0x10] sm:$0xff] }
0x14c7   : > { %3037 = vrot.lane.b32.xlu0 %v2664_v42, %s21544_s15  ;;  %v16770_v48 = vpack.c.bf16 %v690_v47, %v689_v46  ;;  %s21615_s15 = smov 124  }
0x14ca   : > { %2963 = vrot.lane.b32.xlu1 %v18927_v33, %s21538_s20 }
0x14cb   : > { %2961 = vrot.lane.b32.xlu0 %v18929_v34, %s21538_s20  ;;  %s21613_s20 = smov 64  }
0x14ce   : > { %2979 = vrot.lane.b32.xlu1 %v18975_v3, %s21536_s18 }
0x14cf   : > { %2977 = vrot.lane.b32.xlu0 %v18977_v4, %s21536_s18  ;;  %s21618_s18 = smov 120  }
0x14d2   : > { %2995 = vrot.lane.b32.xlu1 %v19023_v38, %s21534_s17 }
0x14d3   : > { %2993 = vrot.lane.b32.xlu0 %v19025_v40, %s21534_s17  ;;  %s21612_s17 = smov 96  }
0x14d6   : > { %3011 = vrot.lane.b32.xlu1 %v19071_v22, %s21532_s16 }
0x14d7   : > { %3009 = vrot.lane.b32.xlu0 %v19073_v23, %s21532_s16  ;;  %s21546_s16 = smov 28  }
0x14da   : > { %3027 = vrot.lane.b32.xlu1 %v19119_v13, %s21530_s19  ;;  %v687_v13 = vld [vmem:[%s21609_s5] sm:$0xff] }
0x14db   : > { %3025 = vrot.lane.b32.xlu0 %v19121_v25, %s21530_s19  ;;  %v688_v25 = vld [vmem:[%s21609_s5 + $0x8] sm:$0xff]  ;;  %s21621_s19 = smov 116  }
0x14dc   : > { %v16766_v42 = vpack.c.bf16 %v688_v25, %v687_v13 }
0x1521   : > { %v2829_v59 = vpop.xlane.xlu0 %2828 }
0x1522   : > { %v2826_v55 = vpop.xlane.xlu1 %2825 }
0x1523   : > { %18185 = vrcp.f32 %v2826_v55 }
0x1524   : > { %18187 = vrcp.f32 %v2829_v59 }
0x1526   : > { %v2832_v31 = vpop.xlane.xlu1 %2831 }
0x1527   : > { %18189 = vrcp.f32 %v2832_v31 }
0x152a   : > { %v17577_v32 = vpop.permute.xlu1 %17576  ;;  %v2835_v33 = vpop.xlane.xlu0 %2834 }
0x152b   : > { %v17579_v34 = vunpack.i.h.bf16 %v17577_v32  ;;  %v17578_v1 = vunpack.i.l.bf16 %v17577_v32  ;;  %18191 = vrcp.f32 %v2835_v33 }
0x152d   : > { %v18186_v2 = vpop.eup %18185  ;;  %v16758_v3 = vpack.c.bf16 %v17579_v34, %v17578_v1 }
0x152e   : > { %v17582_v4 = vpop.permute.xlu0 %17581  ;;  %v2837_v30 = vmul.f32 %v18186_v2, %v18180_v10  ;;  %v18188_v20 = vpop.eup %18187 }
0x152f   : > { %v17584_v37 = vunpack.i.h.bf16 %v17582_v4  ;;  %v17583_v38 = vunpack.i.l.bf16 %v17582_v4  ;;  %16759 = vmatprep.subr.bf16.mxu1 %v16758_v3  ;;  %v2839_v22 = vmul.f32 %v18188_v20, %v19171_v9  ;;  %v2958_v49 = vpop.permute.xlu1 %2957 }
0x1530   : > { %16761 = vmatpush3.bf16.msra.mxu1 %v16758_v3  ;;  %15503 = vmatprep.mubr.msk.f32.mxu1 %vm576_vm2, %v2837_v30  ;;  %v3065_v26 = vsel %vm449_vm1, %v18877_v15, %v2958_v49  ;;  %v19299_v49 = vld [vmem:[%s21609_s5 + $0x60] sm:$0x3f] }
0x1531   : > { %v16762_v40 = vpack.c.bf16 %v17584_v37, %v17583_v38  ;;  %v18190_v21 = vpop.eup %18189 }
0x1532   : > { %v2841_v24 = vmul.f32 %v18190_v21, %v19176_v19  ;;  %v2974_v60 = vpop.permute.xlu0 %2973 }
0x1533   : > { %16763 = vmatprep.subr.bf16.mxu1 %v16762_v40  ;;  %v2960_v57 = vpop.permute.xlu1 %2959  ;;  %v3070_v55 = vsel %vm3069_vm4, %v3065_v26, %v2974_v60 }
0x1534   : > { %16765 = vmatpush3.bf16.msra.mxu1 %v16762_v40  ;;  %v3066_v44 = vsel %vm449_vm1, %v18875_v14, %v2960_v57 }
0x1535   : > { %v18192_v23 = vpop.eup %18191  ;;  %16767 = vmatprep.subr.bf16.mxu1 %v16766_v42 }
0x1536   : > { %v2843_v18 = vmul.f32 %v18192_v23, %v19180_v29  ;;  %v2990_v58 = vpop.permute.xlu0 %2989 }
0x1537   : > { %15504 = vmatmul.mubr.msk.f32.vlgmr.msra.gmra.mrb[32].mxu1 %vm576_vm2, %v2839_v22  ;;  %v2976_v56 = vpop.permute.xlu1 %2975  ;;  %v3075_v32 = vsel %vm3074_vm5, %v3070_v55, %v2990_v58 }
0x1538   : > { %15506 = vmatprep.mubr.msk.f32.mxu1 %vm576_vm2, %v2841_v24  ;;  %16769 = vmatpush3.bf16.msra.mxu1 %v16766_v42  ;;  %v3071_v31 = vsel %vm3069_vm4, %v3066_v44, %v2976_v56 }
0x1539   : > { %16771 = vmatprep.subr.bf16.mxu1 %v16770_v48 }
0x153a   : > { %v3006_v5 = vpop.permute.xlu0 %3005 }
0x153b   : > { %15507 = vmatmul.mubr.msk.f32.gmra.mrb[34].mxu1 %vm576_vm2, %v2843_v18  ;;  %v2992_v51 = vpop.permute.xlu1 %2991  ;;  %v3080_v34 = vsel %vm3079_vm6, %v3075_v32, %v3006_v5 }
0x153c   : > { %16773 = vmatpush3.bf16.msra.mxu1 %v16770_v48  ;;  %v3076_v33 = vsel %vm3074_vm5, %v3071_v31, %v2992_v51 }
0x153e   : > { %v3022_v7 = vpop.permute.xlu0 %3021 }
0x153f   : > { %v3008_v61 = vpop.permute.xlu1 %3007  ;;  %v3085_v1 = vsel %vm3084_vm7, %v3080_v34, %v3022_v7 }
0x1540   : > { %v3081_v15 = vsel %vm3079_vm6, %v3076_v33, %v3008_v61 }
0x1543   : > { %v3024_v6 = vpop.permute.xlu1 %3023 }
0x1544   : > { %v3086_v14 = vsel %vm3084_vm7, %v3081_v15, %v3024_v6 }
0x1547   : > { %v3040_v8 = vpop.permute.xlu1 %3039 }
0x1548   : > { %v3091_v30 = vsel %vm3089_vm8, %v3086_v14, %v3040_v8 }
0x154b   : > { %v2964_v62 = vpop.permute.xlu1 %2963 }
0x154c   : > { %v3068_v21 = vsel %vm449_vm1, %v18879_v16, %v2964_v62 }
0x154f   : > { %v2980_v9 = vpop.permute.xlu1 %2979 }
0x1550   : > { %v3073_v24 = vsel %vm3069_vm4, %v3068_v21, %v2980_v9  ;;  %v691_v21 = vld [vmem:[%s21609_s5 + $0x20] sm:$0xff] }
0x1553   : > { %v2996_v10 = vpop.permute.xlu1 %2995 }
0x1554   : > { %v3078_v13 = vsel %vm3074_vm5, %v3073_v24, %v2996_v10 }
0x1557   : > { %v3012_v12 = vpop.permute.xlu1 %3011 }
0x1558   : > { %v3083_v46 = vsel %vm3079_vm6, %v3078_v13, %v3012_v12 }
0x155b   : > { %v3028_v29 = vpop.permute.xlu1 %3027 }
0x155c   : > { %v3088_v47 = vsel %vm3084_vm7, %v3083_v46, %v3028_v29  ;;  %v696_v46 = vld [vmem:[%s21609_s5 + $0x48] sm:$0xff] }
0x160a   : > { %v15505_v50 = vpop.f32.mrb[32].mxu1 }
0x160b   : > { %3055 = vrot.lane.b32.xlu1 %v15505_v50, %s21546_s16  ;;  %v2934_v52 = vpop.f32.mrb[33].mxu1 }
0x160c   : > { %3053 = vrot.lane.b32.xlu0 %v2934_v52, %s21546_s16 }
0x160e   : > { %v15508_v53 = vpop.f32.mrb[34].mxu1 }
0x160f   : > { %3043 = vrot.lane.b32.xlu1 %v19163_v28, %s21610_s29  ;;  %v2944_v54 = vpop.f32.mrb[35].mxu1  ;;  %v3038_v28 = vpop.permute.xlu0 %3037 }
0x1610   : > { %3041 = vrot.lane.b32.xlu0 %v19165_v27, %s21610_s29  ;;  %v3090_v3 = vsel %vm3089_vm8, %v3085_v1, %v3038_v28 }
0x1613   : > { %3059 = vrot.lane.b32.xlu1 %v15508_v53, %s21546_s16  ;;  %v2962_v0 = vpop.permute.xlu0 %2961 }
0x1614   : > { %3057 = vrot.lane.b32.xlu0 %v2944_v54, %s21546_s16  ;;  %v3067_v40 = vsel %vm449_vm1, %v18881_v17, %v2962_v0  ;;  %v19294_v54 = vsub.s32 0, %v18759_v35  ;;  %s21617_s16 = smov 88  }
0x1616   : > { %v3102_v57 = vrot.slane %v19299_v49, %v19294_v54 }
0x1617   : > { %v2978_v27 = vpop.permute.xlu0 %2977 }
0x1618   : > { %v3072_v22 = vsel %vm3069_vm4, %v3067_v40, %v2978_v27  ;;  %v685_v40 = vld [vmem:[%s21611_s4 + $0x18] sm:$0xff] }
0x161b   : > { %v2994_v11 = vpop.permute.xlu0 %2993 }
0x161c   : > { %v3077_v18 = vsel %vm3074_vm5, %v3072_v22, %v2994_v11  ;;  %v692_v22 = vld [vmem:[%s21609_s5 + $0x28] sm:$0xff] }
0x161d   : > { %v16782_v24 = vpack.c.bf16 %v692_v22, %v691_v21 }
0x161f   : > { %v3010_v19 = vpop.permute.xlu0 %3009  ;;  %16783 = vmatprep.subr.bf16.mxu1 %v16782_v24 }
0x1620   : > { %v3082_v25 = vsel %vm3079_vm6, %v3077_v18, %v3010_v19  ;;  %v694_v18 = vld [vmem:[%s21609_s5 + $0x38] sm:$0xff] }
0x1623   : > { %v3026_v59 = vpop.permute.xlu0 %3025 }
0x1624   : > { %v3087_v17 = vsel %vm3084_vm7, %v3082_v25, %v3026_v59  ;;  %v695_v25 = vld [vmem:[%s21609_s5 + $0x40] sm:$0xff] }
0x167d   : > { %v3056_v2 = vpop.permute.xlu1 %3055 }
0x167e   : > { %v3054_v4 = vpop.permute.xlu0 %3053  ;;  %v3096_v38 = vsel %vm3094_vm9, %v3091_v30, %v3056_v2  ;;  %v683_v30 = vld [vmem:[%s21611_s4 + $0x8] sm:$0xff] }
0x167f   : > { %v3095_v37 = vsel %vm3094_vm9, %v3090_v3, %v3054_v4  ;;  %v682_v4 = vld [vmem:[%s21611_s4] sm:$0xff] }
0x1680   : > { %15517 = vmatprep.mubr.msk.f32.mxu1 %vm576_vm2, %v3095_v37  ;;  %v684_v37 = vld [vmem:[%s21611_s4 + $0x10] sm:$0xff] }
0x1681   : > { %v3044_v20 = vpop.permute.xlu1 %3043  ;;  %15518 = vmatmul.mubr.msk.f32.vlgmr.msra.gmra.mrb[36].mxu1 %vm576_vm2, %v3096_v38  ;;  %v16774_v38 = vpack.c.bf16 %v683_v30, %v682_v4 }
0x1682   : > { %v3042_v23 = vpop.permute.xlu0 %3041  ;;  %v3093_v50 = vsel %vm3089_vm8, %v3088_v47, %v3044_v20  ;;  %v16778_v20 = vpack.c.bf16 %v685_v40, %v684_v37  ;;  %16785 = vmatpush3.bf16.msra.mxu1 %v16782_v24  ;;  %v19393_v40 = vsub.s32 3, %v18759_v35 }
0x1683   : > { %v3092_v16 = vsel %vm3089_vm8, %v3087_v17, %v3042_v23  ;;  %16775 = vmatprep.subr.bf16.mxu0 %v16774_v38  ;;  %v693_v23 = vld [vmem:[%s21609_s5 + $0x30] sm:$0xff]  ;;  %v16790_v17 = vpack.c.bf16 %v696_v46, %v695_v25 }
0x1684   : > { %16777 = vmatpush3.bf16.msra.mxu0 %v16774_v38  ;;  %v16786_v13 = vpack.c.bf16 %v694_v18, %v693_v23 }
0x1685   : > { %v3060_v42 = vpop.permute.xlu1 %3059  ;;  %16779 = vmatprep.subr.bf16.mxu0 %v16778_v20 }
0x1686   : > { %v3058_v48 = vpop.permute.xlu0 %3057  ;;  %v3098_v53 = vsel %vm3094_vm9, %v3093_v50, %v3060_v42  ;;  %16787 = vmatprep.subr.bf16.mxu1 %v16786_v13 }
0x1687   : > { %v3097_v52 = vsel %vm3094_vm9, %v3092_v16, %v3058_v48  ;;  %16789 = vmatpush3.bf16.msra.mxu1 %v16786_v13 }
0x1688   : > { %15520 = vmatprep.mubr.msk.f32.mxu1 %vm576_vm2, %v3097_v52  ;;  %16781 = vmatpush3.bf16.msra.mxu0 %v16778_v20  ;;  %v3381_v20 = vrot.slane %v19299_v49, %v19393_v40 }
0x1689   : > { %15521 = vmatmul.mubr.msk.f32.gmra.mrb[38].mxu1 %vm576_vm2, %v3098_v53  ;;  %16791 = vmatprep.subr.bf16.mxu1 %v16790_v17 }
0x168b   : > { %16793 = vmatpush3.bf16.msra.mxu1 %v16790_v17 }
0x1754   : > { %v15519_v56 = vpop.f32.mrb[36].mxu1 }
0x1755   : > { %v3187_v60 = vadd.f32 %v15519_v56, %v3102_v57  ;;  %v3181_v51 = vpop.f32.mrb[37].mxu1 }
0x1756   : > { %v3182_v58 = vadd.f32 %v3181_v51, %v3102_v57 }
0x1757   : > { %v3201_v61 = vadd.f32 %v3187_v60, %v18765_v39 }
0x1758   : > { %v3200_v5 = vadd.f32 %v3182_v58, %v18767_v41  ;;  %v19365_v58 = vsub.s32 2, %v18759_v35 }
0x1759   : > { %v3207_v6 = vsel %vm576_vm2, %v3201_v61, 0.0 }
0x175a   : > { %3208 = vadd.xlane.f32.xlu1 %v3207_v6  ;;  %v3204_v7 = vsel %vm576_vm2, %v3200_v5, 0.0 }
0x175b   : > { %3205 = vadd.xlane.f32.xlu0 %v3204_v7 }
0x175c   : > { %v15522_v8 = vpop.f32.mrb[38].mxu1 }
0x175d   : > { %v3191_v28 = vpop.f32.mrb[39].mxu1  ;;  %v3197_v62 = vadd.f32 %v15522_v8, %v3102_v57 }
0x175e   : > { %v3192_v0 = vadd.f32 %v3191_v28, %v3102_v57  ;;  %v19362_v57 = vsub.s32 1, %v18759_v35 }
0x175f   : > { %v3203_v27 = vadd.f32 %v3197_v62, %v18771_v43 }
0x1760   : > { %v3202_v9 = vadd.f32 %v3192_v0, %v18775_v45  ;;  %v3268_v0 = vrot.slane %v19299_v49, %v19365_v58 }
0x1761   : > { %v3213_v39 = vsel %vm576_vm2, %v3203_v27, 0.0 }
0x1762   : > { %v3210_v10 = vsel %vm576_vm2, %v3202_v9, 0.0 }
0x1763   : > { %3211 = vadd.xlane.f32.xlu0 %v3210_v10 }
0x1767   : > { %3214 = vadd.xlane.f32.xlu0 %v3213_v39 }
0x17e7   : > { %v3209_v41 = vpop.xlane.xlu1 %3208 }
0x17e8   : > { %v3218_v11 = vmul.f32 0.03125, %v3209_v41  ;;  %v3206_v12 = vpop.xlane.xlu0 %3205 }
0x17e9   : > { %v3217_v19 = vmul.f32 0.03125, %v3206_v12 }
0x17ea   : > { %v19311_v26 = vsub.f32 %v3201_v61, %v3218_v11  ;;  %v3260_v61 = vrot.slane %v19299_v49, %v19362_v57 }
0x17eb   : > { %v19313_v29 = vsub.f32 %v3200_v5, %v3217_v19 }
0x17ec   : > { %v3226_v44 = vmul.f32 %v19311_v26, %v19311_v26 }
0x17ed   : > { %v3225_v43 = vmul.f32 %v19313_v29, %v19313_v29 }
0x17ee   : > { %v3232_v45 = vsel %vm576_vm2, %v3226_v44, 0.0 }
0x17ef   : > { %3233 = vadd.xlane.f32.xlu0 %v3232_v45  ;;  %v3229_v55 = vsel %vm576_vm2, %v3225_v43, 0.0  ;;  %v697_v45 = vld [vmem:[%s21609_s5 + $0x50] sm:$0xff] }
0x17f0   : > { %3230 = vadd.xlane.f32.xlu1 %v3229_v55  ;;  %v3212_v59 = vpop.xlane.xlu0 %3211  ;;  %v698_v55 = vld [vmem:[%s21609_s5 + $0x58] sm:$0xff] }
0x17f1   : > { %v3219_v31 = vmul.f32 0.03125, %v3212_v59  ;;  %v16794_v59 = vpack.c.bf16 %v698_v55, %v697_v45  ;;  %v14219_v55 = vld [vmem:[%s21606_s3 + $0x58] sm:$0xff] }
0x17f3   : > { %v19321_v32 = vsub.f32 %v3202_v9, %v3219_v31  ;;  %16795 = vmatprep.subr.bf16.mxu1 %v16794_v59  ;;  %v14207_v31 = vld [vmem:[%s21611_s4 + $0x20] ss:$0 sm:$0xff] }
0x17f4   : > { %v3215_v33 = vpop.xlane.xlu0 %3214  ;;  %16797 = vmatpush3.bf16.msra.mxu1 %v16794_v59 }
0x17f5   : > { %v3220_v34 = vmul.f32 0.03125, %v3215_v33  ;;  %v3227_v15 = vmul.f32 %v19321_v32, %v19321_v32 }
0x17f7   : > { %v19325_v1 = vsub.f32 %v3203_v27, %v3220_v34  ;;  %v3235_v2 = vsel %vm576_vm2, %v3227_v15, 0.0 }
0x17f8   : > { %3236 = vadd.xlane.f32.xlu1 %v3235_v2 }
0x17f9   : > { %v3228_v14 = vmul.f32 %v19325_v1, %v19325_v1 }
0x17fb   : > { %v3238_v3 = vsel %vm576_vm2, %v3228_v14, 0.0 }
0x17fc   : > { %3239 = vadd.xlane.f32.xlu0 %v3238_v3 }
0x187c   : > { %v3234_v42 = vpop.xlane.xlu0 %3233 }
0x187d   : > { %v3242_v47 = vmul.f32 0.03125, %v3234_v42  ;;  %v3231_v16 = vpop.xlane.xlu1 %3230 }
0x187e   : > { %v3241_v48 = vmul.f32 0.03125, %v3231_v16 }
0x187f   : > { %v3246_v50 = vadd.f32 1e-05, %v3242_v47 }
0x1880   : > { %v3245_v52 = vadd.f32 1e-05, %v3241_v48 }
0x1881   : > { %18193 = vrsqrt.f32 %v3246_v50 }
0x1882   : > { %18195 = vrsqrt.f32 %v3245_v52 }
0x1885   : > { %v3237_v53 = vpop.xlane.xlu1 %3236 }
0x1886   : > { %v3243_v56 = vmul.f32 0.03125, %v3237_v53 }
0x1888   : > { %v3247_v60 = vadd.f32 1e-05, %v3243_v56 }
0x1889   : > { %v3240_v51 = vpop.xlane.xlu0 %3239 }
0x188a   : > { %18197 = vrsqrt.f32 %v3247_v60  ;;  %v3244_v5 = vmul.f32 0.03125, %v3240_v51 }
0x188b   : > { %v18194_v6 = vpop.eup %18193 }
0x188c   : > { %v18196_v7 = vpop.eup %18195  ;;  %v3254_v8 = vmul.f32 %v18194_v6, %v19311_v26  ;;  %v3248_v28 = vadd.f32 1e-05, %v3244_v5 }
0x188d   : > { %v3253_v62 = vmul.f32 %v18196_v7, %v19313_v29 }
0x188e   : > { %v3262_v9 = vmul.f32 %v3260_v61, %v3254_v8  ;;  %18199 = vrsqrt.f32 %v3248_v28 }
0x188f   : > { %v3261_v27 = vmul.f32 %v3260_v61, %v3253_v62 }
0x1890   : > { %v3270_v39 = vadd.f32 %v3268_v0, %v3262_v9 }
0x1891   : > { %v3269_v10 = vadd.f32 %v3268_v0, %v3261_v27 }
0x1893   : > { %15531 = vmatprep.mubr.msk.f32.mxu0 %vm576_vm2, %v3269_v10 }
0x1894   : > { %v18198_v41 = vpop.eup %18197  ;;  %15532 = vmatmul.mubr.msk.f32.vlgmr.msra.gmra.mrb[40].mxu0 %vm576_vm2, %v3270_v39 }
0x1895   : > { %v3255_v11 = vmul.f32 %v18198_v41, %v19321_v32 }
0x1897   : > { %v3263_v12 = vmul.f32 %v3260_v61, %v3255_v11 }
0x1898   : > { %v18200_v19 = vpop.eup %18199 }
0x1899   : > { %v3271_v26 = vadd.f32 %v3268_v0, %v3263_v12  ;;  %v3256_v29 = vmul.f32 %v18200_v19, %v19325_v1 }
0x189b   : > { %15534 = vmatprep.mubr.msk.f32.mxu0 %vm576_vm2, %v3271_v26  ;;  %v3264_v44 = vmul.f32 %v3260_v61, %v3256_v29  ;;  %v14216_v29 = vld [vmem:[%s21606_s3 + $0x40] sm:$0xff] }
0x189d   : > { %v3272_v43 = vadd.f32 %v3268_v0, %v3264_v44  ;;  %v14217_v44 = vld [vmem:[%s21606_s3 + $0x48] sm:$0xff] }
0x189e   : > { %v16798_v45 = vpack.c.bf16 %v14217_v44, %v14216_v29 }
0x189f   : > { %15535 = vmatmul.mubr.msk.f32.gmra.mrb[42].mxu0 %vm576_vm2, %v3272_v43 }
0x18a0   : > { %16799 = vmatprep.subr.bf16.mxu0 %v16798_v45 }
0x18a1   : > { %16801 = vmatpush3.bf16.msra.mxu0 %v16798_v45 }
0x1967   : > { %v15533_v32 = vpop.f32.mrb[40].mxu0 }
0x1968   : > { %v3361_v33 = vadd.f32 %v15533_v32, %v14207_v31  ;;  %v3355_v34 = vpop.f32.mrb[41].mxu0 }
0x1969   : > { %v3356_v15 = vadd.f32 %v14207_v31, %v3355_v34 }
0x196a   : > { %v3375_v2 = vmax.f32 %v3361_v33, 0.0 }
0x196b   : > { %v3374_v1 = vmax.f32 %v3356_v15, 0.0 }
0x196d   : > { %15553 = vmatprep.mubr.msk.f32.mxu1 %vm3382_vm10, %v3374_v1 }
0x196e   : > { %15554 = vmatmul.mubr.msk.f32.vlgmr.msra.gmra.mrb[40].mxu1 %vm3382_vm10, %v3375_v2 }
0x1972   : > { %v15536_v14 = vpop.f32.mrb[42].mxu0 }
0x1973   : > { %v3371_v3 = vadd.f32 %v15536_v14, %v14207_v31  ;;  %v3365_v4 = vpop.f32.mrb[43].mxu0 }
0x1974   : > { %v3366_v30 = vadd.f32 %v14207_v31, %v3365_v4 }
0x1975   : > { %v3377_v38 = vmax.f32 %v3371_v3, 0.0 }
0x1976   : > { %v3376_v37 = vmax.f32 %v3366_v30, 0.0  ;;  %v19418_v30 = vsub.s32 5, %v18759_v35 }
0x1978   : > { %15556 = vmatprep.mubr.msk.f32.mxu1 %vm3382_vm10, %v3376_v37  ;;  %v3539_v37 = vrot.slane %v19299_v49, %v18762_v36 }
0x1979   : > { %15557 = vmatmul.mubr.msk.f32.gmra.mrb[42].mxu1 %vm3382_vm10, %v3377_v38 }
0x1a41   : > { %v15555_v21 = vpop.f32.mrb[40].mxu1 }
0x1a42   : > { %v3467_v22 = vadd.f32 %v15555_v21, %v3381_v20  ;;  %v3461_v23 = vpop.f32.mrb[41].mxu1 }
0x1a43   : > { %v3462_v24 = vadd.f32 %v3461_v23, %v3381_v20 }
0x1a44   : > { %v3481_v18 = vadd.f32 %v3467_v22, %v3270_v39 }
0x1a45   : > { %v3480_v13 = vadd.f32 %v3462_v24, %v3269_v10 }
0x1a46   : > { %v3487_v25 = vsel %vm576_vm2, %v3481_v18, 0.0 }
0x1a47   : > { %3488 = vadd.xlane.f32.xlu0 %v3487_v25  ;;  %v3484_v46 = vsel %vm576_vm2, %v3480_v13, 0.0 }
0x1a48   : > { %3485 = vadd.xlane.f32.xlu1 %v3484_v46 }
0x1a4c   : > { %v15558_v17 = vpop.f32.mrb[42].mxu1 }
0x1a4d   : > { %v3477_v42 = vadd.f32 %v15558_v17, %v3381_v20  ;;  %v3471_v47 = vpop.f32.mrb[43].mxu1 }
0x1a4e   : > { %v3472_v16 = vadd.f32 %v3471_v47, %v3381_v20 }
0x1a4f   : > { %v3483_v48 = vadd.f32 %v3477_v42, %v3272_v43  ;;  %v14218_v43 = vld [vmem:[%s21606_s3 + $0x50] sm:$0xff] }
0x1a50   : > { %v3482_v50 = vadd.f32 %v3472_v16, %v3271_v26  ;;  %v16802_v59 = vpack.c.bf16 %v14219_v55, %v14218_v43 }
0x1a51   : > { %v3493_v52 = vsel %vm576_vm2, %v3483_v48, 0.0 }
0x1a52   : > { %3494 = vadd.xlane.f32.xlu0 %v3493_v52  ;;  %v3490_v53 = vsel %vm576_vm2, %v3482_v50, 0.0  ;;  %16803 = vmatprep.subr.bf16.mxu0 %v16802_v59 }
0x1a53   : > { %3491 = vadd.xlane.f32.xlu1 %v3490_v53  ;;  %16805 = vmatpush3.bf16.msra.mxu0 %v16802_v59 }
0x1ad4   : > { %v3489_v56 = vpop.xlane.xlu0 %3488 }
0x1ad5   : > { %v3497_v60 = vmul.f32 0.03125, %v3489_v56  ;;  %v3486_v51 = vpop.xlane.xlu1 %3485  ;;  %v14221_v56 = vld [vmem:[%s21606_s3 + $0x68] sm:$0xff] }
0x1ad6   : > { %v3496_v61 = vmul.f32 0.03125, %v3486_v51 }
0x1ad7   : > { %v3501_v5 = vsub.f32 %v3481_v18, %v3497_v60  ;;  %v3547_v18 = vrot.slane %v19299_v49, %v19418_v30  ;;  %v14220_v60 = vld [vmem:[%s21606_s3 + $0x60] sm:$0xff] }
0x1ad8   : > { %v3500_v6 = vsub.f32 %v3480_v13, %v3496_v61 }
0x1ad9   : > { %v3505_v7 = vmul.f32 %v3501_v5, %v3501_v5 }
0x1ada   : > { %v3504_v8 = vmul.f32 %v3500_v6, %v3500_v6 }
0x1adb   : > { %v3511_v28 = vsel %vm576_vm2, %v3505_v7, 0.0 }
0x1adc   : > { %3512 = vadd.xlane.f32.xlu0 %v3511_v28  ;;  %v3508_v62 = vsel %vm576_vm2, %v3504_v8, 0.0  ;;  %v14223_v8 = vld [vmem:[%s21606_s3 + $0x78] sm:$0xff]  ;;  %v14222_v28 = vld [vmem:[%s21606_s3 + $0x70] sm:$0xff]  ;;  %s21624_s3 = smov 112  }
0x1add   : > { %3509 = vadd.xlane.f32.xlu1 %v3508_v62 }
0x1adf   : > { %v3495_v0 = vpop.xlane.xlu0 %3494 }
0x1ae0   : > { %v3499_v9 = vmul.f32 0.03125, %v3495_v0  ;;  %v3492_v27 = vpop.xlane.xlu1 %3491 }
0x1ae1   : > { %v3498_v10 = vmul.f32 0.03125, %v3492_v27 }
0x1ae2   : > { %v3503_v39 = vsub.f32 %v3483_v48, %v3499_v9 }
0x1ae3   : > { %v3502_v41 = vsub.f32 %v3482_v50, %v3498_v10 }
0x1ae4   : > { %v3507_v11 = vmul.f32 %v3503_v39, %v3503_v39 }
0x1ae5   : > { %v3506_v12 = vmul.f32 %v3502_v41, %v3502_v41 }
0x1ae6   : > { %v3517_v19 = vsel %vm576_vm2, %v3507_v11, 0.0 }
0x1ae7   : > { %3518 = vadd.xlane.f32.xlu0 %v3517_v19  ;;  %v3514_v26 = vsel %vm576_vm2, %v3506_v12, 0.0 }
0x1ae8   : > { %3515 = vadd.xlane.f32.xlu1 %v3514_v26 }
0x1b69   : > { %v3513_v31 = vpop.xlane.xlu0 %3512 }
0x1b6a   : > { %v3521_v32 = vmul.f32 0.03125, %v3513_v31  ;;  %v3510_v33 = vpop.xlane.xlu1 %3509 }
0x1b6b   : > { %v3520_v34 = vmul.f32 0.03125, %v3510_v33 }
0x1b6c   : > { %v3525_v15 = vadd.f32 1e-05, %v3521_v32 }
0x1b6d   : > { %v3524_v1 = vadd.f32 1e-05, %v3520_v34 }
0x1b6e   : > { %18201 = vrsqrt.f32 %v3525_v15 }
0x1b6f   : > { %18203 = vrsqrt.f32 %v3524_v1 }
0x1b74   : > { %v3519_v2 = vpop.xlane.xlu0 %3518 }
0x1b75   : > { %v3523_v14 = vmul.f32 0.03125, %v3519_v2  ;;  %v3516_v3 = vpop.xlane.xlu1 %3515 }
0x1b76   : > { %v3522_v4 = vmul.f32 0.03125, %v3516_v3 }
0x1b77   : > { %v3527_v38 = vadd.f32 1e-05, %v3523_v14 }
0x1b78   : > { %v18202_v20 = vpop.eup %18201  ;;  %v3526_v21 = vadd.f32 1e-05, %v3522_v4 }
0x1b79   : > { %v18204_v22 = vpop.eup %18203  ;;  %v3533_v23 = vmul.f32 %v18202_v20, %v3501_v5  ;;  %18205 = vrsqrt.f32 %v3527_v38 }
0x1b7a   : > { %18207 = vrsqrt.f32 %v3526_v21  ;;  %v3532_v24 = vmul.f32 %v18204_v22, %v3500_v6 }
0x1b7b   : > { %v3541_v13 = vmul.f32 %v3539_v37, %v3533_v23 }
0x1b7c   : > { %v3540_v25 = vmul.f32 %v3539_v37, %v3532_v24 }
0x1b7d   : > { %v19426_v17 = vadd.f32 %v3547_v18, %v3541_v13 }
0x1b7e   : > { %v19424_v46 = vadd.f32 %v3547_v18, %v3540_v25 }
0x1b80   : > { %15567 = vmatprep.mubr.msk.f32.mxu0 %vm576_vm2, %v19424_v46 }
0x1b81   : > { %15568 = vmatmul.mubr.msk.f32.vlgmr.msra.gmra.mrb[44].mxu0 %vm576_vm2, %v19426_v17 }
0x1b83   : > { %v18206_v42 = vpop.eup %18205 }
0x1b84   : > { %v18208_v47 = vpop.eup %18207  ;;  %v3535_v16 = vmul.f32 %v18206_v42, %v3503_v39 }
0x1b85   : > { %v3534_v48 = vmul.f32 %v18208_v47, %v3502_v41 }
0x1b86   : > { %v3543_v50 = vmul.f32 %v3539_v37, %v3535_v16 }
0x1b87   : > { %v3542_v52 = vmul.f32 %v3539_v37, %v3534_v48 }
0x1b88   : > { %v19434_v49 = vadd.f32 %v3547_v18, %v3543_v50 }
0x1b89   : > { %v19432_v53 = vadd.f32 %v3547_v18, %v3542_v52 }
0x1b8b   : > { %15570 = vmatprep.mubr.msk.f32.mxu0 %vm576_vm2, %v19432_v53 }
0x1b8c   : > { %15571 = vmatmul.mubr.msk.f32.gmra.mrb[46].mxu0 %vm576_vm2, %v19434_v49 }
0x1c54   : > { %v15569_v51 = vpop.f32.mrb[44].mxu0 }
0x1c55   : > { %v19446_v61 = vadd.f32 %v15569_v51, %v14221_v56  ;;  %v3659_v5 = vpop.f32.mrb[45].mxu0 }
0x1c56   : > { %v19448_v6 = vadd.f32 %v14220_v60, %v3659_v5 }
0x1c58   : > { %15581 = vmatprep.mubr.msk.f32.mxu0 %vm449_vm1, %v19448_v6  ;;  %v19454_v7 = vpack.i.bf16 %v19446_v61, %v19448_v6 }
0x1c5a   : > { %17586 = vrot.lane.b32.xlu1 %v19454_v7, %s21612_s17 }
0x1c5f   : > { %v15572_v62 = vpop.f32.mrb[46].mxu0 }
0x1c60   : > { %v19464_v0 = vadd.f32 %v15572_v62, %v14223_v8  ;;  %v3669_v9 = vpop.f32.mrb[47].mxu0 }
0x1c61   : > { %v19466_v27 = vadd.f32 %v14222_v28, %v3669_v9 }
0x1c63   : > { %v19470_v10 = vpack.i.bf16 %v19464_v0, %v19466_v27 }
0x1c65   : > { %17591 = vrot.lane.b32.xlu0 %v19470_v10, %s21612_s17 }
0x1ccc   : > { %v17587_v39 = vpop.permute.xlu1 %17586 }
0x1ccd   : > { %v17589_v41 = vunpack.i.h.bf16 %v17587_v39  ;;  %v17588_v11 = vunpack.i.l.bf16 %v17587_v39 }
0x1ccf   : > { %v16806_v12 = vpack.c.bf16 %v17589_v41, %v17588_v11 }
0x1cd1   : > { %16808 = vmatprep.subr.msk.bf16.mxu0 %vm18817_vm3, %v16806_v12 }
0x1cd2   : > { %16811 = vmatpush3.bf16.xpose.msk.msra.mxu0 %vm18817_vm3, %v16806_v12 }
0x1cd7   : > { %v17592_v19 = vpop.permute.xlu0 %17591 }
0x1cd8   : > { %v17594_v26 = vunpack.i.h.bf16 %v17592_v19  ;;  %v17593_v29 = vunpack.i.l.bf16 %v17592_v19 }
0x1cda   : > { %v16812_v44 = vpack.c.bf16 %v17594_v26, %v17593_v29 }
0x1cdc   : > { %16814 = vmatprep.subr.msk.bf16.mxu0 %vm18817_vm3, %v16812_v44 }
0x1cdd   : > { %16817 = vmatpush3.bf16.xpose.msk.msra.mxu0 %vm18817_vm3, %v16812_v44 }
0x1ce4   : > { %15582 = vmatmul.mubr.msk.f32.vlgmr.msra.gmra.mrb[48].mxu0 %vm449_vm1, %v19446_v61 }
0x1ce5   : > { %15584 = vmatprep.mubr.msk.f32.mxu0 %vm449_vm1, %v19466_v27 }
0x1ce8   : > { %15585 = vmatmul.mubr.msk.f32.gmra.mrb[50].mxu0 %vm449_vm1, %v19464_v0 }
0x1db7   : > { %v15583_v43 = vpop.f32.mrb[48].mxu0 }
0x1db8   : > { %v3772_v45 = vpop.f32.mrb[49].mxu0  ;;  %v3794_v55 = vsel %vm576_vm2, %v15583_v43, -inf }
0x1db9   : > { %3795 = vmax.xlane.f32.xlu0 %v3794_v55  ;;  %v3791_v59 = vsel %vm576_vm2, %v3772_v45, -inf }
0x1dba   : > { %3792 = vmax.xlane.f32.xlu1 %v3791_v59 }
0x1dbb   : > { %v15586_v31 = vpop.f32.mrb[50].mxu0 }
0x1dbc   : > { %v3782_v32 = vpop.f32.mrb[51].mxu0  ;;  %v3800_v33 = vsel %vm576_vm2, %v15586_v31, -inf }
0x1dbd   : > { %3801 = vmax.xlane.f32.xlu0 %v3800_v33  ;;  %v3797_v34 = vsel %vm576_vm2, %v3782_v32, -inf }
0x1dcb   : > { %17596 = vrot.lane.b32.xlu1 %v19454_v7, %s21613_s20 }
0x1def   : > { %3798 = vmax.xlane.f32.xlu1 %v3797_v34 }
0x1e00   : > { %17606 = vrot.lane.b32.xlu1 %v19454_v7, %s21614_s28 }
0x1e46   : > { %v3796_v15 = vpop.xlane.xlu0 %3795 }
0x1e47   : > { %v3804_v1 = vsub.f32 %v15583_v43, %v3796_v15  ;;  %v3793_v2 = vpop.xlane.xlu1 %3792 }
0x1e48   : > { %v3803_v14 = vsub.f32 %v3772_v45, %v3793_v2 }
0x1e49   : > { %v3809_v3 = vmul.f32 1.442695, %v3804_v1 }
0x1e4a   : > { %v3807_v4 = vmul.f32 1.442695, %v3803_v14  ;;  %v3802_v13 = vpop.xlane.xlu0 %3801 }
0x1e4b   : > { %18209 = vpow2.f32 %v3809_v3  ;;  %v17597_v37 = vpop.permute.xlu1 %17596  ;;  %v3806_v25 = vsub.f32 %v15586_v31, %v3802_v13 }
0x1e4c   : > { %18211 = vpow2.f32 %v3807_v4  ;;  %v17599_v38 = vunpack.i.h.bf16 %v17597_v37  ;;  %v17598_v20 = vunpack.i.l.bf16 %v17597_v37 }
0x1e4d   : > { %v3813_v42 = vmul.f32 1.442695, %v3806_v25 }
0x1e4e   : > { %v16818_v21 = vpack.c.bf16 %v17599_v38, %v17598_v20 }
0x1e4f   : > { %18213 = vpow2.f32 %v3813_v42 }
0x1e50   : > { %16819 = vmatprep.subr.bf16.mxu1 %v16818_v21 }
0x1e51   : > { %16821 = vmatpush3.bf16.msra.mxu1 %v16818_v21 }
0x1e55   : > { %v18210_v22 = vpop.eup %18209 }
0x1e56   : > { %v18212_v23 = vpop.eup %18211  ;;  %v3818_v24 = vsel %vm576_vm2, %v18210_v22, 0.0 }
0x1e57   : > { %3819 = vadd.xlane.f32.xlu0 %v3818_v24  ;;  %v3815_v18 = vsel %vm576_vm2, %v18212_v23, 0.0 }
0x1e58   : > { %3816 = vadd.xlane.f32.xlu1 %v3815_v18 }
0x1e59   : > { %v18214_v50 = vpop.eup %18213 }
0x1e5a   : > { %v3824_v56 = vsel %vm576_vm2, %v18214_v50, 0.0 }
0x1e69   : > { %17611 = vrot.lane.b32.xlu1 %v19470_v10, %s21614_s28 }
0x1e6d   : > { %17601 = vrot.lane.b32.xlu0 %v19470_v10, %s21613_s20 }
0x1e7c   : > { %v3799_v47 = vpop.xlane.xlu1 %3798 }
0x1e7d   : > { %v3805_v16 = vsub.f32 %v3782_v32, %v3799_v47 }
0x1e7f   : > { %v3811_v48 = vmul.f32 1.442695, %v3805_v16 }
0x1e80   : > { %v17607_v51 = vpop.permute.xlu1 %17606 }
0x1e81   : > { %18215 = vpow2.f32 %v3811_v48  ;;  %v17609_v62 = vunpack.i.h.bf16 %v17607_v51  ;;  %v17608_v9 = vunpack.i.l.bf16 %v17607_v51 }
0x1e83   : > { %v16826_v12 = vpack.c.bf16 %v17609_v62, %v17608_v9 }
0x1e8b   : > { %v18216_v52 = vpop.eup %18215 }
0x1e8c   : > { %3825 = vadd.xlane.f32.xlu0 %v3824_v56  ;;  %v3821_v60 = vsel %vm576_vm2, %v18216_v52, 0.0 }
0x1e8d   : > { %3822 = vadd.xlane.f32.xlu1 %v3821_v60 }
0x1e9e   : > { %3946 = vrot.lane.b32.xlu1 %v19446_v61, %s21615_s15 }
0x1ea2   : > { %3944 = vrot.lane.b32.xlu0 %v19448_v6, %s21615_s15  ;;  %3950 = vrot.lane.b32.xlu1 %v19464_v0, %s21615_s15 }
0x1ea6   : > { %3948 = vrot.lane.b32.xlu0 %v19466_v27, %s21615_s15 }
0x1ee4   : > { %v3820_v5 = vpop.xlane.xlu0 %3819 }
0x1ee5   : > { %18217 = vrcp.f32 %v3820_v5  ;;  %v3817_v8 = vpop.xlane.xlu1 %3816 }
0x1ee6   : > { %18219 = vrcp.f32 %v3817_v8 }
0x1ee8   : > { %v17602_v28 = vpop.permute.xlu0 %17601 }
0x1ee9   : > { %v17604_v39 = vunpack.i.h.bf16 %v17602_v28  ;;  %v17603_v41 = vunpack.i.l.bf16 %v17602_v28  ;;  %v17612_v26 = vpop.permute.xlu1 %17611 }
0x1eea   : > { %v17614_v45 = vunpack.i.h.bf16 %v17612_v26  ;;  %v17613_v55 = vunpack.i.l.bf16 %v17612_v26 }
0x1eeb   : > { %v16822_v11 = vpack.c.bf16 %v17604_v39, %v17603_v41 }
0x1eec   : > { %v16832_v59 = vpack.c.bf16 %v17614_v45, %v17613_v55 }
0x1eed   : > { %16823 = vmatprep.subr.bf16.mxu1 %v16822_v11 }
0x1eee   : > { %16825 = vmatpush3.bf16.msra.mxu1 %v16822_v11 }
0x1eef   : > { %v18218_v19 = vpop.eup %18217  ;;  %16828 = vmatprep.subr.msk.bf16.mxu1 %vm18817_vm3, %v16826_v12 }
0x1ef0   : > { %v18220_v29 = vpop.eup %18219  ;;  %v3830_v43 = vmul.f32 %v18218_v19, %v18210_v22 }
0x1ef1   : > { %v3828_v44 = vmul.f32 %v18220_v29, %v18212_v23 }
0x1ef3   : > { %15595 = vmatprep.mubr.msk.f32.mxu1 %vm576_vm2, %v3828_v44 }
0x1ef4   : > { %15596 = vmatmul.mubr.msk.f32.vlgmr.msra.gmra.mrb[44].mxu1 %vm576_vm2, %v3830_v43 }
0x1ef7   : > { %16831 = vmatpush3.bf16.xpose.msk.msra.mxu1 %vm18817_vm3, %v16826_v12 }
0x1ef8   : > { %16834 = vmatprep.subr.msk.bf16.mxu1 %vm18817_vm3, %v16832_v59 }
0x1eff   : > { %16837 = vmatpush3.bf16.xpose.msk.msra.mxu1 %vm18817_vm3, %v16832_v59 }
0x1f19   : > { %v3826_v31 = vpop.xlane.xlu0 %3825 }
0x1f1a   : > { %18221 = vrcp.f32 %v3826_v31  ;;  %v3823_v32 = vpop.xlane.xlu1 %3822 }
0x1f1b   : > { %18223 = vrcp.f32 %v3823_v32 }
0x1f1d   : > { %v3945_v1 = vpop.permute.xlu0 %3944 }
0x1f1e   : > { %v3947_v14 = vpop.permute.xlu1 %3946 }
0x1f21   : > { %v3949_v3 = vpop.permute.xlu0 %3948 }
0x1f22   : > { %v3951_v4 = vpop.permute.xlu1 %3950 }
0x1f24   : > { %v18222_v33 = vpop.eup %18221 }
0x1f25   : > { %v18224_v34 = vpop.eup %18223  ;;  %v3834_v2 = vmul.f32 %v18222_v33, %v18214_v50 }
0x1f26   : > { %v3832_v15 = vmul.f32 %v18224_v34, %v18216_v52 }
0x1f28   : > { %15598 = vmatprep.mubr.msk.f32.mxu1 %vm576_vm2, %v3832_v15 }
0x1f29   : > { %15599 = vmatmul.mubr.msk.f32.gmra.mrb[46].mxu1 %vm576_vm2, %v3834_v2 }
0x1f2a   : > { %15609 = vmatprep.mubr.msk.f32.mxu1 %vm449_vm1, %v3945_v1 }
0x1f2d   : > { %15610 = vmatmul.mubr.msk.f32.vlgmr.msra.gmra.mrb[48].mxu1 %vm449_vm1, %v3947_v14 }
0x1f2e   : > { %15612 = vmatprep.mubr.msk.f32.mxu1 %vm449_vm1, %v3949_v3 }
0x1f31   : > { %15613 = vmatmul.mubr.msk.f32.gmra.mrb[50].mxu1 %vm449_vm1, %v3951_v4 }
0x1fc7   : > { %v19528_v37 = vpop.f32.mrb[44].mxu1 }
0x1fc8   : > { %v19530_v38 = vpop.f32.mrb[45].mxu1 }
0x1ffc   : > { %v19532_v20 = vpop.f32.mrb[46].mxu1 }
0x1ffd   : > { %v19534_v21 = vpop.f32.mrb[47].mxu1 }
0x2000   : > { %v15611_v22 = vpop.f32.mrb[48].mxu1 }
0x2001   : > { %v4042_v23 = vpop.f32.mrb[49].mxu1  ;;  %v4064_v24 = vsel %vm576_vm2, %v15611_v22, -inf }
0x2002   : > { %4065 = vmax.xlane.f32.xlu1 %v4064_v24  ;;  %v4061_v18 = vsel %vm576_vm2, %v4042_v23, -inf }
0x2003   : > { %4062 = vmax.xlane.f32.xlu0 %v4061_v18 }
0x2004   : > { %v15614_v13 = vpop.f32.mrb[50].mxu1 }
0x2005   : > { %v4052_v25 = vpop.f32.mrb[51].mxu1  ;;  %v4070_v47 = vsel %vm576_vm2, %v15614_v13, -inf }
0x2006   : > { %v4067_v42 = vsel %vm576_vm2, %v4052_v25, -inf }
0x2007   : > { %4068 = vmax.xlane.f32.xlu0 %v4067_v42 }
0x200b   : > { %4071 = vmax.xlane.f32.xlu0 %v4070_v47 }
0x2013   : > { %17616 = vrot.lane.b32.xlu1 %v19454_v7, %s21616_s0 }
0x2017   : > { %17626 = vrot.lane.b32.xlu1 %v19454_v7, %s21617_s16 }
0x208f   : > { %v4066_v16 = vpop.xlane.xlu1 %4065 }
0x2090   : > { %v4074_v48 = vsub.f32 %v15611_v22, %v4066_v16  ;;  %v4063_v50 = vpop.xlane.xlu0 %4062 }
0x2091   : > { %v4073_v52 = vsub.f32 %v4042_v23, %v4063_v50 }
0x2092   : > { %v4079_v56 = vmul.f32 1.442695, %v4074_v48 }
0x2093   : > { %v4077_v60 = vmul.f32 1.442695, %v4073_v52  ;;  %v17617_v51 = vpop.permute.xlu1 %17616 }
0x2094   : > { %18225 = vpow2.f32 %v4079_v56  ;;  %v17619_v5 = vunpack.i.h.bf16 %v17617_v51  ;;  %v17618_v8 = vunpack.i.l.bf16 %v17617_v51  ;;  %v4069_v11 = vpop.xlane.xlu0 %4068 }
0x2095   : > { %18227 = vpow2.f32 %v4077_v60  ;;  %v4075_v26 = vsub.f32 %v4052_v25, %v4069_v11 }
0x2096   : > { %v16838_v28 = vpack.c.bf16 %v17619_v5, %v17618_v8 }
0x2097   : > { %v4081_v44 = vmul.f32 1.442695, %v4075_v26  ;;  %v17627_v31 = vpop.permute.xlu1 %17626 }
0x2098   : > { %16839 = vmatprep.subr.bf16.mxu0 %v16838_v28  ;;  %v4072_v12 = vpop.xlane.xlu0 %4071  ;;  %v17629_v15 = vunpack.i.h.bf16 %v17627_v31  ;;  %v17628_v1 = vunpack.i.l.bf16 %v17627_v31 }
0x2099   : > { %16841 = vmatpush3.bf16.msra.mxu0 %v16838_v28  ;;  %v4076_v19 = vsub.f32 %v15614_v13, %v4072_v12 }
0x209a   : > { %v16846_v4 = vpack.c.bf16 %v17629_v15, %v17628_v1 }
0x209b   : > { %v4083_v29 = vmul.f32 1.442695, %v4076_v19 }
0x209d   : > { %18229 = vpow2.f32 %v4083_v29 }
0x209e   : > { %v18226_v62 = vpop.eup %18225  ;;  %18231 = vpow2.f32 %v4081_v44 }
0x209f   : > { %v18228_v9 = vpop.eup %18227  ;;  %v4088_v39 = vsel %vm576_vm2, %v18226_v62, 0.0 }
0x20a0   : > { %4089 = vadd.xlane.f32.xlu0 %v4088_v39  ;;  %v4085_v41 = vsel %vm576_vm2, %v18228_v9, 0.0 }
0x20a1   : > { %4086 = vadd.xlane.f32.xlu1 %v4085_v41 }
0x20a7   : > { %v18230_v43 = vpop.eup %18229 }
0x20a8   : > { %v18232_v45 = vpop.eup %18231  ;;  %v4094_v55 = vsel %vm576_vm2, %v18230_v43, 0.0 }
0x20a9   : > { %v4091_v59 = vsel %vm576_vm2, %v18232_v45, 0.0 }
0x20b2   : > { %17631 = vrot.lane.b32.xlu1 %v19470_v10, %s21617_s16 }
0x20b6   : > { %17621 = vrot.lane.b32.xlu0 %v19470_v10, %s21616_s0  ;;  %s21622_s0 = smov 52  }
0x20d5   : > { %4095 = vadd.xlane.f32.xlu0 %v4094_v55 }
0x20d6   : > { %4092 = vadd.xlane.f32.xlu1 %v4091_v59 }
0x20e7   : > { %4216 = vrot.lane.b32.xlu1 %v19446_v61, %s21618_s18 }
0x20eb   : > { %4220 = vrot.lane.b32.xlu1 %v19464_v0, %s21618_s18  ;;  %4214 = vrot.lane.b32.xlu0 %v19448_v6, %s21618_s18 }
0x20ef   : > { %4218 = vrot.lane.b32.xlu0 %v19466_v27, %s21618_s18 }
0x212d   : > { %v4090_v32 = vpop.xlane.xlu0 %4089 }
0x212e   : > { %18233 = vrcp.f32 %v4090_v32  ;;  %v4087_v33 = vpop.xlane.xlu1 %4086 }
0x212f   : > { %18235 = vrcp.f32 %v4087_v33 }
0x2131   : > { %v17622_v34 = vpop.permute.xlu0 %17621 }
0x2132   : > { %v17624_v2 = vunpack.i.h.bf16 %v17622_v34  ;;  %v17623_v14 = vunpack.i.l.bf16 %v17622_v34  ;;  %v17632_v23 = vpop.permute.xlu1 %17631 }
0x2133   : > { %v17634_v25 = vunpack.i.h.bf16 %v17632_v23  ;;  %v17633_v42 = vunpack.i.l.bf16 %v17632_v23 }
0x2134   : > { %v16842_v3 = vpack.c.bf16 %v17624_v2, %v17623_v14 }
0x2135   : > { %v16852_v47 = vpack.c.bf16 %v17634_v25, %v17633_v42 }
0x2136   : > { %16843 = vmatprep.subr.bf16.mxu0 %v16842_v3 }
0x2137   : > { %16845 = vmatpush3.bf16.msra.mxu0 %v16842_v3 }
0x2138   : > { %v18234_v22 = vpop.eup %18233  ;;  %16848 = vmatprep.subr.msk.bf16.mxu0 %vm18817_vm3, %v16846_v4 }
0x2139   : > { %v18236_v24 = vpop.eup %18235  ;;  %v4100_v13 = vmul.f32 %v18234_v22, %v18226_v62 }
0x213a   : > { %v4098_v18 = vmul.f32 %v18236_v24, %v18228_v9 }
0x213c   : > { %15623 = vmatprep.mubr.msk.f32.mxu0 %vm576_vm2, %v4098_v18 }
0x213d   : > { %15624 = vmatmul.mubr.msk.f32.vlgmr.msra.gmra.mrb[52].mxu0 %vm576_vm2, %v4100_v13 }
0x2140   : > { %16851 = vmatpush3.bf16.xpose.msk.msra.mxu0 %vm18817_vm3, %v16846_v4 }
0x2141   : > { %16854 = vmatprep.subr.msk.bf16.mxu0 %vm18817_vm3, %v16852_v47 }
0x2148   : > { %16857 = vmatpush3.bf16.xpose.msk.msra.mxu0 %vm18817_vm3, %v16852_v47 }
0x2162   : > { %v4096_v16 = vpop.xlane.xlu0 %4095 }
0x2163   : > { %18237 = vrcp.f32 %v4096_v16  ;;  %v4093_v48 = vpop.xlane.xlu1 %4092 }
0x2164   : > { %18239 = vrcp.f32 %v4093_v48 }
0x2166   : > { %v4215_v60 = vpop.permute.xlu0 %4214 }
0x2167   : > { %v4217_v5 = vpop.permute.xlu1 %4216 }
0x216a   : > { %v4219_v8 = vpop.permute.xlu0 %4218 }
0x216b   : > { %v4221_v28 = vpop.permute.xlu1 %4220 }
0x216d   : > { %v18238_v50 = vpop.eup %18237 }
0x216e   : > { %v18240_v52 = vpop.eup %18239  ;;  %v4104_v51 = vmul.f32 %v18238_v50, %v18230_v43 }
0x216f   : > { %v4102_v56 = vmul.f32 %v18240_v52, %v18232_v45 }
0x2171   : > { %15626 = vmatprep.mubr.msk.f32.mxu0 %vm576_vm2, %v4102_v56 }
0x2172   : > { %15627 = vmatmul.mubr.msk.f32.gmra.mrb[54].mxu0 %vm576_vm2, %v4104_v51 }
0x2173   : > { %15637 = vmatprep.mubr.msk.f32.mxu0 %vm449_vm1, %v4215_v60 }
0x2176   : > { %15638 = vmatmul.mubr.msk.f32.vlgmr.msra.gmra.mrb[56].mxu0 %vm449_vm1, %v4217_v5 }
0x2177   : > { %15640 = vmatprep.mubr.msk.f32.mxu0 %vm449_vm1, %v4219_v8 }
0x217a   : > { %15641 = vmatmul.mubr.msk.f32.gmra.mrb[58].mxu0 %vm449_vm1, %v4221_v28 }
0x2210   : > { %v19576_v62 = vpop.f32.mrb[52].mxu0 }
0x2211   : > { %v19578_v9 = vpop.f32.mrb[53].mxu0 }
0x2245   : > { %v19580_v39 = vpop.f32.mrb[54].mxu0 }
0x2246   : > { %v19582_v41 = vpop.f32.mrb[55].mxu0 }
0x2249   : > { %v15639_v11 = vpop.f32.mrb[56].mxu0 }
0x224a   : > { %v4312_v12 = vpop.f32.mrb[57].mxu0  ;;  %v4334_v19 = vsel %vm576_vm2, %v15639_v11, -inf }
0x224b   : > { %4335 = vmax.xlane.f32.xlu1 %v4334_v19  ;;  %v4331_v26 = vsel %vm576_vm2, %v4312_v12, -inf }
0x224c   : > { %4332 = vmax.xlane.f32.xlu0 %v4331_v26 }
0x224d   : > { %v15642_v29 = vpop.f32.mrb[58].mxu0 }
0x224e   : > { %v4322_v44 = vpop.f32.mrb[59].mxu0  ;;  %v4340_v45 = vsel %vm576_vm2, %v15642_v29, -inf }
0x224f   : > { %v4337_v43 = vsel %vm576_vm2, %v4322_v44, -inf }
0x2250   : > { %4338 = vmax.xlane.f32.xlu0 %v4337_v43 }
0x2254   : > { %4341 = vmax.xlane.f32.xlu0 %v4340_v45 }
0x225c   : > { %17636 = vrot.lane.b32.xlu1 %v19454_v7, %s21619_s2 }
0x2260   : > { %17646 = vrot.lane.b32.xlu1 %v19454_v7, %s21620_s30 }
0x22d8   : > { %v4336_v55 = vpop.xlane.xlu1 %4335 }
0x22d9   : > { %v4344_v59 = vsub.f32 %v15639_v11, %v4336_v55  ;;  %v4333_v31 = vpop.xlane.xlu0 %4332 }
0x22da   : > { %v4343_v32 = vsub.f32 %v4312_v12, %v4333_v31 }
0x22db   : > { %v4349_v33 = vmul.f32 1.442695, %v4344_v59 }
0x22dc   : > { %v4347_v34 = vmul.f32 1.442695, %v4343_v32  ;;  %v17637_v15 = vpop.permute.xlu1 %17636 }
0x22dd   : > { %18241 = vpow2.f32 %v4349_v33  ;;  %v17639_v1 = vunpack.i.h.bf16 %v17637_v15  ;;  %v17638_v2 = vunpack.i.l.bf16 %v17637_v15  ;;  %v4339_v24 = vpop.xlane.xlu0 %4338 }
0x22de   : > { %18243 = vpow2.f32 %v4347_v34  ;;  %v4345_v25 = vsub.f32 %v4322_v44, %v4339_v24 }
0x22df   : > { %v16858_v14 = vpack.c.bf16 %v17639_v1, %v17638_v2 }
0x22e0   : > { %v4351_v47 = vmul.f32 1.442695, %v4345_v25  ;;  %v17647_v56 = vpop.permute.xlu1 %17646 }
0x22e1   : > { %16859 = vmatprep.subr.bf16.mxu1 %v16858_v14  ;;  %v4342_v18 = vpop.xlane.xlu0 %4341  ;;  %v17649_v8 = vunpack.i.h.bf16 %v17647_v56  ;;  %v17648_v28 = vunpack.i.l.bf16 %v17647_v56 }
0x22e2   : > { %16861 = vmatpush3.bf16.msra.mxu1 %v16858_v14  ;;  %v4346_v13 = vsub.f32 %v15642_v29, %v4342_v18 }
0x22e3   : > { %v16866_v26 = vpack.c.bf16 %v17649_v8, %v17648_v28 }
0x22e4   : > { %v4353_v42 = vmul.f32 1.442695, %v4346_v13 }
0x22e6   : > { %18245 = vpow2.f32 %v4353_v42 }
0x22e7   : > { %v18242_v3 = vpop.eup %18241  ;;  %18247 = vpow2.f32 %v4351_v47 }
0x22e8   : > { %v18244_v4 = vpop.eup %18243  ;;  %v4358_v22 = vsel %vm576_vm2, %v18242_v3, 0.0 }
0x22e9   : > { %4359 = vadd.xlane.f32.xlu0 %v4358_v22  ;;  %v4355_v23 = vsel %vm576_vm2, %v18244_v4, 0.0 }
0x22ea   : > { %4356 = vadd.xlane.f32.xlu1 %v4355_v23 }
0x22f0   : > { %v18246_v16 = vpop.eup %18245 }
0x22f1   : > { %v18248_v48 = vpop.eup %18247  ;;  %v4364_v50 = vsel %vm576_vm2, %v18246_v16, 0.0 }
0x22f2   : > { %v4361_v52 = vsel %vm576_vm2, %v18248_v48, 0.0 }
0x22fb   : > { %17651 = vrot.lane.b32.xlu1 %v19470_v10, %s21620_s30 }
0x22ff   : > { %17641 = vrot.lane.b32.xlu0 %v19470_v10, %s21619_s2  ;;  %s21623_s2 = smov 80  }
0x231e   : > { %4365 = vadd.xlane.f32.xlu0 %v4364_v50 }
0x231f   : > { %4362 = vadd.xlane.f32.xlu1 %v4361_v52 }
0x2330   : > { %4486 = vrot.lane.b32.xlu1 %v19446_v61, %s21621_s19 }
0x2334   : > { %4490 = vrot.lane.b32.xlu1 %v19464_v0, %s21621_s19  ;;  %4484 = vrot.lane.b32.xlu0 %v19448_v6, %s21621_s19 }
0x2338   : > { %4488 = vrot.lane.b32.xlu0 %v19466_v27, %s21621_s19 }
0x2376   : > { %v4360_v60 = vpop.xlane.xlu0 %4359 }
0x2377   : > { %18249 = vrcp.f32 %v4360_v60  ;;  %v4357_v51 = vpop.xlane.xlu1 %4356 }
0x2378   : > { %18251 = vrcp.f32 %v4357_v51 }
0x237a   : > { %v17642_v5 = vpop.permute.xlu0 %17641 }
0x237b   : > { %v17644_v11 = vunpack.i.h.bf16 %v17642_v5  ;;  %v17643_v12 = vunpack.i.l.bf16 %v17642_v5  ;;  %v17652_v44 = vpop.permute.xlu1 %17651 }
0x237c   : > { %v17654_v59 = vunpack.i.h.bf16 %v17652_v44  ;;  %v17653_v31 = vunpack.i.l.bf16 %v17652_v44 }
0x237d   : > { %v16862_v19 = vpack.c.bf16 %v17644_v11, %v17643_v12 }
0x237e   : > { %v16872_v32 = vpack.c.bf16 %v17654_v59, %v17653_v31 }
0x237f   : > { %16863 = vmatprep.subr.bf16.mxu1 %v16862_v19 }
0x2380   : > { %16865 = vmatpush3.bf16.msra.mxu1 %v16862_v19 }
0x2381   : > { %v18250_v29 = vpop.eup %18249  ;;  %16868 = vmatprep.subr.msk.bf16.mxu1 %vm18817_vm3, %v16866_v26 }
0x2382   : > { %v18252_v43 = vpop.eup %18251  ;;  %v4370_v55 = vmul.f32 %v18250_v29, %v18242_v3 }
0x2383   : > { %v4368_v45 = vmul.f32 %v18252_v43, %v18244_v4 }
0x2385   : > { %15651 = vmatprep.mubr.msk.f32.mxu1 %vm576_vm2, %v4368_v45 }
0x2386   : > { %15652 = vmatmul.mubr.msk.f32.vlgmr.msra.gmra.mrb[52].mxu1 %vm576_vm2, %v4370_v55 }
0x2389   : > { %16871 = vmatpush3.bf16.xpose.msk.msra.mxu1 %vm18817_vm3, %v16866_v26 }
0x238a   : > { %16874 = vmatprep.subr.msk.bf16.mxu1 %vm18817_vm3, %v16872_v32 }
0x2391   : > { %16877 = vmatpush3.bf16.xpose.msk.msra.mxu1 %vm18817_vm3, %v16872_v32 }
0x23ab   : > { %v4366_v33 = vpop.xlane.xlu0 %4365 }
0x23ac   : > { %18253 = vrcp.f32 %v4366_v33  ;;  %v4363_v34 = vpop.xlane.xlu1 %4362 }
0x23ad   : > { %18255 = vrcp.f32 %v4363_v34 }
0x23af   : > { %v4485_v14 = vpop.permute.xlu0 %4484 }
0x23b0   : > { %v4487_v4 = vpop.permute.xlu1 %4486 }
0x23b3   : > { %v4489_v22 = vpop.permute.xlu0 %4488 }
0x23b4   : > { %v4491_v23 = vpop.permute.xlu1 %4490 }
0x23b6   : > { %v18254_v15 = vpop.eup %18253 }
0x23b7   : > { %v18256_v1 = vpop.eup %18255  ;;  %v4374_v3 = vmul.f32 %v18254_v15, %v18246_v16 }
0x23b8   : > { %v4372_v2 = vmul.f32 %v18256_v1, %v18248_v48 }
0x23ba   : > { %15654 = vmatprep.mubr.msk.f32.mxu1 %vm576_vm2, %v4372_v2 }
0x23bb   : > { %15655 = vmatmul.mubr.msk.f32.gmra.mrb[54].mxu1 %vm576_vm2, %v4374_v3 }
0x23bc   : > { %15665 = vmatprep.mubr.msk.f32.mxu1 %vm449_vm1, %v4485_v14 }
0x23bf   : > { %15666 = vmatmul.mubr.msk.f32.vlgmr.msra.gmra.mrb[56].mxu1 %vm449_vm1, %v4487_v4 }
0x23c0   : > { %15668 = vmatprep.mubr.msk.f32.mxu1 %vm449_vm1, %v4489_v22 }
0x23c3   : > { %15669 = vmatmul.mubr.msk.f32.gmra.mrb[58].mxu1 %vm449_vm1, %v4491_v23 }
0x2459   : > { %v19624_v24 = vpop.f32.mrb[52].mxu1 }
0x245a   : > { %v19626_v18 = vpop.f32.mrb[53].mxu1 }
0x248e   : > { %v19628_v13 = vpop.f32.mrb[54].mxu1 }
0x248f   : > { %v19630_v25 = vpop.f32.mrb[55].mxu1 }
0x2492   : > { %v15667_v42 = vpop.f32.mrb[56].mxu1 }
0x2493   : > { %v4582_v47 = vpop.f32.mrb[57].mxu1  ;;  %v4604_v16 = vsel %vm576_vm2, %v15667_v42, -inf }
0x2494   : > { %4605 = vmax.xlane.f32.xlu1 %v4604_v16  ;;  %v4601_v48 = vsel %vm576_vm2, %v4582_v47, -inf }
0x2495   : > { %4602 = vmax.xlane.f32.xlu0 %v4601_v48 }
0x2496   : > { %v15670_v50 = vpop.f32.mrb[58].mxu1 }
0x2497   : > { %v4592_v52 = vpop.f32.mrb[59].mxu1  ;;  %v4610_v60 = vsel %vm576_vm2, %v15670_v50, -inf }
0x2498   : > { %v4607_v56 = vsel %vm576_vm2, %v4592_v52, -inf }
0x2499   : > { %4608 = vmax.xlane.f32.xlu0 %v4607_v56 }
0x249d   : > { %4611 = vmax.xlane.f32.xlu0 %v4610_v60 }
0x24a5   : > { %17656 = vrot.lane.b32.xlu1 %v19454_v7, %s21622_s0 }
0x24a9   : > { %17666 = vrot.lane.b32.xlu1 %v19454_v7, %s21623_s2 }
0x2521   : > { %v4606_v51 = vpop.xlane.xlu1 %4605 }
0x2522   : > { %v4614_v5 = vsub.f32 %v15667_v42, %v4606_v51  ;;  %v4603_v8 = vpop.xlane.xlu0 %4602 }
0x2523   : > { %v4613_v28 = vsub.f32 %v4582_v47, %v4603_v8 }
0x2524   : > { %v4619_v11 = vmul.f32 1.442695, %v4614_v5 }
0x2525   : > { %v4617_v12 = vmul.f32 1.442695, %v4613_v28  ;;  %v17657_v19 = vpop.permute.xlu1 %17656 }
0x2526   : > { %18257 = vpow2.f32 %v4619_v11  ;;  %v17659_v26 = vunpack.i.h.bf16 %v17657_v19  ;;  %v17658_v29 = vunpack.i.l.bf16 %v17657_v19  ;;  %v4609_v31 = vpop.xlane.xlu0 %4608 }
0x2527   : > { %18259 = vpow2.f32 %v4617_v12  ;;  %v4615_v34 = vsub.f32 %v4592_v52, %v4609_v31 }
0x2528   : > { %v16878_v44 = vpack.c.bf16 %v17659_v26, %v17658_v29 }
0x2529   : > { %v4621_v1 = vmul.f32 1.442695, %v4615_v34  ;;  %v17667_v22 = vpop.permute.xlu1 %17666 }
0x252a   : > { %16879 = vmatprep.subr.bf16.mxu0 %v16878_v44  ;;  %v4612_v32 = vpop.xlane.xlu0 %4611  ;;  %v17669_v16 = vunpack.i.h.bf16 %v17667_v22  ;;  %v17668_v48 = vunpack.i.l.bf16 %v17667_v22 }
0x252b   : > { %16881 = vmatpush3.bf16.msra.mxu0 %v16878_v44  ;;  %v4616_v33 = vsub.f32 %v15670_v50, %v4612_v32 }
0x252c   : > { %v16886_v60 = vpack.c.bf16 %v17669_v16, %v17668_v48 }
0x252d   : > { %v4623_v15 = vmul.f32 1.442695, %v4616_v33 }
0x252f   : > { %18261 = vpow2.f32 %v4623_v15 }
0x2530   : > { %v18258_v43 = vpop.eup %18257  ;;  %18263 = vpow2.f32 %v4621_v1 }
0x2531   : > { %v18260_v45 = vpop.eup %18259  ;;  %v4628_v55 = vsel %vm576_vm2, %v18258_v43, 0.0 }
0x2532   : > { %4629 = vadd.xlane.f32.xlu0 %v4628_v55  ;;  %v4625_v59 = vsel %vm576_vm2, %v18260_v45, 0.0 }
0x2533   : > { %4626 = vadd.xlane.f32.xlu1 %v4625_v59 }
0x2539   : > { %v18262_v2 = vpop.eup %18261 }
0x253a   : > { %v18264_v14 = vpop.eup %18263  ;;  %v4634_v3 = vsel %vm576_vm2, %v18262_v2, 0.0 }
0x253b   : > { %v4631_v4 = vsel %vm576_vm2, %v18264_v14, 0.0 }
0x2544   : > { %17671 = vrot.lane.b32.xlu1 %v19470_v10, %s21623_s2 }
0x2548   : > { %17661 = vrot.lane.b32.xlu0 %v19470_v10, %s21622_s0  ;;  %s21625_s0 = smov 48  }
0x2567   : > { %4635 = vadd.xlane.f32.xlu0 %v4634_v3 }
0x2568   : > { %4632 = vadd.xlane.f32.xlu1 %v4631_v4 }
0x2579   : > { %4756 = vrot.lane.b32.xlu1 %v19446_v61, %s21624_s3 }
0x257d   : > { %4760 = vrot.lane.b32.xlu1 %v19464_v0, %s21624_s3  ;;  %4754 = vrot.lane.b32.xlu0 %v19448_v6, %s21624_s3 }
0x2581   : > { %4758 = vrot.lane.b32.xlu0 %v19466_v27, %s21624_s3 }
0x25bf   : > { %v4630_v23 = vpop.xlane.xlu0 %4629 }
0x25c0   : > { %18265 = vrcp.f32 %v4630_v23  ;;  %v4627_v42 = vpop.xlane.xlu1 %4626 }
0x25c1   : > { %18267 = vrcp.f32 %v4627_v42 }
0x25c3   : > { %v17662_v47 = vpop.permute.xlu0 %17661 }
0x25c4   : > { %v17664_v50 = vunpack.i.h.bf16 %v17662_v47  ;;  %v17663_v52 = vunpack.i.l.bf16 %v17662_v47  ;;  %v17672_v5 = vpop.permute.xlu1 %17671 }
0x25c5   : > { %v17674_v12 = vunpack.i.h.bf16 %v17672_v5  ;;  %v17673_v19 = vunpack.i.l.bf16 %v17672_v5 }
0x25c6   : > { %v16882_v56 = vpack.c.bf16 %v17664_v50, %v17663_v52 }
0x25c7   : > { %v16892_v26 = vpack.c.bf16 %v17674_v12, %v17673_v19 }
0x25c8   : > { %16883 = vmatprep.subr.bf16.mxu0 %v16882_v56 }
0x25c9   : > { %16885 = vmatpush3.bf16.msra.mxu0 %v16882_v56 }
0x25ca   : > { %v18266_v51 = vpop.eup %18265  ;;  %16888 = vmatprep.subr.msk.bf16.mxu0 %vm18817_vm3, %v16886_v60 }
0x25cb   : > { %v18268_v8 = vpop.eup %18267  ;;  %v4640_v11 = vmul.f32 %v18266_v51, %v18258_v43 }
0x25cc   : > { %v4638_v28 = vmul.f32 %v18268_v8, %v18260_v45 }
0x25ce   : > { %15679 = vmatprep.mubr.msk.f32.mxu0 %vm576_vm2, %v4638_v28 }
0x25cf   : > { %15680 = vmatmul.mubr.msk.f32.vlgmr.msra.gmra.mrb[60].mxu0 %vm576_vm2, %v4640_v11 }
0x25d2   : > { %16891 = vmatpush3.bf16.xpose.msk.msra.mxu0 %vm18817_vm3, %v16886_v60 }
0x25d3   : > { %16894 = vmatprep.subr.msk.bf16.mxu0 %vm18817_vm3, %v16892_v26 }
0x25da   : > { %16897 = vmatpush3.bf16.xpose.msk.msra.mxu0 %vm18817_vm3, %v16892_v26 }
0x25f4   : > { %v4636_v29 = vpop.xlane.xlu0 %4635 }
0x25f5   : > { %18269 = vrcp.f32 %v4636_v29  ;;  %v4633_v44 = vpop.xlane.xlu1 %4632 }
0x25f6   : > { %18271 = vrcp.f32 %v4633_v44 }
0x25f8   : > { %v4755_v59 = vpop.permute.xlu0 %4754 }
0x25f9   : > { %v4757_v32 = vpop.permute.xlu1 %4756 }
0x25fc   : > { %v4759_v33 = vpop.permute.xlu0 %4758 }
0x25fd   : > { %v4761_v34 = vpop.permute.xlu1 %4760 }
0x25ff   : > { %v18270_v43 = vpop.eup %18269 }
0x2600   : > { %v18272_v45 = vpop.eup %18271  ;;  %v4644_v31 = vmul.f32 %v18270_v43, %v18262_v2 }
0x2601   : > { %v4642_v55 = vmul.f32 %v18272_v45, %v18264_v14 }
0x2603   : > { %15682 = vmatprep.mubr.msk.f32.mxu0 %vm576_vm2, %v4642_v55 }
0x2604   : > { %15683 = vmatmul.mubr.msk.f32.gmra.mrb[62].mxu0 %vm576_vm2, %v4644_v31 }
0x2605   : > { %15693 = vmatprep.mubr.msk.f32.mxu0 %vm449_vm1, %v4755_v59 }
0x2608   : > { %15694 = vmatmul.mubr.msk.f32.vlgmr.msra.gmra.mrb[64].mxu0 %vm449_vm1, %v4757_v32 }
0x2609   : > { %15696 = vmatprep.mubr.msk.f32.mxu0 %vm449_vm1, %v4759_v33 }
0x260c   : > { %15697 = vmatmul.mubr.msk.f32.gmra.mrb[66].mxu0 %vm449_vm1, %v4761_v34 }
0x26a2   : > { %v19672_v15 = vpop.f32.mrb[60].mxu0 }
0x26a3   : > { %v19674_v1 = vpop.f32.mrb[61].mxu0 }
0x26d7   : > { %v19676_v2 = vpop.f32.mrb[62].mxu0 }
0x26d8   : > { %v19678_v14 = vpop.f32.mrb[63].mxu0 }
0x26db   : > { %v15695_v3 = vpop.f32.mrb[64].mxu0 }
0x26dc   : > { %v4852_v4 = vpop.f32.mrb[65].mxu0  ;;  %v4874_v22 = vsel %vm576_vm2, %v15695_v3, -inf }
0x26dd   : > { %4875 = vmax.xlane.f32.xlu1 %v4874_v22  ;;  %v4871_v23 = vsel %vm576_vm2, %v4852_v4, -inf }
0x26de   : > { %4872 = vmax.xlane.f32.xlu0 %v4871_v23 }
0x26df   : > { %v15698_v42 = vpop.f32.mrb[66].mxu0 }
0x26e0   : > { %v4862_v47 = vpop.f32.mrb[67].mxu0  ;;  %v4880_v48 = vsel %vm576_vm2, %v15698_v42, -inf }
0x26e1   : > { %v4877_v16 = vsel %vm576_vm2, %v4862_v47, -inf }
0x26e2   : > { %4878 = vmax.xlane.f32.xlu0 %v4877_v16 }
0x26e6   : > { %4881 = vmax.xlane.f32.xlu0 %v4880_v48 }
0x26ee   : > { %17676 = vrot.lane.b32.xlu1 %v19454_v7, %s21625_s0 }
0x26f2   : > { %17686 = vrot.lane.b32.xlu1 %v19454_v7, %s21626_s23 }
0x276a   : > { %v4876_v50 = vpop.xlane.xlu1 %4875 }
0x276b   : > { %v4884_v52 = vsub.f32 %v15695_v3, %v4876_v50  ;;  %v4873_v56 = vpop.xlane.xlu0 %4872 }
0x276c   : > { %v4883_v60 = vsub.f32 %v4852_v4, %v4873_v56 }
0x276d   : > { %v4889_v51 = vmul.f32 1.442695, %v4884_v52 }
0x276e   : > { %v4887_v5 = vmul.f32 1.442695, %v4883_v60  ;;  %v17677_v8 = vpop.permute.xlu1 %17676 }
0x276f   : > { %18273 = vpow2.f32 %v4889_v51  ;;  %v17679_v28 = vunpack.i.h.bf16 %v17677_v8  ;;  %v17678_v11 = vunpack.i.l.bf16 %v17677_v8  ;;  %v4879_v43 = vpop.xlane.xlu0 %4878 }
0x2770   : > { %18275 = vpow2.f32 %v4887_v5  ;;  %v4885_v59 = vsub.f32 %v4862_v47, %v4879_v43 }
0x2771   : > { %v16898_v12 = vpack.c.bf16 %v17679_v28, %v17678_v11 }
0x2772   : > { %v4891_v32 = vmul.f32 1.442695, %v4885_v59  ;;  %v17687_v22 = vpop.permute.xlu1 %17686 }
0x2773   : > { %16899 = vmatprep.subr.bf16.mxu1 %v16898_v12  ;;  %v4882_v45 = vpop.xlane.xlu0 %4881  ;;  %v17689_v16 = vunpack.i.h.bf16 %v17687_v22  ;;  %v17688_v48 = vunpack.i.l.bf16 %v17687_v22 }
0x2774   : > { %16901 = vmatpush3.bf16.msra.mxu1 %v16898_v12  ;;  %v4886_v55 = vsub.f32 %v15698_v42, %v4882_v45 }
0x2775   : > { %v16906_v60 = vpack.c.bf16 %v17689_v16, %v17688_v48 }
0x2776   : > { %v4893_v31 = vmul.f32 1.442695, %v4886_v55 }
0x2778   : > { %18277 = vpow2.f32 %v4893_v31 }
0x2779   : > { %v18274_v19 = vpop.eup %18273  ;;  %18279 = vpow2.f32 %v4891_v32 }
0x277a   : > { %v18276_v26 = vpop.eup %18275  ;;  %v4898_v29 = vsel %vm576_vm2, %v18274_v19, 0.0 }
0x277b   : > { %4899 = vadd.xlane.f32.xlu0 %v4898_v29  ;;  %v4895_v44 = vsel %vm576_vm2, %v18276_v26, 0.0 }
0x277c   : > { %4896 = vadd.xlane.f32.xlu1 %v4895_v44 }
0x2782   : > { %v18278_v33 = vpop.eup %18277 }
0x2783   : > { %v18280_v34 = vpop.eup %18279  ;;  %v4904_v3 = vsel %vm576_vm2, %v18278_v33, 0.0 }
0x2784   : > { %v4901_v4 = vsel %vm576_vm2, %v18280_v34, 0.0 }
0x278d   : > { %17691 = vrot.lane.b32.xlu1 %v19470_v10, %s21626_s23 }
0x2791   : > { %17681 = vrot.lane.b32.xlu0 %v19470_v10, %s21625_s0  ;;  %s21628_s0 = smov 44  }
0x27b0   : > { %4905 = vadd.xlane.f32.xlu0 %v4904_v3 }
0x27b1   : > { %4902 = vadd.xlane.f32.xlu1 %v4901_v4 }
0x27c2   : > { %5026 = vrot.lane.b32.xlu1 %v19446_v61, %s21627_s27 }
0x27c6   : > { %5030 = vrot.lane.b32.xlu1 %v19464_v0, %s21627_s27  ;;  %5024 = vrot.lane.b32.xlu0 %v19448_v6, %s21627_s27 }
0x27ca   : > { %5028 = vrot.lane.b32.xlu0 %v19466_v27, %s21627_s27 }
0x2808   : > { %v4900_v23 = vpop.xlane.xlu0 %4899 }
0x2809   : > { %18281 = vrcp.f32 %v4900_v23  ;;  %v4897_v42 = vpop.xlane.xlu1 %4896 }
0x280a   : > { %18283 = vrcp.f32 %v4897_v42 }
0x280c   : > { %v17682_v47 = vpop.permute.xlu0 %17681 }
0x280d   : > { %v17684_v50 = vunpack.i.h.bf16 %v17682_v47  ;;  %v17683_v52 = vunpack.i.l.bf16 %v17682_v47  ;;  %v17692_v5 = vpop.permute.xlu1 %17691 }
0x280e   : > { %v17694_v12 = vunpack.i.h.bf16 %v17692_v5  ;;  %v17693_v29 = vunpack.i.l.bf16 %v17692_v5 }
0x280f   : > { %v16902_v56 = vpack.c.bf16 %v17684_v50, %v17683_v52 }
0x2810   : > { %v16912_v44 = vpack.c.bf16 %v17694_v12, %v17693_v29 }
0x2811   : > { %16903 = vmatprep.subr.bf16.mxu1 %v16902_v56 }
0x2812   : > { %16905 = vmatpush3.bf16.msra.mxu1 %v16902_v56 }
0x2813   : > { %v18282_v51 = vpop.eup %18281  ;;  %16908 = vmatprep.subr.msk.bf16.mxu1 %vm18817_vm3, %v16906_v60 }
0x2814   : > { %v18284_v8 = vpop.eup %18283  ;;  %v4910_v11 = vmul.f32 %v18282_v51, %v18274_v19 }
0x2815   : > { %v4908_v28 = vmul.f32 %v18284_v8, %v18276_v26 }
0x2817   : > { %15707 = vmatprep.mubr.msk.f32.mxu1 %vm576_vm2, %v4908_v28 }
0x2818   : > { %15708 = vmatmul.mubr.msk.f32.vlgmr.msra.gmra.mrb[60].mxu1 %vm576_vm2, %v4910_v11 }
0x281b   : > { %16911 = vmatpush3.bf16.xpose.msk.msra.mxu1 %vm18817_vm3, %v16906_v60 }
0x281c   : > { %16914 = vmatprep.subr.msk.bf16.mxu1 %vm18817_vm3, %v16912_v44 }
0x2823   : > { %16917 = vmatpush3.bf16.xpose.msk.msra.mxu1 %vm18817_vm3, %v16912_v44 }
0x283d   : > { %v4906_v43 = vpop.xlane.xlu0 %4905 }
0x283e   : > { %18285 = vrcp.f32 %v4906_v43  ;;  %v4903_v26 = vpop.xlane.xlu1 %4902 }
0x283f   : > { %18287 = vrcp.f32 %v4903_v26 }
0x2841   : > { %v5025_v59 = vpop.permute.xlu0 %5024 }
0x2842   : > { %v5027_v32 = vpop.permute.xlu1 %5026 }
0x2845   : > { %v5029_v3 = vpop.permute.xlu0 %5028 }
0x2846   : > { %v5031_v4 = vpop.permute.xlu1 %5030 }
0x2848   : > { %v18286_v19 = vpop.eup %18285 }
0x2849   : > { %v18288_v45 = vpop.eup %18287  ;;  %v4914_v31 = vmul.f32 %v18286_v19, %v18278_v33 }
0x284a   : > { %v4912_v55 = vmul.f32 %v18288_v45, %v18280_v34 }
0x284c   : > { %15710 = vmatprep.mubr.msk.f32.mxu1 %vm576_vm2, %v4912_v55 }
0x284d   : > { %15711 = vmatmul.mubr.msk.f32.gmra.mrb[62].mxu1 %vm576_vm2, %v4914_v31 }
0x284e   : > { %15721 = vmatprep.mubr.msk.f32.mxu1 %vm449_vm1, %v5025_v59 }
0x2851   : > { %15722 = vmatmul.mubr.msk.f32.vlgmr.msra.gmra.mrb[64].mxu1 %vm449_vm1, %v5027_v32 }
0x2852   : > { %15724 = vmatprep.mubr.msk.f32.mxu1 %vm449_vm1, %v5029_v3 }
0x2855   : > { %15725 = vmatmul.mubr.msk.f32.gmra.mrb[66].mxu1 %vm449_vm1, %v5031_v4 }
0x28eb   : > { %v19720_v22 = vpop.f32.mrb[60].mxu1 }
0x28ec   : > { %v19722_v34 = vpop.f32.mrb[61].mxu1 }
0x2920   : > { %v19724_v33 = vpop.f32.mrb[62].mxu1 }
0x2921   : > { %v19726_v23 = vpop.f32.mrb[63].mxu1 }
0x2924   : > { %v15723_v42 = vpop.f32.mrb[64].mxu1 }
0x2925   : > { %v5122_v47 = vpop.f32.mrb[65].mxu1  ;;  %v5144_v16 = vsel %vm576_vm2, %v15723_v42, -inf }
0x2926   : > { %5145 = vmax.xlane.f32.xlu1 %v5144_v16  ;;  %v5141_v48 = vsel %vm576_vm2, %v5122_v47, -inf }
0x2927   : > { %5142 = vmax.xlane.f32.xlu0 %v5141_v48 }
0x2928   : > { %v15726_v50 = vpop.f32.mrb[66].mxu1 }
0x2929   : > { %v5132_v52 = vpop.f32.mrb[67].mxu1  ;;  %v5150_v60 = vsel %vm576_vm2, %v15726_v50, -inf }
0x292a   : > { %v5147_v56 = vsel %vm576_vm2, %v5132_v52, -inf }
0x292b   : > { %5148 = vmax.xlane.f32.xlu0 %v5147_v56 }
0x292f   : > { %5151 = vmax.xlane.f32.xlu0 %v5150_v60 }
0x2937   : > { %17696 = vrot.lane.b32.xlu1 %v19454_v7, %s21628_s0 }
0x293b   : > { %17706 = vrot.lane.b32.xlu1 %v19454_v7, %s21629_s14 }
0x29b3   : > { %v5146_v51 = vpop.xlane.xlu1 %5145 }
0x29b4   : > { %v5154_v5 = vsub.f32 %v15723_v42, %v5146_v51  ;;  %v5143_v8 = vpop.xlane.xlu0 %5142 }
0x29b5   : > { %v5153_v28 = vsub.f32 %v5122_v47, %v5143_v8 }
0x29b6   : > { %v5159_v11 = vmul.f32 1.442695, %v5154_v5 }
0x29b7   : > { %v5157_v12 = vmul.f32 1.442695, %v5153_v28  ;;  %v17697_v29 = vpop.permute.xlu1 %17696 }
0x29b8   : > { %18289 = vpow2.f32 %v5159_v11  ;;  %v17699_v44 = vunpack.i.h.bf16 %v17697_v29  ;;  %v17698_v43 = vunpack.i.l.bf16 %v17697_v29  ;;  %v5149_v31 = vpop.xlane.xlu0 %5148 }
0x29b9   : > { %18291 = vpow2.f32 %v5157_v12  ;;  %v5155_v4 = vsub.f32 %v5132_v52, %v5149_v31 }
0x29ba   : > { %v16918_v26 = vpack.c.bf16 %v17699_v44, %v17698_v43 }
0x29bb   : > { %v5161_v47 = vmul.f32 1.442695, %v5155_v4 }
0x29bc   : > { %16919 = vmatprep.subr.bf16.mxu0 %v16918_v26  ;;  %v5152_v32 = vpop.xlane.xlu0 %5151 }
0x29bd   : > { %16921 = vmatpush3.bf16.msra.mxu0 %v16918_v26  ;;  %v5156_v3 = vsub.f32 %v15726_v50, %v5152_v32  ;;  %v17707_v50 = vpop.permute.xlu1 %17706 }
0x29be   : > { %v17709_v8 = vunpack.i.h.bf16 %v17707_v50  ;;  %v17708_v28 = vunpack.i.l.bf16 %v17707_v50 }
0x29bf   : > { %v5163_v42 = vmul.f32 1.442695, %v5156_v3 }
0x29c0   : > { %v16926_v44 = vpack.c.bf16 %v17709_v8, %v17708_v28 }
0x29c1   : > { %18293 = vpow2.f32 %v5163_v42 }
0x29c2   : > { %v18290_v19 = vpop.eup %18289  ;;  %18295 = vpow2.f32 %v5161_v47 }
0x29c3   : > { %v18292_v45 = vpop.eup %18291  ;;  %v5168_v55 = vsel %vm576_vm2, %v18290_v19, 0.0 }
0x29c4   : > { %5169 = vadd.xlane.f32.xlu0 %v5168_v55  ;;  %v5165_v59 = vsel %vm576_vm2, %v18292_v45, 0.0 }
0x29c5   : > { %5166 = vadd.xlane.f32.xlu1 %v5165_v59 }
0x29cb   : > { %v18294_v16 = vpop.eup %18293 }
0x29cc   : > { %v18296_v48 = vpop.eup %18295  ;;  %v5174_v56 = vsel %vm576_vm2, %v18294_v16, 0.0 }
0x29cd   : > { %v5171_v60 = vsel %vm576_vm2, %v18296_v48, 0.0 }
0x29d6   : > { %17711 = vrot.lane.b32.xlu1 %v19470_v10, %s21629_s14 }
0x29da   : > { %17701 = vrot.lane.b32.xlu0 %v19470_v10, %s21628_s0  ;;  %s21631_s0 = smov 40  }
0x29f9   : > { %5175 = vadd.xlane.f32.xlu0 %v5174_v56 }
0x29fa   : > { %5172 = vadd.xlane.f32.xlu1 %v5171_v60 }
0x2a0b   : > { %5296 = vrot.lane.b32.xlu1 %v19446_v61, %s21630_s21 }
0x2a0f   : > { %5300 = vrot.lane.b32.xlu1 %v19464_v0, %s21630_s21  ;;  %5294 = vrot.lane.b32.xlu0 %v19448_v6, %s21630_s21 }
0x2a13   : > { %5298 = vrot.lane.b32.xlu0 %v19466_v27, %s21630_s21 }
0x2a51   : > { %v5170_v52 = vpop.xlane.xlu0 %5169 }
0x2a52   : > { %18297 = vrcp.f32 %v5170_v52  ;;  %v5167_v51 = vpop.xlane.xlu1 %5166 }
0x2a53   : > { %18299 = vrcp.f32 %v5167_v51 }
0x2a55   : > { %v17702_v5 = vpop.permute.xlu0 %17701 }
0x2a56   : > { %v17704_v11 = vunpack.i.h.bf16 %v17702_v5  ;;  %v17703_v12 = vunpack.i.l.bf16 %v17702_v5  ;;  %v17712_v26 = vpop.permute.xlu1 %17711 }
0x2a57   : > { %v17714_v32 = vunpack.i.h.bf16 %v17712_v26  ;;  %v17713_v3 = vunpack.i.l.bf16 %v17712_v26 }
0x2a58   : > { %v16922_v29 = vpack.c.bf16 %v17704_v11, %v17703_v12 }
0x2a59   : > { %v16932_v4 = vpack.c.bf16 %v17714_v32, %v17713_v3 }
0x2a5a   : > { %16923 = vmatprep.subr.bf16.mxu0 %v16922_v29 }
0x2a5b   : > { %16925 = vmatpush3.bf16.msra.mxu0 %v16922_v29 }
0x2a5c   : > { %v18298_v43 = vpop.eup %18297  ;;  %16928 = vmatprep.subr.msk.bf16.mxu0 %vm18817_vm3, %v16926_v44 }
0x2a5d   : > { %v18300_v55 = vpop.eup %18299  ;;  %v5180_v31 = vmul.f32 %v18298_v43, %v18290_v19 }
0x2a5e   : > { %v5178_v59 = vmul.f32 %v18300_v55, %v18292_v45 }
0x2a60   : > { %15735 = vmatprep.mubr.msk.f32.mxu0 %vm576_vm2, %v5178_v59 }
0x2a61   : > { %15736 = vmatmul.mubr.msk.f32.vlgmr.msra.gmra.mrb[68].mxu0 %vm576_vm2, %v5180_v31 }
0x2a64   : > { %16931 = vmatpush3.bf16.xpose.msk.msra.mxu0 %vm18817_vm3, %v16926_v44 }
0x2a65   : > { %16934 = vmatprep.subr.msk.bf16.mxu0 %vm18817_vm3, %v16932_v4 }
0x2a6c   : > { %16937 = vmatpush3.bf16.xpose.msk.msra.mxu0 %vm18817_vm3, %v16932_v4 }
0x2a86   : > { %v5176_v42 = vpop.xlane.xlu0 %5175 }
0x2a87   : > { %18301 = vrcp.f32 %v5176_v42  ;;  %v5173_v45 = vpop.xlane.xlu1 %5172 }
0x2a88   : > { %18303 = vrcp.f32 %v5173_v45 }
0x2a8a   : > { %v5295_v60 = vpop.permute.xlu0 %5294 }
0x2a8b   : > { %v5297_v52 = vpop.permute.xlu1 %5296 }
0x2a8e   : > { %v5299_v51 = vpop.permute.xlu0 %5298 }
0x2a8f   : > { %v5301_v5 = vpop.permute.xlu1 %5300 }
0x2a91   : > { %v18302_v19 = vpop.eup %18301 }
0x2a92   : > { %v18304_v47 = vpop.eup %18303  ;;  %v5184_v50 = vmul.f32 %v18302_v19, %v18294_v16 }
0x2a93   : > { %v5182_v56 = vmul.f32 %v18304_v47, %v18296_v48 }
0x2a95   : > { %15738 = vmatprep.mubr.msk.f32.mxu0 %vm576_vm2, %v5182_v56 }
0x2a96   : > { %15739 = vmatmul.mubr.msk.f32.gmra.mrb[70].mxu0 %vm576_vm2, %v5184_v50 }
0x2a97   : > { %15749 = vmatprep.mubr.msk.f32.mxu0 %vm449_vm1, %v5295_v60 }
0x2a9a   : > { %15750 = vmatmul.mubr.msk.f32.vlgmr.msra.gmra.mrb[72].mxu0 %vm449_vm1, %v5297_v52 }
0x2a9b   : > { %15752 = vmatprep.mubr.msk.f32.mxu0 %vm449_vm1, %v5299_v51 }
0x2a9e   : > { %15753 = vmatmul.mubr.msk.f32.gmra.mrb[74].mxu0 %vm449_vm1, %v5301_v5 }
0x2b34   : > { %v19768_v8 = vpop.f32.mrb[68].mxu0 }
0x2b35   : > { %v19770_v48 = vpop.f32.mrb[69].mxu0 }
0x2b69   : > { %v19772_v16 = vpop.f32.mrb[70].mxu0 }
0x2b6a   : > { %v19774_v28 = vpop.f32.mrb[71].mxu0 }
0x2b6d   : > { %v15751_v11 = vpop.f32.mrb[72].mxu0 }
0x2b6e   : > { %v5392_v12 = vpop.f32.mrb[73].mxu0  ;;  %v5414_v29 = vsel %vm576_vm2, %v15751_v11, -inf }
0x2b6f   : > { %5415 = vmax.xlane.f32.xlu1 %v5414_v29  ;;  %v5411_v44 = vsel %vm576_vm2, %v5392_v12, -inf }
0x2b70   : > { %5412 = vmax.xlane.f32.xlu0 %v5411_v44 }
0x2b71   : > { %v15754_v43 = vpop.f32.mrb[74].mxu0 }
0x2b72   : > { %v5402_v26 = vpop.f32.mrb[75].mxu0  ;;  %v5420_v59 = vsel %vm576_vm2, %v15754_v43, -inf }
0x2b73   : > { %v5417_v55 = vsel %vm576_vm2, %v5402_v26, -inf }
0x2b74   : > { %5418 = vmax.xlane.f32.xlu0 %v5417_v55 }
0x2b78   : > { %5421 = vmax.xlane.f32.xlu0 %v5420_v59 }
0x2b80   : > { %17716 = vrot.lane.b32.xlu1 %v19454_v7, %s21631_s0 }
0x2b84   : > { %17726 = vrot.lane.b32.xlu1 %v19454_v7, %s21632_s24 }
0x2b88   : > { %17731 = vrot.lane.b32.xlu1 %v19470_v10, %s21632_s24 }
0x2bfc   : > { %v5416_v31 = vpop.xlane.xlu1 %5415 }
0x2bfd   : > { %v5424_v32 = vsub.f32 %v15751_v11, %v5416_v31  ;;  %v5413_v3 = vpop.xlane.xlu0 %5412 }
0x2bfe   : > { %v5423_v4 = vsub.f32 %v5392_v12, %v5413_v3 }
0x2bff   : > { %v5429_v42 = vmul.f32 1.442695, %v5424_v32 }
0x2c00   : > { %v5427_v45 = vmul.f32 1.442695, %v5423_v4  ;;  %v17717_v19 = vpop.permute.xlu1 %17716 }
0x2c01   : > { %18305 = vpow2.f32 %v5429_v42  ;;  %v17719_v47 = vunpack.i.h.bf16 %v17717_v19  ;;  %v17718_v56 = vunpack.i.l.bf16 %v17717_v19  ;;  %v5419_v11 = vpop.xlane.xlu0 %5418 }
0x2c02   : > { %18307 = vpow2.f32 %v5427_v45  ;;  %v5425_v44 = vsub.f32 %v5402_v26, %v5419_v11 }
0x2c03   : > { %v16938_v60 = vpack.c.bf16 %v17719_v47, %v17718_v56 }
0x2c04   : > { %v5431_v59 = vmul.f32 1.442695, %v5425_v44 }
0x2c05   : > { %16939 = vmatprep.subr.bf16.mxu1 %v16938_v60  ;;  %v5422_v12 = vpop.xlane.xlu0 %5421 }
0x2c06   : > { %16941 = vmatpush3.bf16.msra.mxu1 %v16938_v60  ;;  %v5426_v29 = vsub.f32 %v15754_v43, %v5422_v12 }
0x2c08   : > { %v5433_v55 = vmul.f32 1.442695, %v5426_v29 }
0x2c0a   : > { %18309 = vpow2.f32 %v5433_v55 }
0x2c0b   : > { %v18306_v50 = vpop.eup %18305  ;;  %18311 = vpow2.f32 %v5431_v59 }
0x2c0c   : > { %v18308_v52 = vpop.eup %18307  ;;  %v5438_v51 = vsel %vm576_vm2, %v18306_v50, 0.0 }
0x2c0d   : > { %5439 = vadd.xlane.f32.xlu0 %v5438_v51  ;;  %v5435_v5 = vsel %vm576_vm2, %v18308_v52, 0.0 }
0x2c0e   : > { %5436 = vadd.xlane.f32.xlu1 %v5435_v5 }
0x2c14   : > { %v18310_v31 = vpop.eup %18309 }
0x2c15   : > { %v18312_v32 = vpop.eup %18311  ;;  %v5444_v3 = vsel %vm576_vm2, %v18310_v31, 0.0 }
0x2c16   : > { %v5441_v4 = vsel %vm576_vm2, %v18312_v32, 0.0 }
0x2c1f   : > { %5566 = vrot.lane.b32.xlu1 %v19446_v61, %s21633_s12  ;;  %v17727_v61 = vpop.permute.xlu1 %17726 }
0x2c20   : > { %v17729_v19 = vunpack.i.h.bf16 %v17727_v61  ;;  %v17728_v47 = vunpack.i.l.bf16 %v17727_v61 }
0x2c22   : > { %v16946_v5 = vpack.c.bf16 %v17729_v19, %v17728_v47 }
0x2c23   : > { %17721 = vrot.lane.b32.xlu0 %v19470_v10, %s21631_s0  ;;  %v17732_v43 = vpop.permute.xlu1 %17731  ;;  %s21634_s0 = smov 36  }
0x2c24   : > { %v17734_v11 = vunpack.i.h.bf16 %v17732_v43  ;;  %v17733_v12 = vunpack.i.l.bf16 %v17732_v43 }
0x2c26   : > { %v16952_v44 = vpack.c.bf16 %v17734_v11, %v17733_v12 }
0x2c42   : > { %5445 = vadd.xlane.f32.xlu0 %v5444_v3 }
0x2c43   : > { %5442 = vadd.xlane.f32.xlu1 %v5441_v4 }
0x2c54   : > { %5570 = vrot.lane.b32.xlu1 %v19464_v0, %s21633_s12 }
0x2c58   : > { %5564 = vrot.lane.b32.xlu0 %v19448_v6, %s21633_s12 }
0x2c5c   : > { %5568 = vrot.lane.b32.xlu0 %v19466_v27, %s21633_s12 }
0x2c9a   : > { %v5440_v26 = vpop.xlane.xlu0 %5439 }
0x2c9b   : > { %18313 = vrcp.f32 %v5440_v26  ;;  %v5437_v42 = vpop.xlane.xlu1 %5436 }
0x2c9c   : > { %18315 = vrcp.f32 %v5437_v42 }
0x2c9e   : > { %v17722_v45 = vpop.permute.xlu0 %17721 }
0x2c9f   : > { %v17724_v56 = vunpack.i.h.bf16 %v17722_v45  ;;  %v17723_v60 = vunpack.i.l.bf16 %v17722_v45  ;;  %v5567_v55 = vpop.permute.xlu1 %5566 }
0x2ca1   : > { %v16942_v51 = vpack.c.bf16 %v17724_v56, %v17723_v60 }
0x2ca3   : > { %16943 = vmatprep.subr.bf16.mxu1 %v16942_v51 }
0x2ca4   : > { %16945 = vmatpush3.bf16.msra.mxu1 %v16942_v51 }
0x2ca5   : > { %v18314_v0 = vpop.eup %18313  ;;  %16948 = vmatprep.subr.msk.bf16.mxu1 %vm18817_vm3, %v16946_v5 }
0x2ca6   : > { %v18316_v6 = vpop.eup %18315  ;;  %v5450_v29 = vmul.f32 %v18314_v0, %v18306_v50 }
0x2ca7   : > { %v5448_v27 = vmul.f32 %v18316_v6, %v18308_v52 }
0x2ca9   : > { %15763 = vmatprep.mubr.msk.f32.mxu1 %vm576_vm2, %v5448_v27 }
0x2caa   : > { %15764 = vmatmul.mubr.msk.f32.vlgmr.msra.gmra.mrb[68].mxu1 %vm576_vm2, %v5450_v29 }
0x2cad   : > { %16951 = vmatpush3.bf16.xpose.msk.msra.mxu1 %vm18817_vm3, %v16946_v5 }
0x2cae   : > { %16954 = vmatprep.subr.msk.bf16.mxu1 %vm18817_vm3, %v16952_v44 }
0x2cb5   : > { %16957 = vmatpush3.bf16.xpose.msk.msra.mxu1 %vm18817_vm3, %v16952_v44 }
0x2ccf   : > { %v5446_v59 = vpop.xlane.xlu0 %5445 }
0x2cd0   : > { %18317 = vrcp.f32 %v5446_v59  ;;  %v5443_v52 = vpop.xlane.xlu1 %5442 }
0x2cd1   : > { %18319 = vrcp.f32 %v5443_v52 }
0x2cd3   : > { %v5565_v61 = vpop.permute.xlu0 %5564 }
0x2cd4   : > { %v5571_v42 = vpop.permute.xlu1 %5570 }
0x2cd7   : > { %v5569_v26 = vpop.permute.xlu0 %5568 }
0x2cda   : > { %v18318_v50 = vpop.eup %18317 }
0x2cdb   : > { %v18320_v3 = vpop.eup %18319  ;;  %v5454_v43 = vmul.f32 %v18318_v50, %v18310_v31 }
0x2cdc   : > { %v5452_v4 = vmul.f32 %v18320_v3, %v18312_v32 }
0x2cde   : > { %15766 = vmatprep.mubr.msk.f32.mxu1 %vm576_vm2, %v5452_v4 }
0x2cdf   : > { %15767 = vmatmul.mubr.msk.f32.gmra.mrb[70].mxu1 %vm576_vm2, %v5454_v43 }
0x2ce0   : > { %15777 = vmatprep.mubr.msk.f32.mxu1 %vm449_vm1, %v5565_v61 }
0x2ce3   : > { %15778 = vmatmul.mubr.msk.f32.vlgmr.msra.gmra.mrb[72].mxu1 %vm449_vm1, %v5567_v55 }
0x2ce4   : > { %15780 = vmatprep.mubr.msk.f32.mxu1 %vm449_vm1, %v5569_v26 }
0x2ce7   : > { %15781 = vmatmul.mubr.msk.f32.gmra.mrb[74].mxu1 %vm449_vm1, %v5571_v42 }
0x2d7d   : > { %v15765_v45 = vpop.f32.mrb[68].mxu1 }
0x2d7e   : > { %v5545_v19 = vpop.f32.mrb[69].mxu1 }
0x2db2   : > { %v19816_v47 = vpop.f32.mrb[70].mxu1 }
0x2db3   : > { %v19818_v32 = vpop.f32.mrb[71].mxu1 }
0x2db6   : > { %v15779_v31 = vpop.f32.mrb[72].mxu1 }
0x2db7   : > { %v5662_v56 = vpop.f32.mrb[73].mxu1  ;;  %v5684_v60 = vsel %vm576_vm2, %v15779_v31, -inf }
0x2db8   : > { %5685 = vmax.xlane.f32.xlu1 %v5684_v60  ;;  %v5681_v51 = vsel %vm576_vm2, %v5662_v56, -inf }
0x2db9   : > { %5682 = vmax.xlane.f32.xlu0 %v5681_v51 }
0x2dba   : > { %v15782_v5 = vpop.f32.mrb[74].mxu1 }
0x2dbb   : > { %v5672_v0 = vpop.f32.mrb[75].mxu1  ;;  %v5690_v27 = vsel %vm576_vm2, %v15782_v5, -inf }
0x2dbc   : > { %v5687_v6 = vsel %vm576_vm2, %v5672_v0, -inf }
0x2dbd   : > { %5688 = vmax.xlane.f32.xlu0 %v5687_v6 }
0x2dc1   : > { %5691 = vmax.xlane.f32.xlu0 %v5690_v27 }
0x2e45   : > { %v5686_v11 = vpop.xlane.xlu1 %5685 }
0x2e46   : > { %v5694_v12 = vsub.f32 %v15779_v31, %v5686_v11  ;;  %v5683_v29 = vpop.xlane.xlu0 %5682 }
0x2e47   : > { %v5693_v44 = vsub.f32 %v5662_v56, %v5683_v29 }
0x2e48   : > { %v5699_v55 = vmul.f32 1.442695, %v5694_v12 }
0x2e49   : > { %v5697_v59 = vmul.f32 1.442695, %v5693_v44 }
0x2e4a   : > { %18321 = vpow2.f32 %v5699_v55  ;;  %v5689_v52 = vpop.xlane.xlu0 %5688 }
0x2e4b   : > { %18323 = vpow2.f32 %v5697_v59  ;;  %v5695_v50 = vsub.f32 %v5672_v0, %v5689_v52 }
0x2e4d   : > { %v5701_v3 = vmul.f32 1.442695, %v5695_v50 }
0x2e4e   : > { %v5692_v4 = vpop.xlane.xlu0 %5691 }
0x2e4f   : > { %18325 = vpow2.f32 %v5701_v3  ;;  %v5696_v61 = vsub.f32 %v15782_v5, %v5692_v4 }
0x2e51   : > { %v5703_v43 = vmul.f32 1.442695, %v5696_v61 }
0x2e53   : > { %18327 = vpow2.f32 %v5703_v43 }
0x2e54   : > { %v18322_v26 = vpop.eup %18321 }
0x2e55   : > { %v18324_v42 = vpop.eup %18323  ;;  %v5708_v60 = vsel %vm576_vm2, %v18322_v26, 0.0 }
0x2e56   : > { %5709 = vadd.xlane.f32.xlu0 %v5708_v60  ;;  %v5705_v31 = vsel %vm576_vm2, %v18324_v42, 0.0 }
0x2e57   : > { %5706 = vadd.xlane.f32.xlu1 %v5705_v31 }
0x2e59   : > { %v18326_v56 = vpop.eup %18325 }
0x2e5a   : > { %v5711_v51 = vsel %vm576_vm2, %v18326_v56, 0.0 }
0x2e5b   : > { %5712 = vadd.xlane.f32.xlu1 %v5711_v51 }
0x2e5d   : > { %v18328_v6 = vpop.eup %18327 }
0x2e5e   : > { %v5714_v0 = vsel %vm576_vm2, %v18328_v6, 0.0 }
0x2e5f   : > { %5715 = vadd.xlane.f32.xlu0 %v5714_v0 }
0x2e6c   : > { %17736 = vrot.lane.b32.xlu1 %v19454_v7, %s21634_s0 }
0x2e70   : > { %5838 = vrot.lane.b32.xlu1 %v19578_v9, %s21635_s11 }
0x2e74   : > { %5840 = vrot.lane.b32.xlu1 %v19576_v62, %s21635_s11 }
0x2e75   : > { %17741 = vrot.lane.b32.xlu0 %v19470_v10, %s21634_s0  ;;  %s21646_s0 = smov 12  }
0x2e78   : > { %5856 = vrot.lane.b32.xlu1 %v19624_v24, %s21636_s13 }
0x2e79   : > { %5854 = vrot.lane.b32.xlu0 %v19626_v18, %s21636_s13 }
0x2e7c   : > { %5872 = vrot.lane.b32.xlu1 %v19672_v15, %s21637_s25 }
0x2e7d   : > { %5870 = vrot.lane.b32.xlu0 %v19674_v1, %s21637_s25 }
0x2e80   : > { %5842 = vrot.lane.b32.xlu1 %v19582_v41, %s21635_s11 }
0x2e81   : > { %5886 = vrot.lane.b32.xlu0 %v19722_v34, %s21638_s10 }
0x2e84   : > { %5902 = vrot.lane.b32.xlu1 %v19770_v48, %s21639_s9 }
0x2e85   : > { %5888 = vrot.lane.b32.xlu0 %v19720_v22, %s21638_s10 }
0x2e88   : > { %5858 = vrot.lane.b32.xlu1 %v19630_v25, %s21636_s13 }
0x2e89   : > { %5844 = vrot.lane.b32.xlu0 %v19580_v39, %s21635_s11 }
0x2e8c   : > { %5918 = vrot.lane.b32.xlu1 %v5545_v19, %s21610_s29 }
0x2e8d   : > { %5904 = vrot.lane.b32.xlu0 %v19768_v8, %s21639_s9 }
0x2e90   : > { %5874 = vrot.lane.b32.xlu1 %v19678_v14, %s21637_s25 }
0x2e91   : > { %5860 = vrot.lane.b32.xlu0 %v19628_v13, %s21636_s13  ;;  %s21645_s13 = smov 8  }
0x2e94   : > { %5890 = vrot.lane.b32.xlu1 %v19726_v23, %s21638_s10 }
0x2e95   : > { %5920 = vrot.lane.b32.xlu0 %v15765_v45, %s21610_s29  ;;  %v14231_v45 = vld [vmem:[%s21609_s5 + $0x78] sm:$0xff] }
0x2e98   : > { %5892 = vrot.lane.b32.xlu1 %v19724_v33, %s21638_s10  ;;  %s21571_s10 = sshll.u32 %s18723_s26, 3 }
0x2e99   : > { %5876 = vrot.lane.b32.xlu0 %v19676_v2, %s21637_s25  ;;  %s21644_s25 = smov 4  }
0x2e9c   : > { %5908 = vrot.lane.b32.xlu1 %v19772_v16, %s21639_s9  ;;  %v14229_v16 = vld [vmem:[%s21609_s5 + $0x68] sm:$0xff] }
0x2e9d   : > { %5906 = vrot.lane.b32.xlu0 %v19774_v28, %s21639_s9  ;;  %v14230_v28 = vld [vmem:[%s21609_s5 + $0x70] sm:$0xff]  ;;  %s21649_s9 = smov 24  }
0x2e9e   : > { %v16966_v19 = vpack.c.bf16 %v14230_v28, %v14229_v16 }
0x2ea1   : > { %5922 = vrot.lane.b32.xlu0 %v19818_v32, %s21610_s29  ;;  %v14232_v32 = vld [vmem:[%s21609_s5 + $0x80] sm:$0xff] }
0x2ea2   : > { %v16970_v5 = vpack.c.bf16 %v14232_v32, %v14231_v45 }
0x2ee3   : > { %v5710_v10 = vpop.xlane.xlu0 %5709 }
0x2ee4   : > { %v5707_v7 = vpop.xlane.xlu1 %5706 }
0x2ee5   : > { %18329 = vrcp.f32 %v5707_v7 }
0x2ee6   : > { %18331 = vrcp.f32 %v5710_v10 }
0x2ee8   : > { %v5713_v62 = vpop.xlane.xlu1 %5712 }
0x2ee9   : > { %18333 = vrcp.f32 %v5713_v62 }
0x2eec   : > { %v17737_v9 = vpop.permute.xlu1 %17736  ;;  %v5716_v39 = vpop.xlane.xlu0 %5715 }
0x2eed   : > { %v17739_v41 = vunpack.i.h.bf16 %v17737_v9  ;;  %v17738_v24 = vunpack.i.l.bf16 %v17737_v9  ;;  %18335 = vrcp.f32 %v5716_v39 }
0x2eef   : > { %v18330_v18 = vpop.eup %18329  ;;  %v16958_v13 = vpack.c.bf16 %v17739_v41, %v17738_v24 }
0x2ef0   : > { %v17742_v25 = vpop.permute.xlu0 %17741  ;;  %v5718_v15 = vmul.f32 %v18330_v18, %v18324_v42  ;;  %v18332_v22 = vpop.eup %18331 }
0x2ef1   : > { %v17744_v1 = vunpack.i.h.bf16 %v17742_v25  ;;  %v17743_v2 = vunpack.i.l.bf16 %v17742_v25  ;;  %16959 = vmatprep.subr.bf16.mxu0 %v16958_v13  ;;  %v5720_v33 = vmul.f32 %v18332_v22, %v18322_v26  ;;  %v5839_v44 = vpop.permute.xlu1 %5838 }
0x2ef2   : > { %16961 = vmatpush3.bf16.msra.mxu0 %v16958_v13  ;;  %15791 = vmatprep.mubr.msk.f32.mxu0 %vm576_vm2, %v5718_v15  ;;  %v5946_v9 = vsel %vm449_vm1, %v19530_v38, %v5839_v44 }
0x2ef3   : > { %v16962_v14 = vpack.c.bf16 %v17744_v1, %v17743_v2  ;;  %v18334_v34 = vpop.eup %18333 }
0x2ef4   : > { %v5722_v8 = vmul.f32 %v18334_v34, %v18326_v56  ;;  %v5855_v55 = vpop.permute.xlu0 %5854 }
0x2ef5   : > { %16963 = vmatprep.subr.bf16.mxu0 %v16962_v14  ;;  %v5841_v59 = vpop.permute.xlu1 %5840  ;;  %v5950_v24 = vsel %vm3069_vm4, %v5946_v9, %v5855_v55 }
0x2ef6   : > { %16965 = vmatpush3.bf16.msra.mxu0 %v16962_v14  ;;  %v5947_v41 = vsel %vm449_vm1, %v19528_v37, %v5841_v59 }
0x2ef7   : > { %v18336_v23 = vpop.eup %18335  ;;  %16967 = vmatprep.subr.bf16.mxu0 %v16966_v19 }
0x2ef8   : > { %v5724_v48 = vmul.f32 %v18336_v23, %v18328_v6  ;;  %v5871_v52 = vpop.permute.xlu0 %5870 }
0x2ef9   : > { %15792 = vmatmul.mubr.msk.f32.vlgmr.msra.gmra.mrb[76].mxu0 %vm576_vm2, %v5720_v33  ;;  %v5857_v50 = vpop.permute.xlu1 %5856  ;;  %v5954_v25 = vsel %vm3074_vm5, %v5950_v24, %v5871_v52 }
0x2efa   : > { %15794 = vmatprep.mubr.msk.f32.mxu0 %vm576_vm2, %v5722_v8  ;;  %16969 = vmatpush3.bf16.msra.mxu0 %v16966_v19  ;;  %v5951_v13 = vsel %vm3069_vm4, %v5947_v41, %v5857_v50  ;;  %v19937_v50 = vld [vmem:[%s21609_s5 + $0xc8] sm:$0x3f] }
0x2efb   : > { %16971 = vmatprep.subr.bf16.mxu0 %v16970_v5 }
0x2efc   : > { %v5887_v3 = vpop.permute.xlu0 %5886 }
0x2efd   : > { %15795 = vmatmul.mubr.msk.f32.gmra.mrb[78].mxu0 %vm576_vm2, %v5724_v48  ;;  %v5873_v4 = vpop.permute.xlu1 %5872  ;;  %v5958_v1 = vsel %vm3079_vm6, %v5954_v25, %v5887_v3  ;;  %v5977_v3 = vrot.slane %v19937_v50, %v19294_v54 }
0x2efe   : > { %16973 = vmatpush3.bf16.msra.mxu0 %v16970_v5  ;;  %v5955_v15 = vsel %vm3074_vm5, %v5951_v13, %v5873_v4 }
0x2f00   : > { %v5889_v61 = vpop.permute.xlu0 %5888 }
0x2f01   : > { %v5843_v43 = vpop.permute.xlu1 %5842  ;;  %v5959_v38 = vsel %vm3079_vm6, %v5955_v15, %v5889_v61 }
0x2f02   : > { %v5948_v2 = vsel %vm449_vm1, %v19534_v21, %v5843_v43 }
0x2f04   : > { %v5845_v26 = vpop.permute.xlu0 %5844 }
0x2f05   : > { %v5903_v42 = vpop.permute.xlu1 %5902  ;;  %v5949_v45 = vsel %vm449_vm1, %v19532_v20, %v5845_v26 }
0x2f06   : > { %v5962_v14 = vsel %vm3084_vm7, %v5958_v1, %v5903_v42 }
0x2f08   : > { %v5905_v60 = vpop.permute.xlu0 %5904 }
0x2f09   : > { %v5859_v31 = vpop.permute.xlu1 %5858  ;;  %v5963_v34 = vsel %vm3084_vm7, %v5959_v38, %v5905_v60 }
0x2f0a   : > { %v5952_v37 = vsel %vm3069_vm4, %v5948_v2, %v5859_v31 }
0x2f0c   : > { %v5861_v56 = vpop.permute.xlu0 %5860 }
0x2f0d   : > { %v5919_v51 = vpop.permute.xlu1 %5918  ;;  %v5953_v32 = vsel %vm3069_vm4, %v5949_v45, %v5861_v56 }
0x2f0e   : > { %v5966_v33 = vsel %vm3089_vm8, %v5962_v14, %v5919_v51 }
0x2f11   : > { %v5875_v6 = vpop.permute.xlu1 %5874 }
0x2f12   : > { %v5956_v8 = vsel %vm3074_vm5, %v5952_v37, %v5875_v6 }
0x2f15   : > { %v5891_v7 = vpop.permute.xlu1 %5890 }
0x2f16   : > { %v5960_v21 = vsel %vm3079_vm6, %v5956_v8, %v5891_v7  ;;  %v14224_v8 = vld [vmem:[%s21611_s4 + $0x28] sm:$0xff] }
0x2f19   : > { %v5893_v62 = vpop.permute.xlu1 %5892 }
0x2f1d   : > { %v5909_v18 = vpop.permute.xlu1 %5908 }
0x2fcc   : > { %v15793_v27 = vpop.f32.mrb[76].mxu0 }
0x2fcd   : > { %5936 = vrot.lane.b32.xlu0 %v15793_v27, %s21640_s7  ;;  %v5815_v11 = vpop.f32.mrb[77].mxu0 }
0x2fce   : > { %5934 = vrot.lane.b32.xlu1 %v5815_v11, %s21640_s7 }
0x2fd0   : > { %v15796_v12 = vpop.f32.mrb[78].mxu0 }
0x2fd1   : > { %v5825_v29 = vpop.f32.mrb[79].mxu0 }
0x2fd2   : > { %5924 = vrot.lane.b32.xlu1 %v19816_v47, %s21610_s29  ;;  %5938 = vrot.lane.b32.xlu0 %v5825_v29, %s21640_s7  ;;  %v5921_v47 = vpop.permute.xlu0 %5920  ;;  %s20054_s29 = scalar_lea.vmem %s21642_s1, %s21571_s10  ;;  %s21650_s10 = sld [smem:[#allocation25_spill]] }
0x2fd3   : > { %v5967_v48 = vsel %vm3089_vm8, %v5963_v34, %v5921_v47  ;;  %21643 = sst [smem:[#allocation15_spill]] %s20054_s29  ;;  %s21652_s1 = sld [smem:[#allocation6_spill]] }
0x2fd6   : > { %5940 = vrot.lane.b32.xlu1 %v15796_v12, %s21640_s7  ;;  %v5877_v0 = vpop.permute.xlu0 %5876  ;;  %s21648_s7 = smov 20  }
0x2fd7   : > { %v5957_v12 = vsel %vm3074_vm5, %v5953_v32, %v5877_v0  ;;  %v14233_v32 = vld [vmem:[%s21609_s5 + $0x88] sm:$0xff] }
0x2fd8   : > { %v5961_v44 = vsel %vm3079_vm6, %v5957_v12, %v5893_v62  ;;  %v14236_v12 = vld [vmem:[%s21609_s5 + $0xa0] sm:$0xff] }
0x2fd9   : > { %v5965_v20 = vsel %vm3084_vm7, %v5961_v44, %v5909_v18  ;;  %v14237_v44 = vld [vmem:[%s21609_s5 + $0xa8] sm:$0xff] }
0x2fda   : > { %v5907_v10 = vpop.permute.xlu0 %5906 }
0x2fdb   : > { %v5964_v19 = vsel %vm3084_vm7, %v5960_v21, %v5907_v10 }
0x2fde   : > { %v5923_v39 = vpop.permute.xlu0 %5922 }
0x2fdf   : > { %v5968_v5 = vsel %vm3089_vm8, %v5964_v19, %v5923_v39  ;;  %v18592_v19 = vmov 0.0|0.0  }
0x303f   : > { %v5937_v22 = vpop.permute.xlu0 %5936 }
0x3040   : > { %v5935_v23 = vpop.permute.xlu1 %5934  ;;  %v5971_v28 = vsel %vm3094_vm9, %v5967_v48, %v5937_v22  ;;  %v14225_v48 = vld [vmem:[%s21611_s4 + $0x30] sm:$0xff] }
0x3041   : > { %v5970_v16 = vsel %vm3094_vm9, %v5966_v33, %v5935_v23  ;;  %v16974_v21 = vpack.c.bf16 %v14225_v48, %v14224_v8  ;;  %v14240_v8 = vld [vmem:[%s21609_s5 + $0xc0] sm:$0xff] }
0x3042   : > { %15805 = vmatprep.mubr.msk.f32.mxu0 %vm576_vm2, %v5970_v16  ;;  %v14226_v16 = vld [vmem:[%s21611_s4 + $0x38] sm:$0xff] }
0x3043   : > { %15806 = vmatmul.mubr.msk.f32.vlgmr.msra.gmra.mrb[80].mxu0 %vm576_vm2, %v5971_v28  ;;  %v14227_v28 = vld [vmem:[%s21611_s4 + $0x40] sm:$0xff]  ;;  %16975 = vmatprep.subr.bf16.mxu1 %v16974_v21 }
0x3044   : > { %v5925_v27 = vpop.permute.xlu1 %5924  ;;  %v5939_v11 = vpop.permute.xlu0 %5938  ;;  %v16978_v45 = vpack.c.bf16 %v14227_v28, %v14226_v16  ;;  %16977 = vmatpush3.bf16.msra.mxu1 %v16974_v21  ;;  %v14346_v16 = vld [vmem:[%s21611_s4 + $0x48] ss:$0 sm:$0xff]  ;;  %s21575_s4 = sand.u32 1, %s21652_s1   ;;  %s21659_s1 = sld [smem:[#allocation15_spill]] }
0x3045   : > { %v5972_v29 = vsel %vm3094_vm9, %v5968_v5, %v5939_v11  ;;  %v5969_v55 = vsel %vm3089_vm8, %v5965_v20, %v5925_v27  ;;  %v14234_v5 = vld [vmem:[%s21609_s5 + $0x90] sm:$0xff]  ;;  %v14235_v27 = vld [vmem:[%s21609_s5 + $0x98] sm:$0xff] }
0x3046   : > { %15808 = vmatprep.mubr.msk.f32.mxu0 %vm576_vm2, %v5972_v29  ;;  %16979 = vmatprep.subr.bf16.mxu1 %v16978_v45  ;;  %v16982_v11 = vpack.c.bf16 %v14234_v5, %v14233_v32  ;;  %v16986_v29 = vpack.c.bf16 %v14236_v12, %v14235_v27  ;;  %v14238_v20 = vld [vmem:[%s21609_s5 + $0xb0] sm:$0xff] }
0x3048   : > { %v5941_v59 = vpop.permute.xlu1 %5940  ;;  %16981 = vmatpush3.bf16.msra.mxu1 %v16978_v45  ;;  %16983 = vmatprep.subr.bf16.mxu0 %v16982_v11 }
0x3049   : > { %v5973_v52 = vsel %vm3094_vm9, %v5969_v55, %v5941_v59  ;;  %16998 = vmatprep.subr.bf16.mxu1 %v18592_v19  ;;  %16985 = vmatpush3.bf16.msra.mxu0 %v16982_v11  ;;  %v16990_v55 = vpack.c.bf16 %v14238_v20, %v14237_v44  ;;  %v20082_v20 = vld [vmem:[%s21641_s6 + $0x20] ss:$0 sm:$0xff] }
0x304a   : > { %15809 = vmatmul.mubr.msk.f32.gmra.mrb[82].mxu0 %vm576_vm2, %v5973_v52  ;;  %16987 = vmatprep.subr.bf16.mxu0 %v16986_v29 }
0x304d   : > { %16989 = vmatpush3.bf16.msra.mxu0 %v16986_v29 }
0x304e   : > { %16991 = vmatprep.subr.bf16.mxu0 %v16990_v55 }
0x3051   : > { %16993 = vmatpush3.bf16.msra.mxu0 %v16990_v55 }
0x3116   : > { %v15807_v4 = vpop.f32.mrb[80].mxu0 }
0x3117   : > { %v6062_v61 = vadd.f32 %v15807_v4, %v5977_v3  ;;  %v6056_v43 = vpop.f32.mrb[81].mxu0 }
0x3118   : > { %v6057_v26 = vadd.f32 %v6056_v43, %v5977_v3 }
0x3119   : > { %v6076_v42 = vadd.f32 %v6062_v61, %v19426_v17 }
0x311a   : > { %v6075_v60 = vadd.f32 %v6057_v26, %v19424_v46 }
0x311b   : > { %v6082_v31 = vsel %vm576_vm2, %v6076_v42, 0.0 }
0x311c   : > { %6083 = vadd.xlane.f32.xlu1 %v6082_v31  ;;  %v6079_v56 = vsel %vm576_vm2, %v6075_v60, 0.0 }
0x311d   : > { %v15810_v51 = vpop.f32.mrb[82].mxu0  ;;  %6080 = vadd.xlane.f32.xlu0 %v6079_v56 }
0x311e   : > { %v6066_v47 = vpop.f32.mrb[83].mxu0  ;;  %v6072_v6 = vadd.f32 %v15810_v51, %v5977_v3  ;;  %v6134_v51 = vrot.slane %v19937_v50, %v19362_v57 }
0x311f   : > { %v6067_v0 = vadd.f32 %v6066_v47, %v5977_v3 }
0x3120   : > { %v6078_v10 = vadd.f32 %v6072_v6, %v19434_v49 }
0x3121   : > { %v6077_v7 = vadd.f32 %v6067_v0, %v19432_v53 }
0x3122   : > { %v6088_v17 = vsel %vm576_vm2, %v6078_v10, 0.0 }
0x3123   : > { %v6085_v62 = vsel %vm576_vm2, %v6077_v7, 0.0 }
0x3124   : > { %6086 = vadd.xlane.f32.xlu0 %v6085_v62  ;;  %v6142_v62 = vrot.slane %v19937_v50, %v19365_v58 }
0x3128   : > { %6089 = vadd.xlane.f32.xlu0 %v6088_v17 }
0x31a9   : > { %v6084_v46 = vpop.xlane.xlu1 %6083 }
0x31aa   : > { %v6092_v9 = vmul.f32 0.03125, %v6084_v46  ;;  %v6081_v39 = vpop.xlane.xlu0 %6080  ;;  %v20009_v46 = vld [vmem:[%s21641_s6] sm:$0xff] }
0x31ab   : > { %v6091_v41 = vmul.f32 0.03125, %v6081_v39 }
0x31ac   : > { %v19949_v24 = vsub.f32 %v6076_v42, %v6092_v9  ;;  %v20014_v9 = vld [vmem:[%s21641_s6 + $0x8] sm:$0xff] }
0x31ad   : > { %v19951_v18 = vsub.f32 %v6075_v60, %v6091_v41 }
0x31ae   : > { %v6100_v13 = vmul.f32 %v19949_v24, %v19949_v24 }
0x31af   : > { %v6099_v53 = vmul.f32 %v19951_v18, %v19951_v18 }
0x31b0   : > { %v6106_v49 = vsel %vm576_vm2, %v6100_v13, 0.0  ;;  %v20025_v13 = vld [vmem:[%s21641_s6 + $0x10] sm:$0xff] }
0x31b1   : > { %6107 = vadd.xlane.f32.xlu0 %v6106_v49  ;;  %v6087_v25 = vpop.xlane.xlu0 %6086  ;;  %v6103_v15 = vsel %vm576_vm2, %v6099_v53, 0.0  ;;  %v20030_v53 = vld [vmem:[%s21641_s6 + $0x18] sm:$0xff]  ;;  %s21655_s6 = smov 24  }
0x31b2   : > { %v6093_v1 = vmul.f32 0.03125, %v6087_v25  ;;  %6104 = vadd.xlane.f32.xlu1 %v6103_v15  ;;  %v17002_v15 = vpack.c.bf16 %v20030_v53, %v20025_v13 }
0x31b4   : > { %v19959_v2 = vsub.f32 %v6077_v7, %v6093_v1 }
0x31b5   : > { %v6090_v38 = vpop.xlane.xlu0 %6089 }
0x31b6   : > { %v6094_v14 = vmul.f32 0.03125, %v6090_v38  ;;  %v6101_v22 = vmul.f32 %v19959_v2, %v19959_v2 }
0x31b8   : > { %v19963_v37 = vsub.f32 %v6078_v10, %v6094_v14  ;;  %v6109_v34 = vsel %vm576_vm2, %v6101_v22, 0.0 }
0x31b9   : > { %6110 = vadd.xlane.f32.xlu1 %v6109_v34 }
0x31ba   : > { %v6102_v33 = vmul.f32 %v19963_v37, %v19963_v37 }
0x31bc   : > { %v6112_v23 = vsel %vm576_vm2, %v6102_v33, 0.0  ;;  %v20061_v33 = vld [vmem:[%s20054_s29] sm:$0xff]  ;;  %s21658_s29 = smov 64  }
0x31bd   : > { %6113 = vadd.xlane.f32.xlu0 %v6112_v23  ;;  %v14239_v23 = vld [vmem:[%s21609_s5 + $0xb8] sm:$0xff]  ;;  %s14089_s5 = sshll.u32 %s21575_s4, 5  ;;  %s21657_s4 = sld [smem:[#allocation23_spill]] }
0x31be   : > { %v16994_v48 = vpack.c.bf16 %v14240_v8, %v14239_v23  ;;  %s20313_s26 = scalar_lea.vmem [#allocation2], %s14089_s5 }
0x31bf   : > { %21653 = sst [smem:[#allocation16_spill]] %s20313_s26 }
0x31c0   : > { %16995 = vmatprep.subr.bf16.mxu0 %v16994_v48 }
0x31c1   : > { %16997 = vmatpush3.bf16.msra.mxu0 %v16994_v48 }
0x323e   : > { %v6108_v59 = vpop.xlane.xlu0 %6107 }
0x323f   : > { %v6116_v52 = vmul.f32 0.03125, %v6108_v59  ;;  %v6105_v3 = vpop.xlane.xlu1 %6104 }
0x3240   : > { %v6115_v4 = vmul.f32 0.03125, %v6105_v3 }
0x3241   : > { %v6120_v61 = vadd.f32 1e-05, %v6116_v52 }
0x3242   : > { %v6119_v43 = vadd.f32 1e-05, %v6115_v4 }
0x3243   : > { %18337 = vrsqrt.f32 %v6120_v61  ;;  %v17750_v61 = vpack.i.bf16 %v20030_v53, %v20025_v13 }
0x3244   : > { %18339 = vrsqrt.f32 %v6119_v43  ;;  %v17745_v43 = vpack.i.bf16 %v20014_v9, %v20009_v46 }
0x3246   : > { %v6111_v26 = vpop.xlane.xlu1 %6110 }
0x3247   : > { %v6117_v42 = vmul.f32 0.03125, %v6111_v26 }
0x3249   : > { %v6121_v60 = vadd.f32 1e-05, %v6117_v42 }
0x324a   : > { %v6114_v31 = vpop.xlane.xlu0 %6113 }
0x324b   : > { %18341 = vrsqrt.f32 %v6121_v60  ;;  %v6118_v56 = vmul.f32 0.03125, %v6114_v31 }
0x324d   : > { %v18338_v47 = vpop.eup %18337  ;;  %v6122_v6 = vadd.f32 1e-05, %v6118_v56 }
0x324e   : > { %v18340_v0 = vpop.eup %18339  ;;  %v6128_v7 = vmul.f32 %v18338_v47, %v19949_v24  ;;  %v16999_v24 = vpack.c.bf16 %v20014_v9, %v20009_v46 }
0x324f   : > { %18343 = vrsqrt.f32 %v6122_v6  ;;  %v6127_v10 = vmul.f32 %v18340_v0, %v19951_v18 }
0x3250   : > { %v6136_v17 = vmul.f32 %v6134_v51, %v6128_v7 }
0x3251   : > { %v6135_v39 = vmul.f32 %v6134_v51, %v6127_v10 }
0x3252   : > { %v20020_v18 = vadd.f32 %v6142_v62, %v6136_v17 }
0x3253   : > { %v20016_v41 = vadd.f32 %v6142_v62, %v6135_v39 }
0x3255   : > { %v18342_v49 = vpop.eup %18341  ;;  %15819 = vmatprep.mubr.msk.f32.mxu1 %vm576_vm2, %v20016_v41 }
0x3256   : > { %15820 = vmatmul.mubr.msk.f32.vlgmr.msra.gmra.mrb[76].mxu1 %vm576_vm2, %v20020_v18  ;;  %v6129_v25 = vmul.f32 %v18342_v49, %v19959_v2 }
0x3257   : > { %17000 = vmatpush3.bf16.msra.mxu1 %v16999_v24 }
0x3258   : > { %v6137_v1 = vmul.f32 %v6134_v51, %v6129_v25  ;;  %17001 = vmatprep.subr.bf16.mxu1 %v18592_v19 }
0x3259   : > { %v18344_v38 = vpop.eup %18343 }
0x325a   : > { %v20040_v14 = vadd.f32 %v6142_v62, %v6137_v1  ;;  %v6130_v22 = vmul.f32 %v18344_v38, %v19963_v37  ;;  %v18594_v37 = vmov 0.0   ;;  %v20157_v38 = vrot.slane %v19937_v50, %v19393_v40 }
0x325b   : > { %17003 = vmatpush3.bf16.msra.mxu1 %v17002_v15  ;;  %15869 = vmatprep.subr.mxu0 %v18594_v37 }
0x325c   : > { %15822 = vmatprep.mubr.msk.f32.mxu1 %vm576_vm2, %v20040_v14  ;;  %v6138_v34 = vmul.f32 %v6134_v51, %v6130_v22  ;;  %17004 = vmatprep.subr.bf16.mxu1 %v18592_v19 }
0x325e   : > { %v20047_v2 = vadd.f32 %v6142_v62, %v6138_v34 }
0x3260   : > { %15823 = vmatmul.mubr.msk.f32.gmra.mrb[78].mxu1 %vm576_vm2, %v20047_v2 }
0x3261   : > { %15855 = vmatprep.mubr.msk.f32.mxu1 %vm18593_vm11, %v18594_v37 }
0x3264   : > { %15856 = vmatmul.mubr.msk.f32.vlgmr.msra.gmra.mrb[80].mxu1 %vm576_vm2, %v20061_v33 }
0x3265   : > { %15866 = vmatprep.mubr.msk.f32.mxu1 %vm18593_vm11, %v18594_v37 }
0x3329   : > { %v15821_v21 = vpop.f32.mrb[76].mxu1 }
0x332a   : > { %v6235_v28 = vadd.f32 %v15821_v21, %v14346_v16  ;;  %v6229_v45 = vpop.f32.mrb[77].mxu1 }
0x332b   : > { %v6230_v32 = vadd.f32 %v14346_v16, %v6229_v45 }
0x332c   : > { %v6249_v27 = vmax.f32 %v6235_v28, 0.0 }
0x332d   : > { %v6248_v5 = vmax.f32 %v6230_v32, 0.0 }
0x332f   : > { %15841 = vmatprep.mubr.msk.f32.mxu0 %vm3382_vm10, %v6248_v5 }
0x3330   : > { %15842 = vmatmul.mubr.msk.f32.vlgmr.msra.gmra.mrb[84].mxu0 %vm3382_vm10, %v6249_v27 }
0x3333   : > { %v15824_v11 = vpop.f32.mrb[78].mxu1 }
0x3334   : > { %v6239_v12 = vpop.f32.mrb[79].mxu1  ;;  %v6245_v29 = vadd.f32 %v15824_v11, %v14346_v16 }
0x3335   : > { %v6240_v44 = vadd.f32 %v14346_v16, %v6239_v12 }
0x3336   : > { %v6251_v4 = vmax.f32 %v6245_v29, 0.0 }
0x3337   : > { %v6250_v55 = vmax.f32 %v6240_v44, 0.0  ;;  %v6544_v59 = vpop.f32.mrb[80].mxu1 }
0x3338   : > { %v6545_v52 = vadd.f32 %v20082_v20, %v6544_v59  ;;  %v15857_v3 = vpop.f32.mrb[81].mxu1 }
0x3339   : > { %15844 = vmatprep.mubr.msk.f32.mxu0 %vm3382_vm10, %v6250_v55 }
0x333a   : > { %6804 = vrot.lane.b32.xlu0 %v6545_v52, %s21614_s28  ;;  %6642 = vrot.lane.b32.xlu1 %v6545_v52, %s21612_s17 }
0x333b   : > { %15845 = vmatmul.mubr.msk.f32.gmra.mrb[86].mxu0 %vm3382_vm10, %v6251_v4 }
0x333c   : > { %15871 = vmatprep.mubr.msk.f32.mxu0 %vm18593_vm11, %v18594_v37 }
0x333e   : > { %6968 = vrot.lane.b32.xlu0 %v6545_v52, %s21618_s18  ;;  %6802 = vrot.lane.b32.xlu1 %v6545_v52, %s21615_s15 }
0x3342   : > { %7133 = vrot.lane.b32.xlu0 %v6545_v52, %s21621_s19  ;;  %6970 = vrot.lane.b32.xlu1 %v6545_v52, %s21617_s16 }
0x3346   : > { %7298 = vrot.lane.b32.xlu0 %v6545_v52, %s21624_s3  ;;  %7135 = vrot.lane.b32.xlu1 %v6545_v52, %s21620_s30 }
0x334a   : > { %7463 = vrot.lane.b32.xlu0 %v6545_v52, %s21627_s27  ;;  %7300 = vrot.lane.b32.xlu1 %v6545_v52, %s21623_s2 }
0x334e   : > { %7628 = vrot.lane.b32.xlu0 %v6545_v52, %s21630_s21  ;;  %7465 = vrot.lane.b32.xlu1 %v6545_v52, %s21626_s23 }
0x3352   : > { %7793 = vrot.lane.b32.xlu0 %v6545_v52, %s21633_s12  ;;  %7630 = vrot.lane.b32.xlu1 %v6545_v52, %s21629_s14 }
0x3356   : > { %7795 = vrot.lane.b32.xlu1 %v6545_v52, %s21632_s24  ;;  %17751 = vrot.lane.b32.xlu0 %v17750_v61, %s21613_s20 }
0x335a   : > { %17746 = vrot.lane.b32.xlu1 %v17745_v43, %s21613_s20 }
0x33ac   : > { %v6805_v26 = vpop.permute.xlu0 %6804  ;;  %v6643_v42 = vpop.permute.xlu1 %6642 }
0x33ad   : > { %15870 = vmatpush3.xpose.msk.msra.mxu0 %vm449_vm1, %v6643_v42 }
0x33ae   : > { %15879 = vmatprep.subr.mxu0 %v18594_v37 }
0x33b0   : > { %v6969_v60 = vpop.permute.xlu0 %6968  ;;  %v6803_v31 = vpop.permute.xlu1 %6802  ;;  %15872 = vmatmul.mubr.msk.f32.vlgmr.msra.gmra.mrb[88].mxu0 %vm449_vm1, %v6545_v52 }
0x33b1   : > { %15880 = vmatpush3.xpose.msk.msra.mxu0 %vm449_vm1, %v6805_v26  ;;  %15881 = vmatprep.mubr.msk.f32.mxu0 %vm18593_vm11, %v18594_v37 }
0x33b2   : > { %15889 = vmatprep.subr.mxu0 %v18594_v37 }
0x33b4   : > { %v7134_v56 = vpop.permute.xlu0 %7133  ;;  %v6971_v51 = vpop.permute.xlu1 %6970  ;;  %15882 = vmatmul.mubr.msk.f32.vlgmr.msra.gmra.mrb[90].mxu0 %vm449_vm1, %v6803_v31 }
0x33b5   : > { %15890 = vmatpush3.xpose.msk.msra.mxu0 %vm449_vm1, %v6971_v51  ;;  %15891 = vmatprep.mubr.msk.f32.mxu0 %vm18593_vm11, %v18594_v37 }
0x33b6   : > { %15899 = vmatprep.subr.mxu0 %v18594_v37 }
0x33b8   : > { %v7299_v47 = vpop.permute.xlu0 %7298  ;;  %v7136_v6 = vpop.permute.xlu1 %7135  ;;  %15892 = vmatmul.mubr.msk.f32.vlgmr.msra.gmra.mrb[92].mxu0 %vm449_vm1, %v6969_v60 }
0x33b9   : > { %15900 = vmatpush3.xpose.msk.msra.mxu0 %vm449_vm1, %v7136_v6  ;;  %15901 = vmatprep.mubr.msk.f32.mxu0 %vm18593_vm11, %v18594_v37 }
0x33ba   : > { %15909 = vmatprep.subr.mxu0 %v18594_v37 }
0x33bc   : > { %v7464_v0 = vpop.permute.xlu0 %7463  ;;  %v7301_v7 = vpop.permute.xlu1 %7300  ;;  %15902 = vmatmul.mubr.msk.f32.vlgmr.msra.gmra.mrb[94].mxu0 %vm449_vm1, %v7134_v56 }
0x33bd   : > { %15910 = vmatpush3.xpose.msk.msra.mxu0 %vm449_vm1, %v7301_v7  ;;  %15911 = vmatprep.mubr.msk.f32.mxu0 %vm18593_vm11, %v18594_v37 }
0x33be   : > { %15919 = vmatprep.subr.mxu0 %v18594_v37 }
0x33c0   : > { %v7629_v10 = vpop.permute.xlu0 %7628  ;;  %v7466_v62 = vpop.permute.xlu1 %7465  ;;  %15912 = vmatmul.mubr.msk.f32.vlgmr.msra.gmra.mrb[96].mxu0 %vm449_vm1, %v7299_v47 }
0x33c1   : > { %15920 = vmatpush3.xpose.msk.msra.mxu0 %vm449_vm1, %v7466_v62  ;;  %15921 = vmatprep.mubr.msk.f32.mxu0 %vm18593_vm11, %v18594_v37 }
0x33c2   : > { %15929 = vmatprep.subr.mxu0 %v18594_v37 }
0x33c4   : > { %v7631_v17 = vpop.permute.xlu1 %7630  ;;  %15922 = vmatmul.mubr.msk.f32.vlgmr.msra.gmra.mrb[98].mxu0 %vm449_vm1, %v7464_v0  ;;  %v7794_v46 = vpop.permute.xlu0 %7793 }
0x33c5   : > { %15930 = vmatpush3.xpose.msk.msra.mxu0 %vm449_vm1, %v7631_v17  ;;  %15931 = vmatprep.mubr.msk.f32.mxu0 %vm18593_vm11, %v18594_v37 }
0x33c6   : > { %15939 = vmatprep.subr.mxu0 %v18594_v37 }
0x33c8   : > { %v7796_v9 = vpop.permute.xlu1 %7795  ;;  %15932 = vmatmul.mubr.msk.f32.vlgmr.msra.gmra.mrb[100].mxu0 %vm449_vm1, %v7629_v10  ;;  %v17752_v39 = vpop.permute.xlu0 %17751 }
0x33c9   : > { %15940 = vmatpush3.xpose.msk.msra.mxu0 %vm449_vm1, %v7796_v9  ;;  %15941 = vmatprep.mubr.msk.f32.mxu0 %vm18593_vm11, %v18594_v37  ;;  %v17754_v49 = vunpack.i.h.bf16 %v17752_v39  ;;  %v17753_v25 = vunpack.i.l.bf16 %v17752_v39 }
0x33ca   : > { %17010 = vmatprep.subr.bf16.mxu0 %v18592_v19 }
0x33cb   : > { %v17008_v1 = vpack.c.bf16 %v17754_v49, %v17753_v25 }
0x33cc   : > { %15942 = vmatmul.mubr.msk.f32.vlgmr.msra.gmra.mrb[102].mxu0 %vm449_vm1, %v7794_v46  ;;  %v17747_v24 = vpop.permute.xlu1 %17746 }
0x33cd   : > { %v17749_v13 = vunpack.i.h.bf16 %v17747_v24  ;;  %v17748_v53 = vunpack.i.l.bf16 %v17747_v24  ;;  %15957 = vmatprep.mubr.msk.f32.mxu0 %vm18593_vm11, %v18594_v37 }
0x33cf   : > { %v17005_v15 = vpack.c.bf16 %v17749_v13, %v17748_v53 }
0x33d1   : > { %17006 = vmatpush3.bf16.msra.mxu1 %v17005_v15 }
0x33d2   : > { %17007 = vmatprep.subr.bf16.mxu1 %v18592_v19 }
0x33d5   : > { %17009 = vmatpush3.bf16.msra.mxu1 %v17008_v1 }
0x33d6   : > { %15874 = vmatprep.subr.mxu1 %v18594_v37 }
0x33d8   : > { %15867 = vmatmul.mubr.f32.vlgmr.msra.gmra.mrb[82].mxu1 %v18594_v37 }
0x33d9   : > { %15876 = vmatprep.mubr.msk.f32.mxu1 %vm18593_vm11, %v18594_v37 }
0x3403   : > { %v15843_v22 = vpop.f32.mrb[84].mxu0 }
0x3404   : > { %v20160_v34 = vadd.f32 %v15843_v22, %v20157_v38  ;;  %v20162_v23 = vpop.f32.mrb[85].mxu0 }
0x340e   : > { %v20164_v8 = vpop.f32.mrb[86].mxu0 }
0x340f   : > { %v20166_v48 = vpop.f32.mrb[87].mxu0 }
0x3483   : > { %v6714_v16 = vpop.f32.mrb[88].mxu0 }
0x3484   : > { %v15873_v21 = vpop.f32.mrb[89].mxu0  ;;  %v6718_v28 = vsel %vm3069_vm4, %v6714_v16, -inf }
0x3485   : > { %6719 = vmax.xlane.f32.xlu1 %v6718_v28 }
0x3487   : > { %v6876_v45 = vpop.f32.mrb[90].mxu0 }
0x3488   : > { %v15883_v32 = vpop.f32.mrb[91].mxu0  ;;  %v6880_v5 = vsel %vm3069_vm4, %v6876_v45, -inf }
0x3489   : > { %6881 = vmax.xlane.f32.xlu0 %v6880_v5 }
0x348b   : > { %v7042_v27 = vpop.f32.mrb[92].mxu0 }
0x348c   : > { %v15893_v11 = vpop.f32.mrb[93].mxu0  ;;  %v7046_v12 = vsel %vm3069_vm4, %v7042_v27, -inf }
0x348d   : > { %7047 = vmax.xlane.f32.xlu0 %v7046_v12 }
0x348f   : > { %v7207_v29 = vpop.f32.mrb[94].mxu0 }
0x3490   : > { %v15903_v44 = vpop.f32.mrb[95].mxu0  ;;  %v7211_v55 = vsel %vm3069_vm4, %v7207_v29, -inf }
0x3491   : > { %7212 = vmax.xlane.f32.xlu1 %v7211_v55 }
0x3493   : > { %v7372_v59 = vpop.f32.mrb[96].mxu0 }
0x3494   : > { %v15913_v52 = vpop.f32.mrb[97].mxu0  ;;  %v7376_v3 = vsel %vm3069_vm4, %v7372_v59, -inf }
0x3495   : > { %7377 = vmax.xlane.f32.xlu0 %v7376_v3 }
0x3497   : > { %v7537_v4 = vpop.f32.mrb[98].mxu0 }
0x3498   : > { %v15923_v61 = vpop.f32.mrb[99].mxu0  ;;  %v7541_v43 = vsel %vm3069_vm4, %v7537_v4, -inf }
0x3499   : > { %7542 = vmax.xlane.f32.xlu1 %v7541_v43 }
0x349b   : > { %v7702_v26 = vpop.f32.mrb[100].mxu0 }
0x349c   : > { %v15933_v42 = vpop.f32.mrb[101].mxu0  ;;  %v7706_v60 = vsel %vm3069_vm4, %v7702_v26, -inf }
0x349d   : > { %7707 = vmax.xlane.f32.xlu0 %v7706_v60 }
0x349f   : > { %v20175_v31 = vpop.f32.mrb[102].mxu0 }
0x34a0   : > { %v15943_v56 = vpop.f32.mrb[103].mxu0  ;;  %v7871_v11 = vsel %vm3069_vm4, %v20175_v31, -inf }
0x34ab   : > { %v6637_v51 = vpop.f32.mrb[82].mxu1 }
0x34ac   : > { %v15868_v47 = vpop.f32.mrb[83].mxu1 }
0x34b3   : > { %6565 = vrot.lane.b32.xlu0 %v20082_v20, %s21613_s20  ;;  %s21654_s20 = sld [smem:[#allocation24_spill]] }
0x3512   : > { %v6720_v24 = vpop.xlane.xlu1 %6719 }
0x3513   : > { %v6721_v13 = vsub.f32 %v6714_v16, %v6720_v24 }
0x3515   : > { %v6722_v53 = vmul.f32 1.442695, %v6721_v13 }
0x3516   : > { %v6882_v6 = vpop.xlane.xlu0 %6881 }
0x3517   : > { %v6883_v49 = vsub.f32 %v6876_v45, %v6882_v6 }
0x3519   : > { %v6884_v25 = vmul.f32 1.442695, %v6883_v49 }
0x351a   : > { %v7048_v0 = vpop.xlane.xlu0 %7047 }
0x351b   : > { %v7049_v15 = vsub.f32 %v7042_v27, %v7048_v0 }
0x351d   : > { %v7050_v22 = vmul.f32 1.442695, %v7049_v15 }
0x351e   : > { %v7213_v1 = vpop.xlane.xlu1 %7212 }
0x351f   : > { %v7214_v21 = vsub.f32 %v7207_v29, %v7213_v1 }
0x3521   : > { %v7215_v28 = vmul.f32 1.442695, %v7214_v21 }
0x3522   : > { %v7378_v7 = vpop.xlane.xlu0 %7377 }
0x3523   : > { %v7379_v32 = vsub.f32 %v7372_v59, %v7378_v7 }
0x3525   : > { %v7380_v45 = vmul.f32 1.442695, %v7379_v32 }
0x3526   : > { %v7543_v5 = vpop.xlane.xlu1 %7542 }
0x3527   : > { %v7544_v12 = vsub.f32 %v7537_v4, %v7543_v5 }
0x3529   : > { %v7545_v27 = vmul.f32 1.442695, %v7544_v12 }
0x352a   : > { %v7708_v10 = vpop.xlane.xlu0 %7707 }
0x352b   : > { %v7709_v62 = vsub.f32 %v7702_v26, %v7708_v10 }
0x352d   : > { %v7710_v17 = vmul.f32 1.442695, %v7709_v62 }
0x352e   : > { %v6566_v46 = vpop.permute.xlu0 %6565 }
0x352f   : > { %18345 = vpow2.f32 %v7710_v17  ;;  %v20179_v9 = vadd.f32 %v6637_v51, %v6566_v46 }
0x3530   : > { %18347 = vpow2.f32 %v6722_v53 }
0x3531   : > { %6892 = vrot.lane.b32.xlu1 %v20179_v9, %s21615_s15  ;;  %15875 = vmatpush3.msra.mxu1 %v20179_v9  ;;  %18349 = vpow2.f32 %v6884_v25 }
0x3532   : > { %15884 = vmatprep.subr.mxu1 %v18594_v37  ;;  %18351 = vpow2.f32 %v7050_v22 }
0x3533   : > { %18353 = vpow2.f32 %v7215_v28 }
0x3534   : > { %18355 = vpow2.f32 %v7380_v45 }
0x3535   : > { %7057 = vrot.lane.b32.xlu1 %v20179_v9, %s21618_s18  ;;  %18357 = vpow2.f32 %v7545_v27 }
0x3539   : > { %v20187_v20 = vpop.eup %18345  ;;  %7222 = vrot.lane.b32.xlu1 %v20179_v9, %s21621_s19 }
0x353a   : > { %v7712_v39 = vsel %vm3069_vm4, %v20187_v20, 0.0  ;;  %v18348_v16 = vpop.eup %18347 }
0x353b   : > { %7713 = vadd.xlane.f32.xlu0 %v7712_v39  ;;  %v6724_v44 = vsel %vm3069_vm4, %v18348_v16, 0.0  ;;  %v18350_v55 = vpop.eup %18349 }
0x353c   : > { %v6886_v29 = vsel %vm3069_vm4, %v18350_v55, 0.0  ;;  %v18352_v52 = vpop.eup %18351 }
0x353d   : > { %v7052_v59 = vsel %vm3069_vm4, %v18352_v52, 0.0  ;;  %v18354_v3 = vpop.eup %18353 }
0x353e   : > { %v7217_v61 = vsel %vm3069_vm4, %v18354_v3, 0.0  ;;  %v18356_v43 = vpop.eup %18355 }
0x353f   : > { %v7382_v4 = vsel %vm3069_vm4, %v18356_v43, 0.0  ;;  %v20202_v26 = vpop.eup %18357 }
0x3540   : > { %v7547_v42 = vsel %vm3069_vm4, %v20202_v26, 0.0 }
0x3551   : > { %7387 = vrot.lane.b32.xlu0 %v20179_v9, %s21624_s3 }
0x355d   : > { %7872 = vmax.xlane.f32.xlu1 %v7871_v11 }
0x3561   : > { %6725 = vadd.xlane.f32.xlu1 %v6724_v44 }
0x3565   : > { %6887 = vadd.xlane.f32.xlu1 %v6886_v29 }
0x3569   : > { %7053 = vadd.xlane.f32.xlu1 %v7052_v59 }
0x356d   : > { %7218 = vadd.xlane.f32.xlu1 %v7217_v61 }
0x3571   : > { %7383 = vadd.xlane.f32.xlu1 %v7382_v4 }
0x3575   : > { %7548 = vadd.xlane.f32.xlu1 %v7547_v42 }
0x3586   : > { %7552 = vrot.lane.b32.xlu1 %v20179_v9, %s21627_s27 }
0x358a   : > { %7717 = vrot.lane.b32.xlu1 %v20179_v9, %s21630_s21 }
0x35a3   : > { %v6893_v60 = vpop.permute.xlu1 %6892 }
0x35a7   : > { %v7058_v56 = vpop.permute.xlu1 %7057 }
0x35ab   : > { %v7223_v51 = vpop.permute.xlu1 %7222 }
0x35c8   : > { %v7714_v22 = vpop.xlane.xlu0 %7713 }
0x35cc   : > { %v7388_v5 = vpop.permute.xlu0 %7387 }
0x35ea   : > { %v7873_v47 = vpop.xlane.xlu1 %7872 }
0x35eb   : > { %v7874_v6 = vsub.f32 %v20175_v31, %v7873_v47 }
0x35ed   : > { %v7875_v0 = vmul.f32 1.442695, %v7874_v6 }
0x35ee   : > { %v6726_v7 = vpop.xlane.xlu1 %6725 }
0x35ef   : > { %18359 = vpow2.f32 %v7875_v0 }
0x35f0   : > { %18361 = vrcp.f32 %v6726_v7 }
0x35f2   : > { %v6888_v10 = vpop.xlane.xlu1 %6887 }
0x35f3   : > { %18363 = vrcp.f32 %v6888_v10  ;;  %v6335_v10 = vadd.f32 %v20162_v23, %v20157_v38  ;;  %v6448_v23 = vld [vmem:[%s21650_s10] sm:$0xff] }
0x35f6   : > { %v7054_v62 = vpop.xlane.xlu1 %7053 }
0x35f7   : > { %18365 = vrcp.f32 %v7054_v62  ;;  %v6353_v62 = vadd.f32 %v6335_v10, %v20016_v41 }
0x35f9   : > { %v18360_v17 = vpop.eup %18359 }
0x35fa   : > { %v18362_v46 = vpop.eup %18361  ;;  %v7219_v39 = vpop.xlane.xlu1 %7218  ;;  %v7877_v24 = vsel %vm3069_vm4, %v18360_v17, 0.0 }
0x35fb   : > { %18367 = vrcp.f32 %v7219_v39  ;;  %7878 = vadd.xlane.f32.xlu1 %v7877_v24  ;;  %v6728_v13 = vmul.f32 %v18362_v46, %v18348_v16  ;;  %v6350_v46 = vadd.f32 %v20164_v8, %v20157_v38  ;;  %v6357_v24 = vsel %vm576_vm2, %v6353_v62, 0.0  ;;  %v6451_v8 = vld [vmem:[%s21650_s10 + $0x18] sm:$0xff] }
0x35fd   : > { %v18364_v53 = vpop.eup %18363  ;;  %15877 = vmatmul.mubr.msk.f32.vlgmr.msra.gmra.mrb[84].mxu1 %vm3069_vm4, %v6728_v13  ;;  %v20265_v13 = vadd.f32 %v6350_v46, %v20047_v2  ;;  %v6450_v2 = vld [vmem:[%s21650_s10 + $0x10] sm:$0xff] }
0x35fe   : > { %15885 = vmatpush3.msra.mxu1 %v6893_v60  ;;  %v7384_v31 = vpop.xlane.xlu1 %7383  ;;  %15886 = vmatprep.mubr.msk.f32.mxu1 %vm18593_vm11, %v18594_v37  ;;  %v6890_v49 = vmul.f32 %v18364_v53, %v18350_v55 }
0x35ff   : > { %18369 = vrcp.f32 %v7384_v31  ;;  %15894 = vmatprep.subr.mxu1 %v18594_v37  ;;  %v6366_v41 = vsel %vm576_vm2, %v20265_v13, 0.0 }
0x3601   : > { %v18366_v25 = vpop.eup %18365  ;;  %15887 = vmatmul.mubr.msk.f32.vlgmr.msra.gmra.mrb[86].mxu1 %vm3069_vm4, %v6890_v49 }
0x3602   : > { %15895 = vmatpush3.msra.mxu1 %v7058_v56  ;;  %v7549_v15 = vpop.xlane.xlu1 %7548  ;;  %15896 = vmatprep.mubr.msk.f32.mxu1 %vm18593_vm11, %v18594_v37  ;;  %v7056_v1 = vmul.f32 %v18366_v25, %v18352_v52  ;;  %v6354_v25 = vadd.f32 %v20160_v34, %v20020_v18 }
0x3603   : > { %18371 = vrcp.f32 %v7549_v15  ;;  %15904 = vmatprep.subr.mxu1 %v18594_v37 }
0x3604   : > { %18373 = vrcp.f32 %v7714_v22 }
0x3605   : > { %v18368_v21 = vpop.eup %18367  ;;  %15897 = vmatmul.mubr.msk.f32.vlgmr.msra.gmra.mrb[88].mxu1 %vm3069_vm4, %v7056_v1  ;;  %v6360_v1 = vsel %vm576_vm2, %v6354_v25, 0.0 }
0x3606   : > { %15905 = vmatpush3.msra.mxu1 %v7223_v51  ;;  %15906 = vmatprep.mubr.msk.f32.mxu1 %vm18593_vm11, %v18594_v37  ;;  %v7221_v28 = vmul.f32 %v18368_v21, %v18354_v3  ;;  %v7553_v16 = vpop.permute.xlu1 %7552 }
0x3607   : > { %15914 = vmatprep.subr.mxu1 %v18594_v37 }
0x3609   : > { %v18370_v32 = vpop.eup %18369  ;;  %15907 = vmatmul.mubr.msk.f32.vlgmr.msra.gmra.mrb[90].mxu1 %vm3069_vm4, %v7221_v28 }
0x360a   : > { %15915 = vmatpush3.msra.mxu1 %v7388_v5  ;;  %15916 = vmatprep.mubr.msk.f32.mxu1 %vm18593_vm11, %v18594_v37  ;;  %v7386_v11 = vmul.f32 %v18370_v32, %v18356_v43  ;;  %v7718_v55 = vpop.permute.xlu1 %7717 }
0x360b   : > { %15924 = vmatprep.subr.mxu1 %v18594_v37 }
0x360c   : > { %7882 = vrot.lane.b32.xlu1 %v20179_v9, %s21633_s12 }
0x360d   : > { %v18372_v45 = vpop.eup %18371  ;;  %15917 = vmatmul.mubr.msk.f32.vlgmr.msra.gmra.mrb[92].mxu1 %vm3069_vm4, %v7386_v11 }
0x360e   : > { %15925 = vmatpush3.msra.mxu1 %v7553_v16  ;;  %15926 = vmatprep.mubr.msk.f32.mxu1 %vm18593_vm11, %v18594_v37  ;;  %v7551_v12 = vmul.f32 %v18372_v45, %v20202_v26  ;;  %v18374_v44 = vpop.eup %18373 }
0x360f   : > { %15934 = vmatprep.subr.mxu1 %v18594_v37  ;;  %v7716_v9 = vmul.f32 %v18374_v44, %v20187_v20 }
0x3611   : > { %15927 = vmatmul.mubr.msk.f32.vlgmr.msra.gmra.mrb[94].mxu1 %vm3069_vm4, %v7551_v12 }
0x3612   : > { %15935 = vmatpush3.msra.mxu1 %v7718_v55  ;;  %15936 = vmatprep.mubr.msk.f32.mxu1 %vm18593_vm11, %v18594_v37 }
0x3613   : > { %15944 = vmatprep.subr.mxu1 %v18594_v37 }
0x3615   : > { %15937 = vmatmul.mubr.msk.f32.vlgmr.msra.gmra.mrb[96].mxu1 %vm3069_vm4, %v7716_v9 }
0x3616   : > { %15946 = vmatprep.mubr.msk.f32.mxu1 %vm18593_vm11, %v18594_v37 }
0x3688   : > { %v7879_v27 = vpop.xlane.xlu1 %7878 }
0x3689   : > { %18375 = vrcp.f32 %v7879_v27 }
0x368c   : > { %v7883_v29 = vpop.permute.xlu1 %7882 }
0x368d   : > { %15945 = vmatpush3.msra.mxu1 %v7883_v29 }
0x368e   : > { %17016 = vmatprep.subr.bf16.mxu1 %v18592_v19 }
0x3693   : > { %v18376_v52 = vpop.eup %18375 }
0x3694   : > { %v7881_v59 = vmul.f32 %v18376_v52, %v18360_v17  ;;  %v6345_v17 = vadd.f32 %v20166_v48, %v20157_v38  ;;  %v17014_v48 = vpack.c.bf16 %v6451_v8, %v6450_v2 }
0x3696   : > { %15947 = vmatmul.mubr.msk.f32.vlgmr.msra.gmra.mrb[98].mxu1 %vm3069_vm4, %v7881_v59  ;;  %v6355_v39 = vadd.f32 %v6345_v17, %v20040_v14  ;;  %v6449_v14 = vld [vmem:[%s21650_s10 + $0x8] sm:$0xff] }
0x3697   : > { %15968 = vmatprep.mubr.msk.f32.mxu1 %vm18593_vm11, %v18594_v37  ;;  %v17011_v38 = vpack.c.bf16 %v6449_v14, %v6448_v23 }
0x3698   : > { %v6363_v53 = vsel %vm576_vm2, %v6355_v39, 0.0 }
0x3699   : > { %17012 = vmatpush3.bf16.msra.mxu0 %v17011_v38 }
0x369a   : > { %17013 = vmatprep.subr.bf16.mxu0 %v18592_v19 }
0x369d   : > { %17015 = vmatpush3.bf16.msra.mxu0 %v17014_v48 }
0x36d0   : > { %v20247_v20 = vpop.f32.mrb[84].mxu1 }
0x36d1   : > { %v15878_v3 = vpop.f32.mrb[85].mxu1 }
0x36d4   : > { %v6964_v61 = vpop.f32.mrb[86].mxu1 }
0x36d5   : > { %7959 = vrot.lane.b32.xlu1 %v6964_v61, %s21644_s25  ;;  %v15888_v43 = vpop.f32.mrb[87].mxu1 }
0x36d8   : > { %v7129_v4 = vpop.f32.mrb[88].mxu1 }
0x36d9   : > { %7963 = vrot.lane.b32.xlu1 %v7129_v4, %s21645_s13  ;;  %v15898_v26 = vpop.f32.mrb[89].mxu1 }
0x36dc   : > { %v7294_v42 = vpop.f32.mrb[90].mxu1 }
0x36dd   : > { %7967 = vrot.lane.b32.xlu1 %v7294_v42, %s21646_s0  ;;  %v15908_v60 = vpop.f32.mrb[91].mxu1 }
0x36e0   : > { %v7459_v56 = vpop.f32.mrb[92].mxu1 }
0x36e1   : > { %7971 = vrot.lane.b32.xlu0 %v7459_v56, %s21647_s8  ;;  %v15918_v51 = vpop.f32.mrb[93].mxu1 }
0x36e4   : > { %v7624_v47 = vpop.f32.mrb[94].mxu1 }
0x36e5   : > { %7975 = vrot.lane.b32.xlu1 %v7624_v47, %s21648_s7  ;;  %v15928_v6 = vpop.f32.mrb[95].mxu1 }
0x36e8   : > { %v7789_v0 = vpop.f32.mrb[96].mxu1 }
0x36e9   : > { %7979 = vrot.lane.b32.xlu0 %v7789_v0, %s21649_s9  ;;  %v15938_v7 = vpop.f32.mrb[97].mxu1  ;;  %v20301_v0 = vrot.slane %v19937_v50, %v18762_v36  ;;  %s21656_s9 = smov 28  }
0x3708   : > { %6358 = vadd.xlane.f32.xlu0 %v6357_v24 }
0x370c   : > { %6364 = vadd.xlane.f32.xlu0 %v6363_v53 }
0x3710   : > { %6367 = vadd.xlane.f32.xlu0 %v6366_v41  ;;  %v20330_v41 = vld [vmem:[%s21650_s10 + $0xa0] sm:$0xff] }
0x3711   : > { %v7996_v2 = vrot.slane %v20330_v41, %v19294_v54 }
0x3747   : > { %v7960_v18 = vpop.permute.xlu1 %7959 }
0x3748   : > { %v7986_v27 = vsel %vm449_vm1, %v20247_v20, %v7960_v18 }
0x374b   : > { %v7964_v34 = vpop.permute.xlu1 %7963 }
0x374c   : > { %v7987_v29 = vsel %vm3069_vm4, %v7986_v27, %v7964_v34 }
0x374f   : > { %v7968_v9 = vpop.permute.xlu1 %7967 }
0x3750   : > { %v7988_v59 = vsel %vm3074_vm5, %v7987_v29, %v7968_v9 }
0x3753   : > { %v7972_v15 = vpop.permute.xlu0 %7971 }
0x3754   : > { %v7989_v3 = vsel %vm3079_vm6, %v7988_v59, %v7972_v15 }
0x3757   : > { %v7976_v52 = vpop.permute.xlu1 %7975 }
0x3758   : > { %v7990_v61 = vsel %vm3084_vm7, %v7989_v3, %v7976_v52 }
0x375b   : > { %v7980_v22 = vpop.permute.xlu0 %7979 }
0x375c   : > { %v7991_v43 = vsel %vm3089_vm8, %v7990_v61, %v7980_v22 }
0x3769   : > { %v7954_v31 = vpop.f32.mrb[98].mxu1 }
0x376a   : > { %7983 = vrot.lane.b32.xlu1 %v7954_v31, %s21651_s22  ;;  %v15948_v49 = vpop.f32.mrb[99].mxu1 }
0x378e   : > { %6361 = vadd.xlane.f32.xlu1 %v6360_v1 }
0x3795   : > { %v6359_v21 = vpop.xlane.xlu0 %6358 }
0x3796   : > { %v6369_v28 = vmul.f32 0.03125, %v6359_v21 }
0x3798   : > { %v6373_v32 = vsub.f32 %v6353_v62, %v6369_v28  ;;  %v20307_v62 = vrot.slane %v19937_v50, %v19418_v30 }
0x3799   : > { %v6365_v5 = vpop.xlane.xlu0 %6364 }
0x379a   : > { %v6371_v11 = vmul.f32 0.03125, %v6365_v5  ;;  %v6377_v16 = vmul.f32 %v6373_v32, %v6373_v32  ;;  %v6436_v5 = vld [vmem:[%s21654_s20 + $0x8] sm:$0xff] }
0x379c   : > { %v6375_v45 = vsub.f32 %v6355_v39, %v6371_v11  ;;  %v6381_v12 = vsel %vm576_vm2, %v6377_v16, 0.0  ;;  %v6438_v16 = vld [vmem:[%s21654_s20 + $0x18] sm:$0xff] }
0x379d   : > { %6382 = vadd.xlane.f32.xlu1 %v6381_v12  ;;  %v6368_v14 = vpop.xlane.xlu0 %6367 }
0x379e   : > { %v6379_v44 = vmul.f32 %v6375_v45, %v6375_v45  ;;  %v6372_v38 = vmul.f32 0.03125, %v6368_v14  ;;  %v8092_v14 = vrot.slane %v20330_v41, %v19365_v58 }
0x37a0   : > { %v6387_v55 = vsel %vm576_vm2, %v6379_v44, 0.0  ;;  %v6376_v15 = vsub.f32 %v20265_v13, %v6372_v38  ;;  %v6437_v13 = vld [vmem:[%s21654_s20 + $0x10] sm:$0xff] }
0x37a1   : > { %6388 = vadd.xlane.f32.xlu1 %v6387_v55 }
0x37a2   : > { %v6380_v28 = vmul.f32 %v6376_v15, %v6376_v15 }
0x37dc   : > { %v7984_v4 = vpop.permute.xlu1 %7983 }
0x37dd   : > { %v7992_v26 = vsel %vm3094_vm9, %v7991_v43, %v7984_v4 }
0x37de   : > { %15958 = vmatmul.mubr.msk.f32.vlgmr.msra.gmra.mrb[104].mxu0 %vm576_vm2, %v7992_v26 }
0x381b   : > { %v6362_v42 = vpop.xlane.xlu1 %6361 }
0x381c   : > { %v6370_v23 = vmul.f32 0.03125, %v6362_v42 }
0x381e   : > { %v6374_v8 = vsub.f32 %v6354_v25, %v6370_v23  ;;  %v6435_v25 = vld [vmem:[%s21654_s20] sm:$0xff] }
0x381f   : > { %v17022_v11 = vpack.c.bf16 %v6436_v5, %v6435_v25 }
0x3820   : > { %v6378_v22 = vmul.f32 %v6374_v8, %v6374_v8 }
0x3821   : > { %17023 = vmatprep.subr.bf16.mxu0 %v17022_v11 }
0x3822   : > { %v6384_v21 = vsel %vm576_vm2, %v6378_v22, 0.0  ;;  %17025 = vmatpush3.bf16.msra.mxu0 %v17022_v11 }
0x382a   : > { %v6383_v20 = vpop.xlane.xlu1 %6382 }
0x382b   : > { %v6393_v60 = vmul.f32 0.03125, %v6383_v20 }
0x382d   : > { %v6397_v56 = vadd.f32 1e-05, %v6393_v60 }
0x382e   : > { %v6389_v51 = vpop.xlane.xlu1 %6388 }
0x382f   : > { %18377 = vrsqrt.f32 %v6397_v56  ;;  %v6395_v47 = vmul.f32 0.03125, %v6389_v51  ;;  %v6452_v51 = vld [vmem:[%s21650_s10 + $0x20] sm:$0xff] }
0x3831   : > { %v6399_v6 = vadd.f32 1e-05, %v6395_v47  ;;  %v6453_v47 = vld [vmem:[%s21650_s10 + $0x28] sm:$0xff] }
0x3833   : > { %18379 = vrsqrt.f32 %v6399_v6  ;;  %v6454_v6 = vld [vmem:[%s21650_s10 + $0x30] sm:$0xff] }
0x3839   : > { %v18378_v7 = vpop.eup %18377 }
0x383a   : > { %v6405_v10 = vmul.f32 %v18378_v7, %v6373_v32  ;;  %v6390_v32 = vsel %vm576_vm2, %v6380_v28, 0.0  ;;  %v6455_v7 = vld [vmem:[%s21650_s10 + $0x38] sm:$0xff] }
0x383c   : > { %v6413_v17 = vmul.f32 %v20301_v0, %v6405_v10  ;;  %v17020_v10 = vpack.c.bf16 %v6455_v7, %v6454_v6 }
0x383d   : > { %v18380_v46 = vpop.eup %18379 }
0x383e   : > { %v20311_v39 = vadd.f32 %v20307_v62, %v6413_v17  ;;  %v6407_v24 = vmul.f32 %v18380_v46, %v6375_v45  ;;  %v17026_v45 = vpack.c.bf16 %v6438_v16, %v6437_v13 }
0x3840   : > { %6425 = vst.msk [vmem:[%s20313_s26] sm:$0xff] %vm576_vm2, %v20311_v39  ;;  %15979 = vmatprep.mubr.msk.f32.mxu0 %vm576_vm2, %v20311_v39  ;;  %v6415_v50 = vmul.f32 %v20301_v0, %v6407_v24  ;;  %17027 = vmatprep.subr.bf16.mxu0 %v17026_v45  ;;  %v8087_v24 = vrot.slane %v20330_v41, %v19362_v57 }
0x3841   : > { %17029 = vmatpush3.bf16.msra.mxu0 %v17026_v45 }
0x3842   : > { %v20322_v53 = vadd.f32 %v20307_v62, %v6415_v50  ;;  %17038 = vmatprep.subr.bf16.mxu0 %v18592_v19 }
0x3844   : > { %6427 = vst.msk [vmem:[%s20313_s26 + $0x10] sm:$0xff] %vm576_vm2, %v20322_v53 }
0x38b1   : > { %v8066_v48 = vpop.f32.mrb[104].mxu0 }
0x38b2   : > { %v8067_v31 = vadd.f32 %v8066_v48, %v7996_v2  ;;  %v15959_v49 = vpop.f32.mrb[105].mxu0  ;;  %v6440_v48 = vld [vmem:[%s21654_s20 + $0x28] sm:$0xff] }
0x38b4   : > { %v8071_v1 = vsel %vm576_vm2, %v8067_v31, 0.0 }
0x38b5   : > { %8072 = vadd.xlane.f32.xlu0 %v8071_v1 }
0x38b9   : > { %6385 = vadd.xlane.f32.xlu0 %v6384_v21  ;;  %v6441_v21 = vld [vmem:[%s21654_s20 + $0x30] sm:$0xff] }
0x38bd   : > { %6391 = vadd.xlane.f32.xlu0 %v6390_v32 }
0x3942   : > { %v8073_v12 = vpop.xlane.xlu0 %8072 }
0x3943   : > { %v8074_v44 = vmul.f32 0.03125, %v8073_v12  ;;  %v8098_v12 = vrot.slane %v20330_v41, %v19393_v40 }
0x3945   : > { %v8075_v55 = vsub.f32 %v8067_v31, %v8074_v44  ;;  %v6439_v31 = vld [vmem:[%s21654_s20 + $0x20] sm:$0xff] }
0x3946   : > { %v6386_v18 = vpop.xlane.xlu0 %6385 }
0x3947   : > { %v6394_v34 = vmul.f32 0.03125, %v6386_v18  ;;  %v8076_v9 = vmul.f32 %v8075_v55, %v8075_v55 }
0x3949   : > { %v6398_v27 = vadd.f32 1e-05, %v6394_v34  ;;  %v8077_v29 = vsel %vm576_vm2, %v8076_v9, 0.0 }
0x394a   : > { %8078 = vadd.xlane.f32.xlu1 %v8077_v29  ;;  %v6392_v52 = vpop.xlane.xlu0 %6391 }
0x394b   : > { %18381 = vrsqrt.f32 %v6398_v27  ;;  %v6396_v59 = vmul.f32 0.03125, %v6392_v52 }
0x394d   : > { %v6400_v3 = vadd.f32 1e-05, %v6396_v59 }
0x394f   : > { %18383 = vrsqrt.f32 %v6400_v3 }
0x3955   : > { %v18382_v61 = vpop.eup %18381 }
0x3956   : > { %v6406_v43 = vmul.f32 %v18382_v61, %v6374_v8 }
0x3958   : > { %v6414_v4 = vmul.f32 %v20301_v0, %v6406_v43 }
0x3959   : > { %v18384_v26 = vpop.eup %18383 }
0x395a   : > { %v20354_v42 = vadd.f32 %v20307_v62, %v6414_v4  ;;  %v6408_v20 = vmul.f32 %v18384_v26, %v6376_v15 }
0x395c   : > { %6426 = vst.msk [vmem:[%s20313_s26 + $0x8] sm:$0xff] %vm576_vm2, %v20354_v42  ;;  %15980 = vmatmul.mubr.msk.f32.vlgmr.msra.gmra.mrb[106].mxu0 %vm576_vm2, %v20354_v42  ;;  %v6416_v60 = vmul.f32 %v20301_v0, %v6408_v20  ;;  %v17017_v0 = vpack.c.bf16 %v6453_v47, %v6452_v51 }
0x395d   : > { %15982 = vmatprep.mubr.msk.f32.mxu0 %vm576_vm2, %v20322_v53 }
0x395e   : > { %v20365_v56 = vadd.f32 %v20307_v62, %v6416_v60  ;;  %17018 = vmatpush3.bf16.msra.mxu1 %v17017_v0 }
0x395f   : > { %17019 = vmatprep.subr.bf16.mxu1 %v18592_v19 }
0x3960   : > { %6428 = vst.msk [vmem:[%s20313_s26 + $0x18] sm:$0xff] %vm576_vm2, %v20365_v56  ;;  %15983 = vmatmul.mubr.msk.f32.gmra.mrb[108].mxu0 %vm576_vm2, %v20365_v56  ;;  %s21660_s26 = smov 24  }
0x3961   : > { %16004 = vmatprep.mubr.msk.f32.mxu0 %vm18593_vm11, %v18594_v37 }
0x3962   : > { %17021 = vmatpush3.bf16.msra.mxu1 %v17020_v10 }
0x3963   : > { %17030 = vmatprep.subr.bf16.mxu1 %v18592_v19 }
0x39d7   : > { %v8079_v62 = vpop.xlane.xlu1 %8078 }
0x39d8   : > { %v8080_v17 = vmul.f32 0.03125, %v8079_v62 }
0x39da   : > { %v8081_v46 = vadd.f32 1e-05, %v8080_v17 }
0x39dc   : > { %18385 = vrsqrt.f32 %v8081_v46 }
0x39e6   : > { %v18386_v50 = vpop.eup %18385 }
0x39e7   : > { %v8083_v23 = vmul.f32 %v18386_v50, %v8075_v55 }
0x39e9   : > { %v8088_v2 = vmul.f32 %v8087_v24, %v8083_v23 }
0x39eb   : > { %v20392_v38 = vadd.f32 %v8092_v14, %v8088_v2 }
0x39ed   : > { %v8094_v8 = vadd.f32 %v20392_v38, %v20061_v33  ;;  %v6442_v33 = vld [vmem:[%s21654_s20 + $0x38] sm:$0xff] }
0x39ef   : > { %15969 = vmatmul.mubr.msk.f32.vlgmr.msra.gmra.mrb[100].mxu1 %vm576_vm2, %v8094_v8 }
0x39f0   : > { %15993 = vmatprep.mubr.msk.f32.mxu1 %vm18593_vm11, %v18594_v37 }
0x3a2f   : > { %v15981_v49 = vpop.f32.mrb[106].mxu0 }
0x3a30   : > { %v8256_v15 = vadd.f32 %v15981_v49, %v6440_v48  ;;  %v8250_v1 = vpop.f32.mrb[107].mxu0 }
0x3a31   : > { %v8251_v22 = vadd.f32 %v8250_v1, %v6439_v31 }
0x3a33   : > { %v15984_v28 = vpop.f32.mrb[108].mxu0  ;;  %v17031_v32 = vpack.c.bf16 %v8256_v15, %v8251_v22  ;;  %v20411_v25 = vpack.i.bf16 %v8256_v15, %v8251_v22 }
0x3a34   : > { %v8266_v5 = vadd.f32 %v15984_v28, %v6442_v33  ;;  %v8260_v13 = vpop.f32.mrb[109].mxu0 }
0x3a35   : > { %v8261_v11 = vadd.f32 %v8260_v13, %v6441_v21  ;;  %17033 = vmatpush3.bf16.xpose.msk.msra.mxu1 %vm18817_vm3, %v17031_v32 }
0x3a36   : > { %17034 = vmatprep.subr.bf16.mxu1 %v18592_v19 }
0x3a37   : > { %v20416_v16 = vpack.i.bf16 %v8266_v5, %v8261_v11  ;;  %v17035_v45 = vpack.c.bf16 %v8266_v5, %v8261_v11 }
0x3a39   : > { %17761 = vrot.lane.b32.xlu1 %v20416_v16, %s21612_s17 }
0x3a3d   : > { %17766 = vrot.lane.b32.xlu1 %v20411_v25, %s21615_s15  ;;  %17037 = vmatpush3.bf16.xpose.msk.msra.mxu1 %vm18817_vm3, %v17035_v45 }
0x3a3e   : > { %17052 = vmatprep.subr.bf16.mxu1 %v18592_v19 }
0x3aab   : > { %v17762_v59 = vpop.permute.xlu1 %17761 }
0x3aac   : > { %v17764_v4 = vunpack.i.h.bf16 %v17762_v59  ;;  %v17763_v26 = vunpack.i.l.bf16 %v17762_v59 }
0x3aae   : > { %v17042_v60 = vpack.c.bf16 %v17764_v4, %v17763_v26 }
0x3aaf   : > { %v17767_v6 = vpop.permute.xlu1 %17766 }
0x3ab0   : > { %v17769_v7 = vunpack.i.h.bf16 %v17767_v6  ;;  %v17768_v10 = vunpack.i.l.bf16 %v17767_v6 }
0x3ab2   : > { %v17045_v46 = vpack.c.bf16 %v17769_v7, %v17768_v10 }
0x3ac2   : > { %v8168_v44 = vpop.f32.mrb[100].mxu1 }
0x3ac3   : > { %v20427_v55 = vadd.f32 %v8168_v44, %v8098_v12  ;;  %v15970_v18 = vpop.f32.mrb[101].mxu1 }
0x3ac5   : > { %15994 = vmatmul.mubr.msk.f32.vlgmr.msra.gmra.mrb[102].mxu1 %vm449_vm1, %v20427_v55 }
0x3ac6   : > { %16026 = vmatprep.mubr.msk.f32.mxu1 %vm18593_vm11, %v18594_v37 }
0x3b98   : > { %v8350_v34 = vpop.f32.mrb[102].mxu1 }
0x3b99   : > { %v15995_v9 = vpop.f32.mrb[103].mxu1  ;;  %v8354_v27 = vsel %vm576_vm2, %v8350_v34, -inf }
0x3b9a   : > { %8355 = vmax.xlane.f32.xlu0 %v8354_v27 }
0x3bb0   : > { %17756 = vrot.lane.b32.xlu0 %v20411_v25, %s21612_s17 }
0x3bb4   : > { %8450 = vrot.lane.b32.xlu0 %v20427_v55, %s21615_s15 }
0x3c27   : > { %v8356_v41 = vpop.xlane.xlu0 %8355 }
0x3c28   : > { %v8357_v29 = vsub.f32 %v8350_v34, %v8356_v41 }
0x3c2a   : > { %v8358_v52 = vmul.f32 1.442695, %v8357_v29 }
0x3c2b   : > { %v17757_v3 = vpop.permute.xlu0 %17756 }
0x3c2c   : > { %18387 = vpow2.f32 %v8358_v52  ;;  %v17759_v61 = vunpack.i.h.bf16 %v17757_v3  ;;  %v17758_v43 = vunpack.i.l.bf16 %v17757_v3 }
0x3c2e   : > { %v17039_v20 = vpack.c.bf16 %v17759_v61, %v17758_v43 }
0x3c2f   : > { %v8451_v2 = vpop.permute.xlu0 %8450 }
0x3c30   : > { %17040 = vmatpush3.bf16.msra.mxu0 %v17039_v20 }
0x3c31   : > { %17041 = vmatprep.subr.bf16.mxu0 %v18592_v19 }
0x3c34   : > { %17043 = vmatpush3.bf16.msra.mxu0 %v17042_v60 }
0x3c35   : > { %17044 = vmatprep.subr.bf16.mxu0 %v18592_v19 }
0x3c36   : > { %v18388_v51 = vpop.eup %18387 }
0x3c37   : > { %v8360_v47 = vsel %vm576_vm2, %v18388_v51, 0.0 }
0x3c38   : > { %8361 = vadd.xlane.f32.xlu1 %v8360_v47 }
0x3c49   : > { %17771 = vrot.lane.b32.xlu1 %v20416_v16, %s21615_s15 }
0x3cc5   : > { %v8362_v0 = vpop.xlane.xlu1 %8361 }
0x3cc6   : > { %18389 = vrcp.f32 %v8362_v0 }
0x3cc9   : > { %v17772_v24 = vpop.permute.xlu1 %17771 }
0x3cca   : > { %v17774_v50 = vunpack.i.h.bf16 %v17772_v24  ;;  %v17773_v23 = vunpack.i.l.bf16 %v17772_v24 }
0x3ccc   : > { %v17049_v14 = vpack.c.bf16 %v17774_v50, %v17773_v23 }
0x3cd0   : > { %v18390_v62 = vpop.eup %18389 }
0x3cd1   : > { %v8364_v17 = vmul.f32 %v18390_v62, %v18388_v51 }
0x3cd3   : > { %16005 = vmatmul.mubr.msk.f32.vlgmr.msra.gmra.mrb[110].mxu0 %vm576_vm2, %v8364_v17 }
0x3cd4   : > { %17047 = vmatpush3.bf16.xpose.msk.msra.mxu0 %vm18817_vm3, %v17045_v46  ;;  %16015 = vmatprep.mubr.msk.f32.mxu0 %vm18593_vm11, %v18594_v37 }
0x3cd5   : > { %17048 = vmatprep.subr.bf16.mxu0 %v18592_v19 }
0x3cdc   : > { %17051 = vmatpush3.bf16.xpose.msk.msra.mxu0 %vm18817_vm3, %v17049_v14 }
0x3cdd   : > { %17066 = vmatprep.subr.bf16.mxu0 %v18592_v19 }
0x3ce3   : > { %16016 = vmatmul.mubr.msk.f32.vlgmr.msra.gmra.mrb[112].mxu0 %vm449_vm1, %v8451_v2 }
0x3ce4   : > { %16048 = vmatprep.mubr.msk.f32.mxu0 %vm18593_vm11, %v18594_v37 }
0x3da6   : > { %v20455_v8 = vpop.f32.mrb[110].mxu0 }
0x3da7   : > { %v16006_v48 = vpop.f32.mrb[111].mxu0 }
0x3db6   : > { %v8536_v31 = vpop.f32.mrb[112].mxu0 }
0x3db7   : > { %v16017_v49 = vpop.f32.mrb[113].mxu0  ;;  %v8540_v15 = vsel %vm576_vm2, %v8536_v31, -inf }
0x3db8   : > { %8541 = vmax.xlane.f32.xlu1 %v8540_v15 }
0x3dc9   : > { %17781 = vrot.lane.b32.xlu1 %v20416_v16, %s21614_s28 }
0x3dcd   : > { %17786 = vrot.lane.b32.xlu1 %v20411_v25, %s21618_s18 }
0x3dd1   : > { %8636 = vrot.lane.b32.xlu1 %v20427_v55, %s21618_s18 }
0x3dd5   : > { %17801 = vrot.lane.b32.xlu1 %v20416_v16, %s21617_s16 }
0x3e45   : > { %v8542_v1 = vpop.xlane.xlu1 %8541 }
0x3e46   : > { %v8543_v22 = vsub.f32 %v8536_v31, %v8542_v1 }
0x3e48   : > { %v8544_v33 = vmul.f32 1.442695, %v8543_v22 }
0x3e49   : > { %v17782_v5 = vpop.permute.xlu1 %17781 }
0x3e4a   : > { %18391 = vpow2.f32 %v8544_v33  ;;  %v17784_v12 = vunpack.i.h.bf16 %v17782_v5  ;;  %v17783_v44 = vunpack.i.l.bf16 %v17782_v5 }
0x3e4c   : > { %v17056_v9 = vpack.c.bf16 %v17784_v12, %v17783_v44 }
0x3e4d   : > { %v17787_v27 = vpop.permute.xlu1 %17786 }
0x3e4e   : > { %v17789_v29 = vunpack.i.h.bf16 %v17787_v27  ;;  %v17788_v52 = vunpack.i.l.bf16 %v17787_v27 }
0x3e50   : > { %v17059_v59 = vpack.c.bf16 %v17789_v29, %v17788_v52 }
0x3e51   : > { %v8637_v26 = vpop.permute.xlu1 %8636 }
0x3e54   : > { %v18392_v21 = vpop.eup %18391 }
0x3e55   : > { %v8546_v28 = vsel %vm576_vm2, %v18392_v21, 0.0  ;;  %v17802_v62 = vpop.permute.xlu1 %17801 }
0x3e56   : > { %8547 = vadd.xlane.f32.xlu0 %v8546_v28  ;;  %v17804_v50 = vunpack.i.h.bf16 %v17802_v62  ;;  %v17803_v23 = vunpack.i.l.bf16 %v17802_v62 }
0x3e58   : > { %v17070_v2 = vpack.c.bf16 %v17804_v50, %v17803_v23 }
0x3e6c   : > { %17776 = vrot.lane.b32.xlu0 %v20411_v25, %s21614_s28 }
0x3e70   : > { %17791 = vrot.lane.b32.xlu0 %v20416_v16, %s21618_s18 }
0x3ee3   : > { %v8548_v32 = vpop.xlane.xlu0 %8547 }
0x3ee4   : > { %18393 = vrcp.f32 %v8548_v32 }
0x3ee7   : > { %v17777_v13 = vpop.permute.xlu0 %17776 }
0x3ee8   : > { %v17779_v11 = vunpack.i.h.bf16 %v17777_v13  ;;  %v17778_v45 = vunpack.i.l.bf16 %v17777_v13 }
0x3eea   : > { %v17053_v18 = vpack.c.bf16 %v17779_v11, %v17778_v45 }
0x3eeb   : > { %v17792_v3 = vpop.permute.xlu0 %17791 }
0x3eec   : > { %17054 = vmatpush3.bf16.msra.mxu1 %v17053_v18  ;;  %v17794_v61 = vunpack.i.h.bf16 %v17792_v3  ;;  %v17793_v43 = vunpack.i.l.bf16 %v17792_v3 }
0x3eed   : > { %17055 = vmatprep.subr.bf16.mxu1 %v18592_v19 }
0x3eee   : > { %v18394_v34 = vpop.eup %18393  ;;  %v17063_v4 = vpack.c.bf16 %v17794_v61, %v17793_v43 }
0x3eef   : > { %v8550_v41 = vmul.f32 %v18394_v34, %v18392_v21 }
0x3ef0   : > { %17057 = vmatpush3.bf16.msra.mxu1 %v17056_v9 }
0x3ef1   : > { %17058 = vmatprep.subr.bf16.mxu1 %v18592_v19 }
0x3ef3   : > { %16027 = vmatmul.mubr.msk.f32.vlgmr.msra.gmra.mrb[104].mxu1 %vm576_vm2, %v8550_v41 }
0x3ef4   : > { %16037 = vmatprep.mubr.msk.f32.mxu1 %vm18593_vm11, %v18594_v37 }
0x3ef9   : > { %17061 = vmatpush3.bf16.xpose.msk.msra.mxu1 %vm18817_vm3, %v17059_v59 }
0x3efa   : > { %17062 = vmatprep.subr.bf16.mxu1 %v18592_v19 }
0x3f01   : > { %17065 = vmatpush3.bf16.xpose.msk.msra.mxu1 %vm18817_vm3, %v17063_v4 }
0x3f02   : > { %17080 = vmatprep.subr.bf16.mxu1 %v18592_v19 }
0x3f08   : > { %16038 = vmatmul.mubr.msk.f32.vlgmr.msra.gmra.mrb[106].mxu1 %vm449_vm1, %v8637_v26 }
0x3f09   : > { %16070 = vmatprep.mubr.msk.f32.mxu1 %vm18593_vm11, %v18594_v37 }
0x3fc6   : > { %v20485_v20 = vpop.f32.mrb[104].mxu1 }
0x3fc7   : > { %v16028_v60 = vpop.f32.mrb[105].mxu1 }
0x3fdb   : > { %v8722_v51 = vpop.f32.mrb[106].mxu1 }
0x3fdc   : > { %v16039_v47 = vpop.f32.mrb[107].mxu1  ;;  %v8726_v6 = vsel %vm576_vm2, %v8722_v51, -inf }
0x3fdd   : > { %8727 = vmax.xlane.f32.xlu0 %v8726_v6 }
0x3ff3   : > { %17796 = vrot.lane.b32.xlu0 %v20411_v25, %s21617_s16 }
0x3ff7   : > { %17806 = vrot.lane.b32.xlu0 %v20411_v25, %s21621_s19 }
0x3ffb   : > { %8822 = vrot.lane.b32.xlu0 %v20427_v55, %s21621_s19 }
0x406a   : > { %v8728_v0 = vpop.xlane.xlu0 %8727 }
0x406b   : > { %v8729_v7 = vsub.f32 %v8722_v51, %v8728_v0 }
0x406d   : > { %v8730_v10 = vmul.f32 1.442695, %v8729_v7 }
0x406e   : > { %v17797_v17 = vpop.permute.xlu0 %17796 }
0x406f   : > { %18395 = vpow2.f32 %v8730_v10  ;;  %v17799_v46 = vunpack.i.h.bf16 %v17797_v17  ;;  %v17798_v24 = vunpack.i.l.bf16 %v17797_v17 }
0x4071   : > { %v17067_v14 = vpack.c.bf16 %v17799_v46, %v17798_v24 }
0x4072   : > { %v17807_v15 = vpop.permute.xlu0 %17806 }
0x4073   : > { %17068 = vmatpush3.bf16.msra.mxu0 %v17067_v14  ;;  %v17809_v1 = vunpack.i.h.bf16 %v17807_v15  ;;  %v17808_v22 = vunpack.i.l.bf16 %v17807_v15 }
0x4074   : > { %17069 = vmatprep.subr.bf16.mxu0 %v18592_v19 }
0x4075   : > { %v17073_v28 = vpack.c.bf16 %v17809_v1, %v17808_v22 }
0x4076   : > { %v8823_v45 = vpop.permute.xlu0 %8822 }
0x4077   : > { %17071 = vmatpush3.bf16.msra.mxu0 %v17070_v2 }
0x4078   : > { %17072 = vmatprep.subr.bf16.mxu0 %v18592_v19 }
0x4079   : > { %v18396_v48 = vpop.eup %18395 }
0x407a   : > { %v8732_v31 = vsel %vm576_vm2, %v18396_v48, 0.0 }
0x407b   : > { %8733 = vadd.xlane.f32.xlu1 %v8732_v31 }
0x408c   : > { %17811 = vrot.lane.b32.xlu1 %v20416_v16, %s21621_s19 }
0x4108   : > { %v8734_v49 = vpop.xlane.xlu1 %8733 }
0x4109   : > { %18397 = vrcp.f32 %v8734_v49 }
0x410c   : > { %v17812_v32 = vpop.permute.xlu1 %17811 }
0x410d   : > { %v17814_v5 = vunpack.i.h.bf16 %v17812_v32  ;;  %v17813_v13 = vunpack.i.l.bf16 %v17812_v32 }
0x410f   : > { %v17077_v11 = vpack.c.bf16 %v17814_v5, %v17813_v13 }
0x4113   : > { %v18398_v33 = vpop.eup %18397 }
0x4114   : > { %v8736_v21 = vmul.f32 %v18398_v33, %v18396_v48 }
0x4116   : > { %16049 = vmatmul.mubr.msk.f32.vlgmr.msra.gmra.mrb[114].mxu0 %vm576_vm2, %v8736_v21 }
0x4117   : > { %17075 = vmatpush3.bf16.xpose.msk.msra.mxu0 %vm18817_vm3, %v17073_v28  ;;  %16059 = vmatprep.mubr.msk.f32.mxu0 %vm18593_vm11, %v18594_v37 }
0x4118   : > { %17076 = vmatprep.subr.bf16.mxu0 %v18592_v19 }
0x411f   : > { %17079 = vmatpush3.bf16.xpose.msk.msra.mxu0 %vm18817_vm3, %v17077_v11 }
0x4120   : > { %17094 = vmatprep.subr.bf16.mxu0 %v18592_v19 }
0x4126   : > { %16060 = vmatmul.mubr.msk.f32.vlgmr.msra.gmra.mrb[116].mxu0 %vm449_vm1, %v8823_v45 }
0x4127   : > { %16092 = vmatprep.mubr.msk.f32.mxu0 %vm18593_vm11, %v18594_v37 }
0x41e9   : > { %v20511_v12 = vpop.f32.mrb[114].mxu0 }
0x41ea   : > { %v16050_v44 = vpop.f32.mrb[115].mxu0 }
0x41f9   : > { %v8908_v18 = vpop.f32.mrb[116].mxu0 }
0x41fa   : > { %v16061_v34 = vpop.f32.mrb[117].mxu0  ;;  %v8912_v9 = vsel %vm576_vm2, %v8908_v18, -inf }
0x41fb   : > { %8913 = vmax.xlane.f32.xlu1 %v8912_v9 }
0x420c   : > { %17821 = vrot.lane.b32.xlu1 %v20416_v16, %s21620_s30 }
0x4210   : > { %17826 = vrot.lane.b32.xlu1 %v20411_v25, %s21624_s3 }
0x4214   : > { %9008 = vrot.lane.b32.xlu1 %v20427_v55, %s21624_s3 }
0x4218   : > { %17841 = vrot.lane.b32.xlu1 %v20416_v16, %s21623_s2 }
0x4288   : > { %v8914_v27 = vpop.xlane.xlu1 %8913 }
0x4289   : > { %v8915_v41 = vsub.f32 %v8908_v18, %v8914_v27 }
0x428b   : > { %v8916_v29 = vmul.f32 1.442695, %v8915_v41 }
0x428c   : > { %v17822_v61 = vpop.permute.xlu1 %17821 }
0x428d   : > { %18399 = vpow2.f32 %v8916_v29  ;;  %v17824_v60 = vunpack.i.h.bf16 %v17822_v61  ;;  %v17823_v51 = vunpack.i.l.bf16 %v17822_v61 }
0x428f   : > { %v17084_v0 = vpack.c.bf16 %v17824_v60, %v17823_v51 }
0x4290   : > { %v17827_v7 = vpop.permute.xlu1 %17826 }
0x4291   : > { %v17829_v62 = vunpack.i.h.bf16 %v17827_v7  ;;  %v17828_v17 = vunpack.i.l.bf16 %v17827_v7 }
0x4293   : > { %v17087_v46 = vpack.c.bf16 %v17829_v62, %v17828_v17 }
0x4294   : > { %v9009_v2 = vpop.permute.xlu1 %9008 }
0x4297   : > { %v18400_v52 = vpop.eup %18399 }
0x4298   : > { %v8918_v59 = vsel %vm576_vm2, %v18400_v52, 0.0  ;;  %v17842_v28 = vpop.permute.xlu1 %17841 }
0x4299   : > { %8919 = vadd.xlane.f32.xlu0 %v8918_v59  ;;  %v17844_v11 = vunpack.i.h.bf16 %v17842_v28  ;;  %v17843_v45 = vunpack.i.l.bf16 %v17842_v28 }
0x429b   : > { %v17098_v18 = vpack.c.bf16 %v17844_v11, %v17843_v45 }
0x42af   : > { %17816 = vrot.lane.b32.xlu0 %v20411_v25, %s21620_s30 }
0x42b3   : > { %17831 = vrot.lane.b32.xlu0 %v20416_v16, %s21624_s3 }
0x4326   : > { %v8920_v3 = vpop.xlane.xlu0 %8919 }
0x4327   : > { %18401 = vrcp.f32 %v8920_v3 }
0x432a   : > { %v17817_v43 = vpop.permute.xlu0 %17816 }
0x432b   : > { %v17819_v4 = vunpack.i.h.bf16 %v17817_v43  ;;  %v17818_v26 = vunpack.i.l.bf16 %v17817_v43 }
0x432d   : > { %v17081_v47 = vpack.c.bf16 %v17819_v4, %v17818_v26 }
0x432e   : > { %v17832_v24 = vpop.permute.xlu0 %17831 }
0x432f   : > { %17082 = vmatpush3.bf16.msra.mxu1 %v17081_v47  ;;  %v17834_v50 = vunpack.i.h.bf16 %v17832_v24  ;;  %v17833_v23 = vunpack.i.l.bf16 %v17832_v24 }
0x4330   : > { %17083 = vmatprep.subr.bf16.mxu1 %v18592_v19 }
0x4331   : > { %v18402_v6 = vpop.eup %18401  ;;  %v17091_v14 = vpack.c.bf16 %v17834_v50, %v17833_v23 }
0x4332   : > { %v8922_v10 = vmul.f32 %v18402_v6, %v18400_v52 }
0x4333   : > { %17085 = vmatpush3.bf16.msra.mxu1 %v17084_v0 }
0x4334   : > { %17086 = vmatprep.subr.bf16.mxu1 %v18592_v19 }
0x4336   : > { %16071 = vmatmul.mubr.msk.f32.vlgmr.msra.gmra.mrb[108].mxu1 %vm576_vm2, %v8922_v10 }
0x4337   : > { %16081 = vmatprep.mubr.msk.f32.mxu1 %vm18593_vm11, %v18594_v37 }
0x433c   : > { %17089 = vmatpush3.bf16.xpose.msk.msra.mxu1 %vm18817_vm3, %v17087_v46 }
0x433d   : > { %17090 = vmatprep.subr.bf16.mxu1 %v18592_v19 }
0x4344   : > { %17093 = vmatpush3.bf16.xpose.msk.msra.mxu1 %vm18817_vm3, %v17091_v14 }
0x4345   : > { %17108 = vmatprep.subr.bf16.mxu1 %v18592_v19 }
0x434b   : > { %16082 = vmatmul.mubr.msk.f32.vlgmr.msra.gmra.mrb[110].mxu1 %vm449_vm1, %v9009_v2 }
0x434c   : > { %16114 = vmatprep.mubr.msk.f32.mxu1 %vm18593_vm11, %v18594_v37 }
0x4409   : > { %v20541_v48 = vpop.f32.mrb[108].mxu1 }
0x440a   : > { %v16072_v31 = vpop.f32.mrb[109].mxu1 }
0x441e   : > { %v9094_v49 = vpop.f32.mrb[110].mxu1 }
0x441f   : > { %v16083_v15 = vpop.f32.mrb[111].mxu1  ;;  %v9098_v1 = vsel %vm576_vm2, %v9094_v49, -inf }
0x4420   : > { %9099 = vmax.xlane.f32.xlu0 %v9098_v1 }
0x4436   : > { %17836 = vrot.lane.b32.xlu0 %v20411_v25, %s21623_s2 }
0x443a   : > { %17846 = vrot.lane.b32.xlu0 %v20411_v25, %s21627_s27 }
0x443e   : > { %9194 = vrot.lane.b32.xlu0 %v20427_v55, %s21627_s27 }
0x44ad   : > { %v9100_v22 = vpop.xlane.xlu0 %9099 }
0x44ae   : > { %v9101_v33 = vsub.f32 %v9094_v49, %v9100_v22 }
0x44b0   : > { %v9102_v21 = vmul.f32 1.442695, %v9101_v33 }
0x44b1   : > { %v17837_v32 = vpop.permute.xlu0 %17836 }
0x44b2   : > { %18403 = vpow2.f32 %v9102_v21  ;;  %v17839_v5 = vunpack.i.h.bf16 %v17837_v32  ;;  %v17838_v13 = vunpack.i.l.bf16 %v17837_v32 }
0x44b4   : > { %v17095_v44 = vpack.c.bf16 %v17839_v5, %v17838_v13 }
0x44b5   : > { %v17847_v41 = vpop.permute.xlu0 %17846 }
0x44b6   : > { %17096 = vmatpush3.bf16.msra.mxu0 %v17095_v44  ;;  %v17849_v29 = vunpack.i.h.bf16 %v17847_v41  ;;  %v17848_v52 = vunpack.i.l.bf16 %v17847_v41 }
0x44b7   : > { %17097 = vmatprep.subr.bf16.mxu0 %v18592_v19 }
0x44b8   : > { %v17101_v61 = vpack.c.bf16 %v17849_v29, %v17848_v52 }
0x44b9   : > { %v9195_v51 = vpop.permute.xlu0 %9194 }
0x44ba   : > { %17099 = vmatpush3.bf16.msra.mxu0 %v17098_v18 }
0x44bb   : > { %17100 = vmatprep.subr.bf16.mxu0 %v18592_v19 }
0x44bc   : > { %v18404_v34 = vpop.eup %18403 }
0x44bd   : > { %v9104_v9 = vsel %vm576_vm2, %v18404_v34, 0.0 }
0x44be   : > { %9105 = vadd.xlane.f32.xlu1 %v9104_v9 }
0x44cf   : > { %17851 = vrot.lane.b32.xlu1 %v20416_v16, %s21627_s27 }
0x454b   : > { %v9106_v27 = vpop.xlane.xlu1 %9105 }
0x454c   : > { %18405 = vrcp.f32 %v9106_v27 }
0x454f   : > { %v17852_v43 = vpop.permute.xlu1 %17851 }
0x4550   : > { %v17854_v4 = vunpack.i.h.bf16 %v17852_v43  ;;  %v17853_v26 = vunpack.i.l.bf16 %v17852_v43 }
0x4552   : > { %v17105_v60 = vpack.c.bf16 %v17854_v4, %v17853_v26 }
0x4556   : > { %v18406_v59 = vpop.eup %18405 }
0x4557   : > { %v9108_v3 = vmul.f32 %v18406_v59, %v18404_v34 }
0x4559   : > { %16093 = vmatmul.mubr.msk.f32.vlgmr.msra.gmra.mrb[118].mxu0 %vm576_vm2, %v9108_v3 }
0x455a   : > { %17103 = vmatpush3.bf16.xpose.msk.msra.mxu0 %vm18817_vm3, %v17101_v61  ;;  %16103 = vmatprep.mubr.msk.f32.mxu0 %vm18593_vm11, %v18594_v37 }
0x455b   : > { %17104 = vmatprep.subr.bf16.mxu0 %v18592_v19 }
0x4562   : > { %17107 = vmatpush3.bf16.xpose.msk.msra.mxu0 %vm18817_vm3, %v17105_v60 }
0x4563   : > { %17122 = vmatprep.subr.bf16.mxu0 %v18592_v19 }
0x4569   : > { %16104 = vmatmul.mubr.msk.f32.vlgmr.msra.gmra.mrb[120].mxu0 %vm449_vm1, %v9195_v51 }
0x456a   : > { %16136 = vmatprep.mubr.msk.f32.mxu0 %vm18593_vm11, %v18594_v37 }
0x462c   : > { %v20567_v47 = vpop.f32.mrb[118].mxu0 }
0x462d   : > { %v16094_v6 = vpop.f32.mrb[119].mxu0 }
0x463c   : > { %v9280_v0 = vpop.f32.mrb[120].mxu0 }
0x463d   : > { %v16105_v7 = vpop.f32.mrb[121].mxu0  ;;  %v9284_v10 = vsel %vm576_vm2, %v9280_v0, -inf }
0x463e   : > { %9285 = vmax.xlane.f32.xlu1 %v9284_v10 }
0x464f   : > { %17861 = vrot.lane.b32.xlu1 %v20416_v16, %s21626_s23 }
0x4653   : > { %17866 = vrot.lane.b32.xlu1 %v20411_v25, %s21630_s21 }
0x4657   : > { %9380 = vrot.lane.b32.xlu1 %v20427_v55, %s21630_s21 }
0x465b   : > { %17881 = vrot.lane.b32.xlu1 %v20416_v16, %s21629_s14 }
0x46cb   : > { %v9286_v62 = vpop.xlane.xlu1 %9285 }
0x46cc   : > { %v9287_v17 = vsub.f32 %v9280_v0, %v9286_v62 }
0x46ce   : > { %v9288_v46 = vmul.f32 1.442695, %v9287_v17 }
0x46cf   : > { %v17862_v14 = vpop.permute.xlu1 %17861 }
0x46d0   : > { %18407 = vpow2.f32 %v9288_v46  ;;  %v17864_v15 = vunpack.i.h.bf16 %v17862_v14  ;;  %v17863_v1 = vunpack.i.l.bf16 %v17862_v14 }
0x46d2   : > { %v17112_v21 = vpack.c.bf16 %v17864_v15, %v17863_v1 }
0x46d3   : > { %v17867_v28 = vpop.permute.xlu1 %17866 }
0x46d4   : > { %v17869_v5 = vunpack.i.h.bf16 %v17867_v28  ;;  %v17868_v13 = vunpack.i.l.bf16 %v17867_v28 }
0x46d6   : > { %v17115_v11 = vpack.c.bf16 %v17869_v5, %v17868_v13 }
0x46d7   : > { %v9381_v9 = vpop.permute.xlu1 %9380 }
0x46da   : > { %v18408_v24 = vpop.eup %18407 }
0x46db   : > { %v9290_v50 = vsel %vm576_vm2, %v18408_v24, 0.0  ;;  %v17882_v4 = vpop.permute.xlu1 %17881 }
0x46dc   : > { %9291 = vadd.xlane.f32.xlu0 %v9290_v50  ;;  %v17884_v6 = vunpack.i.h.bf16 %v17882_v4  ;;  %v17883_v0 = vunpack.i.l.bf16 %v17882_v4 }
0x46de   : > { %v17126_v10 = vpack.c.bf16 %v17884_v6, %v17883_v0 }
0x46f2   : > { %17856 = vrot.lane.b32.xlu0 %v20411_v25, %s21626_s23 }
0x46f6   : > { %17871 = vrot.lane.b32.xlu0 %v20416_v16, %s21630_s21 }
0x4769   : > { %v9292_v23 = vpop.xlane.xlu0 %9291 }
0x476a   : > { %18409 = vrcp.f32 %v9292_v23 }
0x476d   : > { %v17857_v2 = vpop.permute.xlu0 %17856 }
0x476e   : > { %v17859_v31 = vunpack.i.h.bf16 %v17857_v2  ;;  %v17858_v49 = vunpack.i.l.bf16 %v17857_v2 }
0x4770   : > { %v17109_v22 = vpack.c.bf16 %v17859_v31, %v17858_v49 }
0x4771   : > { %v17872_v45 = vpop.permute.xlu0 %17871 }
0x4772   : > { %17110 = vmatpush3.bf16.msra.mxu1 %v17109_v22  ;;  %v17874_v44 = vunpack.i.h.bf16 %v17872_v45  ;;  %v17873_v18 = vunpack.i.l.bf16 %v17872_v45 }
0x4773   : > { %17111 = vmatprep.subr.bf16.mxu1 %v18592_v19 }
0x4774   : > { %v18410_v33 = vpop.eup %18409  ;;  %v17119_v34 = vpack.c.bf16 %v17874_v44, %v17873_v18 }
0x4775   : > { %v9294_v32 = vmul.f32 %v18410_v33, %v18408_v24 }
0x4776   : > { %17113 = vmatpush3.bf16.msra.mxu1 %v17112_v21 }
0x4777   : > { %17114 = vmatprep.subr.bf16.mxu1 %v18592_v19 }
0x4779   : > { %16115 = vmatmul.mubr.msk.f32.vlgmr.msra.gmra.mrb[112].mxu1 %vm576_vm2, %v9294_v32 }
0x477a   : > { %16125 = vmatprep.mubr.msk.f32.mxu1 %vm18593_vm11, %v18594_v37 }
0x477f   : > { %17117 = vmatpush3.bf16.xpose.msk.msra.mxu1 %vm18817_vm3, %v17115_v11 }
0x4780   : > { %17118 = vmatprep.subr.bf16.mxu1 %v18592_v19 }
0x4787   : > { %17121 = vmatpush3.bf16.xpose.msk.msra.mxu1 %vm18817_vm3, %v17119_v34 }
0x4788   : > { %17136 = vmatprep.subr.bf16.mxu1 %v18592_v19 }
0x478e   : > { %16126 = vmatmul.mubr.msk.f32.vlgmr.msra.gmra.mrb[114].mxu1 %vm449_vm1, %v9381_v9 }
0x478f   : > { %16158 = vmatprep.mubr.msk.f32.mxu1 %vm18593_vm11, %v18594_v37 }
0x484c   : > { %v9376_v27 = vpop.f32.mrb[112].mxu1 }
0x484d   : > { %v16116_v41 = vpop.f32.mrb[113].mxu1 }
0x4861   : > { %v9466_v29 = vpop.f32.mrb[114].mxu1 }
0x4862   : > { %v16127_v52 = vpop.f32.mrb[115].mxu1  ;;  %v9470_v59 = vsel %vm576_vm2, %v9466_v29, -inf }
0x4863   : > { %9471 = vmax.xlane.f32.xlu0 %v9470_v59  ;;  %v6457_v59 = vld [vmem:[%s21650_s10 + $0x48] sm:$0xff] }
0x4879   : > { %17876 = vrot.lane.b32.xlu0 %v20411_v25, %s21629_s14 }
0x487d   : > { %17886 = vrot.lane.b32.xlu0 %v20411_v25, %s21633_s12 }
0x4881   : > { %9566 = vrot.lane.b32.xlu0 %v20427_v55, %s21633_s12 }
0x48f0   : > { %v9472_v3 = vpop.xlane.xlu0 %9471 }
0x48f1   : > { %v9473_v61 = vsub.f32 %v9466_v29, %v9472_v3  ;;  %v6458_v3 = vld [vmem:[%s21650_s10 + $0x50] sm:$0xff] }
0x48f3   : > { %v9474_v43 = vmul.f32 1.442695, %v9473_v61 }
0x48f4   : > { %v17877_v26 = vpop.permute.xlu0 %17876 }
0x48f5   : > { %18411 = vpow2.f32 %v9474_v43  ;;  %v17879_v60 = vunpack.i.h.bf16 %v17877_v26  ;;  %v17878_v51 = vunpack.i.l.bf16 %v17877_v26  ;;  %v6459_v43 = vld [vmem:[%s21650_s10 + $0x58] sm:$0xff] }
0x48f6   : > { %v17146_v4 = vpack.c.bf16 %v6459_v43, %v6458_v3  ;;  %v9885_v3 = vsub.s32 6, %v18759_v35 }
0x48f7   : > { %v17123_v7 = vpack.c.bf16 %v17879_v60, %v17878_v51 }
0x48f8   : > { %v17887_v46 = vpop.permute.xlu0 %17886 }
0x48f9   : > { %17124 = vmatpush3.bf16.msra.mxu0 %v17123_v7  ;;  %v17889_v24 = vunpack.i.h.bf16 %v17887_v46  ;;  %v17888_v50 = vunpack.i.l.bf16 %v17887_v46 }
0x48fa   : > { %17125 = vmatprep.subr.bf16.mxu0 %v18592_v19 }
0x48fb   : > { %v17129_v2 = vpack.c.bf16 %v17889_v24, %v17888_v50 }
0x48fc   : > { %v9567_v22 = vpop.permute.xlu0 %9566 }
0x48fd   : > { %17127 = vmatpush3.bf16.msra.mxu0 %v17126_v10 }
0x48fe   : > { %17128 = vmatprep.subr.bf16.mxu0 %v18592_v19 }
0x48ff   : > { %v18412_v62 = vpop.eup %18411 }
0x4900   : > { %v9476_v55 = vsel %vm576_vm2, %v18412_v62, 0.0 }
0x4901   : > { %9477 = vadd.xlane.f32.xlu1 %v9476_v55 }
0x4912   : > { %17891 = vrot.lane.b32.xlu1 %v20416_v16, %s21633_s12 }
0x498e   : > { %v9478_v17 = vpop.xlane.xlu1 %9477 }
0x498f   : > { %18413 = vrcp.f32 %v9478_v17 }
0x4992   : > { %v17892_v31 = vpop.permute.xlu1 %17891 }
0x4993   : > { %v17894_v49 = vunpack.i.h.bf16 %v17892_v31  ;;  %v17893_v15 = vunpack.i.l.bf16 %v17892_v31 }
0x4995   : > { %v17133_v1 = vpack.c.bf16 %v17894_v49, %v17893_v15 }
0x4999   : > { %v18414_v23 = vpop.eup %18413 }
0x499a   : > { %v9480_v14 = vmul.f32 %v18414_v23, %v18412_v62 }
0x499c   : > { %16137 = vmatmul.mubr.msk.f32.vlgmr.msra.gmra.mrb[122].mxu0 %vm576_vm2, %v9480_v14 }
0x499d   : > { %17131 = vmatpush3.bf16.xpose.msk.msra.mxu0 %vm18817_vm3, %v17129_v2  ;;  %16147 = vmatprep.mubr.msk.f32.mxu0 %vm18593_vm11, %v18594_v37 }
0x499e   : > { %17132 = vmatprep.subr.bf16.mxu0 %v18592_v19 }
0x49a5   : > { %17135 = vmatpush3.bf16.xpose.msk.msra.mxu0 %vm18817_vm3, %v17133_v1 }
0x49a6   : > { %17148 = vmatprep.subr.bf16.mxu0 %v18592_v19 }
0x49ac   : > { %16148 = vmatmul.mubr.msk.f32.vlgmr.msra.gmra.mrb[124].mxu0 %vm449_vm1, %v9567_v22 }
0x49ad   : > { %16180 = vmatprep.mubr.msk.f32.mxu0 %vm18593_vm11, %v18594_v37 }
0x4a6f   : > { %v9562_v33 = vpop.f32.mrb[122].mxu0 }
0x4a70   : > { %v16138_v21 = vpop.f32.mrb[123].mxu0 }
0x4a7f   : > { %v9652_v28 = vpop.f32.mrb[124].mxu0 }
0x4a80   : > { %v16149_v32 = vpop.f32.mrb[125].mxu0  ;;  %v9656_v5 = vsel %vm576_vm2, %v9652_v28, -inf }
0x4a81   : > { %9657 = vmax.xlane.f32.xlu1 %v9656_v5 }
0x4a92   : > { %17901 = vrot.lane.b32.xlu1 %v20416_v16, %s21632_s24 }
0x4a96   : > { %9753 = vrot.lane.b32.xlu1 %v20485_v20, %s21644_s25 }
0x4a9a   : > { %9761 = vrot.lane.b32.xlu1 %v20541_v48, %s21646_s0 }
0x4a9e   : > { %9769 = vrot.lane.b32.xlu1 %v9376_v27, %s21648_s7 }
0x4b0e   : > { %v9658_v13 = vpop.xlane.xlu1 %9657 }
0x4b0f   : > { %v9659_v11 = vsub.f32 %v9652_v28, %v9658_v13 }
0x4b11   : > { %v9660_v45 = vmul.f32 1.442695, %v9659_v11  ;;  %v6443_v11 = vld [vmem:[%s21654_s20 + $0x40] sm:$0xff] }
0x4b12   : > { %v17902_v20 = vpop.permute.xlu1 %17901 }
0x4b13   : > { %18415 = vpow2.f32 %v9660_v45  ;;  %v17904_v27 = vunpack.i.h.bf16 %v17902_v20  ;;  %v17903_v41 = vunpack.i.l.bf16 %v17902_v20  ;;  %v6444_v45 = vld [vmem:[%s21654_s20 + $0x48] sm:$0xff]  ;;  %v6460_v20 = vld [vmem:[%s21650_s10 + $0x60] sm:$0xff] }
0x4b15   : > { %v17140_v52 = vpack.c.bf16 %v17904_v27, %v17903_v41  ;;  %v6463_v27 = vld [vmem:[%s21650_s10 + $0x78] sm:$0xff] }
0x4b16   : > { %v9754_v51 = vpop.permute.xlu1 %9753 }
0x4b17   : > { %v9780_v7 = vsel %vm449_vm1, %v20455_v8, %v9754_v51  ;;  %v20671_v8 = vld [vmem:[%s21650_s10 + $0xa0] sm:$0xff] }
0x4b18   : > { %v9790_v31 = vrot.slane %v20671_v8, %v18762_v36 }
0x4b1a   : > { %v9762_v0 = vpop.permute.xlu1 %9761 }
0x4b1d   : > { %v18416_v44 = vpop.eup %18415 }
0x4b1e   : > { %v9662_v18 = vsel %vm576_vm2, %v18416_v44, 0.0  ;;  %v9770_v17 = vpop.permute.xlu1 %9769 }
0x4b1f   : > { %9663 = vadd.xlane.f32.xlu0 %v9662_v18  ;;  %v6446_v18 = vld [vmem:[%s21654_s20 + $0x58] sm:$0xff] }
0x4b35   : > { %17896 = vrot.lane.b32.xlu0 %v20411_v25, %s21632_s24 }
0x4b39   : > { %9757 = vrot.lane.b32.xlu0 %v20511_v12, %s21645_s13 }
0x4b3d   : > { %9765 = vrot.lane.b32.xlu0 %v20567_v47, %s21647_s8  ;;  %v6456_v47 = vld [vmem:[%s21650_s10 + $0x40] sm:$0xff] }
0x4b3e   : > { %v17143_v61 = vpack.c.bf16 %v6457_v59, %v6456_v47 }
0x4b41   : > { %9773 = vrot.lane.b32.xlu0 %v9562_v33, %s21655_s6 }
0x4bac   : > { %v9664_v16 = vpop.xlane.xlu0 %9663 }
0x4bad   : > { %18417 = vrcp.f32 %v9664_v16 }
0x4bb0   : > { %v17897_v48 = vpop.permute.xlu0 %17896 }
0x4bb1   : > { %v17899_v34 = vunpack.i.h.bf16 %v17897_v48  ;;  %v17898_v9 = vunpack.i.l.bf16 %v17897_v48  ;;  %v6461_v48 = vld [vmem:[%s21650_s10 + $0x68] sm:$0xff] }
0x4bb3   : > { %v17137_v29 = vpack.c.bf16 %v17899_v34, %v17898_v9  ;;  %v6462_v34 = vld [vmem:[%s21650_s10 + $0x70] sm:$0xff]  ;;  %v17155_v9 = vpack.c.bf16 %v6461_v48, %v6460_v20  ;;  %v6469_v20 = vld [vmem:[%s21650_s10 + $0xa8] sm:$0x3] }
0x4bb4   : > { %v9758_v6 = vpop.permute.xlu0 %9757  ;;  %v17158_v41 = vpack.c.bf16 %v6463_v27, %v6462_v34  ;;  %v10060_v48 = vrot.slane %v6469_v20, %v19294_v54 }
0x4bb5   : > { %17138 = vmatpush3.bf16.msra.mxu1 %v17137_v29  ;;  %v9781_v62 = vsel %vm3069_vm4, %v9780_v7, %v9758_v6  ;;  %v6464_v29 = vld [vmem:[%s21650_s10 + $0x80] sm:$0xff]  ;;  %v6466_v6 = vld [vmem:[%s21650_s10 + $0x90] sm:$0xff] }
0x4bb6   : > { %17139 = vmatprep.subr.bf16.mxu1 %v18592_v19  ;;  %v9782_v55 = vsel %vm3074_vm5, %v9781_v62, %v9762_v0  ;;  %v6467_v0 = vld [vmem:[%s21650_s10 + $0x98] sm:$0xff] }
0x4bb7   : > { %v18418_v25 = vpop.eup %18417  ;;  %v17164_v7 = vpack.c.bf16 %v6467_v0, %v6466_v6 }
0x4bb8   : > { %v9666_v12 = vmul.f32 %v18418_v25, %v18416_v44  ;;  %v9766_v10 = vpop.permute.xlu0 %9765  ;;  %v17149_v44 = vpack.c.bf16 %v6444_v45, %v6443_v11  ;;  %v6465_v25 = vld [vmem:[%s21650_s10 + $0x88] sm:$0xff] }
0x4bb9   : > { %17141 = vmatpush3.bf16.msra.mxu1 %v17140_v52  ;;  %v9783_v46 = vsel %vm3079_vm6, %v9782_v55, %v9766_v10  ;;  %v17161_v52 = vpack.c.bf16 %v6465_v25, %v6464_v29  ;;  %v14436_v10 = vld [vmem:[%s21654_s20 + $0x60] ss:$0 sm:$0xff] }
0x4bba   : > { %17142 = vmatprep.subr.bf16.mxu1 %v18592_v19  ;;  %v9784_v50 = vsel %vm3084_vm7, %v9783_v46, %v9770_v17  ;;  %17150 = vmatpush3.bf16.msra.mxu0 %v17149_v44 }
0x4bbb   : > { %17151 = vmatprep.subr.bf16.mxu0 %v18592_v19 }
0x4bbc   : > { %16159 = vmatmul.mubr.msk.f32.vlgmr.msra.gmra.mrb[116].mxu1 %vm576_vm2, %v9666_v12  ;;  %v9774_v24 = vpop.permute.xlu0 %9773 }
0x4bbd   : > { %16169 = vmatprep.mubr.msk.f32.mxu1 %vm18593_vm11, %v18594_v37  ;;  %17144 = vmatpush3.bf16.msra.mxu1 %v17143_v61  ;;  %v9785_v23 = vsel %vm3089_vm8, %v9784_v50, %v9774_v24  ;;  %v9881_v61 = vrot.slane %v20671_v8, %v19418_v30  ;;  %v9968_v24 = vsub.s32 7, %v18759_v35  ;;  %v14478_v35 = vld [vmem:[%s21650_s10 + $0x158] sm:$0x3] }
0x4bbe   : > { %17145 = vmatprep.subr.bf16.mxu1 %v18592_v19 }
0x4bbf   : > { %v9969_v50 = vrot.slane %v20671_v8, %v9968_v24 }
0x4bc1   : > { %17147 = vmatpush3.bf16.msra.mxu1 %v17146_v4 }
0x4bc2   : > { %17154 = vmatprep.subr.bf16.mxu1 %v18592_v19 }
0x4c8f   : > { %v9748_v26 = vpop.f32.mrb[116].mxu1 }
0x4c90   : > { %9777 = vrot.lane.b32.xlu1 %v9748_v26, %s21656_s9  ;;  %v16160_v60 = vpop.f32.mrb[117].mxu1  ;;  %v9886_v26 = vrot.slane %v20671_v8, %v9885_v3 }
0x4d02   : > { %v9778_v14 = vpop.permute.xlu1 %9777 }
0x4d03   : > { %v9786_v2 = vsel %vm3094_vm9, %v9785_v23, %v9778_v14 }
0x4d04   : > { %16170 = vmatmul.mubr.msk.f32.vlgmr.msra.gmra.mrb[118].mxu1 %vm576_vm2, %v9786_v2 }
0x4d05   : > { %16199 = vmatprep.mubr.msk.f32.mxu1 %vm18593_vm11, %v18594_v37  ;;  %17156 = vmatpush3.bf16.msra.mxu1 %v17155_v9 }
0x4d06   : > { %17157 = vmatprep.subr.bf16.mxu1 %v18592_v19 }
0x4d09   : > { %17159 = vmatpush3.bf16.msra.mxu1 %v17158_v41  ;;  %v10065_v41 = vrot.slane %v6469_v20, %v19362_v57 }
0x4d0a   : > { %17160 = vmatprep.subr.bf16.mxu1 %v18592_v19 }
0x4d0d   : > { %17162 = vmatpush3.bf16.msra.mxu1 %v17161_v52 }
0x4d0e   : > { %17163 = vmatprep.subr.bf16.mxu1 %v18592_v19 }
0x4d11   : > { %17165 = vmatpush3.bf16.msra.mxu1 %v17164_v7 }
0x4d12   : > { %16224 = vmatprep.subr.mxu1 %v18594_v37 }
0x4dd7   : > { %v9860_v49 = vpop.f32.mrb[118].mxu1 }
0x4dd8   : > { %v9861_v15 = vadd.f32 %v9860_v49, %v9790_v31  ;;  %v16171_v1 = vpop.f32.mrb[119].mxu1 }
0x4dd9   : > { %v14442_v1 = vld [vmem:[%s21657_s4 + $0x40] sm:$0xff] }
0x4dda   : > { %v9864_v22 = vadd.f32 %v9861_v15, %v20392_v38  ;;  %v6445_v38 = vld [vmem:[%s21654_s20 + $0x50] sm:$0xff]  ;;  %v14441_v15 = vld [vmem:[%s21657_s4 + $0x38] sm:$0xff] }
0x4ddb   : > { %v17152_v16 = vpack.c.bf16 %v6446_v18, %v6445_v38  ;;  %v17170_v38 = vpack.c.bf16 %v14442_v1, %v14441_v15 }
0x4ddc   : > { %v9865_v33 = vsel %vm576_vm2, %v9864_v22, 0.0 }
0x4ddd   : > { %9866 = vadd.xlane.f32.xlu0 %v9865_v33  ;;  %17153 = vmatpush3.bf16.msra.mxu0 %v17152_v16 }
0x4dde   : > { %17166 = vmatprep.subr.bf16.mxu0 %v18592_v19 }
0x4e6a   : > { %v9867_v21 = vpop.xlane.xlu0 %9866 }
0x4e6b   : > { %v9868_v28 = vmul.f32 0.03125, %v9867_v21 }
0x4e6d   : > { %v9869_v32 = vsub.f32 %v9864_v22, %v9868_v28  ;;  %v17910_v22 = vpack.i.bf16 %v14442_v1, %v14441_v15 }
0x4e6f   : > { %v9870_v5 = vmul.f32 %v9869_v32, %v9869_v32 }
0x4e71   : > { %v9871_v13 = vsel %vm576_vm2, %v9870_v5, 0.0  ;;  %v14439_v5 = vld [vmem:[%s21657_s4 + $0x28] sm:$0xff] }
0x4e72   : > { %9872 = vadd.xlane.f32.xlu1 %v9871_v13  ;;  %v14440_v13 = vld [vmem:[%s21657_s4 + $0x30] sm:$0xff] }
0x4e73   : > { %v17905_v11 = vpack.i.bf16 %v14440_v13, %v14439_v5  ;;  %v17167_v45 = vpack.c.bf16 %v14440_v13, %v14439_v5 }
0x4e83   : > { %17911 = vrot.lane.b32.xlu1 %v17910_v22, %s21658_s29 }
0x4eff   : > { %v9873_v12 = vpop.xlane.xlu1 %9872 }
0x4f00   : > { %v9874_v47 = vmul.f32 0.03125, %v9873_v12 }
0x4f02   : > { %v9875_v59 = vadd.f32 1e-05, %v9874_v47 }
0x4f03   : > { %v17912_v12 = vpop.permute.xlu1 %17911 }
0x4f04   : > { %18419 = vrsqrt.f32 %v9875_v59 }
0x4f0e   : > { %v18420_v43 = vpop.eup %18419 }
0x4f0f   : > { %v9877_v4 = vmul.f32 %v18420_v43, %v9869_v32  ;;  %v17913_v43 = vunpack.i.l.bf16 %v17912_v12 }
0x4f11   : > { %v9882_v60 = vmul.f32 %v9881_v61, %v9877_v4  ;;  %v17914_v61 = vunpack.i.h.bf16 %v17912_v12  ;;  %v20765_v4 = vld [vmem:[%s21659_s1] sm:$0xff]  ;;  %s21661_s1 = smov 28  }
0x4f13   : > { %v9887_v51 = vadd.f32 %v9886_v26, %v9882_v60  ;;  %v17176_v60 = vpack.c.bf16 %v17914_v61, %v17913_v43 }
0x4f15   : > { %16181 = vmatmul.mubr.msk.f32.vlgmr.msra.gmra.mrb[126].mxu0 %vm576_vm2, %v9887_v51 }
0x4f16   : > { %16210 = vmatprep.mubr.msk.f32.mxu0 %vm18593_vm11, %v18594_v37  ;;  %17168 = vmatpush3.bf16.msra.mxu0 %v17167_v45 }
0x4f17   : > { %17169 = vmatprep.subr.bf16.mxu0 %v18592_v19 }
0x4f1a   : > { %17171 = vmatpush3.bf16.msra.mxu0 %v17170_v38 }
0x4f1b   : > { %17172 = vmatprep.subr.bf16.mxu0 %v18592_v19 }
0x4fe8   : > { %v9961_v62 = vpop.f32.mrb[126].mxu0 }
0x4fe9   : > { %v9962_v55 = vadd.f32 %v14436_v10, %v9961_v62  ;;  %v16182_v17 = vpop.f32.mrb[127].mxu0 }
0x4feb   : > { %v9965_v46 = vmax.f32 %v9962_v55, 0.0 }
0x4fed   : > { %16200 = vmatmul.mubr.msk.f32.vlgmr.msra.gmra.mrb[120].mxu1 %vm3382_vm10, %v9965_v46 }
0x4fee   : > { %16226 = vmatprep.mubr.msk.f32.mxu1 %vm18593_vm11, %v18594_v37 }
0x50c0   : > { %v10039_v23 = vpop.f32.mrb[120].mxu1 }
0x50c1   : > { %v10040_v14 = vadd.f32 %v10039_v23, %v9969_v50  ;;  %v16201_v2 = vpop.f32.mrb[121].mxu1 }
0x50c3   : > { %v10043_v31 = vadd.f32 %v10040_v14, %v9887_v51  ;;  %v20781_v51 = vld [vmem:[%s21657_s4 + $0x48] ss:$0 sm:$0xff] }
0x50c5   : > { %v10044_v49 = vsel %vm576_vm2, %v10043_v31, 0.0 }
0x50c6   : > { %10045 = vadd.xlane.f32.xlu0 %v10044_v49 }
0x5153   : > { %v10046_v33 = vpop.xlane.xlu0 %10045 }
0x5154   : > { %v10047_v8 = vmul.f32 0.03125, %v10046_v33 }
0x5156   : > { %v10048_v21 = vsub.f32 %v10043_v31, %v10047_v8 }
0x5158   : > { %v10049_v28 = vmul.f32 %v10048_v21, %v10048_v21 }
0x515a   : > { %v10050_v32 = vsel %vm576_vm2, %v10049_v28, 0.0 }
0x515b   : > { %10051 = vadd.xlane.f32.xlu0 %v10050_v32 }
0x5171   : > { %17906 = vrot.lane.b32.xlu0 %v17905_v11, %s21658_s29 }
0x51e8   : > { %v10052_v44 = vpop.xlane.xlu0 %10051 }
0x51e9   : > { %v10053_v18 = vmul.f32 0.03125, %v10052_v44 }
0x51eb   : > { %v10054_v16 = vadd.f32 1e-05, %v10053_v18 }
0x51ec   : > { %v17907_v34 = vpop.permute.xlu0 %17906 }
0x51ed   : > { %18421 = vrsqrt.f32 %v10054_v16  ;;  %v17909_v29 = vunpack.i.h.bf16 %v17907_v34  ;;  %v17908_v25 = vunpack.i.l.bf16 %v17907_v34 }
0x51ef   : > { %v17173_v59 = vpack.c.bf16 %v17909_v29, %v17908_v25 }
0x51f7   : > { %v18422_v9 = vpop.eup %18421 }
0x51f8   : > { %v10056_v27 = vmul.f32 %v18422_v9, %v10048_v21 }
0x51fa   : > { %v10061_v52 = vmul.f32 %v10060_v48, %v10056_v27 }
0x51fc   : > { %v20762_v47 = vadd.f32 %v10065_v41, %v10061_v52 }
0x51fe   : > { %v10110_v26 = vadd.f32 %v20765_v4, %v20762_v47 }
0x5200   : > { %16211 = vmatmul.mubr.msk.f32.vlgmr.msra.gmra.mrb[128].mxu0 %vm576_vm2, %v10110_v26 }
0x5201   : > { %17174 = vmatpush3.bf16.msra.mxu0 %v17173_v59  ;;  %16221 = vmatprep.mubr.msk.f32.mxu0 %vm18593_vm11, %v18594_v37 }
0x5202   : > { %17175 = vmatprep.subr.bf16.mxu0 %v18592_v19 }
0x5205   : > { %17177 = vmatpush3.bf16.msra.mxu0 %v17176_v60 }
0x5206   : > { %16234 = vmatprep.subr.mxu0 %v18594_v37 }
0x5208   : > { %16222 = vmatmul.mubr.msk.f32.vlgmr.msra.gmra.mrb[130].mxu0 %vm576_vm2, %v20762_v47 }
0x5209   : > { %16236 = vmatprep.mubr.msk.f32.mxu0 %vm18593_vm11, %v18594_v37 }
0x52d3   : > { %v10184_v6 = vpop.f32.mrb[128].mxu0 }
0x52d4   : > { %v10185_v0 = vadd.f32 %v20781_v51, %v10184_v6  ;;  %v16212_v7 = vpop.f32.mrb[129].mxu0 }
0x52d6   : > { %10442 = vrot.lane.b32.xlu0 %v10185_v0, %s21615_s15  ;;  %10282 = vrot.lane.b32.xlu1 %v10185_v0, %s21612_s17 }
0x52da   : > { %10608 = vrot.lane.b32.xlu0 %v10185_v0, %s21618_s18  ;;  %10444 = vrot.lane.b32.xlu1 %v10185_v0, %s21614_s28 }
0x52db   : > { %v20788_v10 = vpop.f32.mrb[130].mxu0 }
0x52dc   : > { %v16223_v62 = vpop.f32.mrb[131].mxu0 }
0x52de   : > { %10773 = vrot.lane.b32.xlu0 %v10185_v0, %s21621_s19  ;;  %10610 = vrot.lane.b32.xlu1 %v10185_v0, %s21617_s16 }
0x52e2   : > { %10938 = vrot.lane.b32.xlu0 %v10185_v0, %s21624_s3  ;;  %10775 = vrot.lane.b32.xlu1 %v10185_v0, %s21620_s30 }
0x52e6   : > { %11103 = vrot.lane.b32.xlu0 %v10185_v0, %s21627_s27  ;;  %10940 = vrot.lane.b32.xlu1 %v10185_v0, %s21623_s2 }
0x52ea   : > { %11268 = vrot.lane.b32.xlu0 %v10185_v0, %s21630_s21  ;;  %11105 = vrot.lane.b32.xlu1 %v10185_v0, %s21626_s23 }
0x52ee   : > { %11433 = vrot.lane.b32.xlu0 %v10185_v0, %s21633_s12  ;;  %11270 = vrot.lane.b32.xlu1 %v10185_v0, %s21629_s14 }
0x52f2   : > { %11435 = vrot.lane.b32.xlu1 %v10185_v0, %s21632_s24 }
0x5348   : > { %v10283_v55 = vpop.permute.xlu1 %10282  ;;  %v10443_v17 = vpop.permute.xlu0 %10442 }
0x5349   : > { %16225 = vmatpush3.xpose.msk.msra.mxu1 %vm449_vm1, %v10283_v55 }
0x534a   : > { %16229 = vmatprep.subr.mxu1 %v18594_v37 }
0x534c   : > { %16227 = vmatmul.mubr.msk.f32.vlgmr.msra.gmra.mrb[122].mxu1 %vm449_vm1, %v10185_v0  ;;  %v10445_v46 = vpop.permute.xlu1 %10444  ;;  %v10609_v50 = vpop.permute.xlu0 %10608 }
0x534d   : > { %16235 = vmatpush3.xpose.msk.msra.mxu0 %vm449_vm1, %v10445_v46  ;;  %16231 = vmatprep.mubr.msk.f32.mxu1 %vm18593_vm11, %v18594_v37 }
0x534e   : > { %16244 = vmatprep.subr.mxu0 %v18594_v37 }
0x5350   : > { %v10611_v23 = vpop.permute.xlu1 %10610  ;;  %v10774_v14 = vpop.permute.xlu0 %10773  ;;  %16237 = vmatmul.mubr.msk.f32.vlgmr.msra.gmra.mrb[132].mxu0 %vm449_vm1, %v10443_v17 }
0x5351   : > { %16245 = vmatpush3.xpose.msk.msra.mxu0 %vm449_vm1, %v10611_v23  ;;  %16246 = vmatprep.mubr.msk.f32.mxu0 %vm18593_vm11, %v18594_v37 }
0x5352   : > { %16254 = vmatprep.subr.mxu0 %v18594_v37 }
0x5354   : > { %v10776_v2 = vpop.permute.xlu1 %10775  ;;  %16247 = vmatmul.mubr.msk.f32.vlgmr.msra.gmra.mrb[134].mxu0 %vm449_vm1, %v10609_v50  ;;  %v10939_v31 = vpop.permute.xlu0 %10938 }
0x5355   : > { %16255 = vmatpush3.xpose.msk.msra.mxu0 %vm449_vm1, %v10776_v2  ;;  %16256 = vmatprep.mubr.msk.f32.mxu0 %vm18593_vm11, %v18594_v37 }
0x5356   : > { %16264 = vmatprep.subr.mxu0 %v18594_v37 }
0x5358   : > { %v10941_v49 = vpop.permute.xlu1 %10940  ;;  %16257 = vmatmul.mubr.msk.f32.vlgmr.msra.gmra.mrb[136].mxu0 %vm449_vm1, %v10774_v14  ;;  %v11104_v15 = vpop.permute.xlu0 %11103 }
0x5359   : > { %16265 = vmatpush3.xpose.msk.msra.mxu0 %vm449_vm1, %v10941_v49  ;;  %16266 = vmatprep.mubr.msk.f32.mxu0 %vm18593_vm11, %v18594_v37 }
0x535a   : > { %16274 = vmatprep.subr.mxu0 %v18594_v37 }
0x535c   : > { %v11106_v1 = vpop.permute.xlu1 %11105  ;;  %16267 = vmatmul.mubr.msk.f32.vlgmr.msra.gmra.mrb[138].mxu0 %vm449_vm1, %v10939_v31  ;;  %v11269_v33 = vpop.permute.xlu0 %11268 }
0x535d   : > { %16275 = vmatpush3.xpose.msk.msra.mxu0 %vm449_vm1, %v11106_v1  ;;  %16276 = vmatprep.mubr.msk.f32.mxu0 %vm18593_vm11, %v18594_v37 }
0x535e   : > { %16284 = vmatprep.subr.mxu0 %v18594_v37 }
0x5360   : > { %v11271_v22 = vpop.permute.xlu1 %11270  ;;  %16277 = vmatmul.mubr.msk.f32.vlgmr.msra.gmra.mrb[140].mxu0 %vm449_vm1, %v11104_v15  ;;  %v11434_v21 = vpop.permute.xlu0 %11433 }
0x5361   : > { %16285 = vmatpush3.xpose.msk.msra.mxu0 %vm449_vm1, %v11271_v22  ;;  %16286 = vmatprep.mubr.msk.f32.mxu0 %vm18593_vm11, %v18594_v37 }
0x5362   : > { %16294 = vmatprep.subr.mxu0 %v18594_v37 }
0x5364   : > { %v11436_v8 = vpop.permute.xlu1 %11435  ;;  %16287 = vmatmul.mubr.msk.f32.vlgmr.msra.gmra.mrb[142].mxu0 %vm449_vm1, %v11269_v33 }
0x5365   : > { %16295 = vmatpush3.xpose.msk.msra.mxu0 %vm449_vm1, %v11436_v8  ;;  %16296 = vmatprep.mubr.msk.f32.mxu0 %vm18593_vm11, %v18594_v37 }
0x5366   : > { %17178 = vmatprep.subr.bf16.mxu0 %v18592_v19 }
0x5368   : > { %16297 = vmatmul.mubr.msk.f32.vlgmr.msra.gmra.mrb[144].mxu0 %vm449_vm1, %v11434_v21 }
0x5369   : > { %16312 = vmatprep.mubr.msk.f32.mxu0 %vm18593_vm11, %v18594_v37 }
0x541f   : > { %v10354_v28 = vpop.f32.mrb[122].mxu1 }
0x5420   : > { %v16228_v32 = vpop.f32.mrb[123].mxu1  ;;  %v10358_v5 = vsel %vm3069_vm4, %v10354_v28, -inf }
0x5421   : > { %10359 = vmax.xlane.f32.xlu1 %v10358_v5 }
0x5423   : > { %v10516_v13 = vpop.f32.mrb[132].mxu0 }
0x5424   : > { %v16238_v11 = vpop.f32.mrb[133].mxu0  ;;  %v10520_v45 = vsel %vm3069_vm4, %v10516_v13, -inf }
0x5425   : > { %10521 = vmax.xlane.f32.xlu0 %v10520_v45 }
0x5427   : > { %v10682_v38 = vpop.f32.mrb[134].mxu0 }
0x5428   : > { %v16248_v44 = vpop.f32.mrb[135].mxu0  ;;  %v10686_v18 = vsel %vm3069_vm4, %v10682_v38, -inf }
0x5429   : > { %10687 = vmax.xlane.f32.xlu0 %v10686_v18 }
0x542b   : > { %v10847_v16 = vpop.f32.mrb[136].mxu0 }
0x542c   : > { %v16258_v20 = vpop.f32.mrb[137].mxu0  ;;  %v10851_v48 = vsel %vm3069_vm4, %v10847_v16, -inf }
0x542d   : > { %10852 = vmax.xlane.f32.xlu0 %v10851_v48 }
0x542f   : > { %v11012_v34 = vpop.f32.mrb[138].mxu0 }
0x5430   : > { %v16268_v9 = vpop.f32.mrb[139].mxu0  ;;  %v11016_v27 = vsel %vm3069_vm4, %v11012_v34, -inf }
0x5431   : > { %11017 = vmax.xlane.f32.xlu1 %v11016_v27 }
0x5433   : > { %v11177_v41 = vpop.f32.mrb[140].mxu0 }
0x5434   : > { %v16278_v29 = vpop.f32.mrb[141].mxu0  ;;  %v11181_v25 = vsel %vm3069_vm4, %v11177_v41, -inf }
0x5435   : > { %11182 = vmax.xlane.f32.xlu0 %v11181_v25 }
0x5437   : > { %v11342_v52 = vpop.f32.mrb[142].mxu0 }
0x5438   : > { %v16288_v12 = vpop.f32.mrb[143].mxu0  ;;  %v11346_v59 = vsel %vm3069_vm4, %v11342_v52, -inf }
0x5439   : > { %11347 = vmax.xlane.f32.xlu1 %v11346_v59 }
0x543b   : > { %v20848_v61 = vpop.f32.mrb[144].mxu0 }
0x543c   : > { %v16298_v43 = vpop.f32.mrb[145].mxu0  ;;  %v11511_v8 = vsel %vm3069_vm4, %v20848_v61, -inf }
0x544a   : > { %10205 = vrot.lane.b32.xlu1 %v20781_v51, %s21658_s29  ;;  %s18595_s29 = smov [#allocation2]  }
0x544b   : > { %s18502_s6 = sshll.u32 %s18595_s29, 4  ;;  %s18503_s6 = int_to_ptr.vmem [resolvable:$false] %s18502_s6 }
0x54ae   : > { %v10360_v26 = vpop.xlane.xlu1 %10359 }
0x54af   : > { %v10361_v23 = vsub.f32 %v10354_v28, %v10360_v26 }
0x54b1   : > { %v10362_v2 = vmul.f32 1.442695, %v10361_v23 }
0x54b2   : > { %v10522_v50 = vpop.xlane.xlu0 %10521 }
0x54b3   : > { %v10523_v31 = vsub.f32 %v10516_v13, %v10522_v50 }
0x54b6   : > { %v10688_v14 = vpop.xlane.xlu0 %10687 }
0x54b7   : > { %v10689_v49 = vsub.f32 %v10682_v38, %v10688_v14 }
0x54b9   : > { %v10690_v1 = vmul.f32 1.442695, %v10689_v49 }
0x54ba   : > { %v10853_v15 = vpop.xlane.xlu0 %10852 }
0x54bb   : > { %v10854_v22 = vsub.f32 %v10847_v16, %v10853_v15 }
0x54bd   : > { %v10855_v33 = vmul.f32 1.442695, %v10854_v22 }
0x54be   : > { %v11018_v60 = vpop.xlane.xlu1 %11017 }
0x54bf   : > { %v11019_v6 = vsub.f32 %v11012_v34, %v11018_v60 }
0x54c1   : > { %v11020_v0 = vmul.f32 1.442695, %v11019_v6 }
0x54c2   : > { %v11183_v44 = vpop.xlane.xlu0 %11182 }
0x54c3   : > { %18423 = vpow2.f32 %v11020_v0  ;;  %v11184_v18 = vsub.f32 %v11177_v41, %v11183_v44 }
0x54c4   : > { %18425 = vpow2.f32 %v10362_v2 }
0x54c5   : > { %v11185_v16 = vmul.f32 1.442695, %v11184_v18 }
0x54c6   : > { %v11348_v7 = vpop.xlane.xlu1 %11347 }
0x54c7   : > { %v11349_v62 = vsub.f32 %v11342_v52, %v11348_v7 }
0x54c9   : > { %v11350_v20 = vmul.f32 1.442695, %v11349_v62 }
0x54ca   : > { %v10206_v55 = vpop.permute.xlu1 %10205 }
0x54cb   : > { %v20853_v17 = vadd.f32 %v20788_v10, %v10206_v55  ;;  %v10524_v10 = vmul.f32 1.442695, %v10523_v31 }
0x54cd   : > { %v20855_v46 = vpop.eup %18423  ;;  %10532 = vrot.lane.b32.xlu0 %v20853_v17, %s21615_s15  ;;  %16230 = vmatpush3.msra.mxu1 %v20853_v17  ;;  %18427 = vpow2.f32 %v10524_v10 }
0x54ce   : > { %v11022_v51 = vsel %vm3069_vm4, %v20855_v46, 0.0  ;;  %16239 = vmatprep.subr.mxu1 %v18594_v37  ;;  %18429 = vpow2.f32 %v10690_v1  ;;  %v18426_v21 = vpop.eup %18425 }
0x54cf   : > { %11023 = vadd.xlane.f32.xlu1 %v11022_v51  ;;  %18431 = vpow2.f32 %v10855_v33  ;;  %v10364_v28 = vsel %vm3069_vm4, %v18426_v21, 0.0 }
0x54d0   : > { %18433 = vpow2.f32 %v11185_v16 }
0x54d1   : > { %18435 = vpow2.f32 %v11350_v20 }
0x54d7   : > { %v18428_v32 = vpop.eup %18427 }
0x54d8   : > { %v10526_v5 = vsel %vm3069_vm4, %v18428_v32, 0.0  ;;  %v18430_v13 = vpop.eup %18429 }
0x54d9   : > { %v10692_v11 = vsel %vm3069_vm4, %v18430_v13, 0.0  ;;  %v18432_v45 = vpop.eup %18431 }
0x54da   : > { %v10857_v38 = vsel %vm3069_vm4, %v18432_v45, 0.0  ;;  %v20879_v48 = vpop.eup %18433 }
0x54db   : > { %v11187_v34 = vsel %vm3069_vm4, %v20879_v48, 0.0  ;;  %v20883_v9 = vpop.eup %18435 }
0x54dc   : > { %v11352_v27 = vsel %vm3069_vm4, %v20883_v9, 0.0 }
0x54e0   : > { %10697 = vrot.lane.b32.xlu1 %v20853_v17, %s21618_s18 }
0x54ec   : > { %11512 = vmax.xlane.f32.xlu0 %v11511_v8 }
0x54f0   : > { %10365 = vadd.xlane.f32.xlu0 %v10364_v28 }
0x54f4   : > { %10527 = vadd.xlane.f32.xlu0 %v10526_v5 }
0x54f8   : > { %10693 = vadd.xlane.f32.xlu0 %v10692_v11 }
0x54fc   : > { %10858 = vadd.xlane.f32.xlu0 %v10857_v38 }
0x5512   : > { %10862 = vrot.lane.b32.xlu0 %v20853_v17, %s21621_s19 }
0x5516   : > { %11027 = vrot.lane.b32.xlu0 %v20853_v17, %s21624_s3 }
0x551a   : > { %11192 = vrot.lane.b32.xlu0 %v20853_v17, %s21627_s27 }
0x551e   : > { %11357 = vrot.lane.b32.xlu0 %v20853_v17, %s21630_s21 }
0x553d   : > { %11188 = vadd.xlane.f32.xlu0 %v11187_v34 }
0x553f   : > { %v10533_v29 = vpop.permute.xlu0 %10532 }
0x5541   : > { %11353 = vadd.xlane.f32.xlu0 %v11352_v27 }
0x555c   : > { %v11024_v7 = vpop.xlane.xlu1 %11023 }
0x5560   : > { %v10698_v50 = vpop.permute.xlu1 %10697 }
0x5579   : > { %v11513_v25 = vpop.xlane.xlu0 %11512 }
0x557a   : > { %v11514_v41 = vsub.f32 %v20848_v61, %v11513_v25  ;;  %v14458_v25 = vld [vmem:[%s21650_s10 + $0xb8] sm:$0xff] }
0x557c   : > { %v11515_v52 = vmul.f32 1.442695, %v11514_v41  ;;  %v14459_v41 = vld [vmem:[%s21650_s10 + $0xc0] sm:$0xff] }
0x557d   : > { %v10366_v12 = vpop.xlane.xlu0 %10365 }
0x557e   : > { %18437 = vpow2.f32 %v11515_v52 }
0x557f   : > { %18439 = vrcp.f32 %v10366_v12  ;;  %v14460_v12 = vld [vmem:[%s21650_s10 + $0xc8] sm:$0xff] }
0x5581   : > { %v10528_v59 = vpop.xlane.xlu0 %10527 }
0x5582   : > { %18441 = vrcp.f32 %v10528_v59  ;;  %v17182_v59 = vpack.c.bf16 %v14460_v12, %v14459_v41 }
0x5585   : > { %v10694_v43 = vpop.xlane.xlu0 %10693 }
0x5586   : > { %18443 = vrcp.f32 %v10694_v43 }
0x5588   : > { %v20888_v26 = vpop.eup %18437 }
0x5589   : > { %v18440_v60 = vpop.eup %18439  ;;  %v10859_v6 = vpop.xlane.xlu0 %10858  ;;  %v11517_v0 = vsel %vm3069_vm4, %v20888_v26, 0.0 }
0x558a   : > { %18445 = vrcp.f32 %v10859_v6  ;;  %11518 = vadd.xlane.f32.xlu0 %v11517_v0  ;;  %v10368_v62 = vmul.f32 %v18440_v60, %v18426_v21  ;;  %v14444_v0 = vld [vmem:[%s21654_s20 + $0x68] sm:$0xff] }
0x558b   : > { %18447 = vrcp.f32 %v11024_v7  ;;  %v14445_v7 = vld [vmem:[%s21654_s20 + $0x70] sm:$0xff] }
0x558c   : > { %v18442_v61 = vpop.eup %18441  ;;  %16232 = vmatmul.mubr.msk.f32.vlgmr.msra.gmra.mrb[124].mxu1 %vm3069_vm4, %v10368_v62  ;;  %v17190_v62 = vpack.c.bf16 %v14445_v7, %v14444_v0  ;;  %v14462_v0 = vld [vmem:[%s21650_s10 + $0xd8] sm:$0xff] }
0x558d   : > { %v10530_v55 = vmul.f32 %v18442_v61, %v18428_v32  ;;  %16240 = vmatpush3.msra.mxu1 %v10533_v29  ;;  %16241 = vmatprep.mubr.msk.f32.mxu1 %vm18593_vm11, %v18594_v37  ;;  %v10863_v23 = vpop.permute.xlu0 %10862  ;;  %v14457_v29 = vld [vmem:[%s21650_s10 + $0xb0] sm:$0xff] }
0x558e   : > { %16249 = vmatprep.subr.mxu1 %v18594_v37  ;;  %v17179_v52 = vpack.c.bf16 %v14458_v25, %v14457_v29 }
0x5590   : > { %v18444_v51 = vpop.eup %18443  ;;  %16242 = vmatmul.mubr.msk.f32.vlgmr.msra.gmra.mrb[126].mxu1 %vm3069_vm4, %v10530_v55  ;;  %17180 = vmatpush3.bf16.msra.mxu0 %v17179_v52 }
0x5591   : > { %v10696_v14 = vmul.f32 %v18444_v51, %v18430_v13  ;;  %16250 = vmatpush3.msra.mxu1 %v10698_v50  ;;  %16251 = vmatprep.mubr.msk.f32.mxu1 %vm18593_vm11, %v18594_v37  ;;  %v11028_v10 = vpop.permute.xlu0 %11027 }
0x5592   : > { %16259 = vmatprep.subr.mxu1 %v18594_v37  ;;  %17181 = vmatprep.subr.bf16.mxu0 %v18592_v19 }
0x5594   : > { %v18446_v2 = vpop.eup %18445  ;;  %16252 = vmatmul.mubr.msk.f32.vlgmr.msra.gmra.mrb[128].mxu1 %vm3069_vm4, %v10696_v14  ;;  %17183 = vmatpush3.bf16.msra.mxu0 %v17182_v59 }
0x5595   : > { %v10861_v31 = vmul.f32 %v18446_v2, %v18432_v45  ;;  %16260 = vmatpush3.msra.mxu1 %v10863_v23  ;;  %16261 = vmatprep.mubr.msk.f32.mxu1 %vm18593_vm11, %v18594_v37  ;;  %v18448_v49 = vpop.eup %18447  ;;  %v11193_v1 = vpop.permute.xlu0 %11192 }
0x5596   : > { %16269 = vmatprep.subr.mxu1 %v18594_v37  ;;  %v11026_v15 = vmul.f32 %v18448_v49, %v20855_v46  ;;  %17191 = vmatprep.subr.bf16.mxu0 %v17190_v62 }
0x5598   : > { %16262 = vmatmul.mubr.msk.f32.vlgmr.msra.gmra.mrb[130].mxu1 %vm3069_vm4, %v10861_v31 }
0x5599   : > { %16270 = vmatpush3.msra.mxu1 %v11028_v10  ;;  %16271 = vmatprep.mubr.msk.f32.mxu1 %vm18593_vm11, %v18594_v37  ;;  %v11358_v22 = vpop.permute.xlu0 %11357 }
0x559a   : > { %16279 = vmatprep.subr.mxu1 %v18594_v37 }
0x559c   : > { %16272 = vmatmul.mubr.msk.f32.vlgmr.msra.gmra.mrb[132].mxu1 %vm3069_vm4, %v11026_v15 }
0x559d   : > { %16280 = vmatpush3.msra.mxu1 %v11193_v1  ;;  %16281 = vmatprep.mubr.msk.f32.mxu1 %vm18593_vm11, %v18594_v37  ;;  %v14446_v1 = vld [vmem:[%s21654_s20 + $0x78] sm:$0xff] }
0x559e   : > { %16289 = vmatprep.subr.mxu1 %v18594_v37 }
0x55a0   : > { %11522 = vrot.lane.b32.xlu0 %v20853_v17, %s21633_s12 }
0x55ca   : > { %v11189_v33 = vpop.xlane.xlu0 %11188 }
0x55cb   : > { %18449 = vrcp.f32 %v11189_v33 }
0x55ce   : > { %v11354_v8 = vpop.xlane.xlu0 %11353 }
0x55cf   : > { %18451 = vrcp.f32 %v11354_v8 }
0x55d5   : > { %v18450_v46 = vpop.eup %18449 }
0x55d6   : > { %v11191_v21 = vmul.f32 %v18450_v46, %v20879_v48 }
0x55d8   : > { %16282 = vmatmul.mubr.msk.f32.vlgmr.msra.gmra.mrb[134].mxu1 %vm3069_vm4, %v11191_v21 }
0x55d9   : > { %v18452_v28 = vpop.eup %18451  ;;  %16290 = vmatpush3.msra.mxu1 %v11358_v22  ;;  %16291 = vmatprep.mubr.msk.f32.mxu1 %vm18593_vm11, %v18594_v37  ;;  %v14447_v22 = vld [vmem:[%s21654_s20 + $0x80] sm:$0xff] }
0x55da   : > { %v11356_v32 = vmul.f32 %v18452_v28, %v20883_v9  ;;  %16299 = vmatprep.subr.mxu1 %v18594_v37  ;;  %v17194_v28 = vpack.c.bf16 %v14447_v22, %v14446_v1 }
0x55dc   : > { %16292 = vmatmul.mubr.msk.f32.vlgmr.msra.gmra.mrb[136].mxu1 %vm3069_vm4, %v11356_v32 }
0x55dd   : > { %16301 = vmatprep.mubr.msk.f32.mxu1 %vm18593_vm11, %v18594_v37 }
0x5617   : > { %v11519_v17 = vpop.xlane.xlu0 %11518 }
0x5618   : > { %18453 = vrcp.f32 %v11519_v17 }
0x561b   : > { %v11523_v5 = vpop.permute.xlu0 %11522 }
0x561c   : > { %16300 = vmatpush3.msra.mxu1 %v11523_v5 }
0x561d   : > { %17184 = vmatprep.subr.bf16.mxu1 %v18592_v19 }
0x5622   : > { %v18454_v13 = vpop.eup %18453 }
0x5623   : > { %v11521_v11 = vmul.f32 %v18454_v13, %v20888_v26 }
0x5625   : > { %16302 = vmatmul.mubr.msk.f32.vlgmr.msra.gmra.mrb[138].mxu1 %vm3069_vm4, %v11521_v11 }
0x5626   : > { %16323 = vmatprep.mubr.msk.f32.mxu1 %vm18593_vm11, %v18594_v37 }
0x565f   : > { %v10438_v45 = vpop.f32.mrb[124].mxu1 }
0x5660   : > { %v16233_v38 = vpop.f32.mrb[125].mxu1 }
0x5663   : > { %v10604_v44 = vpop.f32.mrb[126].mxu1 }
0x5664   : > { %11599 = vrot.lane.b32.xlu1 %v10604_v44, %s21644_s25  ;;  %v16243_v18 = vpop.f32.mrb[127].mxu1 }
0x5667   : > { %v10769_v16 = vpop.f32.mrb[128].mxu1 }
0x5668   : > { %11603 = vrot.lane.b32.xlu0 %v10769_v16, %s21645_s13  ;;  %v16253_v20 = vpop.f32.mrb[129].mxu1 }
0x5669   : > { %v14451_v20 = vld [vmem:[%s21654_s20 + $0xa0] sm:$0xff] }
0x566b   : > { %v10934_v48 = vpop.f32.mrb[130].mxu1 }
0x566c   : > { %11607 = vrot.lane.b32.xlu1 %v10934_v48, %s21646_s0  ;;  %v16263_v34 = vpop.f32.mrb[131].mxu1 }
0x566f   : > { %v11099_v9 = vpop.f32.mrb[132].mxu1 }
0x5670   : > { %11611 = vrot.lane.b32.xlu0 %v11099_v9, %s21647_s8  ;;  %v16273_v27 = vpop.f32.mrb[133].mxu1 }
0x56ab   : > { %v11264_v43 = vpop.f32.mrb[134].mxu1 }
0x56ac   : > { %11615 = vrot.lane.b32.xlu1 %v11264_v43, %s21648_s7  ;;  %v16283_v26 = vpop.f32.mrb[135].mxu1 }
0x56af   : > { %v11429_v60 = vpop.f32.mrb[136].mxu1 }
0x56b0   : > { %11619 = vrot.lane.b32.xlu0 %v11429_v60, %s21660_s26  ;;  %v16293_v6 = vpop.f32.mrb[137].mxu1 }
0x56b1   : > { %v14461_v6 = vld [vmem:[%s21650_s10 + $0xd0] sm:$0xff] }
0x56b2   : > { %v17185_v7 = vpack.c.bf16 %v14462_v0, %v14461_v6 }
0x56b4   : > { %17186 = vmatpush3.bf16.msra.mxu1 %v17185_v7 }
0x56b5   : > { %17187 = vmatprep.subr.bf16.mxu1 %v18592_v19 }
0x56d6   : > { %v11600_v51 = vpop.permute.xlu1 %11599 }
0x56d7   : > { %v11626_v2 = vsel %vm449_vm1, %v10438_v45, %v11600_v51  ;;  %v14448_v45 = vld [vmem:[%s21654_s20 + $0x88] sm:$0xff] }
0x56da   : > { %v11604_v50 = vpop.permute.xlu0 %11603 }
0x56db   : > { %v11627_v31 = vsel %vm3069_vm4, %v11626_v2, %v11604_v50 }
0x56de   : > { %v11608_v23 = vpop.permute.xlu1 %11607 }
0x56df   : > { %v11628_v49 = vsel %vm3074_vm5, %v11627_v31, %v11608_v23 }
0x56e2   : > { %v11612_v14 = vpop.permute.xlu0 %11611 }
0x56e3   : > { %v11629_v33 = vsel %vm3079_vm6, %v11628_v49, %v11612_v14 }
0x56f8   : > { %v11594_v61 = vpop.f32.mrb[138].mxu1 }
0x56f9   : > { %11623 = vrot.lane.b32.xlu1 %v11594_v61, %s21661_s1  ;;  %v16303_v55 = vpop.f32.mrb[139].mxu1  ;;  %v14464_v61 = vld [vmem:[%s21650_s10 + $0xe8] sm:$0xff]  ;;  %s21670_s1 = sld [smem:[#allocation28_spill]] }
0x571e   : > { %v11616_v10 = vpop.permute.xlu1 %11615 }
0x571f   : > { %v11630_v8 = vsel %vm3084_vm7, %v11629_v33, %v11616_v10 }
0x5722   : > { %v11620_v15 = vpop.permute.xlu0 %11619 }
0x5723   : > { %v11631_v46 = vsel %vm3089_vm8, %v11630_v8, %v11620_v15 }
0x576b   : > { %v11624_v21 = vpop.permute.xlu1 %11623 }
0x576c   : > { %v11632_v32 = vsel %vm3094_vm9, %v11631_v46, %v11624_v21 }
0x576d   : > { %16313 = vmatmul.mubr.msk.f32.vlgmr.msra.gmra.mrb[146].mxu0 %vm576_vm2, %v11632_v32 }
0x576e   : > { %17193 = vmatpush3.bf16.msra.mxu0 %v17190_v62  ;;  %16334 = vmatprep.mubr.msk.f32.mxu0 %vm576_vm2, %v20311_v39  ;;  %v20983_v39 = vld [vmem:[%s21650_s10 + $0x150] sm:$0xff]  ;;  %v14463_v62 = vld [vmem:[%s21650_s10 + $0xe0] sm:$0xff] }
0x576f   : > { %17195 = vmatprep.subr.bf16.mxu0 %v17194_v28  ;;  %v11636_v17 = vrot.slane %v20983_v39, %v19294_v54  ;;  %v17188_v55 = vpack.c.bf16 %v14464_v61, %v14463_v62  ;;  %v11727_v49 = vrot.slane %v20983_v39, %v19362_v57  ;;  %v11732_v22 = vrot.slane %v20983_v39, %v19365_v58 }
0x5770   : > { %v11738_v21 = vrot.slane %v20983_v39, %v19393_v40 }
0x5771   : > { %17189 = vmatpush3.bf16.msra.mxu1 %v17188_v55 }
0x5772   : > { %17197 = vmatpush3.bf16.msra.mxu0 %v17194_v28  ;;  %17198 = vmatprep.subr.bf16.mxu1 %v18592_v19 }
0x5773   : > { %17206 = vmatprep.subr.bf16.mxu0 %v18592_v19 }
0x5775   : > { %16335 = vmatmul.mubr.msk.f32.vlgmr.msra.gmra.mrb[148].mxu0 %vm576_vm2, %v20354_v42 }
0x5776   : > { %16337 = vmatprep.mubr.msk.f32.mxu0 %vm576_vm2, %v20322_v53 }
0x5779   : > { %16338 = vmatmul.mubr.msk.f32.gmra.mrb[150].mxu0 %vm576_vm2, %v20365_v56  ;;  %v14449_v56 = vld [vmem:[%s21654_s20 + $0x90] sm:$0xff] }
0x577a   : > { %16359 = vmatprep.mubr.msk.f32.mxu0 %vm18593_vm11, %v18594_v37 }
0x5840   : > { %v11706_v5 = vpop.f32.mrb[146].mxu0 }
0x5841   : > { %v11707_v13 = vadd.f32 %v11706_v5, %v11636_v17  ;;  %v16314_v42 = vpop.f32.mrb[147].mxu0 }
0x5843   : > { %v11710_v11 = vadd.f32 %v11707_v13, %v20762_v47  ;;  %v14450_v47 = vld [vmem:[%s21654_s20 + $0x98] sm:$0xff] }
0x5845   : > { %v11711_v53 = vsel %vm576_vm2, %v11710_v11, 0.0 }
0x5846   : > { %11712 = vadd.xlane.f32.xlu0 %v11711_v53 }
0x5848   : > { %v16336_v38 = vpop.f32.mrb[148].mxu0 }
0x5849   : > { %v11884_v44 = vadd.f32 %v16336_v38, %v14449_v56  ;;  %v11878_v18 = vpop.f32.mrb[149].mxu0 }
0x584a   : > { %v11879_v16 = vadd.f32 %v14448_v45, %v11878_v18 }
0x584c   : > { %v16339_v48 = vpop.f32.mrb[150].mxu0  ;;  %v21001_v34 = vpack.i.bf16 %v11884_v44, %v11879_v16  ;;  %v17199_v9 = vpack.c.bf16 %v11884_v44, %v11879_v16 }
0x584d   : > { %v11894_v27 = vadd.f32 %v16339_v48, %v14451_v20  ;;  %v11888_v29 = vpop.f32.mrb[151].mxu0 }
0x584e   : > { %v11889_v25 = vadd.f32 %v14450_v47, %v11888_v29 }
0x5850   : > { %v21003_v41 = vpack.i.bf16 %v11894_v27, %v11889_v25  ;;  %v17203_v52 = vpack.c.bf16 %v11894_v27, %v11889_v25 }
0x58d3   : > { %v11713_v12 = vpop.xlane.xlu0 %11712 }
0x58d4   : > { %v11714_v59 = vmul.f32 0.03125, %v11713_v12 }
0x58d6   : > { %v11715_v43 = vsub.f32 %v11710_v11, %v11714_v59 }
0x58d8   : > { %v11716_v26 = vmul.f32 %v11715_v43, %v11715_v43 }
0x58da   : > { %v11717_v60 = vsel %vm576_vm2, %v11716_v26, 0.0 }
0x58db   : > { %11718 = vadd.xlane.f32.xlu1 %v11717_v60 }
0x58ec   : > { %17916 = vrot.lane.b32.xlu1 %v21001_v34, %s21612_s17 }
0x58f0   : > { %17926 = vrot.lane.b32.xlu1 %v21001_v34, %s21615_s15 }
0x58f4   : > { %17931 = vrot.lane.b32.xlu1 %v21003_v41, %s21615_s15 }
0x5968   : > { %v11719_v51 = vpop.xlane.xlu1 %11718 }
0x5969   : > { %v11720_v50 = vmul.f32 0.03125, %v11719_v51 }
0x596b   : > { %v11721_v23 = vadd.f32 1e-05, %v11720_v50 }
0x596c   : > { %v17917_v14 = vpop.permute.xlu1 %17916 }
0x596d   : > { %18455 = vrsqrt.f32 %v11721_v23  ;;  %v17919_v2 = vunpack.i.h.bf16 %v17917_v14  ;;  %v17918_v31 = vunpack.i.l.bf16 %v17917_v14 }
0x596f   : > { %v17207_v10 = vpack.c.bf16 %v17919_v2, %v17918_v31 }
0x5970   : > { %v17927_v20 = vpop.permute.xlu1 %17926 }
0x5971   : > { %17208 = vmatpush3.bf16.msra.mxu0 %v17207_v10  ;;  %v17929_v48 = vunpack.i.h.bf16 %v17927_v20 }
0x5972   : > { %17209 = vmatprep.subr.bf16.mxu0 %v18592_v19 }
0x5974   : > { %v17932_v25 = vpop.permute.xlu1 %17931 }
0x5975   : > { %v17933_v12 = vunpack.i.l.bf16 %v17932_v25 }
0x5977   : > { %v18456_v15 = vpop.eup %18455 }
0x5978   : > { %v11723_v1 = vmul.f32 %v18456_v15, %v11715_v43 }
0x597a   : > { %v11728_v33 = vmul.f32 %v11727_v49, %v11723_v1 }
0x597c   : > { %v21031_v8 = vadd.f32 %v11732_v22, %v11728_v33 }
0x597e   : > { %v11734_v46 = vadd.f32 %v20765_v4, %v21031_v8 }
0x5980   : > { %16324 = vmatmul.mubr.msk.f32.vlgmr.msra.gmra.mrb[140].mxu1 %vm576_vm2, %v11734_v46 }
0x5981   : > { %17201 = vmatpush3.bf16.xpose.msk.msra.mxu1 %vm18817_vm3, %v17199_v9  ;;  %16348 = vmatprep.mubr.msk.f32.mxu1 %vm18593_vm11, %v18594_v37  ;;  %v17928_v9 = vunpack.i.l.bf16 %v17927_v20 }
0x5982   : > { %17202 = vmatprep.subr.bf16.mxu1 %v18592_v19 }
0x5983   : > { %v17213_v29 = vpack.c.bf16 %v17929_v48, %v17928_v9 }
0x5989   : > { %17205 = vmatpush3.bf16.xpose.msk.msra.mxu1 %vm18817_vm3, %v17203_v52  ;;  %v17934_v52 = vunpack.i.h.bf16 %v17932_v25 }
0x598a   : > { %17220 = vmatprep.subr.bf16.mxu1 %v18592_v19 }
0x598b   : > { %v17217_v59 = vpack.c.bf16 %v17934_v52, %v17933_v12 }
0x5a53   : > { %v11808_v28 = vpop.f32.mrb[140].mxu1 }
0x5a54   : > { %v21046_v4 = vadd.f32 %v11808_v28, %v11738_v21  ;;  %v16325_v32 = vpop.f32.mrb[141].mxu1 }
0x5a56   : > { %16349 = vmatmul.mubr.msk.f32.vlgmr.msra.gmra.mrb[142].mxu1 %vm449_vm1, %v21046_v4 }
0x5a57   : > { %16381 = vmatprep.mubr.msk.f32.mxu1 %vm18593_vm11, %v18594_v37 }
0x5b29   : > { %v11978_v17 = vpop.f32.mrb[142].mxu1 }
0x5b2a   : > { %v16350_v5 = vpop.f32.mrb[143].mxu1  ;;  %v11982_v13 = vsel %vm576_vm2, %v11978_v17, -inf }
0x5b2b   : > { %11983 = vmax.xlane.f32.xlu0 %v11982_v13 }
0x5bb8   : > { %v11984_v42 = vpop.xlane.xlu0 %11983 }
0x5bb9   : > { %v11985_v11 = vsub.f32 %v11978_v17, %v11984_v42 }
0x5bbb   : > { %v11986_v53 = vmul.f32 1.442695, %v11985_v11 }
0x5bbd   : > { %18457 = vpow2.f32 %v11986_v53 }
0x5bc7   : > { %v18458_v39 = vpop.eup %18457 }
0x5bc8   : > { %v11988_v56 = vsel %vm576_vm2, %v18458_v39, 0.0 }
0x5bc9   : > { %11989 = vadd.xlane.f32.xlu0 %v11988_v56 }
0x5bdf   : > { %17921 = vrot.lane.b32.xlu0 %v21003_v41, %s21612_s17 }
0x5be3   : > { %12078 = vrot.lane.b32.xlu0 %v21046_v4, %s21615_s15  ;;  %s21667_s15 = sld [smem:[#allocation16_spill]] }
0x5be9   : > { %s13984_s11 = sshll.u32 %s21667_s15, 4  ;;  %s21421_s11 = int_to_ptr.vmem [resolvable:$true] %s13984_s11 }
0x5bea   : > { %s18498_s4 = scalar_lea.vmem %s21421_s11, 512  ;;  %p18505_p0 = scmp.lt.s32.totalorder %s21421_s11, %s18503_s6 }
0x5beb   : > { %p18499_p11 = scmp.ne.s32.totalorder %s21421_s11, %s18498_s4 }
0x5bed   : > { %p18500_p12 = pnand %p18499_p11, %p18700_p5 }
0x5bef   : > { %p18501_p13 = pneg %p18500_p12 }
0x5c56   : > { %v11990_v45 = vpop.xlane.xlu0 %11989 }
0x5c57   : > { %18459 = vrcp.f32 %v11990_v45 }
0x5c5a   : > { %v17922_v38 = vpop.permute.xlu0 %17921 }
0x5c5b   : > { %v17924_v44 = vunpack.i.h.bf16 %v17922_v38  ;;  %v17923_v18 = vunpack.i.l.bf16 %v17922_v38 }
0x5c5d   : > { %v17210_v16 = vpack.c.bf16 %v17924_v44, %v17923_v18 }
0x5c5e   : > { %v12079_v43 = vpop.permute.xlu0 %12078 }
0x5c5f   : > { %17211 = vmatpush3.bf16.msra.mxu0 %v17210_v16 }
0x5c60   : > { %17212 = vmatprep.subr.bf16.mxu0 %v18592_v19 }
0x5c61   : > { %v18460_v47 = vpop.eup %18459 }
0x5c62   : > { %v11992_v27 = vmul.f32 %v18460_v47, %v18458_v39 }
0x5c64   : > { %16360 = vmatmul.mubr.msk.f32.vlgmr.msra.gmra.mrb[152].mxu0 %vm576_vm2, %v11992_v27 }
0x5c65   : > { %16370 = vmatprep.mubr.msk.f32.mxu0 %vm18593_vm11, %v18594_v37 }
0x5c68   : > { %17215 = vmatpush3.bf16.xpose.msk.msra.mxu0 %vm18817_vm3, %v17213_v29 }
0x5c69   : > { %17216 = vmatprep.subr.bf16.mxu0 %v18592_v19 }
0x5c70   : > { %17219 = vmatpush3.bf16.xpose.msk.msra.mxu0 %vm18817_vm3, %v17217_v59 }
0x5c71   : > { %17234 = vmatprep.subr.bf16.mxu0 %v18592_v19 }
0x5c77   : > { %16371 = vmatmul.mubr.msk.f32.vlgmr.msra.gmra.mrb[154].mxu0 %vm449_vm1, %v12079_v43 }
0x5c78   : > { %16403 = vmatprep.mubr.msk.f32.mxu0 %vm18593_vm11, %v18594_v37 }
0x5d37   : > { %v21071_v26 = vpop.f32.mrb[152].mxu0 }
0x5d38   : > { %v16361_v60 = vpop.f32.mrb[153].mxu0 }
0x5d4a   : > { %v12164_v6 = vpop.f32.mrb[154].mxu0 }
0x5d4b   : > { %v16372_v0 = vpop.f32.mrb[155].mxu0  ;;  %v12168_v7 = vsel %vm576_vm2, %v12164_v6, -inf }
0x5d4c   : > { %12169 = vmax.xlane.f32.xlu1 %v12168_v7 }
0x5d5d   : > { %17941 = vrot.lane.b32.xlu1 %v21003_v41, %s21614_s28 }
0x5d61   : > { %17946 = vrot.lane.b32.xlu1 %v21001_v34, %s21618_s18 }
0x5d65   : > { %12264 = vrot.lane.b32.xlu1 %v21046_v4, %s21618_s18 }
0x5d69   : > { %17961 = vrot.lane.b32.xlu1 %v21003_v41, %s21617_s16 }
0x5dd9   : > { %v12170_v62 = vpop.xlane.xlu1 %12169 }
0x5dda   : > { %v12171_v61 = vsub.f32 %v12164_v6, %v12170_v62 }
0x5ddc   : > { %v12172_v55 = vmul.f32 1.442695, %v12171_v61 }
0x5ddd   : > { %v17942_v14 = vpop.permute.xlu1 %17941 }
0x5dde   : > { %18461 = vpow2.f32 %v12172_v55  ;;  %v17944_v49 = vunpack.i.h.bf16 %v17942_v14  ;;  %v17943_v15 = vunpack.i.l.bf16 %v17942_v14 }
0x5de0   : > { %v17224_v33 = vpack.c.bf16 %v17944_v49, %v17943_v15 }
0x5de1   : > { %v17947_v46 = vpop.permute.xlu1 %17946 }
0x5de2   : > { %v17949_v28 = vunpack.i.h.bf16 %v17947_v46  ;;  %v17948_v32 = vunpack.i.l.bf16 %v17947_v46 }
0x5de4   : > { %v17227_v17 = vpack.c.bf16 %v17949_v28, %v17948_v32 }
0x5de5   : > { %v12265_v53 = vpop.permute.xlu1 %12264 }
0x5de8   : > { %v18462_v51 = vpop.eup %18461 }
0x5de9   : > { %v12174_v50 = vsel %vm576_vm2, %v18462_v51, 0.0  ;;  %v17962_v47 = vpop.permute.xlu1 %17961 }
0x5dea   : > { %12175 = vadd.xlane.f32.xlu0 %v12174_v50  ;;  %v17964_v29 = vunpack.i.h.bf16 %v17962_v47  ;;  %v17963_v25 = vunpack.i.l.bf16 %v17962_v47 }
0x5dec   : > { %v17238_v12 = vpack.c.bf16 %v17964_v29, %v17963_v25 }
0x5e00   : > { %17936 = vrot.lane.b32.xlu0 %v21001_v34, %s21614_s28  ;;  %s21662_s28 = smov 28  }
0x5e04   : > { %17951 = vrot.lane.b32.xlu0 %v21003_v41, %s21618_s18 }
0x5e77   : > { %v12176_v23 = vpop.xlane.xlu0 %12175 }
0x5e78   : > { %18463 = vrcp.f32 %v12176_v23 }
0x5e7b   : > { %v17937_v2 = vpop.permute.xlu0 %17936 }
0x5e7c   : > { %v17939_v31 = vunpack.i.h.bf16 %v17937_v2  ;;  %v17938_v10 = vunpack.i.l.bf16 %v17937_v2 }
0x5e7e   : > { %v17221_v1 = vpack.c.bf16 %v17939_v31, %v17938_v10 }
0x5e7f   : > { %v17952_v5 = vpop.permute.xlu0 %17951 }
0x5e80   : > { %17222 = vmatpush3.bf16.msra.mxu1 %v17221_v1  ;;  %v17954_v13 = vunpack.i.h.bf16 %v17952_v5  ;;  %v17953_v42 = vunpack.i.l.bf16 %v17952_v5 }
0x5e81   : > { %17223 = vmatprep.subr.bf16.mxu1 %v18592_v19 }
0x5e82   : > { %v18464_v22 = vpop.eup %18463  ;;  %v17231_v11 = vpack.c.bf16 %v17954_v13, %v17953_v42 }
0x5e83   : > { %v12178_v21 = vmul.f32 %v18464_v22, %v18462_v51 }
0x5e84   : > { %17225 = vmatpush3.bf16.msra.mxu1 %v17224_v33 }
0x5e85   : > { %17226 = vmatprep.subr.bf16.mxu1 %v18592_v19 }
0x5e87   : > { %16382 = vmatmul.mubr.msk.f32.vlgmr.msra.gmra.mrb[144].mxu1 %vm576_vm2, %v12178_v21 }
0x5e88   : > { %16392 = vmatprep.mubr.msk.f32.mxu1 %vm18593_vm11, %v18594_v37 }
0x5e8d   : > { %17229 = vmatpush3.bf16.xpose.msk.msra.mxu1 %vm18817_vm3, %v17227_v17 }
0x5e8e   : > { %17230 = vmatprep.subr.bf16.mxu1 %v18592_v19 }
0x5e95   : > { %17233 = vmatpush3.bf16.xpose.msk.msra.mxu1 %vm18817_vm3, %v17231_v11 }
0x5e96   : > { %17248 = vmatprep.subr.bf16.mxu1 %v18592_v19 }
0x5e9c   : > { %16393 = vmatmul.mubr.msk.f32.vlgmr.msra.gmra.mrb[146].mxu1 %vm449_vm1, %v12265_v53 }
0x5e9d   : > { %16425 = vmatprep.mubr.msk.f32.mxu1 %vm18593_vm11, %v18594_v37 }
0x5f5a   : > { %v21101_v39 = vpop.f32.mrb[144].mxu1 }
0x5f5b   : > { %v16383_v56 = vpop.f32.mrb[145].mxu1 }
0x5f6f   : > { %v12350_v45 = vpop.f32.mrb[146].mxu1 }
0x5f70   : > { %v16394_v38 = vpop.f32.mrb[147].mxu1  ;;  %v12354_v44 = vsel %vm576_vm2, %v12350_v45, -inf }
0x5f71   : > { %12355 = vmax.xlane.f32.xlu0 %v12354_v44 }
0x5f87   : > { %17956 = vrot.lane.b32.xlu0 %v21001_v34, %s21617_s16  ;;  %s21668_s16 = sld [smem:[#allocation6_spill]] }
0x5f8b   : > { %17966 = vrot.lane.b32.xlu0 %v21001_v34, %s21621_s19 }
0x5f8d   : > { %s21671_s5 = sand.u32 1, %s21668_s16  }
0x5f8e   : > { %s21425_s9 = scalar_lea.sflag [#allocation3], %s21671_s5 }
0x5f8f   : > { %12450 = vrot.lane.b32.xlu0 %v21046_v4, %s21621_s19 }
0x5ffe   : > { %v12356_v18 = vpop.xlane.xlu0 %12355 }
0x5fff   : > { %v12357_v16 = vsub.f32 %v12350_v45, %v12356_v18 }
0x6001   : > { %v12358_v20 = vmul.f32 1.442695, %v12357_v16 }
0x6002   : > { %v17957_v48 = vpop.permute.xlu0 %17956 }
0x6003   : > { %18465 = vpow2.f32 %v12358_v20  ;;  %v17959_v9 = vunpack.i.h.bf16 %v17957_v48  ;;  %v17958_v27 = vunpack.i.l.bf16 %v17957_v48 }
0x6005   : > { %v17235_v52 = vpack.c.bf16 %v17959_v9, %v17958_v27 }
0x6006   : > { %v17967_v6 = vpop.permute.xlu0 %17966 }
0x6007   : > { %17236 = vmatpush3.bf16.msra.mxu0 %v17235_v52  ;;  %v17969_v0 = vunpack.i.h.bf16 %v17967_v6  ;;  %v17968_v7 = vunpack.i.l.bf16 %v17967_v6 }
0x6008   : > { %17237 = vmatprep.subr.bf16.mxu0 %v18592_v19 }
0x6009   : > { %v17241_v55 = vpack.c.bf16 %v17969_v0, %v17968_v7 }
0x600a   : > { %v12451_v2 = vpop.permute.xlu0 %12450 }
0x600b   : > { %17239 = vmatpush3.bf16.msra.mxu0 %v17238_v12 }
0x600c   : > { %17240 = vmatprep.subr.bf16.mxu0 %v18592_v19 }
0x600d   : > { %v18466_v59 = vpop.eup %18465 }
0x600e   : > { %v12360_v43 = vsel %vm576_vm2, %v18466_v59, 0.0 }
0x600f   : > { %12361 = vadd.xlane.f32.xlu1 %v12360_v43 }
0x6020   : > { %17971 = vrot.lane.b32.xlu1 %v21003_v41, %s21621_s19  ;;  %s21663_s19 = sld [smem:[#allocation26_spill]] }
0x609c   : > { %v12362_v60 = vpop.xlane.xlu1 %12361 }
0x609d   : > { %18467 = vrcp.f32 %v12362_v60 }
0x60a0   : > { %v17972_v51 = vpop.permute.xlu1 %17971 }
0x60a1   : > { %v17974_v50 = vunpack.i.h.bf16 %v17972_v51  ;;  %v17973_v23 = vunpack.i.l.bf16 %v17972_v51 }
0x60a3   : > { %v17245_v14 = vpack.c.bf16 %v17974_v50, %v17973_v23 }
0x60a7   : > { %v18468_v62 = vpop.eup %18467 }
0x60a8   : > { %v12364_v61 = vmul.f32 %v18468_v62, %v18466_v59 }
0x60aa   : > { %16404 = vmatmul.mubr.msk.f32.vlgmr.msra.gmra.mrb[156].mxu0 %vm576_vm2, %v12364_v61 }
0x60ab   : > { %17243 = vmatpush3.bf16.xpose.msk.msra.mxu0 %vm18817_vm3, %v17241_v55  ;;  %16414 = vmatprep.mubr.msk.f32.mxu0 %vm18593_vm11, %v18594_v37 }
0x60ac   : > { %17244 = vmatprep.subr.bf16.mxu0 %v18592_v19 }
0x60b3   : > { %17247 = vmatpush3.bf16.xpose.msk.msra.mxu0 %vm18817_vm3, %v17245_v14 }
0x60b4   : > { %17262 = vmatprep.subr.bf16.mxu0 %v18592_v19 }
0x60ba   : > { %16415 = vmatmul.mubr.msk.f32.vlgmr.msra.gmra.mrb[158].mxu0 %vm449_vm1, %v12451_v2 }
0x60bb   : > { %16447 = vmatprep.mubr.msk.f32.mxu0 %vm18593_vm11, %v18594_v37 }
0x617d   : > { %v21127_v31 = vpop.f32.mrb[156].mxu0 }
0x617e   : > { %v16405_v10 = vpop.f32.mrb[157].mxu0 }
0x618d   : > { %v12536_v49 = vpop.f32.mrb[158].mxu0 }
0x618e   : > { %v16416_v15 = vpop.f32.mrb[159].mxu0  ;;  %v12540_v1 = vsel %vm576_vm2, %v12536_v49, -inf }
0x618f   : > { %12541 = vmax.xlane.f32.xlu1 %v12540_v1 }
0x61a0   : > { %17981 = vrot.lane.b32.xlu1 %v21003_v41, %s21620_s30 }
0x61a4   : > { %17986 = vrot.lane.b32.xlu1 %v21001_v34, %s21624_s3 }
0x61a8   : > { %12636 = vrot.lane.b32.xlu1 %v21046_v4, %s21624_s3 }
0x61ac   : > { %18001 = vrot.lane.b32.xlu1 %v21003_v41, %s21623_s2 }
0x621c   : > { %v12542_v22 = vpop.xlane.xlu1 %12541 }
0x621d   : > { %v12543_v33 = vsub.f32 %v12536_v49, %v12542_v22 }
0x621f   : > { %v12544_v46 = vmul.f32 1.442695, %v12543_v33 }
0x6220   : > { %v17982_v17 = vpop.permute.xlu1 %17981 }
0x6221   : > { %18469 = vpow2.f32 %v12544_v46  ;;  %v17984_v11 = vunpack.i.h.bf16 %v17982_v17  ;;  %v17983_v53 = vunpack.i.l.bf16 %v17982_v17 }
0x6223   : > { %v17252_v38 = vpack.c.bf16 %v17984_v11, %v17983_v53 }
0x6224   : > { %v17987_v44 = vpop.permute.xlu1 %17986 }
0x6225   : > { %v17989_v16 = vunpack.i.h.bf16 %v17987_v44  ;;  %v17988_v20 = vunpack.i.l.bf16 %v17987_v44 }
0x6227   : > { %v17255_v47 = vpack.c.bf16 %v17989_v16, %v17988_v20 }
0x6228   : > { %v12637_v25 = vpop.permute.xlu1 %12636 }
0x622b   : > { %v18470_v21 = vpop.eup %18469 }
0x622c   : > { %v12546_v28 = vsel %vm576_vm2, %v18470_v21, 0.0  ;;  %v18002_v62 = vpop.permute.xlu1 %18001 }
0x622d   : > { %12547 = vadd.xlane.f32.xlu0 %v12546_v28  ;;  %v18004_v50 = vunpack.i.h.bf16 %v18002_v62  ;;  %v18003_v23 = vunpack.i.l.bf16 %v18002_v62 }
0x622f   : > { %v17266_v2 = vpack.c.bf16 %v18004_v50, %v18003_v23 }
0x6243   : > { %17976 = vrot.lane.b32.xlu0 %v21001_v34, %s21620_s30 }
0x6247   : > { %17991 = vrot.lane.b32.xlu0 %v21003_v41, %s21624_s3  ;;  %s18504_s3 = scalar_lea.vmem %s18503_s6, 1024 }
0x6248   : > { %p18506_p1 = scmp.lt.s32.totalorder %s18504_s3, %s18498_s4 }
0x624a   : > { %p18507_p2 = por %p18506_p1, %p18505_p0 }
0x624c   : > { %p18508_p3 = pnand %p18507_p2, %p18501_p13 }
0x62ba   : > { %v12548_v32 = vpop.xlane.xlu0 %12547 }
0x62bb   : > { %18471 = vrcp.f32 %v12548_v32 }
0x62be   : > { %v17977_v5 = vpop.permute.xlu0 %17976 }
0x62bf   : > { %v17979_v13 = vunpack.i.h.bf16 %v17977_v5  ;;  %v17978_v42 = vunpack.i.l.bf16 %v17977_v5 }
0x62c1   : > { %v17249_v56 = vpack.c.bf16 %v17979_v13, %v17978_v42 }
0x62c2   : > { %v17992_v48 = vpop.permute.xlu0 %17991 }
0x62c3   : > { %17250 = vmatpush3.bf16.msra.mxu1 %v17249_v56  ;;  %v17994_v9 = vunpack.i.h.bf16 %v17992_v48  ;;  %v17993_v27 = vunpack.i.l.bf16 %v17992_v48 }
0x62c4   : > { %17251 = vmatprep.subr.bf16.mxu1 %v18592_v19 }
0x62c5   : > { %v18472_v45 = vpop.eup %18471  ;;  %v17259_v29 = vpack.c.bf16 %v17994_v9, %v17993_v27 }
0x62c6   : > { %v12550_v18 = vmul.f32 %v18472_v45, %v18470_v21 }
0x62c7   : > { %17253 = vmatpush3.bf16.msra.mxu1 %v17252_v38 }
0x62c8   : > { %17254 = vmatprep.subr.bf16.mxu1 %v18592_v19 }
0x62ca   : > { %16426 = vmatmul.mubr.msk.f32.vlgmr.msra.gmra.mrb[148].mxu1 %vm576_vm2, %v12550_v18 }
0x62cb   : > { %16436 = vmatprep.mubr.msk.f32.mxu1 %vm18593_vm11, %v18594_v37 }
0x62d0   : > { %17257 = vmatpush3.bf16.xpose.msk.msra.mxu1 %vm18817_vm3, %v17255_v47 }
0x62d1   : > { %17258 = vmatprep.subr.bf16.mxu1 %v18592_v19 }
0x62d8   : > { %17261 = vmatpush3.bf16.xpose.msk.msra.mxu1 %vm18817_vm3, %v17259_v29 }
0x62d9   : > { %17276 = vmatprep.subr.bf16.mxu1 %v18592_v19 }
0x62df   : > { %16437 = vmatmul.mubr.msk.f32.vlgmr.msra.gmra.mrb[150].mxu1 %vm449_vm1, %v12637_v25 }
0x62e0   : > { %16469 = vmatprep.mubr.msk.f32.mxu1 %vm18593_vm11, %v18594_v37 }
0x639d   : > { %v21157_v52 = vpop.f32.mrb[148].mxu1 }
0x639e   : > { %v16427_v12 = vpop.f32.mrb[149].mxu1 }
0x63b2   : > { %v12722_v59 = vpop.f32.mrb[150].mxu1 }
0x63b3   : > { %v16438_v43 = vpop.f32.mrb[151].mxu1  ;;  %v12726_v60 = vsel %vm576_vm2, %v12722_v59, -inf }
0x63b4   : > { %12727 = vmax.xlane.f32.xlu0 %v12726_v60 }
0x63ca   : > { %17996 = vrot.lane.b32.xlu0 %v21001_v34, %s21623_s2 }
0x63ce   : > { %18006 = vrot.lane.b32.xlu0 %v21001_v34, %s21627_s27 }
0x63d2   : > { %12822 = vrot.lane.b32.xlu0 %v21046_v4, %s21627_s27 }
0x6441   : > { %v12728_v6 = vpop.xlane.xlu0 %12727 }
0x6442   : > { %v12729_v0 = vsub.f32 %v12722_v59, %v12728_v6 }
0x6444   : > { %v12730_v7 = vmul.f32 1.442695, %v12729_v0 }
0x6445   : > { %v17997_v61 = vpop.permute.xlu0 %17996 }
0x6446   : > { %18473 = vpow2.f32 %v12730_v7  ;;  %v17999_v55 = vunpack.i.h.bf16 %v17997_v61  ;;  %v17998_v51 = vunpack.i.l.bf16 %v17997_v61 }
0x6448   : > { %v17263_v14 = vpack.c.bf16 %v17999_v55, %v17998_v51 }
0x6449   : > { %v18007_v1 = vpop.permute.xlu0 %18006 }
0x644a   : > { %17264 = vmatpush3.bf16.msra.mxu0 %v17263_v14  ;;  %v18009_v22 = vunpack.i.h.bf16 %v18007_v1  ;;  %v18008_v33 = vunpack.i.l.bf16 %v18007_v1 }
0x644b   : > { %17265 = vmatprep.subr.bf16.mxu0 %v18592_v19 }
0x644c   : > { %v17269_v28 = vpack.c.bf16 %v18009_v22, %v18008_v33 }
0x644d   : > { %v12823_v42 = vpop.permute.xlu0 %12822 }
0x644e   : > { %17267 = vmatpush3.bf16.msra.mxu0 %v17266_v2 }
0x644f   : > { %17268 = vmatprep.subr.bf16.mxu0 %v18592_v19 }
0x6450   : > { %v18474_v10 = vpop.eup %18473 }
0x6451   : > { %v12732_v49 = vsel %vm576_vm2, %v18474_v10, 0.0 }
0x6452   : > { %12733 = vadd.xlane.f32.xlu1 %v12732_v49 }
0x6463   : > { %18011 = vrot.lane.b32.xlu1 %v21003_v41, %s21627_s27 }
0x64df   : > { %v12734_v15 = vpop.xlane.xlu1 %12733 }
0x64e0   : > { %18475 = vrcp.f32 %v12734_v15 }
0x64e3   : > { %v18012_v32 = vpop.permute.xlu1 %18011 }
0x64e4   : > { %v18014_v17 = vunpack.i.h.bf16 %v18012_v32  ;;  %v18013_v5 = vunpack.i.l.bf16 %v18012_v32 }
0x64e6   : > { %v17273_v13 = vpack.c.bf16 %v18014_v17, %v18013_v5 }
0x64ea   : > { %v18476_v46 = vpop.eup %18475 }
0x64eb   : > { %v12736_v21 = vmul.f32 %v18476_v46, %v18474_v10 }
0x64ed   : > { %16448 = vmatmul.mubr.msk.f32.vlgmr.msra.gmra.mrb[160].mxu0 %vm576_vm2, %v12736_v21 }
0x64ee   : > { %17271 = vmatpush3.bf16.xpose.msk.msra.mxu0 %vm18817_vm3, %v17269_v28  ;;  %16458 = vmatprep.mubr.msk.f32.mxu0 %vm18593_vm11, %v18594_v37 }
0x64ef   : > { %17272 = vmatprep.subr.bf16.mxu0 %v18592_v19 }
0x64f6   : > { %17275 = vmatpush3.bf16.xpose.msk.msra.mxu0 %vm18817_vm3, %v17273_v13 }
0x64f7   : > { %17290 = vmatprep.subr.bf16.mxu0 %v18592_v19 }
0x64fd   : > { %16459 = vmatmul.mubr.msk.f32.vlgmr.msra.gmra.mrb[162].mxu0 %vm449_vm1, %v12823_v42 }
0x64fe   : > { %16491 = vmatprep.mubr.msk.f32.mxu0 %vm18593_vm11, %v18594_v37 }
0x65c0   : > { %v21183_v11 = vpop.f32.mrb[160].mxu0 }
0x65c1   : > { %v16449_v53 = vpop.f32.mrb[161].mxu0 }
0x65d0   : > { %v12908_v56 = vpop.f32.mrb[162].mxu0 }
0x65d1   : > { %v16460_v45 = vpop.f32.mrb[163].mxu0  ;;  %v12912_v38 = vsel %vm576_vm2, %v12908_v56, -inf }
0x65d2   : > { %12913 = vmax.xlane.f32.xlu1 %v12912_v38 }
0x65e3   : > { %18021 = vrot.lane.b32.xlu1 %v21003_v41, %s21626_s23 }
0x65e7   : > { %18026 = vrot.lane.b32.xlu1 %v21001_v34, %s21630_s21 }
0x65eb   : > { %13008 = vrot.lane.b32.xlu1 %v21046_v4, %s21630_s21 }
0x65ef   : > { %18041 = vrot.lane.b32.xlu1 %v21003_v41, %s21629_s14 }
0x665f   : > { %v12914_v44 = vpop.xlane.xlu1 %12913 }
0x6660   : > { %v12915_v18 = vsub.f32 %v12908_v56, %v12914_v44 }
0x6662   : > { %v12916_v16 = vmul.f32 1.442695, %v12915_v18 }
0x6663   : > { %v18022_v9 = vpop.permute.xlu1 %18021 }
0x6664   : > { %18477 = vpow2.f32 %v12916_v16  ;;  %v18024_v12 = vunpack.i.h.bf16 %v18022_v9  ;;  %v18023_v59 = vunpack.i.l.bf16 %v18022_v9 }
0x6666   : > { %v17280_v6 = vpack.c.bf16 %v18024_v12, %v18023_v59 }
0x6667   : > { %v18027_v0 = vpop.permute.xlu1 %18026 }
0x6668   : > { %v18029_v62 = vunpack.i.h.bf16 %v18027_v0  ;;  %v18028_v61 = vunpack.i.l.bf16 %v18027_v0 }
0x666a   : > { %v17283_v55 = vpack.c.bf16 %v18029_v62, %v18028_v61 }
0x666b   : > { %v13009_v2 = vpop.permute.xlu1 %13008 }
0x666e   : > { %v18478_v20 = vpop.eup %18477 }
0x666f   : > { %v12918_v47 = vsel %vm576_vm2, %v18478_v20, 0.0  ;;  %v18042_v28 = vpop.permute.xlu1 %18041 }
0x6670   : > { %12919 = vadd.xlane.f32.xlu0 %v12918_v47  ;;  %v18044_v13 = vunpack.i.h.bf16 %v18042_v28  ;;  %v18043_v42 = vunpack.i.l.bf16 %v18042_v28 }
0x6672   : > { %v17294_v56 = vpack.c.bf16 %v18044_v13, %v18043_v42 }
0x6686   : > { %18016 = vrot.lane.b32.xlu0 %v21001_v34, %s21626_s23 }
0x668a   : > { %18031 = vrot.lane.b32.xlu0 %v21003_v41, %s21630_s21 }
0x66fd   : > { %v12920_v48 = vpop.xlane.xlu0 %12919 }
0x66fe   : > { %18479 = vrcp.f32 %v12920_v48 }
0x6701   : > { %v18017_v27 = vpop.permute.xlu0 %18016 }
0x6702   : > { %v18019_v29 = vunpack.i.h.bf16 %v18017_v27  ;;  %v18018_v25 = vunpack.i.l.bf16 %v18017_v27 }
0x6704   : > { %v17277_v43 = vpack.c.bf16 %v18019_v29, %v18018_v25 }
0x6705   : > { %v18032_v51 = vpop.permute.xlu0 %18031 }
0x6706   : > { %17278 = vmatpush3.bf16.msra.mxu1 %v17277_v43  ;;  %v18034_v50 = vunpack.i.h.bf16 %v18032_v51  ;;  %v18033_v23 = vunpack.i.l.bf16 %v18032_v51 }
0x6707   : > { %17279 = vmatprep.subr.bf16.mxu1 %v18592_v19 }
0x6708   : > { %v18480_v60 = vpop.eup %18479  ;;  %v17287_v14 = vpack.c.bf16 %v18034_v50, %v18033_v23 }
0x6709   : > { %v12922_v7 = vmul.f32 %v18480_v60, %v18478_v20 }
0x670a   : > { %17281 = vmatpush3.bf16.msra.mxu1 %v17280_v6 }
0x670b   : > { %17282 = vmatprep.subr.bf16.mxu1 %v18592_v19 }
0x670d   : > { %16470 = vmatmul.mubr.msk.f32.vlgmr.msra.gmra.mrb[152].mxu1 %vm576_vm2, %v12922_v7 }
0x670e   : > { %16480 = vmatprep.mubr.msk.f32.mxu1 %vm18593_vm11, %v18594_v37 }
0x6713   : > { %17285 = vmatpush3.bf16.xpose.msk.msra.mxu1 %vm18817_vm3, %v17283_v55 }
0x6714   : > { %17286 = vmatprep.subr.bf16.mxu1 %v18592_v19 }
0x671b   : > { %17289 = vmatpush3.bf16.xpose.msk.msra.mxu1 %vm18817_vm3, %v17287_v14 }
0x671c   : > { %17304 = vmatprep.subr.bf16.mxu1 %v18592_v19 }
0x6722   : > { %16481 = vmatmul.mubr.msk.f32.vlgmr.msra.gmra.mrb[154].mxu1 %vm449_vm1, %v13009_v2 }
0x6723   : > { %16513 = vmatprep.mubr.msk.f32.mxu1 %vm18593_vm11, %v18594_v37 }
0x67e0   : > { %v13004_v10 = vpop.f32.mrb[152].mxu1 }
0x67e1   : > { %v16471_v49 = vpop.f32.mrb[153].mxu1 }
0x67e2   : > { %v14466_v49 = vld [vmem:[%s21650_s10 + $0xf8] sm:$0xff] }
0x67f5   : > { %v13094_v15 = vpop.f32.mrb[154].mxu1 }
0x67f6   : > { %v16482_v1 = vpop.f32.mrb[155].mxu1  ;;  %v13098_v22 = vsel %vm576_vm2, %v13094_v15, -inf }
0x67f7   : > { %13099 = vmax.xlane.f32.xlu0 %v13098_v22  ;;  %v14468_v22 = vld [vmem:[%s21650_s10 + $0x108] sm:$0xff] }
0x680d   : > { %18036 = vrot.lane.b32.xlu0 %v21001_v34, %s21629_s14 }
0x6811   : > { %18046 = vrot.lane.b32.xlu0 %v21001_v34, %s21633_s12 }
0x6815   : > { %13194 = vrot.lane.b32.xlu0 %v21046_v4, %s21633_s12 }
0x6884   : > { %v13100_v33 = vpop.xlane.xlu0 %13099 }
0x6885   : > { %v13101_v46 = vsub.f32 %v13094_v15, %v13100_v33  ;;  %v14467_v15 = vld [vmem:[%s21650_s10 + $0x100] sm:$0xff] }
0x6886   : > { %v17314_v33 = vpack.c.bf16 %v14468_v22, %v14467_v15  ;;  %v14475_v22 = vld [vmem:[%s21650_s10 + $0x140] sm:$0xff] }
0x6887   : > { %v13102_v21 = vmul.f32 1.442695, %v13101_v46 }
0x6888   : > { %v18037_v32 = vpop.permute.xlu0 %18036 }
0x6889   : > { %18481 = vpow2.f32 %v13102_v21  ;;  %v18039_v17 = vunpack.i.h.bf16 %v18037_v32  ;;  %v18038_v5 = vunpack.i.l.bf16 %v18037_v32 }
0x688b   : > { %v17291_v53 = vpack.c.bf16 %v18039_v17, %v18038_v5 }
0x688c   : > { %v18047_v44 = vpop.permute.xlu0 %18046 }
0x688d   : > { %17292 = vmatpush3.bf16.msra.mxu0 %v17291_v53  ;;  %v18049_v18 = vunpack.i.h.bf16 %v18047_v44  ;;  %v18048_v16 = vunpack.i.l.bf16 %v18047_v44 }
0x688e   : > { %17293 = vmatprep.subr.bf16.mxu0 %v18592_v19 }
0x688f   : > { %v17297_v48 = vpack.c.bf16 %v18049_v18, %v18048_v16 }
0x6890   : > { %v13195_v12 = vpop.permute.xlu0 %13194 }
0x6891   : > { %17295 = vmatpush3.bf16.msra.mxu0 %v17294_v56 }
0x6892   : > { %17296 = vmatprep.subr.bf16.mxu0 %v18592_v19 }
0x6893   : > { %v18482_v45 = vpop.eup %18481 }
0x6894   : > { %v13104_v4 = vsel %vm576_vm2, %v18482_v45, 0.0 }
0x6895   : > { %13105 = vadd.xlane.f32.xlu1 %v13104_v4 }
0x68a6   : > { %18051 = vrot.lane.b32.xlu1 %v21003_v41, %s21633_s12 }
0x6922   : > { %v13106_v38 = vpop.xlane.xlu1 %13105 }
0x6923   : > { %18483 = vrcp.f32 %v13106_v38 }
0x6926   : > { %v18052_v9 = vpop.permute.xlu1 %18051 }
0x6927   : > { %v18054_v27 = vunpack.i.h.bf16 %v18052_v9  ;;  %v18053_v29 = vunpack.i.l.bf16 %v18052_v9 }
0x6929   : > { %v17301_v25 = vpack.c.bf16 %v18054_v27, %v18053_v29 }
0x692d   : > { %v18484_v20 = vpop.eup %18483 }
0x692e   : > { %v13108_v47 = vmul.f32 %v18484_v20, %v18482_v45 }
0x6930   : > { %16492 = vmatmul.mubr.msk.f32.vlgmr.msra.gmra.mrb[164].mxu0 %vm576_vm2, %v13108_v47 }
0x6931   : > { %17299 = vmatpush3.bf16.xpose.msk.msra.mxu0 %vm18817_vm3, %v17297_v48  ;;  %16502 = vmatprep.mubr.msk.f32.mxu0 %vm18593_vm11, %v18594_v37 }
0x6932   : > { %17300 = vmatprep.subr.bf16.mxu0 %v18592_v19 }
0x6939   : > { %17303 = vmatpush3.bf16.xpose.msk.msra.mxu0 %vm18817_vm3, %v17301_v25 }
0x693a   : > { %17316 = vmatprep.subr.bf16.mxu0 %v18592_v19 }
0x6940   : > { %16503 = vmatmul.mubr.msk.f32.vlgmr.msra.gmra.mrb[166].mxu0 %vm449_vm1, %v13195_v12 }
0x6941   : > { %16535 = vmatprep.mubr.msk.f32.mxu0 %vm18593_vm11, %v18594_v37 }
0x6a03   : > { %v13190_v59 = vpop.f32.mrb[164].mxu0 }
0x6a04   : > { %v16493_v43 = vpop.f32.mrb[165].mxu0 }
0x6a13   : > { %v13280_v60 = vpop.f32.mrb[166].mxu0 }
0x6a14   : > { %v16504_v6 = vpop.f32.mrb[167].mxu0  ;;  %v13284_v0 = vsel %vm576_vm2, %v13280_v60, -inf }
0x6a15   : > { %13285 = vmax.xlane.f32.xlu1 %v13284_v0  ;;  %v14452_v6 = vld [vmem:[%s21654_s20 + $0xa8] sm:$0xff] }
0x6a26   : > { %18061 = vrot.lane.b32.xlu1 %v21003_v41, %s21632_s24 }
0x6a2a   : > { %13381 = vrot.lane.b32.xlu1 %v21101_v39, %s21644_s25 }
0x6a2e   : > { %13389 = vrot.lane.b32.xlu1 %v21157_v52, %s21646_s0 }
0x6a32   : > { %13397 = vrot.lane.b32.xlu1 %v13004_v10, %s21648_s7 }
0x6aa2   : > { %v13286_v63 = vpop.xlane.xlu1 %13285 }
0x6aa3   : > { %v13287_v7 = vsub.f32 %v13280_v60, %v13286_v63  ;;  %v14455_v63 = vld [vmem:[%s21654_s20 + $0xc0] sm:$0xff] }
0x6aa5   : > { %v13288_v62 = vmul.f32 1.442695, %v13287_v7 }
0x6aa6   : > { %v18062_v39 = vpop.permute.xlu1 %18061 }
0x6aa7   : > { %18485 = vpow2.f32 %v13288_v62  ;;  %v18064_v23 = vunpack.i.h.bf16 %v18062_v39  ;;  %v18063_v14 = vunpack.i.l.bf16 %v18062_v39  ;;  %v14469_v62 = vld [vmem:[%s21650_s10 + $0x110] sm:$0xff]  ;;  %v14472_v39 = vld [vmem:[%s21650_s10 + $0x128] sm:$0xff] }
0x6aa9   : > { %v17308_v10 = vpack.c.bf16 %v18064_v23, %v18063_v14 }
0x6aaa   : > { %v13382_v28 = vpop.permute.xlu1 %13381 }
0x6aab   : > { %v13408_v5 = vsel %vm449_vm1, %v21071_v26, %v13382_v28  ;;  %v21287_v26 = vld [vmem:[%s21650_s10 + $0x150] sm:$0xff] }
0x6aac   : > { %v13418_v20 = vrot.slane %v21287_v26, %v18762_v36  ;;  %v14453_v36 = vld [vmem:[%s21654_s20 + $0xb0] sm:$0xff] }
0x6aad   : > { %v17317_v0 = vpack.c.bf16 %v14453_v36, %v14452_v6  ;;  %v13695_v36 = vld [vmem:[%s21663_s19] sm:$0xff] }
0x6aae   : > { %v13390_v17 = vpop.permute.xlu1 %13389 }
0x6aaf   : > { %17318 = vmatpush3.bf16.msra.mxu0 %v17317_v0  ;;  %v13697_v0 = vld [vmem:[%s21663_s19 + $0x10] sm:$0xff] }
0x6ab0   : > { %17319 = vmatprep.subr.bf16.mxu0 %v18592_v19 }
0x6ab1   : > { %v18486_v61 = vpop.eup %18485 }
0x6ab2   : > { %v13290_v55 = vsel %vm576_vm2, %v18486_v61, 0.0  ;;  %v13398_v56 = vpop.permute.xlu1 %13397 }
0x6ab3   : > { %13291 = vadd.xlane.f32.xlu0 %v13290_v55  ;;  %v14471_v55 = vld [vmem:[%s21650_s10 + $0x120] sm:$0xff] }
0x6ac9   : > { %18056 = vrot.lane.b32.xlu0 %v21001_v34, %s21632_s24  ;;  %s21664_s24 = sld [smem:[#allocation27_spill]] }
0x6acd   : > { %13385 = vrot.lane.b32.xlu0 %v21127_v31, %s21645_s13 }
0x6acf   : > { %s21665_s27 = smov %s21664_s24 }
0x6ad1   : > { %13393 = vrot.lane.b32.xlu0 %v21183_v11, %s21647_s8  ;;  %v14465_v11 = vld [vmem:[%s21650_s10 + $0xf0] sm:$0xff] }
0x6ad2   : > { %v17311_v1 = vpack.c.bf16 %v14466_v49, %v14465_v11  ;;  %v13514_v49 = vrot.slane %v21287_v26, %v9885_v3  ;;  %v14561_v3 = vld [vmem:[%s21654_s20 + $0xc8] ss:$0 sm:$0xff] }
0x6ad5   : > { %13401 = vrot.lane.b32.xlu0 %v13190_v59, %s21660_s26 }
0x6b40   : > { %v13292_v41 = vpop.xlane.xlu0 %13291 }
0x6b41   : > { %18487 = vrcp.f32 %v13292_v41 }
0x6b44   : > { %v18057_v52 = vpop.permute.xlu0 %18056 }
0x6b45   : > { %v18059_v51 = vunpack.i.h.bf16 %v18057_v52  ;;  %v18058_v50 = vunpack.i.l.bf16 %v18057_v52  ;;  %v17326_v52 = vpack.c.bf16 %v14472_v39, %v14471_v55  ;;  %v13703_v39 = vld [vmem:[%s21663_s19 + $0x40] sm:$0xf] }
0x6b47   : > { %v17305_v2 = vpack.c.bf16 %v18059_v51, %v18058_v50  ;;  %v14473_v51 = vld [vmem:[%s21650_s10 + $0x130] sm:$0xff]  ;;  %v14474_v50 = vld [vmem:[%s21650_s10 + $0x138] sm:$0xff] }
0x6b48   : > { %v13386_v32 = vpop.permute.xlu0 %13385  ;;  %v17329_v23 = vpack.c.bf16 %v14474_v50, %v14473_v51 }
0x6b49   : > { %17306 = vmatpush3.bf16.msra.mxu1 %v17305_v2  ;;  %v13409_v42 = vsel %vm3069_vm4, %v13408_v5, %v13386_v32 }
0x6b4a   : > { %17307 = vmatprep.subr.bf16.mxu1 %v18592_v19  ;;  %v13410_v53 = vsel %vm3074_vm5, %v13409_v42, %v13390_v17  ;;  %v13597_v17 = vrot.slane %v21287_v26, %v9968_v24  ;;  %v13688_v24 = vrot.slane %v14478_v35, %v19294_v54 }
0x6b4b   : > { %v18488_v34 = vpop.eup %18487 }
0x6b4c   : > { %v13294_v31 = vmul.f32 %v18488_v34, %v18486_v61  ;;  %v13394_v13 = vpop.permute.xlu0 %13393  ;;  %v14470_v61 = vld [vmem:[%s21650_s10 + $0x118] sm:$0xff] }
0x6b4d   : > { %17309 = vmatpush3.bf16.msra.mxu1 %v17308_v10  ;;  %v13411_v45 = vsel %vm3079_vm6, %v13410_v53, %v13394_v13  ;;  %v17323_v41 = vpack.c.bf16 %v14470_v61, %v14469_v62  ;;  %v13509_v10 = vrot.slane %v21287_v26, %v19418_v30  ;;  %v14476_v30 = vld [vmem:[%s21650_s10 + $0x148] sm:$0xff] }
0x6b4e   : > { %17310 = vmatprep.subr.bf16.mxu1 %v18592_v19  ;;  %v13412_v38 = vsel %vm3084_vm7, %v13411_v45, %v13398_v56 }
0x6b50   : > { %16514 = vmatmul.mubr.msk.f32.vlgmr.msra.gmra.mrb[156].mxu1 %vm576_vm2, %v13294_v31  ;;  %v13402_v4 = vpop.permute.xlu0 %13401 }
0x6b51   : > { %16524 = vmatprep.mubr.msk.f32.mxu1 %vm18593_vm11, %v18594_v37  ;;  %17312 = vmatpush3.bf16.msra.mxu1 %v17311_v1  ;;  %v13413_v44 = vsel %vm3089_vm8, %v13412_v38, %v13402_v4 }
0x6b52   : > { %17313 = vmatprep.subr.bf16.mxu1 %v18592_v19 }
0x6b55   : > { %17315 = vmatpush3.bf16.msra.mxu1 %v17314_v33  ;;  %v17332_v33 = vpack.c.bf16 %v14476_v30, %v14475_v22 }
0x6b56   : > { %17322 = vmatprep.subr.bf16.mxu1 %v18592_v19 }
0x6c23   : > { %v13376_v46 = vpop.f32.mrb[156].mxu1 }
0x6c24   : > { %13405 = vrot.lane.b32.xlu1 %v13376_v46, %s21662_s28  ;;  %v16515_v21 = vpop.f32.mrb[157].mxu1  ;;  %s21666_s28 = sld [smem:[#allocation9_spill]] }
0x6c2a   : > { %s14574_s8 = sshll.u32 %s21666_s28, 9 }
0x6c2b   : > { %s21418_s22 = scalar_lea.hbm %s21670_s1, %s14574_s8 }
0x6c96   : > { %v13406_v18 = vpop.permute.xlu1 %13405 }
0x6c97   : > { %v13414_v16 = vsel %vm3094_vm9, %v13413_v44, %v13406_v18 }
0x6c98   : > { %16525 = vmatmul.mubr.msk.f32.vlgmr.msra.gmra.mrb[158].mxu1 %vm576_vm2, %v13414_v16 }
0x6c99   : > { %16554 = vmatprep.mubr.msk.f32.mxu1 %vm18593_vm11, %v18594_v37  ;;  %17324 = vmatpush3.bf16.msra.mxu1 %v17323_v41 }
0x6c9a   : > { %17325 = vmatprep.subr.bf16.mxu1 %v18592_v19 }
0x6c9d   : > { %17327 = vmatpush3.bf16.msra.mxu1 %v17326_v52  ;;  %v13725_v52 = vrot.slane %v13703_v39, %v19294_v54  ;;  %v13701_v54 = vld [vmem:[%s21663_s19 + $0x30] sm:$0xff] }
0x6c9e   : > { %17328 = vmatprep.subr.bf16.mxu1 %v18592_v19 }
0x6ca1   : > { %17330 = vmatpush3.bf16.msra.mxu1 %v17329_v23  ;;  %v13730_v23 = vrot.slane %v13703_v39, %v19362_v57 }
0x6ca2   : > { %17331 = vmatprep.subr.bf16.mxu1 %v18592_v19 }
0x6ca5   : > { %17333 = vmatpush3.bf16.msra.mxu1 %v17332_v33 }
0x6ca6   : > { %17346 = vmatprep.subr.bf16.mxu1 %v18592_v19 }
0x6d6b   : > { %v13488_v47 = vpop.f32.mrb[158].mxu1 }
0x6d6c   : > { %v13489_v48 = vadd.f32 %v13488_v47, %v13418_v20  ;;  %v16526_v9 = vpop.f32.mrb[159].mxu1 }
0x6d6d   : > { %v13693_v9 = vrot.slane %v14478_v35, %v19362_v57  ;;  %v13702_v57 = vld [vmem:[%s21663_s19 + $0x38] sm:$0xff] }
0x6d6e   : > { %v13492_v27 = vadd.f32 %v13489_v48, %v21031_v8  ;;  %v14454_v8 = vld [vmem:[%s21654_s20 + $0xb8] sm:$0xff] }
0x6d6f   : > { %v17320_v7 = vpack.c.bf16 %v14455_v63, %v14454_v8  ;;  %v13696_v8 = vld [vmem:[%s21663_s19 + $0x8] sm:$0xff] }
0x6d70   : > { %v13493_v29 = vsel %vm576_vm2, %v13492_v27, 0.0  ;;  %v17335_v63 = vpack.c.bf16 %v13696_v8, %v13695_v36 }
0x6d71   : > { %13494 = vadd.xlane.f32.xlu0 %v13493_v29  ;;  %17321 = vmatpush3.bf16.msra.mxu0 %v17320_v7  ;;  %v13698_v7 = vld [vmem:[%s21663_s19 + $0x18] sm:$0xff] }
0x6d72   : > { %17334 = vmatprep.subr.bf16.mxu0 %v18592_v19  ;;  %v17338_v62 = vpack.c.bf16 %v13698_v7, %v13697_v0 }
0x6dfe   : > { %v13495_v25 = vpop.xlane.xlu0 %13494 }
0x6dff   : > { %v13496_v12 = vmul.f32 0.03125, %v13495_v25 }
0x6e01   : > { %v13497_v59 = vsub.f32 %v13492_v27, %v13496_v12 }
0x6e03   : > { %v13498_v43 = vmul.f32 %v13497_v59, %v13497_v59 }
0x6e05   : > { %v13499_v60 = vsel %vm576_vm2, %v13498_v43, 0.0 }
0x6e06   : > { %13500 = vadd.xlane.f32.xlu1 %v13499_v60 }
0x6e93   : > { %v13501_v14 = vpop.xlane.xlu1 %13500 }
0x6e94   : > { %v13502_v2 = vmul.f32 0.03125, %v13501_v14  ;;  %v13699_v14 = vld [vmem:[%s21663_s19 + $0x20] sm:$0xff] }
0x6e96   : > { %v13503_v34 = vadd.f32 1e-05, %v13502_v2  ;;  %v13700_v2 = vld [vmem:[%s21663_s19 + $0x28] sm:$0xff] }
0x6e98   : > { %18489 = vrsqrt.f32 %v13503_v34 }
0x6ea2   : > { %v18490_v31 = vpop.eup %18489 }
0x6ea3   : > { %v13505_v11 = vmul.f32 %v18490_v31, %v13497_v59 }
0x6ea5   : > { %v13510_v15 = vmul.f32 %v13509_v10, %v13505_v11  ;;  %v17341_v10 = vpack.c.bf16 %v13700_v2, %v13699_v14  ;;  %v17344_v11 = vpack.c.bf16 %v13702_v57, %v13701_v54 }
0x6ea7   : > { %v13515_v1 = vadd.f32 %v13514_v49, %v13510_v15  ;;  %v13704_v49 = vld [vmem:[%s21664_s24] sm:$0xff]  ;;  %v13705_v15 = vld [vmem:[%s21665_s27 + $0x8] sm:$0xff] }
0x6ea9   : > { %16536 = vmatmul.mubr.msk.f32.vlgmr.msra.gmra.mrb[168].mxu0 %vm576_vm2, %v13515_v1 }
0x6eaa   : > { %16565 = vmatprep.mubr.msk.f32.mxu0 %vm18593_vm11, %v18594_v37  ;;  %17336 = vmatpush3.bf16.msra.mxu0 %v17335_v63 }
0x6eab   : > { %17337 = vmatprep.subr.bf16.mxu0 %v18592_v19 }
0x6eae   : > { %17339 = vmatpush3.bf16.msra.mxu0 %v17338_v62 }
0x6eaf   : > { %17340 = vmatprep.subr.bf16.mxu0 %v18592_v19 }
0x6f7c   : > { %v13589_v46 = vpop.f32.mrb[168].mxu0 }
0x6f7d   : > { %v13590_v21 = vadd.f32 %v14561_v3, %v13589_v46  ;;  %v16537_v28 = vpop.f32.mrb[169].mxu0  ;;  %v13706_v46 = vld [vmem:[%s21665_s27 + $0x10] sm:$0xff] }
0x6f7f   : > { %v13593_v32 = vmax.f32 %v13590_v21, 0.0  ;;  %v13707_v21 = vld [vmem:[%s21665_s27 + $0x18] sm:$0xff] }
0x6f81   : > { %16555 = vmatmul.mubr.msk.f32.vlgmr.msra.gmra.mrb[160].mxu1 %vm3382_vm10, %v13593_v32 }
0x6f82   : > { %16587 = vmatprep.mubr.msk.f32.mxu1 %vm18593_vm11, %v18594_v37 }
0x7054   : > { %v13667_v5 = vpop.f32.mrb[160].mxu1 }
0x7055   : > { %v13668_v13 = vadd.f32 %v13667_v5, %v13597_v17  ;;  %v16556_v42 = vpop.f32.mrb[161].mxu1 }
0x7057   : > { %v13671_v53 = vadd.f32 %v13668_v13, %v13515_v1  ;;  %v13735_v1 = vrot.slane %v13703_v39, %v19365_v58  ;;  %v13813_v58 = vrot.slane %v13703_v39, %v19393_v40 }
0x7059   : > { %v13672_v56 = vsel %vm576_vm2, %v13671_v53, 0.0 }
0x705a   : > { %13673 = vadd.xlane.f32.xlu0 %v13672_v56 }
0x70e7   : > { %v13674_v45 = vpop.xlane.xlu0 %13673 }
0x70e8   : > { %v13675_v4 = vmul.f32 0.03125, %v13674_v45 }
0x70ea   : > { %v13676_v38 = vsub.f32 %v13671_v53, %v13675_v4 }
0x70ec   : > { %v13677_v44 = vmul.f32 %v13676_v38, %v13676_v38 }
0x70ee   : > { %v13678_v18 = vsel %vm576_vm2, %v13677_v44, 0.0 }
0x70ef   : > { %13679 = vadd.xlane.f32.xlu0 %v13678_v18 }
0x717c   : > { %v13680_v16 = vpop.xlane.xlu0 %13679 }
0x717d   : > { %v13681_v20 = vmul.f32 0.03125, %v13680_v16 }
0x717f   : > { %v13682_v47 = vadd.f32 1e-05, %v13681_v20 }
0x7181   : > { %18491 = vrsqrt.f32 %v13682_v47 }
0x718b   : > { %v18492_v26 = vpop.eup %18491 }
0x718c   : > { %v13684_v48 = vmul.f32 %v18492_v26, %v13676_v38 }
0x718e   : > { %v13689_v27 = vmul.f32 %v13688_v24, %v13684_v48 }
0x7190   : > { %v13694_v29 = vadd.f32 %v13693_v9, %v13689_v27 }
0x7192   : > { %v13709_v25 = vsel %vm576_vm2, %v13694_v29, 0.0 }
0x7193   : > { %13710 = vadd.xlane.f32.xlu1 %v13709_v25 }
0x7220   : > { %v13711_v12 = vpop.xlane.xlu1 %13710 }
0x7221   : > { %v13712_v59 = vmul.f32 0.03125, %v13711_v12 }
0x7223   : > { %v13713_v43 = vsub.f32 %v13694_v29, %v13712_v59 }
0x7225   : > { %v13714_v60 = vmul.f32 %v13713_v43, %v13713_v43 }
0x7227   : > { %v13715_v6 = vsel %vm576_vm2, %v13714_v60, 0.0 }
0x7228   : > { %13716 = vadd.xlane.f32.xlu0 %v13715_v6 }
0x72b5   : > { %v13717_v61 = vpop.xlane.xlu0 %13716 }
0x72b6   : > { %v13718_v55 = vmul.f32 0.03125, %v13717_v61 }
0x72b8   : > { %v13719_v41 = vadd.f32 1e-05, %v13718_v55 }
0x72ba   : > { %18493 = vrsqrt.f32 %v13719_v41 }
0x72c4   : > { %v18494_v51 = vpop.eup %18493 }
0x72c5   : > { %v13721_v50 = vmul.f32 %v18494_v51, %v13713_v43 }
0x72c7   : > { %v13726_v34 = vmul.f32 %v13725_v52, %v13721_v50 }
0x72c9   : > { %v13731_v31 = vadd.f32 %v13730_v23, %v13726_v34 }
0x72cb   : > { %16566 = vmatmul.mubr.msk.f32.vlgmr.msra.gmra.mrb[170].mxu0 %vm576_vm2, %v13731_v31 }
0x72cc   : > { %17342 = vmatpush3.bf16.msra.mxu0 %v17341_v10  ;;  %16576 = vmatprep.mubr.msk.f32.mxu0 %vm18593_vm11, %v18594_v37  ;;  %v17347_v37 = vpack.c.bf16 %v13705_v15, %v13704_v49 }
0x72cd   : > { %17343 = vmatprep.subr.bf16.mxu0 %v18592_v19 }
0x72ce   : > { %17348 = vmatpush3.bf16.msra.mxu1 %v17347_v37 }
0x72cf   : > { %17349 = vmatprep.subr.bf16.mxu1 %v18592_v19  ;;  %v17350_v19 = vpack.c.bf16 %v13707_v21, %v13706_v46 }
0x72d0   : > { %17345 = vmatpush3.bf16.msra.mxu0 %v17344_v11 }
0x72d2   : > { %17351 = vmatpush3.bf16.msra.mxu1 %v17350_v19 }
0x739e   : > { %v13805_v22 = vpop.f32.mrb[170].mxu0 }
0x739f   : > { %v13806_v30 = vadd.f32 %v13805_v22, %v13735_v1  ;;  %v16567_v33 = vpop.f32.mrb[171].mxu0 }
0x73a1   : > { %v13809_v3 = vmax.f32 %v13806_v30, 0.0 }
0x73a3   : > { %16577 = vmatmul.mubr.msk.f32.vlgmr.msra.gmra.mrb[172].mxu0 %vm576_vm2, %v13809_v3 }
0x7476   : > { %v13883_v28 = vpop.f32.mrb[172].mxu0 }
0x7477   : > { %v13884_v32 = vadd.f32 %v13883_v28, %v13813_v58  ;;  %v16578_v17 = vpop.f32.mrb[173].mxu0 }
0x7479   : > { %v13887_v5 = vmax.f32 %v13884_v32, 0.0 }
0x747b   : > { %16588 = vmatmul.mubr.msk.f32.vlgmr.msra.gmra.mrb[162].mxu1 %vm576_vm2, %v13887_v5 }
0x747c   : > { %18511 = shalt.err (!%p18508_p3)
}
0x747d   : > { %s18512_s12 = scalar_lea.hbm %s21418_s22, 512  ;;  %s18516_s24 = scalar_lea.hbm %s21670_s1, 1024 }
0x747e   : > { %p18513_p4 = scmp.ne.s32.totalorder %s21418_s22, %s18512_s12  ;;  %p18517_p9 = scmp.lt.u32.totalorder %s21418_s22, %s21670_s1 }
0x747f   : > { %p18518_p10 = scmp.lt.u32.totalorder %s18516_s24, %s18512_s12  ;;  %p18520_p12 = scmp.lt.u32.totalorder %s18512_s12, %s21418_s22 }
0x7480   : > { %p18514_p7 = pnand %p18513_p4, %p18700_p5 }
0x7481   : > { %p18519_p11 = por %p18518_p10, %p18517_p9 }
0x7482   : > { %p18515_p8 = pneg %p18514_p7 }
0x7483   : > { %p18521_p13 = por %p18520_p12, %p18519_p11 }
0x7485   : > { %p18522_p0 = pnand %p18521_p13, %p18515_p8 }
0x7487   : > { %18525 = shalt.err (!%p18522_p0)
}
0x7488   : > { %s18596_s28 = smov 128   ;;  %s21672_s15 = sld [smem:[#allocation14_spill]]  ;;  %v14566_v40 = vld [vmem:[%s21665_s27 + $0x20] ss:$0 sm:$0xff] }
0x7489   : > { %17352 = dma.vmem_to_hbm [thread:$0]  (%p18700_p5), %s21421_s11, 512, %s21418_s22, %s21425_s9, %s18596_s28, %s18596_s28, %s21645_s13  }
0x748a   : > { %s21674_s8 = sld [smem:[#allocation29_spill]] }
0x748e   : > { %s21673_s30 = sshll.u32 %s21672_s15, 3 }
0x7490   : > { %s439_s7 = scalar_lea.vmem %s21674_s8, %s21673_s30 }
0x754e   : > { %v13961_v13 = vpop.f32.mrb[162].mxu1 }
0x754f   : > { %v13962_v42 = vadd.f32 %v14566_v40, %v13961_v13  ;;  %v16589_v53 = vpop.f32.mrb[163].mxu1 }
0x7551   : > { %13965 = vst [vmem:[%s439_s7] sm:$0xff] %v13962_v42 }
0x7552 PF: > { %s21675_s0 = sld [smem:[#allocation8_spill]]  ;;  %s21676_s26 = sld [smem:[#allocation5_spill]] }
0x7558   : > { %p17358_p1 = scmp.ge.s32.totalorder %s21675_s0, 2  ;;  %s14002_s4 = sand.u32 1, %s21676_s26  }
0x7559   : > { %s14003_s13 = scalar_lea.sflag [#allocation3], %s14002_s4 }
0x755a   : > { %p17355_p5 = pnand %p17358_p1, %p18704_p6 }
0x755c   : > { %18543 = dma.done.wait (!%p17355_p5), %s14003_s13, 512  }
0x755d   : > { %18545 = vsyncadd (!%p17355_p5), %s14003_s13, 4294966784  ;;  %s21678_s24 = sld [smem:[#allocation10_spill]]  ;;  %s21679_s21 = sld [smem:[#allocation6_spill]] }
0x755e   : > { %s21680_s22 = sld [smem:[#allocation7_spill]]  ;;  %s21681_s23 = sld [smem:[#allocation11_spill]] }
0x7563   : > { %p23_p2 = scmp.ge.s32.totalorder %s21678_s24, 4  }
0x7565   :  { %25 = sbr.rel (!%p23_p2) target bundleno = 17 (0x11), region = 120 }
0x756c   :  { %14015 = vsyncpa [#allocation3], 1 }
0x756d   :  { %14017 = vsyncpa [#allocation3 + $0x1], 1 }

</bundles_post_ra>
